<compile_context>
chip_gen: v6e
topology: v6e:2x2x1
jax: 0.10.0
libtpu: 0.0.40
codegen_flags: <defaults>
</compile_context>

<pallas_src>
import functools

import jax
import jax.numpy as jnp
from jax import lax
from jax.experimental import pallas as pl
from jax.experimental.pallas import tpu as pltpu

MID = 2048          # hidden width, hard-coded in the PyTorch module
TK = 1024           # K-tile for the 2048x2048 matmul (bf16 slab = 4 MB)
BN_EPS = 1e-5       # torch.nn.BatchNorm1d default eps
LEAKY_SLOPE = 0.01  # torch.nn.LeakyReLU default negative_slope


def _leaky_relu(h):
    return jnp.where(h >= 0, h, LEAKY_SLOPE * h)


def _batchnorm_two_group(h, gamma, beta, half):
    """Training-mode BatchNorm1d applied independently to rows [0:half) and
    [half:2*half) of h -- equivalent to running the PyTorch module twice
    (once on the empirical batch, once on the prior batch), each with its own
    batch statistics.  Implemented with masks (pure VPU/XLU work, no
    slice/concat relayouts).
    """
    row = lax.broadcasted_iota(jnp.int32, h.shape, 0)
    in_a = row < half
    inv_n = 1.0 / half

    h_a = jnp.where(in_a, h, 0.0)
    h_b = jnp.where(in_a, 0.0, h)
    mu_a = jnp.sum(h_a, axis=0, keepdims=True) * inv_n
    mu_b = jnp.sum(h_b, axis=0, keepdims=True) * inv_n
    mu = jnp.where(in_a, mu_a, mu_b)

    d = h - mu
    d_a = jnp.where(in_a, d, 0.0)
    d_b = jnp.where(in_a, 0.0, d)
    var_a = jnp.sum(d_a * d_a, axis=0, keepdims=True) * inv_n   # biased, as torch
    var_b = jnp.sum(d_b * d_b, axis=0, keepdims=True) * inv_n
    var = jnp.where(in_a, var_a, var_b)

    return d * lax.rsqrt(var + BN_EPS) * gamma + beta


def _mlp_kernel(x_ref, w0_ref, b0_ref, g0_ref, be0_ref,
                w1_ref, b1_ref, g1_ref, be1_ref,
                w2t_ref, b2_ref,
                out_ref,
                h0_ref, acc_ref, *, half):
    k = pl.program_id(0)
    tk = w1_ref.shape[0]

    # First grid step: layer0 + bn0 + leaky_relu; keep activations resident.
    @pl.when(k == 0)
    def _():
        h = jnp.dot(x_ref[...].astype(jnp.bfloat16), w0_ref[...],
                    preferred_element_type=jnp.float32) + b0_ref[...]
        h = _batchnorm_two_group(h, g0_ref[...], be0_ref[...], half)
        h0_ref[...] = _leaky_relu(h)
        acc_ref[...] = jnp.zeros_like(acc_ref)

    # Accumulate one K-slab of layer1: h0[:, k*tk:(k+1)*tk] @ W1[k*tk:(k+1)*tk, :]
    start = pl.multiple_of(k * tk, tk)
    h0_chunk = h0_ref[:, pl.ds(start, tk)].astype(jnp.bfloat16)
    acc_ref[...] += jnp.dot(h0_chunk, w1_ref[...],
                            preferred_element_type=jnp.float32)

    # Last grid step: bn1 + leaky_relu + layer2 (lane reduction) + sigmoid.
    @pl.when(k == pl.num_programs(0) - 1)
    def _():
        h1 = acc_ref[...] + b1_ref[...]
        h1 = _batchnorm_two_group(h1, g1_ref[...], be1_ref[...], half)
        h1 = _leaky_relu(h1)
        logit = jnp.sum(h1 * w2t_ref[...].astype(jnp.float32),
                        axis=-1, keepdims=True) + b2_ref[...]
        out_ref[...] = jax.nn.sigmoid(logit)


@jax.jit
def _fused_mlp_forward(params, x):
    """x is the stacked (2B, y_size) batch: rows [0:B) = Y, rows [B:2B) = prior."""
    B2, y_size = x.shape
    (w0, b0, g0, be0, w1, b1, g1, be1, w2t, b2) = params
    n_k = MID // TK

    full = lambda shape: pl.BlockSpec(shape, lambda k: (0, 0))

    flops = 2 * B2 * (y_size * MID + MID * MID + MID)
    bytes_accessed = (2 * (y_size * MID + MID * MID + MID)   # bf16 weights
                      + 4 * (6 * MID + 1)                    # f32 bias/bn params
                      + 4 * B2 * y_size + 4 * B2)            # input + output
    transcendentals = B2 + 4 * MID                           # sigmoid + rsqrt

    kernel = functools.partial(_mlp_kernel, half=B2 // 2)

    return pl.pallas_call(
        kernel,
        out_shape=jax.ShapeDtypeStruct((B2, 1), jnp.float32),
        grid_spec=pltpu.PrefetchScalarGridSpec(
            num_scalar_prefetch=0,
            grid=(n_k,),
            in_specs=[
                full((B2, y_size)),                          # x (f32)
                full((y_size, MID)),                         # W0 (bf16)
                full((1, MID)),                              # b0
                full((1, MID)),                              # gamma0
                full((1, MID)),                              # beta0
                pl.BlockSpec((TK, MID), lambda k: (k, 0)),   # W1 (bf16, K-tiled)
                full((1, MID)),                              # b1
                full((1, MID)),                              # gamma1
                full((1, MID)),                              # beta1
                full((1, MID)),                              # W2^T (bf16)
                full((1, 1)),                                # b2
            ],
            out_specs=pl.BlockSpec((B2, 1), lambda k: (0, 0)),
            scratch_shapes=[
                pltpu.VMEM((B2, MID), jnp.float32),          # h0 activations
                pltpu.VMEM((B2, MID), jnp.float32),          # layer1 accumulator
            ],
        ),
        compiler_params=pltpu.CompilerParams(
            dimension_semantics=("arbitrary",)),
        cost_estimate=pl.CostEstimate(
            flops=flops,
            transcendentals=transcendentals,
            bytes_accessed=bytes_accessed),
    )(x, w0, b0, g0, be0, w1, b1, g1, be1, w2t, b2)


def init_params(key, y_size):
    ks = jax.random.split(key, 3)
    # Weights stored in bf16 (streamed from HBM at half the bytes); everything
    # else (biases, BN affine params) stays f32.
    w0 = (jax.random.normal(ks[0], (y_size, MID), jnp.float32) * 0.05
          ).astype(jnp.bfloat16)
    b0 = jnp.zeros((1, MID), jnp.float32)
    g0 = jnp.ones((1, MID), jnp.float32)
    be0 = jnp.zeros((1, MID), jnp.float32)
    w1 = (jax.random.normal(ks[1], (MID, MID), jnp.float32) * 0.02
          ).astype(jnp.bfloat16)
    b1 = jnp.zeros((1, MID), jnp.float32)
    g1 = jnp.ones((1, MID), jnp.float32)
    be1 = jnp.zeros((1, MID), jnp.float32)
    w2t = (jax.random.normal(ks[2], (1, MID), jnp.float32) * 0.02
           ).astype(jnp.bfloat16)                             # layer2 weight, transposed
    b2 = jnp.zeros((1, 1), jnp.float32)
    return (w0, b0, g0, be0, w1, b1, g1, be1, w2t, b2)


def prior_discriminator_forward(params, M, Y, key):
    """Mirrors PriorDiscriminator.forward(M, Y).  M is unused (as in PyTorch)."""
    B = Y.shape[0]
    # TODO(synk): torch.normal RNG stream is not reproducible in JAX; we use
    # jax.random.normal for the prior sample (same distribution, same shape).
    prior_x = jax.random.normal(key, Y.shape, Y.dtype)

    # One fused kernel call: weights streamed once for both forwards.
    stacked = jnp.concatenate([Y, prior_x], axis=0)          # (2B, y_size)
    probs = _fused_mlp_forward(params, stacked)              # (2B, 1)
    empirical, prior = probs[:B], probs[B:]

    eps = 1e-6                                               # same eps as the PyTorch module
    encoder_loss = -jnp.mean(jnp.log(empirical + eps))
    disc_loss = (-jnp.mean(jnp.log(1.0 - empirical + eps))
                 - jnp.mean(jnp.log(prior + eps)))
    return dict(prior_encoder_loss=encoder_loss,
                prior_emp=jnp.mean(empirical),
                prior_fake=jnp.mean(prior),
                prior_discriminator_loss=disc_loss)


if __name__ == "__main__":
    key = jax.random.PRNGKey(0)
    k_param, k_y, k_m, k_prior = jax.random.split(key, 4)

    B, y_size = 8, 32
    Y = jax.random.normal(k_y, (B, y_size), jnp.float32)
    M = jax.random.normal(k_m, (B, 4, 16, 16), jnp.float32)   # unused, as in torch

    params = init_params(k_param, y_size)
    out = prior_discriminator_forward(params, M, Y, k_prior)
    out = jax.tree_util.tree_map(jax.block_until_ready, out)

    # sanity: outputs are finite scalars, probabilities land in (0, 1)
    for v in out.values():
        assert jnp.isfinite(v), "non-finite output"
    assert 0.0 < float(out["prior_emp"]) < 1.0
    assert 0.0 < float(out["prior_fake"]) < 1.0

    print("KERNEL_OK")
</pallas_src>

<mosaic_0001>
module attributes {stable_mosaic.version = 11 : i64} {
  func.func @_mlp_kernel(%arg0: i32, %arg1: memref<16x32xf32, #tpu.memory_space<vmem>>, %arg2: memref<32x2048xbf16, #tpu.memory_space<vmem>>, %arg3: memref<1x2048xf32, #tpu.memory_space<vmem>>, %arg4: memref<1x2048xf32, #tpu.memory_space<vmem>>, %arg5: memref<1x2048xf32, #tpu.memory_space<vmem>>, %arg6: memref<1024x2048xbf16, #tpu.memory_space<vmem>>, %arg7: memref<1x2048xf32, #tpu.memory_space<vmem>>, %arg8: memref<1x2048xf32, #tpu.memory_space<vmem>>, %arg9: memref<1x2048xf32, #tpu.memory_space<vmem>>, %arg10: memref<1x2048xbf16, #tpu.memory_space<vmem>>, %arg11: memref<1x1xf32, #tpu.memory_space<vmem>>, %arg12: memref<16x1xf32, #tpu.memory_space<vmem>>, %arg13: memref<16x2048xf32, #tpu.memory_space<vmem>>, %arg14: memref<16x2048xf32, #tpu.memory_space<vmem>>) attributes {dimension_semantics = [#tpu.dimension_semantics<arbitrary>], iteration_bounds = array<i64: 2>, scalar_prefetch = 0 : i64, scratch_operands = 2 : i64, tpu.core_type = #tpu.core_type<tc>, window_params = [{pipeline_mode = #tpu.pipeline_mode<synchronous>, transform_indices = @transform_0, window_bounds = array<i64: 16, 32>}, {pipeline_mode = #tpu.pipeline_mode<synchronous>, transform_indices = @transform_1, window_bounds = array<i64: 32, 2048>}, {pipeline_mode = #tpu.pipeline_mode<synchronous>, transform_indices = @transform_2, window_bounds = array<i64: 1, 2048>}, {pipeline_mode = #tpu.pipeline_mode<synchronous>, transform_indices = @transform_3, window_bounds = array<i64: 1, 2048>}, {pipeline_mode = #tpu.pipeline_mode<synchronous>, transform_indices = @transform_4, window_bounds = array<i64: 1, 2048>}, {transform_indices = @transform_5, window_bounds = array<i64: 1024, 2048>}, {pipeline_mode = #tpu.pipeline_mode<synchronous>, transform_indices = @transform_6, window_bounds = array<i64: 1, 2048>}, {pipeline_mode = #tpu.pipeline_mode<synchronous>, transform_indices = @transform_7, window_bounds = array<i64: 1, 2048>}, {pipeline_mode = #tpu.pipeline_mode<synchronous>, transform_indices = @transform_8, window_bounds = array<i64: 1, 2048>}, {pipeline_mode = #tpu.pipeline_mode<synchronous>, transform_indices = @transform_9, window_bounds = array<i64: 1, 2048>}, {pipeline_mode = #tpu.pipeline_mode<synchronous>, transform_indices = @transform_10, window_bounds = array<i64: 1, 1>}, {pipeline_mode = #tpu.pipeline_mode<synchronous>, transform_indices = @transform_11, window_bounds = array<i64: 16, 1>}]} {
    %c0_i32 = arith.constant 0 : i32
    %0 = arith.cmpi eq, %arg0, %c0_i32 : i32
    %1 = arith.extui %0 : i1 to i32
    %c0_i32_0 = arith.constant 0 : i32
    %2 = arith.cmpi ne, %1, %c0_i32_0 : i32
    scf.if %2 {
      %c0_8 = arith.constant 0 : index
      %c0_9 = arith.constant 0 : index
      %16 = vector.load %arg1[%c0_8, %c0_9] : memref<16x32xf32, #tpu.memory_space<vmem>>, vector<16x32xf32>
      %17 = arith.truncf %16 : vector<16x32xf32> to vector<16x32xbf16>
      %c0_10 = arith.constant 0 : index
      %c0_11 = arith.constant 0 : index
      %18 = vector.load %arg2[%c0_10, %c0_11] : memref<32x2048xbf16, #tpu.memory_space<vmem>>, vector<32x2048xbf16>
      %cst_12 = arith.constant dense<0.000000e+00> : vector<16x2048xf32>
      %19 = tpu.matmul %17, %18, %cst_12 {dimension_numbers = #tpu.dot_dimension_numbers<[1], [0], [0], [1], [0, 0, 1, 1], [], []>} : vector<16x32xbf16>, vector<32x2048xbf16>, vector<16x2048xf32> -> vector<16x2048xf32>
      %c0_13 = arith.constant 0 : index
      %c0_14 = arith.constant 0 : index
      %20 = vector.load %arg3[%c0_13, %c0_14] : memref<1x2048xf32, #tpu.memory_space<vmem>>, vector<1x2048xf32>
      %21 = vector.broadcast %20 : vector<1x2048xf32> to vector<16x2048xf32>
      %22 = arith.addf %19, %21 : vector<16x2048xf32>
      %c0_15 = arith.constant 0 : index
      %c0_16 = arith.constant 0 : index
      %23 = vector.load %arg4[%c0_15, %c0_16] : memref<1x2048xf32, #tpu.memory_space<vmem>>, vector<1x2048xf32>
      %c0_17 = arith.constant 0 : index
      %c0_18 = arith.constant 0 : index
      %24 = vector.load %arg5[%c0_17, %c0_18] : memref<1x2048xf32, #tpu.memory_space<vmem>>, vector<1x2048xf32>
      %25 = tpu.iota {dimensions = array<i32: 0>} : vector<16x2048xi32>
      %c8_i32 = arith.constant 8 : i32
      %26 = vector.broadcast %c8_i32 : i32 to vector<16x2048xi32>
      %27 = arith.cmpi slt, %25, %26 : vector<16x2048xi32>
      %cst_19 = arith.constant 0.000000e+00 : f32
      %28 = vector.broadcast %cst_19 : f32 to vector<16x2048xf32>
      %29 = arith.select %27, %22, %28 : vector<16x2048xi1>, vector<16x2048xf32>
      %cst_20 = arith.constant 0.000000e+00 : f32
      %30 = vector.broadcast %cst_20 : f32 to vector<16x2048xf32>
      %31 = arith.select %27, %30, %22 : vector<16x2048xi1>, vector<16x2048xf32>
      %cst_21 = arith.constant dense<0.000000e+00> : vector<2048xf32>
      %32 = vector.multi_reduction <add>, %29, %cst_21 [0] : vector<16x2048xf32> to vector<2048xf32>
      %33 = vector.shape_cast %32 : vector<2048xf32> to vector<1x2048xf32>
      %cst_22 = arith.constant 1.250000e-01 : f32
      %34 = vector.broadcast %cst_22 : f32 to vector<1x2048xf32>
      %35 = arith.mulf %33, %34 : vector<1x2048xf32>
      %cst_23 = arith.constant dense<0.000000e+00> : vector<2048xf32>
      %36 = vector.multi_reduction <add>, %31, %cst_23 [0] : vector<16x2048xf32> to vector<2048xf32>
      %37 = vector.shape_cast %36 : vector<2048xf32> to vector<1x2048xf32>
      %cst_24 = arith.constant 1.250000e-01 : f32
      %38 = vector.broadcast %cst_24 : f32 to vector<1x2048xf32>
      %39 = arith.mulf %37, %38 : vector<1x2048xf32>
      %40 = vector.shape_cast %35 : vector<1x2048xf32> to vector<1x2048xf32>
      %41 = vector.broadcast %40 : vector<1x2048xf32> to vector<16x2048xf32>
      %42 = vector.shape_cast %39 : vector<1x2048xf32> to vector<1x2048xf32>
      %43 = vector.broadcast %42 : vector<1x2048xf32> to vector<16x2048xf32>
      %44 = arith.select %27, %41, %43 : vector<16x2048xi1>, vector<16x2048xf32>
      %45 = arith.subf %22, %44 : vector<16x2048xf32>
      %cst_25 = arith.constant 0.000000e+00 : f32
      %46 = vector.broadcast %cst_25 : f32 to vector<16x2048xf32>
      %47 = arith.select %27, %45, %46 : vector<16x2048xi1>, vector<16x2048xf32>
      %cst_26 = arith.constant 0.000000e+00 : f32
      %48 = vector.broadcast %cst_26 : f32 to vector<16x2048xf32>
      %49 = arith.select %27, %48, %45 : vector<16x2048xi1>, vector<16x2048xf32>
      %50 = arith.mulf %47, %47 : vector<16x2048xf32>
      %cst_27 = arith.constant dense<0.000000e+00> : vector<2048xf32>
      %51 = vector.multi_reduction <add>, %50, %cst_27 [0] : vector<16x2048xf32> to vector<2048xf32>
      %52 = vector.shape_cast %51 : vector<2048xf32> to vector<1x2048xf32>
      %cst_28 = arith.constant 1.250000e-01 : f32
      %53 = vector.broadcast %cst_28 : f32 to vector<1x2048xf32>
      %54 = arith.mulf %52, %53 : vector<1x2048xf32>
      %55 = arith.mulf %49, %49 : vector<16x2048xf32>
      %cst_29 = arith.constant dense<0.000000e+00> : vector<2048xf32>
      %56 = vector.multi_reduction <add>, %55, %cst_29 [0] : vector<16x2048xf32> to vector<2048xf32>
      %57 = vector.shape_cast %56 : vector<2048xf32> to vector<1x2048xf32>
      %cst_30 = arith.constant 1.250000e-01 : f32
      %58 = vector.broadcast %cst_30 : f32 to vector<1x2048xf32>
      %59 = arith.mulf %57, %58 : vector<1x2048xf32>
      %60 = vector.shape_cast %54 : vector<1x2048xf32> to vector<1x2048xf32>
      %61 = vector.broadcast %60 : vector<1x2048xf32> to vector<16x2048xf32>
      %62 = vector.shape_cast %59 : vector<1x2048xf32> to vector<1x2048xf32>
      %63 = vector.broadcast %62 : vector<1x2048xf32> to vector<16x2048xf32>
      %64 = arith.select %27, %61, %63 : vector<16x2048xi1>, vector<16x2048xf32>
      %cst_31 = arith.constant 9.99999974E-6 : f32
      %65 = vector.broadcast %cst_31 : f32 to vector<16x2048xf32>
      %66 = arith.addf %64, %65 : vector<16x2048xf32>
      %67 = math.rsqrt %66 : vector<16x2048xf32>
      %68 = arith.mulf %45, %67 : vector<16x2048xf32>
      %69 = vector.broadcast %23 : vector<1x2048xf32> to vector<16x2048xf32>
      %70 = arith.mulf %68, %69 : vector<16x2048xf32>
      %71 = vector.broadcast %24 : vector<1x2048xf32> to vector<16x2048xf32>
      %72 = arith.addf %70, %71 : vector<16x2048xf32>
      %cst_32 = arith.constant 0.000000e+00 : f32
      %73 = vector.broadcast %cst_32 : f32 to vector<16x2048xf32>
      %74 = arith.cmpf oge, %72, %73 : vector<16x2048xf32>
      %cst_33 = arith.constant 0.00999999977 : f32
      %75 = vector.broadcast %cst_33 : f32 to vector<16x2048xf32>
      %76 = arith.mulf %75, %72 : vector<16x2048xf32>
      %77 = arith.select %74, %72, %76 : vector<16x2048xi1>, vector<16x2048xf32>
      %c0_34 = arith.constant 0 : index
      %c0_35 = arith.constant 0 : index
      %78 = vector.load %arg13[%c0_34, %c0_35] : memref<16x2048xf32, #tpu.memory_space<vmem>>, vector<16x2048xf32>
      tpu.vector_store %arg13[%c0_34, %c0_35], %77 {strides = array<i32>} : memref<16x2048xf32, #tpu.memory_space<vmem>>, vector<16x2048xf32>,
      %cst_36 = arith.constant 0.000000e+00 : f32
      %79 = vector.broadcast %cst_36 : f32 to vector<16x2048xf32>
      %c0_37 = arith.constant 0 : index
      %c0_38 = arith.constant 0 : index
      %80 = vector.load %arg14[%c0_37, %c0_38] : memref<16x2048xf32, #tpu.memory_space<vmem>>, vector<16x2048xf32>
      tpu.vector_store %arg14[%c0_37, %c0_38], %79 {strides = array<i32>} : memref<16x2048xf32, #tpu.memory_space<vmem>>, vector<16x2048xf32>,
    } else {
    }
    %c1024_i32 = arith.constant 1024 : i32
    %3 = arith.muli %arg0, %c1024_i32 : i32
    %4 = tpu.assume_multiple %3, 1024 : i32
    %c0 = arith.constant 0 : index
    %5 = arith.index_cast %4 : i32 to index
    %6 = vector.load %arg13[%c0, %5] : memref<16x2048xf32, #tpu.memory_space<vmem>>, vector<16x1024xf32>
    %7 = arith.truncf %6 : vector<16x1024xf32> to vector<16x1024xbf16>
    %c0_1 = arith.constant 0 : index
    %c0_2 = arith.constant 0 : index
    %8 = vector.load %arg14[%c0_1, %c0_2] : memref<16x2048xf32, #tpu.memory_space<vmem>>, vector<16x2048xf32>
    %c0_3 = arith.constant 0 : index
    %c0_4 = arith.constant 0 : index
    %9 = vector.load %arg6[%c0_3, %c0_4] : memref<1024x2048xbf16, #tpu.memory_space<vmem>>, vector<1024x2048xbf16>
    %cst = arith.constant dense<0.000000e+00> : vector<16x2048xf32>
    %10 = tpu.matmul %7, %9, %cst {dimension_numbers = #tpu.dot_dimension_numbers<[1], [0], [0], [1], [0, 0, 1, 1], [], []>} : vector<16x1024xbf16>, vector<1024x2048xbf16>, vector<16x2048xf32> -> vector<16x2048xf32>
    %11 = arith.addf %8, %10 : vector<16x2048xf32>
    %c0_5 = arith.constant 0 : index
    %c0_6 = arith.constant 0 : index
    %12 = vector.load %arg14[%c0_5, %c0_6] : memref<16x2048xf32, #tpu.memory_space<vmem>>, vector<16x2048xf32>
    tpu.vector_store %arg14[%c0_5, %c0_6], %11 {strides = array<i32>} : memref<16x2048xf32, #tpu.memory_space<vmem>>, vector<16x2048xf32>,
    %c1_i32 = arith.constant 1 : i32
    %13 = arith.cmpi eq, %arg0, %c1_i32 : i32
    %14 = arith.extui %13 : i1 to i32
    %c0_i32_7 = arith.constant 0 : i32
    %15 = arith.cmpi ne, %14, %c0_i32_7 : i32
    scf.if %15 {
      %c0_8 = arith.constant 0 : index
      %c0_9 = arith.constant 0 : index
      %16 = vector.load %arg14[%c0_8, %c0_9] : memref<16x2048xf32, #tpu.memory_space<vmem>>, vector<16x2048xf32>
      %c0_10 = arith.constant 0 : index
      %c0_11 = arith.constant 0 : index
      %17 = vector.load %arg7[%c0_10, %c0_11] : memref<1x2048xf32, #tpu.memory_space<vmem>>, vector<1x2048xf32>
      %18 = vector.broadcast %17 : vector<1x2048xf32> to vector<16x2048xf32>
      %19 = arith.addf %16, %18 : vector<16x2048xf32>
      %c0_12 = arith.constant 0 : index
      %c0_13 = arith.constant 0 : index
      %20 = vector.load %arg8[%c0_12, %c0_13] : memref<1x2048xf32, #tpu.memory_space<vmem>>, vector<1x2048xf32>
      %c0_14 = arith.constant 0 : index
      %c0_15 = arith.constant 0 : index
      %21 = vector.load %arg9[%c0_14, %c0_15] : memref<1x2048xf32, #tpu.memory_space<vmem>>, vector<1x2048xf32>
      %22 = tpu.iota {dimensions = array<i32: 0>} : vector<16x2048xi32>
      %c8_i32 = arith.constant 8 : i32
      %23 = vector.broadcast %c8_i32 : i32 to vector<16x2048xi32>
      %24 = arith.cmpi slt, %22, %23 : vector<16x2048xi32>
      %cst_16 = arith.constant 0.000000e+00 : f32
      %25 = vector.broadcast %cst_16 : f32 to vector<16x2048xf32>
      %26 = arith.select %24, %19, %25 : vector<16x2048xi1>, vector<16x2048xf32>
      %cst_17 = arith.constant 0.000000e+00 : f32
      %27 = vector.broadcast %cst_17 : f32 to vector<16x2048xf32>
      %28 = arith.select %24, %27, %19 : vector<16x2048xi1>, vector<16x2048xf32>
      %cst_18 = arith.constant dense<0.000000e+00> : vector<2048xf32>
      %29 = vector.multi_reduction <add>, %26, %cst_18 [0] : vector<16x2048xf32> to vector<2048xf32>
      %30 = vector.shape_cast %29 : vector<2048xf32> to vector<1x2048xf32>
      %cst_19 = arith.constant 1.250000e-01 : f32
      %31 = vector.broadcast %cst_19 : f32 to vector<1x2048xf32>
      %32 = arith.mulf %30, %31 : vector<1x2048xf32>
      %cst_20 = arith.constant dense<0.000000e+00> : vector<2048xf32>
      %33 = vector.multi_reduction <add>, %28, %cst_20 [0] : vector<16x2048xf32> to vector<2048xf32>
      %34 = vector.shape_cast %33 : vector<2048xf32> to vector<1x2048xf32>
      %cst_21 = arith.constant 1.250000e-01 : f32
      %35 = vector.broadcast %cst_21 : f32 to vector<1x2048xf32>
      %36 = arith.mulf %34, %35 : vector<1x2048xf32>
      %37 = vector.shape_cast %32 : vector<1x2048xf32> to vector<1x2048xf32>
      %38 = vector.broadcast %37 : vector<1x2048xf32> to vector<16x2048xf32>
      %39 = vector.shape_cast %36 : vector<1x2048xf32> to vector<1x2048xf32>
      %40 = vector.broadcast %39 : vector<1x2048xf32> to vector<16x2048xf32>
      %41 = arith.select %24, %38, %40 : vector<16x2048xi1>, vector<16x2048xf32>
      %42 = arith.subf %19, %41 : vector<16x2048xf32>
      %cst_22 = arith.constant 0.000000e+00 : f32
      %43 = vector.broadcast %cst_22 : f32 to vector<16x2048xf32>
      %44 = arith.select %24, %42, %43 : vector<16x2048xi1>, vector<16x2048xf32>
      %cst_23 = arith.constant 0.000000e+00 : f32
      %45 = vector.broadcast %cst_23 : f32 to vector<16x2048xf32>
      %46 = arith.select %24, %45, %42 : vector<16x2048xi1>, vector<16x2048xf32>
      %47 = arith.mulf %44, %44 : vector<16x2048xf32>
      %cst_24 = arith.constant dense<0.000000e+00> : vector<2048xf32>
      %48 = vector.multi_reduction <add>, %47, %cst_24 [0] : vector<16x2048xf32> to vector<2048xf32>
      %49 = vector.shape_cast %48 : vector<2048xf32> to vector<1x2048xf32>
      %cst_25 = arith.constant 1.250000e-01 : f32
      %50 = vector.broadcast %cst_25 : f32 to vector<1x2048xf32>
      %51 = arith.mulf %49, %50 : vector<1x2048xf32>
      %52 = arith.mulf %46, %46 : vector<16x2048xf32>
      %cst_26 = arith.constant dense<0.000000e+00> : vector<2048xf32>
      %53 = vector.multi_reduction <add>, %52, %cst_26 [0] : vector<16x2048xf32> to vector<2048xf32>
      %54 = vector.shape_cast %53 : vector<2048xf32> to vector<1x2048xf32>
      %cst_27 = arith.constant 1.250000e-01 : f32
      %55 = vector.broadcast %cst_27 : f32 to vector<1x2048xf32>
      %56 = arith.mulf %54, %55 : vector<1x2048xf32>
      %57 = vector.shape_cast %51 : vector<1x2048xf32> to vector<1x2048xf32>
      %58 = vector.broadcast %57 : vector<1x2048xf32> to vector<16x2048xf32>
      %59 = vector.shape_cast %56 : vector<1x2048xf32> to vector<1x2048xf32>
      %60 = vector.broadcast %59 : vector<1x2048xf32> to vector<16x2048xf32>
      %61 = arith.select %24, %58, %60 : vector<16x2048xi1>, vector<16x2048xf32>
      %cst_28 = arith.constant 9.99999974E-6 : f32
      %62 = vector.broadcast %cst_28 : f32 to vector<16x2048xf32>
      %63 = arith.addf %61, %62 : vector<16x2048xf32>
      %64 = math.rsqrt %63 : vector<16x2048xf32>
      %65 = arith.mulf %42, %64 : vector<16x2048xf32>
      %66 = vector.broadcast %20 : vector<1x2048xf32> to vector<16x2048xf32>
      %67 = arith.mulf %65, %66 : vector<16x2048xf32>
      %68 = vector.broadcast %21 : vector<1x2048xf32> to vector<16x2048xf32>
      %69 = arith.addf %67, %68 : vector<16x2048xf32>
      %cst_29 = arith.constant 0.000000e+00 : f32
      %70 = vector.broadcast %cst_29 : f32 to vector<16x2048xf32>
      %71 = arith.cmpf oge, %69, %70 : vector<16x2048xf32>
      %cst_30 = arith.constant 0.00999999977 : f32
      %72 = vector.broadcast %cst_30 : f32 to vector<16x2048xf32>
      %73 = arith.mulf %72, %69 : vector<16x2048xf32>
      %74 = arith.select %71, %69, %73 : vector<16x2048xi1>, vector<16x2048xf32>
      %c0_31 = arith.constant 0 : index
      %c0_32 = arith.constant 0 : index
      %75 = vector.load %arg10[%c0_31, %c0_32] : memref<1x2048xbf16, #tpu.memory_space<vmem>>, vector<1x2048xbf16>
      %76 = arith.extf %75 : vector<1x2048xbf16> to vector<1x2048xf32>
      %77 = vector.broadcast %76 : vector<1x2048xf32> to vector<16x2048xf32>
      %78 = arith.mulf %74, %77 : vector<16x2048xf32>
      %cst_33 = arith.constant dense<0.000000e+00> : vector<16xf32>
      %79 = vector.multi_reduction <add>, %78, %cst_33 [1] : vector<16x2048xf32> to vector<16xf32>
      %80 = vector.shape_cast %79 : vector<16xf32> to vector<16x1xf32>
      %c0_34 = arith.constant 0 : index
      %c0_35 = arith.constant 0 : index
      %81 = vector.load %arg11[%c0_34, %c0_35] : memref<1x1xf32, #tpu.memory_space<vmem>>, vector<1x1xf32>
      %82 = vector.broadcast %81 : vector<1x1xf32> to vector<16x1xf32>
      %83 = arith.addf %80, %82 : vector<16x1xf32>
      %84 = arith.negf %83 : vector<16x1xf32>
      %85 = math.exp %84 : vector<16x1xf32>
      %cst_36 = arith.constant 1.000000e+00 : f32
      %86 = vector.broadcast %cst_36 : f32 to vector<16x1xf32>
      %87 = arith.addf %86, %85 : vector<16x1xf32>
      %88 = arith.divf %86, %87 : vector<16x1xf32>
      %c0_37 = arith.constant 0 : index
      %c0_38 = arith.constant 0 : index
      %89 = vector.load %arg12[%c0_37, %c0_38] : memref<16x1xf32, #tpu.memory_space<vmem>>, vector<16x1xf32>
      tpu.vector_store %arg12[%c0_37, %c0_38], %88 {strides = array<i32>} : memref<16x1xf32, #tpu.memory_space<vmem>>, vector<16x1xf32>,
    } else {
    }
    return
  }
  func.func @transform_0(%arg0: i32) -> (i32, i32) {
    %c0_i32 = arith.constant 0 : i32
    %c0_i32_0 = arith.constant 0 : i32
    %c0_i32_1 = arith.constant 0 : i32
    return %c0_i32, %c0_i32_0 : i32, i32
  }
  func.func @transform_1(%arg0: i32) -> (i32, i32) {
    %c0_i32 = arith.constant 0 : i32
    %c0_i32_0 = arith.constant 0 : i32
    %c0_i32_1 = arith.constant 0 : i32
    return %c0_i32, %c0_i32_0 : i32, i32
  }
  func.func @transform_2(%arg0: i32) -> (i32, i32) {
    %c0_i32 = arith.constant 0 : i32
    %c0_i32_0 = arith.constant 0 : i32
    %c0_i32_1 = arith.constant 0 : i32
    return %c0_i32, %c0_i32_0 : i32, i32
  }
  func.func @transform_3(%arg0: i32) -> (i32, i32) {
    %c0_i32 = arith.constant 0 : i32
    %c0_i32_0 = arith.constant 0 : i32
    %c0_i32_1 = arith.constant 0 : i32
    return %c0_i32, %c0_i32_0 : i32, i32
  }
  func.func @transform_4(%arg0: i32) -> (i32, i32) {
    %c0_i32 = arith.constant 0 : i32
    %c0_i32_0 = arith.constant 0 : i32
    %c0_i32_1 = arith.constant 0 : i32
    return %c0_i32, %c0_i32_0 : i32, i32
  }
  func.func @transform_5(%arg0: i32) -> (i32, i32) {
    %c0_i32 = arith.constant 0 : i32
    %c0_i32_0 = arith.constant 0 : i32
    return %arg0, %c0_i32 : i32, i32
  }
  func.func @transform_6(%arg0: i32) -> (i32, i32) {
    %c0_i32 = arith.constant 0 : i32
    %c0_i32_0 = arith.constant 0 : i32
    %c0_i32_1 = arith.constant 0 : i32
    return %c0_i32, %c0_i32_0 : i32, i32
  }
  func.func @transform_7(%arg0: i32) -> (i32, i32) {
    %c0_i32 = arith.constant 0 : i32
    %c0_i32_0 = arith.constant 0 : i32
    %c0_i32_1 = arith.constant 0 : i32
    return %c0_i32, %c0_i32_0 : i32, i32
  }
  func.func @transform_8(%arg0: i32) -> (i32, i32) {
    %c0_i32 = arith.constant 0 : i32
    %c0_i32_0 = arith.constant 0 : i32
    %c0_i32_1 = arith.constant 0 : i32
    return %c0_i32, %c0_i32_0 : i32, i32
  }
  func.func @transform_9(%arg0: i32) -> (i32, i32) {
    %c0_i32 = arith.constant 0 : i32
    %c0_i32_0 = arith.constant 0 : i32
    %c0_i32_1 = arith.constant 0 : i32
    return %c0_i32, %c0_i32_0 : i32, i32
  }
  func.func @transform_10(%arg0: i32) -> (i32, i32) {
    %c0_i32 = arith.constant 0 : i32
    %c0_i32_0 = arith.constant 0 : i32
    %c0_i32_1 = arith.constant 0 : i32
    return %c0_i32, %c0_i32_0 : i32, i32
  }
  func.func @transform_11(%arg0: i32) -> (i32, i32) {
    %c0_i32 = arith.constant 0 : i32
    %c0_i32_0 = arith.constant 0 : i32
    %c0_i32_1 = arith.constant 0 : i32
    return %c0_i32, %c0_i32_0 : i32, i32
  }
}

</mosaic_0001>

<bundles_post_ra>
// kernel: _fused_mlp_forward.1
= control target key start
LH: loop header
LB: loop body
LE: loop exit
PB: predicated region body
PF: predicated region fallthrough
CT: control target
= control target key end

     0   :  { %s16386_s0 = inlined_call_operand.hbm [shape: f32[16,32], index: 0, kind: input, shape index: {}]   ;;  %s16387_s1 = inlined_call_operand.hbm [shape: bf16[32,2048], index: 1, kind: input, shape index: {}]   ;;  %s16388_s2 = inlined_call_operand.hbm [shape: f32[1,2048], index: 2, kind: input, shape index: {}]   ;;  %s16389_s3 = inlined_call_operand.hbm [shape: f32[1,2048], index: 3, kind: input, shape index: {}]   ;;  %s16390_s4 = inlined_call_operand.hbm [shape: f32[1,2048], index: 4, kind: input, shape index: {}]   ;;  %s16391_s5 = inlined_call_operand.hbm [shape: bf16[2048,2048], index: 5, kind: input, shape index: {}]   ;;  %s16392_s6 = inlined_call_operand.hbm [shape: f32[1,2048], index: 6, kind: input, shape index: {}]   ;;  %s16393_s7 = inlined_call_operand.hbm [shape: f32[1,2048], index: 7, kind: input, shape index: {}]   ;;  %s16394_s8 = inlined_call_operand.hbm [shape: f32[1,2048], index: 8, kind: input, shape index: {}]   ;;  %s16395_s9 = inlined_call_operand.hbm [shape: bf16[1,2048], index: 9, kind: input, shape index: {}]   ;;  %s16396_s10 = inlined_call_operand.<no memory space> [shape: f32[1,1], index: 10, kind: input, shape index: {}]   ;;  %s16397_s11 = inlined_call_operand.vmem [shape: f32[16,1], index: 11, kind: output, shape index: {}]  }
   0x1   :  { %v16_v0 = vstv %s16396_s10 }
   0x2   :  { %17 = vst [vmem:[#allocation4] sm:$0x1] %v16_v0 }
   0x3   :  { %18 = vsyncpa [#allocation6], 0 }
   0x4   :  { %19 = vsyncpa [#allocation8], 0 }
   0x5   :  { %20 = vsyncpa [#allocation11], 0 }
   0x6   :  { %21 = vsyncpa [#allocation14], 0 }
   0x7   :  { %23 = vsyncpa [#allocation14 + $0x1], 0 }
   0x8   :  { %24 = vsyncpa [#allocation17], 0 }
   0x9   :  { %25 = vsyncpa [#allocation20], 0  ;;  %s13615_s19 = smov 0   ;;  %s13617_s20 = smov 0  }
   0xa   :  { %s13619_s21 = smov 0   ;;  %s13621_s22 = smov 0  }
   0xb LB: > { %s13536_s10 = smov [#allocation7]   ;;  %s13636_s24 = sadd.s32 4294967295, %s13534_s22   ;;  %s13534_s22 = sphi %s13621_s22, %s16670_s22   ;;  %s13530_s21 = sphi %s13619_s21, %s16669_s21   ;;  %s13526_s20 = sphi %s13617_s20, %s16668_s20   ;;  %s13522_s19 = sphi %s13615_s19, %s16667_s19  }
   0xc   : > { %s318_s23 = sshll.u32 %s13536_s10, 4  ;;  %p11838_p0 = scmp.ge.s32.totalorder %s13534_s22, 1  ;;  %s319_s23 = int_to_ptr.vmem [resolvable:$true] %s318_s23 }
   0xd   : > { %p16398_p1 = scmp.eq.s32.totalorder %s13636_s24, 0  ;;  %p293_p2 = scmp.lt.s32.totalorder %s13534_s22, 3 }
   0xe   : > { %s13537_s26 = smov [#allocation10]   ;;  %s13538_s29 = smov [#allocation15]  }
   0xf   : > { %p13642_p4 = pnand %p11838_p0, %p293_p2  ;;  %s343_s27 = sshll.u32 %s13537_s26, 4  ;;  %s344_s27 = int_to_ptr.vmem [resolvable:$true] %s343_s27 }
  0x10   : > { %s365_s30 = sshll.u32 %s13538_s29, 4  ;;  %s13225_s13 = scalar_lea.vmem %s319_s23, 4096  ;;  %s13654_s30 = int_to_ptr.vmem [resolvable:$true] %s365_s30 }
  0x11   : > { %s16489_s25 = scalar_select %p13642_p4, 1, 0 }
  0x12   : > { %p12977_p5 = pneg %p13642_p4  ;;  %p13226_p8 = scmp.ne.s32.totalorder %s319_s23, %s13225_s13 }
  0x13   : > { %p13233_p11 = scmp.lt.s32.totalorder %s319_s23, %s319_s23  ;;  %p13234_p12 = scmp.lt.s32.totalorder %s13225_s13, %s13225_s13 }
  0x14   : > { %p13650_p6 = pnand %p12977_p5, %p16398_p1 }
  0x15   : > { %p13235_p13 = por %p13234_p12, %p13233_p11 }
  0x16   : > { %p13658_p7 = pneg %p13650_p6 }
  0x18   : > { %p13228_p9 = pnand %p13226_p8, %p13658_p7 }
  0x1a   : > { %p13229_p10 = pneg %p13228_p9 }
  0x1c   : > { %p13236_p0 = pnand %p13235_p13, %p13229_p10 }
  0x1e   : > { %13239 = shalt.err (!%p13236_p0)
}
  0x1f   : > { %s16400_s14 = smov 1024   ;;  %s16401_s15 = smov 64  }
  0x20   : > { %12983 = dma.hbm_to_vmem [thread:$0]  (!%p13650_p6), %s16387_s1, 4096, %s319_s23, [#allocation8], %s16400_s14, %s16400_s14, %s16401_s15  }
  0x21   : > { %s13251_s18 = scalar_lea.vmem %s344_s27, 256  ;;  %p13259_p9 = scmp.lt.s32.totalorder %s344_s27, %s344_s27 }
  0x22   : > { %p13252_p2 = scmp.ne.s32.totalorder %s344_s27, %s13251_s18  ;;  %p13260_p10 = scmp.lt.s32.totalorder %s13251_s18, %s13251_s18 }
  0x24   : > { %p13254_p5 = pnand %p13252_p2, %p13658_p7  ;;  %p13261_p11 = por %p13260_p10, %p13259_p9 }
  0x26   : > { %p13255_p8 = pneg %p13254_p5 }
  0x28   : > { %p13262_p12 = pnand %p13261_p11, %p13255_p8 }
  0x2a   : > { %13265 = shalt.err (!%p13262_p12)
}
  0x2b   : > { %12989 = dma.hbm_to_vmem [thread:$0]  (!%p13650_p6), %s16389_s3, 256, %s344_s27, [#allocation11]  }
  0x2c   : > { %s13277_s23 = scalar_lea.vmem %s13654_s30, 256  ;;  %p13285_p5 = scmp.lt.s32.totalorder %s13654_s30, %s13654_s30 }
  0x2d   : > { %p13278_p13 = scmp.ne.s32.totalorder %s13654_s30, %s13277_s23  ;;  %p13286_p9 = scmp.lt.s32.totalorder %s13277_s23, %s13277_s23 }
  0x2f   : > { %p13280_p0 = pnand %p13278_p13, %p13658_p7  ;;  %p13287_p8 = por %p13286_p9, %p13285_p5 }
  0x31   : > { %p13281_p2 = pneg %p13280_p0 }
  0x33   : > { %p13288_p10 = pnand %p13287_p8, %p13281_p2 }
  0x35   : > { %13291 = shalt.err (!%p13288_p10)
}
  0x36   : > { %12995 = dma.hbm_to_vmem [thread:$0]  (!%p13650_p6), %s16392_s6, 256, %s13654_s30, [#allocation14]  }
  0x37   : > { %s13541_s27 = smov [#allocation16]   ;;  %s13542_s17 = smov [#allocation5]  }
  0x38   : > { %s376_s16 = sshll.u32 %s13541_s27, 4  ;;  %s305_s18 = sshll.u32 %s13542_s17, 4  ;;  %s377_s16 = int_to_ptr.vmem [resolvable:$true] %s376_s16  ;;  %s306_s18 = int_to_ptr.vmem [resolvable:$true] %s305_s18 }
  0x39   : > { %s13303_s10 = scalar_lea.vmem %s377_s16, 256  ;;  %p13311_p0 = scmp.lt.s32.totalorder %s377_s16, %s377_s16 }
  0x3a   : > { %p13304_p11 = scmp.ne.s32.totalorder %s377_s16, %s13303_s10  ;;  %p13312_p2 = scmp.lt.s32.totalorder %s13303_s10, %s13303_s10 }
  0x3c   : > { %p13306_p12 = pnand %p13304_p11, %p13658_p7  ;;  %p13313_p5 = por %p13312_p2, %p13311_p0 }
  0x3e   : > { %p13307_p13 = pneg %p13306_p12 }
  0x40   : > { %p13314_p9 = pnand %p13313_p5, %p13307_p13 }
  0x42   : > { %13317 = shalt.err (!%p13314_p9)
}
  0x43   : > { %12998 = dma.hbm_to_vmem [thread:$0]  (!%p13650_p6), %s16393_s7, 256, %s377_s16, [#allocation17]  }
  0x44   : > { %s13329_s30 = scalar_lea.vmem %s306_s18, 256  ;;  %p13337_p11 = scmp.lt.s32.totalorder %s306_s18, %s306_s18 }
  0x45   : > { %p13330_p8 = scmp.ne.s32.totalorder %s306_s18, %s13329_s30  ;;  %p13338_p12 = scmp.lt.s32.totalorder %s13329_s30, %s13329_s30 }
  0x47   : > { %p13332_p10 = pnand %p13330_p8, %p13658_p7  ;;  %p13339_p1 = por %p13338_p12, %p13337_p11 }
  0x49   : > { %p13333_p3 = pneg %p13332_p10 }
  0x4b   : > { %p13340_p4 = pnand %p13339_p1, %p13333_p3 }
  0x4d   : > { %13343 = shalt.err (!%p13340_p4)
}
  0x4e   : > { %s13543_s29 = smov 128   ;;  %s13544_s13 = smov 8  }
  0x4f   : > { %12980 = dma.hbm_to_vmem [thread:$0]  (!%p13650_p6), %s16386_s0, 256, %s306_s18, [#allocation6], %s13543_s29, %s13543_s29, %s13544_s13  }
  0x50   : > { %s13545_s16 = smov [#allocation9]   ;;  %s13546_s26 = smov [#allocation12]  }
  0x51   : > { %s332_s10 = sshll.u32 %s13545_s16, 4  ;;  %s354_s23 = sshll.u32 %s13546_s26, 4  ;;  %s333_s10 = int_to_ptr.vmem [resolvable:$true] %s332_s10  ;;  %s355_s23 = int_to_ptr.vmem [resolvable:$true] %s354_s23 }
  0x52   : > { %s13355_s14 = scalar_lea.vmem %s333_s10, 256  ;;  %p13363_p3 = scmp.lt.s32.totalorder %s333_s10, %s333_s10 }
  0x53   : > { %p13356_p13 = scmp.ne.s32.totalorder %s333_s10, %s13355_s14  ;;  %p13364_p4 = scmp.lt.s32.totalorder %s13355_s14, %s13355_s14 }
  0x55   : > { %p13358_p0 = pnand %p13356_p13, %p13658_p7  ;;  %p13365_p2 = por %p13364_p4, %p13363_p3 }
  0x57   : > { %p13359_p1 = pneg %p13358_p0 }
  0x59   : > { %p13366_p5 = pnand %p13365_p2, %p13359_p1 }
  0x5b   : > { %13369 = shalt.err (!%p13366_p5)
}
  0x5c   : > { %12986 = dma.hbm_to_vmem [thread:$0]  (!%p13650_p6), %s16388_s2, 256, %s333_s10, [#allocation8]  }
  0x5d   : > { %s13381_s18 = scalar_lea.vmem %s355_s23, 256  ;;  %p13389_p11 = scmp.lt.s32.totalorder %s355_s23, %s355_s23 }
  0x5e   : > { %p13382_p9 = scmp.ne.s32.totalorder %s355_s23, %s13381_s18  ;;  %p13390_p12 = scmp.lt.s32.totalorder %s13381_s18, %s13381_s18 }
  0x60   : > { %p13384_p8 = pnand %p13382_p9, %p13658_p7  ;;  %p13391_p13 = por %p13390_p12, %p13389_p11 }
  0x62   : > { %p13385_p10 = pneg %p13384_p8 }
  0x64   : > { %p13392_p0 = pnand %p13391_p13, %p13385_p10 }
  0x66   : > { %13395 = shalt.err (!%p13392_p0)
}
  0x67   : > { %12992 = dma.hbm_to_vmem [thread:$0]  (!%p13650_p6), %s16390_s4, 256, %s355_s23, [#allocation11]  }
  0x68   : > { %s13547_s13 = smov [#allocation18]   ;;  %s13548_s16 = smov [#allocation19]  }
  0x69   : > { %s387_s17 = sshll.u32 %s13547_s13, 4  ;;  %s398_s10 = sshll.u32 %s13548_s16, 4  ;;  %s388_s17 = int_to_ptr.vmem [resolvable:$true] %s387_s17  ;;  %s399_s10 = int_to_ptr.vmem [resolvable:$true] %s398_s10 }
  0x6a   : > { %s13407_s26 = scalar_lea.vmem %s388_s17, 256  ;;  %p13415_p2 = scmp.lt.s32.totalorder %s388_s17, %s388_s17 }
  0x6b   : > { %p13408_p1 = scmp.ne.s32.totalorder %s388_s17, %s13407_s26  ;;  %p13416_p5 = scmp.lt.s32.totalorder %s13407_s26, %s13407_s26 }
  0x6d   : > { %p13410_p3 = pnand %p13408_p1, %p13658_p7  ;;  %p13417_p9 = por %p13416_p5, %p13415_p2 }
  0x6f   : > { %p13411_p4 = pneg %p13410_p3 }
  0x71   : > { %p13418_p8 = pnand %p13417_p9, %p13411_p4 }
  0x73   : > { %13421 = shalt.err (!%p13418_p8)
}
  0x74   : > { %13001 = dma.hbm_to_vmem [thread:$0]  (!%p13650_p6), %s16394_s8, 256, %s388_s17, [#allocation17]  }
  0x75   : > { %s13433_s23 = scalar_lea.vmem %s399_s10, 256  ;;  %p13441_p13 = scmp.lt.s32.totalorder %s399_s10, %s399_s10 }
  0x76   : > { %p13434_p10 = scmp.ne.s32.totalorder %s399_s10, %s13433_s23  ;;  %p13442_p0 = scmp.lt.s32.totalorder %s13433_s23, %s13433_s23 }
  0x78   : > { %p13436_p11 = pnand %p13434_p10, %p13658_p7  ;;  %p13443_p1 = por %p13442_p0, %p13441_p13 }
  0x7a   : > { %p13437_p12 = pneg %p13436_p11 }
  0x7c   : > { %p13444_p3 = pnand %p13443_p1, %p13437_p12 }
  0x7e   : > { %13447 = shalt.err (!%p13444_p3)
}
  0x7f   : > { %13004 = dma.hbm_to_vmem [thread:$0]  (!%p13650_p6), %s16395_s9, 256, %s399_s10, [#allocation20]  }
  0x80   : > { %s13734_s12 = sadd.s32 1, %s13534_s22   ;;  %s143_s29 = sadd.s32 1, %s13530_s21 }
  0x81   : > { %s140_s28 = ssub.s32 %s13534_s22, %s13734_s12  ;;  %p150_p4 = scmp.ne.s32.totalorder %s13530_s21, %s13526_s20 }
  0x82   : > { %p141_p7 = scmp.eq.s32.totalorder %s140_s28, 0  ;;  %p151_p2 = scmp.eq.s32.totalorder %s13534_s22, 0 }
  0x83   : > { %p156_p5 = scmp.ne.s32.totalorder %s13526_s20, %s13522_s19  ;;  %p16492_p8 = scmp.eq.s32.totalorder %s13636_s24, 0 }
  0x84   : > { %s13745_s13 = scalar_select %p141_p7, %s13530_s21, %s143_s29  }
  0x85   : > { %p152_p9 = por %p151_p2, %p150_p4  ;;  %p13749_p10 = por %p16492_p8, %p156_p5 }
  0x86   : > { %p13018_p11 = scmp.lt.s32.totalorder %s13534_s22, 2  ;;  %s412_s16 = sand.u32 1, %s13534_s22  }
  0x87   : > { %s16493_s17 = scalar_select %p13749_p10, 1, 0 }
  0x88   : > { %s414_s10 = sand.u32 1, %s13530_s21   ;;  %s12938_s30 = sshll.u32 %s13534_s22, 17 }
  0x89   : > { %s11849_s26 = sshll.u32 %s414_s10, 13  ;;  %s13760_s18 = scalar_lea.hbm %s16391_s5, %s12938_s30 }
  0x8a   : > { %s416_s19 = scalar_lea.vmem [#allocation13], %s11849_s26  ;;  %p13762_p6 = pnand %p13018_p11, %p152_p9 }
  0x8b   : > { %s424_s14 = sshll.u32 %s416_s19, 4  ;;  %s13768_s29 = scalar_lea.sflag [#allocation14], %s412_s16  ;;  %s13766_s14 = int_to_ptr.vmem [resolvable:$true] %s424_s14 }
  0x8c   : > { %s13448_s22 = scalar_lea.hbm %s13760_s18, 131072  ;;  %p13450_p13 = pneg %p13762_p6 }
  0x8d   : > { %p13449_p12 = scmp.ne.s32.totalorder %s13760_s18, %s13448_s22  ;;  %s13453_s26 = scalar_lea.hbm %s16391_s5, 262144 }
  0x8e   : > { %p13454_p3 = scmp.lt.s32.totalorder %s13760_s18, %s16391_s5  ;;  %p13455_p7 = scmp.lt.s32.totalorder %s13453_s26, %s13448_s22 }
  0x8f   : > { %p13451_p0 = pnand %p13450_p13, %p13449_p12 }
  0x90   : > { %p13456_p4 = por %p13455_p7, %p13454_p3 }
  0x91   : > { %p13452_p1 = pneg %p13451_p0 }
  0x93   : > { %p13457_p2 = pnand %p13456_p4, %p13452_p1 }
  0x95   : > { %13460 = shalt.err (!%p13457_p2)
}
  0x96   : > { %s13461_s16 = scalar_lea.vmem %s13766_s14, 131072  ;;  %s13549_s19 = smov [#allocation13]  }
  0x97   : > { %p13462_p5 = scmp.ne.s32.totalorder %s13766_s14, %s13461_s16  ;;  %s13466_s15 = sshll.u32 %s13549_s19, 4  ;;  %s13467_s15 = int_to_ptr.vmem [resolvable:$false] %s13466_s15 }
  0x98   : > { %s13468_s10 = scalar_lea.vmem %s13467_s15, 262144  ;;  %p13469_p11 = scmp.lt.s32.totalorder %s13766_s14, %s13467_s15 }
  0x99   : > { %p13464_p9 = pnand %p13462_p5, %p13450_p13  ;;  %p13470_p12 = scmp.lt.s32.totalorder %s13468_s10, %s13461_s16 }
  0x9b   : > { %p13465_p8 = pneg %p13464_p9  ;;  %p13471_p0 = por %p13470_p12, %p13469_p11 }
  0x9d   : > { %p13472_p10 = pnand %p13471_p0, %p13465_p8 }
  0x9f   : > { %13475 = shalt.err (!%p13472_p10)
}
  0xa0   : > { %s16495_s22 = smov 64   ;;  %s16496_s30 = smov 1024  }
  0xa1   : > { %13008 = dma.hbm_to_vmem [thread:$0]  (!%p13762_p6), %s13760_s18, 131072, %s13766_s14, %s13768_s29, %s16496_s30, %s16496_s30, %s16495_s22  }
  0xa2   : > { %p16497_p13 = scmp.ne.s32.totalorder %s16489_s25, 0 }
  0xa3   : > { %p16498_p1 = scmp.eq.s32.totalorder (!%p16497_p13), %s13636_s24, 0 }
  0xa4   : > { %436 = sbr.rel (%p16497_p13) target bundleno = 2315 (0x90b), region = 64 }
  0xa9   : > { %13493 = dma.done.wait (%p16498_p1), [#allocation6], 256   ;;  %p16499_p3 = pmov %p16498_p1 }
  0xaa   : > { %p16500_p10 = pmov %p16498_p1 }
  0xab   : > { %13495 = vsyncadd (%p16499_p3), [#allocation6], 4294967040 }
  0xac   : > { %13497 = dma.done.wait (%p16500_p10), [#allocation8], 4352   ;;  %p16501_p7 = pmov %p16498_p1 }
  0xad   : > { %p16502_p4 = pmov %p16498_p1 }
  0xae   : > { %13499 = vsyncadd (%p16501_p7), [#allocation8], 4294962944 }
  0xaf   : > { %13501 = dma.done.wait (%p16502_p4), [#allocation11], 512   ;;  %p16503_p6 = pmov %p16498_p1 }
  0xb0   : > { %s458_s25 = sand.u32 1, %s13636_s24   ;;  %s460_s15 = sand.u32 1, %s13526_s20  }
  0xb1   : > { %13503 = vsyncadd (%p16503_p6), [#allocation11], 4294966784  ;;  %s11859_s18 = sshll.u32 %s460_s15, 13  ;;  %s459_s14 = scalar_lea.sflag [#allocation14], %s458_s25 }
  0xb2   : > { %s13808_s28 = scalar_lea.vmem [#allocation13], %s11859_s18  ;;  %p16504_p2 = scmp.ne.s32.totalorder %s16493_s17, 0 }
  0xb4   : > { %13505 = dma.done.wait (%p16504_p2), %s459_s14, 131072  }
  0xb5   : > { %13507 = vsyncadd (%p16504_p2), %s459_s14, 4294836224  ;;  %p16505_p5 = pmov %p16498_p1 }
  0xb6   : > { %p16506_p9 = pmov %p16498_p1 }
  0xb7   : > { %13509 = dma.done.wait (%p16505_p5), [#allocation14], 256  }
  0xb8   : > { %13511 = vsyncadd (%p16506_p9), [#allocation14], 4294967040  ;;  %p16507_p8 = pmov %p16498_p1 }
  0xb9   : > { %p16508_p11 = pmov %p16498_p1 }
  0xba   : > { %13513 = dma.done.wait (%p16507_p8), [#allocation17], 512  }
  0xbb   : > { %13515 = vsyncadd (%p16508_p11), [#allocation17], 4294966784  ;;  %p16509_p12 = pmov %p16498_p1 }
  0xbc   : > { %p16510_p0 = pmov %p16498_p1 }
  0xbd   : > { %13517 = dma.done.wait (%p16509_p12), [#allocation20], 256  }
  0xbe   : > { %13519 = vsyncadd (%p16510_p0), [#allocation20], 4294967040  ;;  %p16511_p13 = scmp.ne.s32.totalorder %s13636_s24, 0 }
  0xc0   : > { %517 = sbr.rel (%p16511_p13) target bundleno = 644 (0x284), region = 108 }
  0xc5   : > { %v537_v1 = vld [vmem:[#allocation7 + $0x80] sm:$0xff]  ;;  %v538_v3 = vld [vmem:[#allocation7 + $0x88] sm:$0xff]  ;;  %v13550_v9 = vmov 0   ;;  %v518_v16 = vld [vmem:[#allocation5] sm:$0xff]  ;;  %vm797_vm0 = vcmask 261120  }
  0xc6   : > { %v545_v2 = vld [vmem:[#allocation7 + $0xc0] sm:$0xff]  ;;  %v546_v5 = vld [vmem:[#allocation7 + $0xc8] sm:$0xff]  ;;  %833 = vmatprep.mubr.bf16.mxu0 %v13550_v9  ;;  %876 = vmatprep.mubr.bf16.mxu1 %v13550_v9  ;;  %v539_v17 = vld [vmem:[#allocation7 + $0x90] sm:$0xff] }
  0xc7   : > { %v11882_v4 = vcombine.high %v537_v1, %v545_v2  ;;  %v11881_v6 = vcombine.low %v537_v1, %v545_v2  ;;  %v521_v7 = vld [vmem:[#allocation7] sm:$0xff]  ;;  %v11884_v10 = vcombine.high %v538_v3, %v546_v5  ;;  %v11883_v11 = vcombine.low %v538_v3, %v546_v5  ;;  %v522_v13 = vld [vmem:[#allocation7 + $0x8] sm:$0xff]  ;;  %v547_v18 = vld [vmem:[#allocation7 + $0xd0] sm:$0xff] }
  0xc8   : > { %v529_v8 = vld [vmem:[#allocation7 + $0x40] sm:$0xff]  ;;  %v530_v14 = vld [vmem:[#allocation7 + $0x48] sm:$0xff]  ;;  %v519_v20 = vld [vmem:[#allocation5 + $0x8] sm:$0xff]  ;;  %v11886_v24 = vcombine.high %v539_v17, %v547_v18  ;;  %v11885_v31 = vcombine.low %v539_v17, %v547_v18  ;;  %v557_v5 = vlaneseq }
  0xc9   : > { %v11866_v12 = vcombine.high %v521_v7, %v529_v8  ;;  %813 = vmatprep.subr.bf16.mxu0 %v11882_v4  ;;  %v11868_v15 = vcombine.high %v522_v13, %v530_v14  ;;  %856 = vmatprep.subr.bf16.mxu1 %v11884_v10  ;;  %v11865_v19 = vcombine.low %v521_v7, %v529_v8  ;;  %v540_v21 = vld [vmem:[#allocation7 + $0x98] sm:$0xff]  ;;  %v523_v26 = vld [vmem:[#allocation7 + $0x10] sm:$0xff]  ;;  %v541_v35 = vld [vmem:[#allocation7 + $0xa0] sm:$0xff] }
  0xca   : > { %814 = vmatpush1.bf16.msra.mxu0 %v11881_v6  ;;  %v548_v22 = vld [vmem:[#allocation7 + $0xd8] sm:$0xff]  ;;  %857 = vmatpush1.bf16.msra.mxu1 %v11883_v11  ;;  %v11867_v23 = vcombine.low %v522_v13, %v530_v14  ;;  %v531_v27 = vld [vmem:[#allocation7 + $0x50] sm:$0xff]  ;;  %v13830_v28 = vpack.c.bf16 %v519_v20, %v518_v16  ;;  %v549_v36 = vld [vmem:[#allocation7 + $0xe0] sm:$0xff]  ;;  %v558_v6 = vshrl.u32 %v557_v5, 7 }
  0xcb   : > { %815 = vmatprep.subr.bf16.mxu0 %v11866_v12  ;;  %858 = vmatprep.subr.bf16.mxu1 %v11868_v15  ;;  %v11888_v25 = vcombine.high %v540_v21, %v548_v22  ;;  %v524_v29 = vld [vmem:[#allocation7 + $0x18] sm:$0xff]  ;;  %v11887_v32 = vcombine.low %v540_v21, %v548_v22  ;;  %v11870_v33 = vcombine.high %v523_v26, %v531_v27  ;;  %v542_v37 = vld [vmem:[#allocation7 + $0xa8] sm:$0xff]  ;;  %v525_v43 = vld [vmem:[#allocation7 + $0x20] sm:$0xff] }
  0xcc   : > { %v532_v30 = vld [vmem:[#allocation7 + $0x58] sm:$0xff]  ;;  %v550_v38 = vld [vmem:[#allocation7 + $0xe8] sm:$0xff]  ;;  %v11869_v39 = vcombine.low %v523_v26, %v531_v27  ;;  %v11890_v41 = vcombine.high %v541_v35, %v549_v36  ;;  %v533_v44 = vld [vmem:[#allocation7 + $0x60] sm:$0xff]  ;;  %v11889_v47 = vcombine.low %v541_v35, %v549_v36  ;;  %v13854_v7 = vsub.s32 0, %v558_v6 }
  0xcd   : > { %v11872_v34 = vcombine.high %v524_v29, %v532_v30  ;;  %v11871_v40 = vcombine.low %v524_v29, %v532_v30  ;;  %v11892_v42 = vcombine.high %v542_v37, %v550_v38  ;;  %v526_v45 = vld [vmem:[#allocation7 + $0x28] sm:$0xff]  ;;  %v11891_v48 = vcombine.low %v542_v37, %v550_v38  ;;  %v543_v51 = vld [vmem:[#allocation7 + $0xb0] sm:$0xff]  ;;  %v544_v53 = vld [vmem:[#allocation7 + $0xb8] sm:$0xff] }
  0xce   : > { %816 = vmatpush1.bf16.msra.mxu0 %v11865_v19  ;;  %859 = vmatpush1.bf16.msra.mxu1 %v11867_v23  ;;  %v534_v46 = vld [vmem:[#allocation7 + $0x68] sm:$0xff]  ;;  %v11874_v49 = vcombine.high %v525_v43, %v533_v44  ;;  %v551_v52 = vld [vmem:[#allocation7 + $0xf0] sm:$0xff]  ;;  %v552_v54 = vld [vmem:[#allocation7 + $0xf8] sm:$0xff]  ;;  %v11873_v55 = vcombine.low %v525_v43, %v533_v44  ;;  %v13856_v8 = vsub.s32 2, %v558_v6  ;;  %v13858_v10 = vsub.s32 1, %v558_v6 }
  0xcf   : > { %899 = vmatprep.subr.bf16.mxu0 %v11886_v24  ;;  %942 = vmatprep.subr.bf16.mxu1 %v11888_v25  ;;  %v11876_v50 = vcombine.high %v526_v45, %v534_v46  ;;  %v11875_v56 = vcombine.low %v526_v45, %v534_v46  ;;  %v11894_v57 = vcombine.high %v543_v51, %v551_v52  ;;  %v527_v59 = vld [vmem:[#allocation7 + $0x30] sm:$0xff]  ;;  %v528_v61 = vld [vmem:[#allocation7 + $0x38] sm:$0xff]  ;;  %v13860_v11 = vsub.s32 3, %v558_v6  ;;  %v553_v12 = vld [vmem:[#allocation9] sm:$0xff] }
  0xd0   : > { %v11896_v58 = vcombine.high %v544_v53, %v552_v54  ;;  %v535_v60 = vld [vmem:[#allocation7 + $0x70] sm:$0xff]  ;;  %v536_v62 = vld [vmem:[#allocation7 + $0x78] sm:$0xff]  ;;  %v11893_v63 = vcombine.low %v543_v51, %v551_v52  ;;  %v11895_v0 = vcombine.low %v544_v53, %v552_v54  ;;  %16512 = vst [vmem:[#allocation28_spill] sm:$0xff] %v13856_v8  ;;  %16513 = vst [vmem:[#allocation29_spill] sm:$0xff] %v13858_v10  ;;  %v13864_v13 = vsub.s32 6, %v558_v6 }
  0xd1   : > { %11897 = vmatmul.mubr.msk.bf16.vlgmr.msra.gmra.mxu0 %vm797_vm0, %v13830_v28  ;;  %11898 = vmatmul.mubr.msk.bf16.vlgmr.msra.gmra.mxu1 %vm797_vm0, %v13830_v28  ;;  %v11878_v1 = vcombine.high %v527_v59, %v535_v60  ;;  %v11880_v2 = vcombine.high %v528_v61, %v536_v62  ;;  %v11877_v3 = vcombine.low %v527_v59, %v535_v60  ;;  %v13866_v14 = vsub.s32 5, %v558_v6  ;;  %v1145_v16 = vld [vmem:[#allocation10] sm:$0xff]  ;;  %v1147_v17 = vld [vmem:[#allocation12] sm:$0xff]  ;;  %v13886_v26 = vld [vmem:[#allocation9 + $0x8] sm:$0xff] }
  0xd2   : > { %900 = vmatpush1.bf16.msra.mxu0 %v11885_v31  ;;  %943 = vmatpush1.bf16.msra.mxu1 %v11887_v32  ;;  %v11879_v4 = vcombine.low %v528_v61, %v536_v62  ;;  %16514 = vst [vmem:[#allocation30_spill] sm:$0xff] %v13860_v11  ;;  %v13868_v15 = vsub.s32 7, %v558_v6  ;;  %v560_v18 = vrot.slane %v553_v12, %v13854_v7 }
  0xd3   : > { %901 = vmatprep.subr.bf16.mxu0 %v11870_v33  ;;  %944 = vmatprep.subr.bf16.mxu1 %v11872_v34  ;;  %v568_v19 = vrot.slane %v553_v12, %v13856_v8  ;;  %v564_v20 = vrot.slane %v553_v12, %v13858_v10  ;;  %v572_v21 = vrot.slane %v553_v12, %v13860_v11 }
  0xd4   : > { %919 = vmatprep.mubr.bf16.mxu0 %v13550_v9  ;;  %962 = vmatprep.mubr.bf16.mxu1 %v13550_v9  ;;  %16515 = vst [vmem:[#allocation31_spill] sm:$0xff] %v13868_v15  ;;  %v13878_v23 = vrot.slane %v553_v12, %v13864_v13  ;;  %v13881_v24 = vrot.slane %v553_v12, %v13866_v14 }
  0xd5   : > { %v13884_v25 = vrot.slane %v553_v12, %v13868_v15  ;;  %v13889_v27 = vrot.slane %v1145_v16, %v13854_v7  ;;  %v13895_v29 = vrot.slane %v1145_v16, %v13856_v8  ;;  %v13898_v30 = vrot.slane %v1147_v17, %v13856_v8 }
  0xd6   : > { %902 = vmatpush1.bf16.msra.mxu0 %v11869_v39  ;;  %945 = vmatpush1.bf16.msra.mxu1 %v11871_v40  ;;  %v13901_v32 = vrot.slane %v1145_v16, %v13858_v10  ;;  %v13904_v33 = vrot.slane %v1147_v17, %v13858_v10  ;;  %v13907_v34 = vrot.slane %v1145_v16, %v13860_v11 }
  0xd7   : > { %985 = vmatprep.subr.bf16.mxu0 %v11890_v41  ;;  %1028 = vmatprep.subr.bf16.mxu1 %v11892_v42  ;;  %v13910_v35 = vrot.slane %v1147_v17, %v13860_v11  ;;  %v13916_v38 = vrot.slane %v13886_v26, %v13854_v7  ;;  %v13920_v39 = vrot.slane %v13886_v26, %v13856_v8 }
  0xd8   : > { %v13924_v40 = vrot.slane %v13886_v26, %v13858_v10  ;;  %v13932_v44 = vrot.slane %v1145_v16, %v13864_v13  ;;  %v13936_v45 = vrot.slane %v13886_v26, %v13860_v11  ;;  %v13951_v54 = vrot.slane %v1145_v16, %v13866_v14 }
  0xd9   : > { %11899 = vmatmul.mubr.msk.bf16.vlgmr.msra.gmra.mxu0 %vm797_vm0, %v13830_v28  ;;  %11900 = vmatmul.mubr.msk.bf16.vlgmr.msra.gmra.mxu1 %vm797_vm0, %v13830_v28  ;;  %v13961_v60 = vrot.slane %v1147_v17, %v13866_v14 }
  0xda   : > { %986 = vmatpush1.bf16.msra.mxu0 %v11889_v47  ;;  %1029 = vmatpush1.bf16.msra.mxu1 %v11891_v48  ;;  %16516 = vst [vmem:[#allocation32_spill] sm:$0xff] %v13932_v44  ;;  %16519 = vst [vmem:[#allocation35_spill] sm:$0xff] %v13951_v54 }
  0xdb   : > { %987 = vmatprep.subr.bf16.mxu0 %v11874_v49  ;;  %1030 = vmatprep.subr.bf16.mxu1 %v11876_v50  ;;  %v13945_v50 = vrot.slane %v1147_v17, %v13864_v13  ;;  %16521 = vst [vmem:[#allocation37_spill] sm:$0xff] %v13961_v60 }
  0xdc   : > { %1005 = vmatprep.mubr.bf16.mxu0 %v13550_v9  ;;  %1048 = vmatprep.mubr.bf16.mxu1 %v13550_v9 }
  0xdd   : > { %16518 = vst [vmem:[#allocation34_spill] sm:$0xff] %v13945_v50 }
  0xde   : > { %988 = vmatpush1.bf16.msra.mxu0 %v11873_v55  ;;  %1031 = vmatpush1.bf16.msra.mxu1 %v11875_v56  ;;  %v13954_v55 = vrot.slane %v1145_v16, %v13868_v15 }
  0xdf   : > { %1071 = vmatprep.subr.bf16.mxu0 %v11894_v57  ;;  %1114 = vmatprep.subr.bf16.mxu1 %v11896_v58 }
  0xe0   : > { %16520 = vst [vmem:[#allocation36_spill] sm:$0xff] %v13954_v55 }
  0xe1   : > { %11901 = vmatmul.mubr.msk.bf16.vlgmr.msra.gmra.mxu0 %vm797_vm0, %v13830_v28  ;;  %11902 = vmatmul.mubr.msk.bf16.vlgmr.msra.gmra.mxu1 %vm797_vm0, %v13830_v28 }
  0xe2   : > { %1072 = vmatpush1.bf16.msra.mxu0 %v11893_v63  ;;  %1115 = vmatpush1.bf16.msra.mxu1 %v11895_v0 }
  0xe3   : > { %1073 = vmatprep.subr.bf16.mxu0 %v11878_v1  ;;  %1116 = vmatprep.subr.bf16.mxu1 %v11880_v2  ;;  %v13968_v1 = vrot.slane %v1147_v17, %v13868_v15 }
  0xe4   : > { %1091 = vmatprep.mubr.bf16.mxu0 %v13550_v9  ;;  %1134 = vmatprep.mubr.bf16.mxu1 %v13550_v9  ;;  %v13862_v9 = vsub.s32 4, %v558_v6 }
  0xe5   : > { %16522 = vst [vmem:[#allocation38_spill] sm:$0xff] %v13968_v1 }
  0xe6   : > { %1074 = vmatpush1.bf16.msra.mxu0 %v11877_v3  ;;  %1117 = vmatpush1.bf16.msra.mxu1 %v11879_v4  ;;  %v13875_v22 = vrot.slane %v553_v12, %v13862_v9  ;;  %v13929_v43 = vrot.slane %v1145_v16, %v13862_v9  ;;  %v13942_v49 = vrot.slane %v1147_v17, %v13862_v9 }
  0xe8   : > { %16517 = vst [vmem:[#allocation33_spill] sm:$0xff] %v13942_v49 }
  0xe9   : > { %11903 = vmatmul.mubr.msk.bf16.vlgmr.msra.gmra.mxu0 %vm797_vm0, %v13830_v28  ;;  %11904 = vmatmul.mubr.msk.bf16.vlgmr.msra.gmra.mxu1 %vm797_vm0, %v13830_v28  ;;  %v13892_v28 = vrot.slane %v1147_v17, %v13854_v7 }
 0x191   : > { %v835_v31 = vpop.f32.mrf.mxu0  ;;  %v878_v37 = vpop.f32.mrf.mxu1 }
 0x192   : > { %v13912_v36 = vadd.f32 %v835_v31, %v560_v18  ;;  %v13926_v41 = vadd.f32 %v878_v37, %v568_v19 }
 0x193   : > { %v837_v42 = vpop.f32.mrf.mxu0  ;;  %v880_v48 = vpop.f32.mrf.mxu1 }
 0x194   : > { %v1219_v46 = vrot.slane %v13912_v36, 4  ;;  %v13939_v47 = vadd.f32 %v837_v42, %v564_v20  ;;  %v1233_v51 = vrot.slane %v13926_v41, 4  ;;  %v13948_v52 = vadd.f32 %v880_v48, %v572_v21 }
 0x195   : > { %v839_v53 = vpop.f32.mrf.mxu0  ;;  %v882_v59 = vpop.f32.mrf.mxu1 }
 0x196   : > { %v1220_v56 = vadd.f32 %v1219_v46, %v13912_v36  ;;  %v1226_v57 = vrot.slane %v13939_v47, 4  ;;  %v13958_v58 = vadd.f32 %v839_v53, %v560_v18  ;;  %v1234_v61 = vadd.f32 %v1233_v51, %v13926_v41 }
 0x197   : > { %v1240_v62 = vrot.slane %v13948_v52, 4  ;;  %v13965_v63 = vadd.f32 %v882_v59, %v568_v19  ;;  %v841_v0 = vpop.f32.mrf.mxu0  ;;  %v884_v6 = vpop.f32.mrf.mxu1 }
 0x198   : > { %v1221_v2 = vrot.slane %v1220_v56, 2  ;;  %v1227_v3 = vadd.f32 %v1226_v57, %v13939_v47  ;;  %v1347_v4 = vrot.slane %v13958_v58, 4  ;;  %v13972_v5 = vadd.f32 %v841_v0, %v564_v20 }
 0x199   : > { %v1235_v12 = vrot.slane %v1234_v61, 2  ;;  %v1241_v16 = vadd.f32 %v1240_v62, %v13948_v52  ;;  %v1361_v18 = vrot.slane %v13965_v63, 4  ;;  %v13976_v31 = vadd.f32 %v884_v6, %v572_v21 }
 0x19a   : > { %v1222_v19 = vadd.f32 %v1221_v2, %v1220_v56  ;;  %v1228_v37 = vrot.slane %v1227_v3, 2  ;;  %v1348_v17 = vadd.f32 %v1347_v4, %v13958_v58  ;;  %v1354_v42 = vrot.slane %v13972_v5, 4 }
 0x19b   : > { %v1236_v46 = vadd.f32 %v1235_v12, %v1234_v61  ;;  %v1242_v48 = vrot.slane %v1241_v16, 2  ;;  %v1362_v51 = vadd.f32 %v1361_v18, %v13965_v63  ;;  %v1368_v20 = vrot.slane %v13976_v31, 4 }
 0x19c   : > { %v1223_v53 = vrot.slane %v1222_v19, 1  ;;  %v1229_v57 = vadd.f32 %v1228_v37, %v1227_v3  ;;  %v1349_v59 = vrot.slane %v1348_v17, 2  ;;  %v1355_v62 = vadd.f32 %v1354_v42, %v13972_v5 }
 0x19d   : > { %v1237_v0 = vrot.slane %v1236_v46, 1  ;;  %v1243_v21 = vadd.f32 %v1242_v48, %v1241_v16  ;;  %v1363_v6 = vrot.slane %v1362_v51, 2  ;;  %v1369_v56 = vadd.f32 %v1368_v20, %v13976_v31 }
 0x19e   : > { %v1224_v2 = vadd.f32 %v1223_v53, %v1222_v19  ;;  %v1230_v4 = vrot.slane %v1229_v57, 1  ;;  %v1350_v15 = vadd.f32 %v1349_v59, %v1348_v17  ;;  %v1356_v11 = vrot.slane %v1355_v62, 2 }
 0x19f   : > { %v1238_v61 = vadd.f32 %v1237_v0, %v1236_v46  ;;  %v1244_v12 = vrot.slane %v1243_v21, 1  ;;  %v1364_v10 = vadd.f32 %v1363_v6, %v1362_v51  ;;  %v1370_v18 = vrot.slane %v1369_v56, 2 }
 0x1a0   : > { %v1330_v8 = vmul.f32 0.125, %v1224_v2  ;;  %v1231_v1 = vadd.f32 %v1230_v4, %v1229_v57  ;;  %v1351_v60 = vrot.slane %v1350_v15, 1  ;;  %v1357_v3 = vadd.f32 %v1356_v11, %v1355_v62 }
 0x1a1   : > { %v1332_v37 = vmul.f32 0.125, %v1238_v61  ;;  %v1245_v55 = vadd.f32 %v1244_v12, %v1243_v21  ;;  %v1365_v42 = vrot.slane %v1364_v10, 1  ;;  %v1371_v54 = vadd.f32 %v1370_v18, %v1369_v56 }
 0x1a2   : > { %v13985_v16 = vsub.f32 %v13912_v36, %v1330_v8  ;;  %v1331_v48 = vmul.f32 0.125, %v1231_v1  ;;  %v1352_v19 = vadd.f32 %v1351_v60, %v1350_v15  ;;  %v1358_v20 = vrot.slane %v1357_v3, 1 }
 0x1a3   : > { %v13988_v17 = vsub.f32 %v13926_v41, %v1332_v37  ;;  %v1333_v46 = vmul.f32 0.125, %v1245_v55  ;;  %v1366_v51 = vadd.f32 %v1365_v42, %v1364_v10  ;;  %v1372_v53 = vrot.slane %v1371_v54, 1 }
 0x1a4   : > { %v1602_v57 = vmul.f32 %v13985_v16, %v13985_v16  ;;  %v13993_v11 = vsub.f32 %v13939_v47, %v1331_v48  ;;  %v1458_v59 = vmul.f32 0.125, %v1352_v19  ;;  %v1359_v62 = vadd.f32 %v1358_v20, %v1357_v3 }
 0x1a5   : > { %v1604_v8 = vmul.f32 %v13988_v17, %v13988_v17  ;;  %v13998_v15 = vsub.f32 %v13948_v52, %v1333_v46  ;;  %v1460_v36 = vmul.f32 0.125, %v1366_v51  ;;  %v1373_v41 = vadd.f32 %v1372_v53, %v1371_v54 }
 0x1a6   : > { %v1635_v60 = vrot.slane %v1602_v57, 4  ;;  %v1603_v10 = vmul.f32 %v13993_v11, %v13993_v11  ;;  %v14003_v55 = vsub.f32 %v13958_v58, %v1458_v59  ;;  %v1459_v1 = vmul.f32 0.125, %v1359_v62 }
 0x1a7   : > { %v1649_v47 = vrot.slane %v1604_v8, 4  ;;  %v1605_v0 = vmul.f32 %v13998_v15, %v13998_v15  ;;  %v14008_v21 = vsub.f32 %v13965_v63, %v1460_v36  ;;  %v1461_v6 = vmul.f32 0.125, %v1373_v41 }
 0x1a8   : > { %v1636_v52 = vadd.f32 %v1635_v60, %v1602_v57  ;;  %v1642_v56 = vrot.slane %v1603_v10, 4  ;;  %v1778_v54 = vmul.f32 %v14003_v55, %v14003_v55  ;;  %v14013_v2 = vsub.f32 %v13972_v5, %v1459_v1 }
 0x1a9   : > { %v1650_v4 = vadd.f32 %v1649_v47, %v1604_v8  ;;  %v1656_v58 = vrot.slane %v1605_v0, 4  ;;  %v1780_v61 = vmul.f32 %v14008_v21, %v14008_v21  ;;  %v14018_v12 = vsub.f32 %v13976_v31, %v1461_v6  ;;  %v921_v6 = vpop.f32.mrf.mxu0 }
 0x1aa   : > { %v1637_v18 = vrot.slane %v1636_v52, 2  ;;  %v1643_v63 = vadd.f32 %v1642_v56, %v1603_v10  ;;  %v1795_v3 = vrot.slane %v1778_v54, 4  ;;  %v1779_v37 = vmul.f32 %v14013_v2, %v14013_v2 }
 0x1ab   : > { %v1651_v42 = vrot.slane %v1650_v4, 2  ;;  %v1657_v48 = vadd.f32 %v1656_v58, %v1605_v0  ;;  %v1809_v19 = vrot.slane %v1780_v61, 4  ;;  %v1781_v5 = vmul.f32 %v14018_v12, %v14018_v12 }
 0x1ac   : > { %v1638_v20 = vadd.f32 %v1637_v18, %v1636_v52  ;;  %v1644_v46 = vrot.slane %v1643_v63, 2  ;;  %v1796_v51 = vadd.f32 %v1795_v3, %v1778_v54  ;;  %v1802_v53 = vrot.slane %v1779_v37, 4  ;;  %v964_v18 = vpop.f32.mrf.mxu1 }
 0x1ad   : > { %v1652_v57 = vadd.f32 %v1651_v42, %v1650_v4  ;;  %v1658_v59 = vrot.slane %v1657_v48, 2  ;;  %v1810_v31 = vadd.f32 %v1809_v19, %v1780_v61  ;;  %v1816_v62 = vrot.slane %v1781_v5, 4 }
 0x1ae   : > { %v1639_v8 = vrot.slane %v1638_v20, 1  ;;  %v1645_v36 = vadd.f32 %v1644_v46, %v1643_v63  ;;  %v1797_v41 = vrot.slane %v1796_v51, 2  ;;  %v1803_v60 = vadd.f32 %v1802_v53, %v1779_v37 }
 0x1af   : > { %v1653_v10 = vrot.slane %v1652_v57, 1  ;;  %v1659_v1 = vadd.f32 %v1658_v59, %v1657_v48  ;;  %v1811_v47 = vrot.slane %v1810_v31, 2  ;;  %v1817_v0 = vadd.f32 %v1816_v62, %v1781_v5  ;;  %v923_v59 = vpop.f32.mrf.mxu0 }
 0x1b0   : > { %v1640_v56 = vadd.f32 %v1639_v8, %v1638_v20  ;;  %v1646_v58 = vrot.slane %v1645_v36, 1  ;;  %v1798_v50 = vadd.f32 %v1797_v41, %v1796_v51  ;;  %v1804_v52 = vrot.slane %v1803_v60, 2  ;;  %v966_v51 = vpop.f32.mrf.mxu1 }
 0x1b1   : > { %v1654_v54 = vadd.f32 %v1653_v10, %v1652_v57  ;;  %v1660_v3 = vrot.slane %v1659_v1, 1  ;;  %v1812_v4 = vadd.f32 %v1811_v47, %v1810_v31  ;;  %v1818_v42 = vrot.slane %v1817_v0, 2 }
 0x1b2   : > { %v1746_v61 = vmul.f32 0.125, %v1640_v56  ;;  %v1647_v19 = vadd.f32 %v1646_v58, %v1645_v36  ;;  %v1799_v49 = vrot.slane %v1798_v50, 1  ;;  %v1805_v63 = vadd.f32 %v1804_v52, %v1803_v60  ;;  %v925_v58 = vpop.f32.mrf.mxu0 }
 0x1b3   : > { %v1748_v46 = vmul.f32 0.125, %v1654_v54  ;;  %v1661_v37 = vadd.f32 %v1660_v3, %v1659_v1  ;;  %v1813_v53 = vrot.slane %v1812_v4, 1  ;;  %v1819_v48 = vadd.f32 %v1818_v42, %v1817_v0 }
 0x1b4   : > { %v1954_v5 = vadd.f32 1e-05, %v1746_v61  ;;  %v1747_v62 = vmul.f32 0.125, %v1647_v19  ;;  %v1800_v20 = vadd.f32 %v1799_v49, %v1798_v50  ;;  %v1806_v8 = vrot.slane %v1805_v63, 1  ;;  %v968_v50 = vpop.f32.mrf.mxu1 }
 0x1b5   : > { %v1956_v41 = vadd.f32 1e-05, %v1748_v46  ;;  %v1749_v44 = vmul.f32 0.125, %v1661_v37  ;;  %v1814_v57 = vadd.f32 %v1813_v53, %v1812_v4  ;;  %v1820_v10 = vrot.slane %v1819_v48, 1  ;;  %v927_v46 = vpop.f32.mrf.mxu0 }
 0x1b6   : > { %13075 = vrsqrt.f32 %v1954_v5  ;;  %v1955_v31 = vadd.f32 1e-05, %v1747_v62  ;;  %v1906_v47 = vmul.f32 0.125, %v1800_v20  ;;  %v1807_v36 = vadd.f32 %v1806_v8, %v1805_v63 }
 0x1b7   : > { %13077 = vrsqrt.f32 %v1956_v41  ;;  %v1957_v60 = vadd.f32 1e-05, %v1749_v44  ;;  %v1908_v56 = vmul.f32 0.125, %v1814_v57  ;;  %v1821_v1 = vadd.f32 %v1820_v10, %v1819_v48  ;;  %v970_v48 = vpop.f32.mrf.mxu1 }
 0x1b8   : > { %13079 = vrsqrt.f32 %v1955_v31  ;;  %v1970_v0 = vadd.f32 1e-05, %v1906_v47  ;;  %v1907_v52 = vmul.f32 0.125, %v1807_v36  ;;  %v14025_v49 = vadd.f32 %v921_v6, %v13875_v22 }
 0x1b9   : > { %13081 = vrsqrt.f32 %v1957_v60  ;;  %v1972_v54 = vadd.f32 1e-05, %v1908_v56  ;;  %v1909_v3 = vmul.f32 0.125, %v1821_v1  ;;  %v14028_v4 = vadd.f32 %v964_v18, %v13878_v23 }
 0x1ba   : > { %13083 = vrsqrt.f32 %v1970_v0  ;;  %v1971_v42 = vadd.f32 1e-05, %v1907_v52  ;;  %v1247_v44 = vrot.slane %v14025_v49, 4  ;;  %v14032_v61 = vadd.f32 %v923_v59, %v13881_v24 }
 0x1bb   : > { %13085 = vrsqrt.f32 %v1972_v54  ;;  %v1973_v19 = vadd.f32 1e-05, %v1909_v3  ;;  %v1261_v63 = vrot.slane %v14028_v4, 4  ;;  %v14036_v6 = vadd.f32 %v966_v51, %v13884_v25 }
 0x1bc   : > { %13087 = vrsqrt.f32 %v1971_v42  ;;  %v1248_v37 = vadd.f32 %v1247_v44, %v14025_v49  ;;  %v1254_v18 = vrot.slane %v14032_v61, 4  ;;  %v14041_v53 = vadd.f32 %v925_v58, %v13875_v22 }
 0x1bd   : > { %13089 = vrsqrt.f32 %v1973_v19  ;;  %v1262_v59 = vadd.f32 %v1261_v63, %v14028_v4  ;;  %v1268_v5 = vrot.slane %v14036_v6, 4  ;;  %v14046_v62 = vadd.f32 %v968_v50, %v13878_v23 }
 0x1be   : > { %v1249_v20 = vrot.slane %v1248_v37, 2  ;;  %v1255_v8 = vadd.f32 %v1254_v18, %v14032_v61  ;;  %v1375_v51 = vrot.slane %v14041_v53, 4  ;;  %v14051_v41 = vadd.f32 %v927_v46, %v13881_v24 }
 0x1bf   : > { %v1263_v57 = vrot.slane %v1262_v59, 2  ;;  %v1269_v22 = vadd.f32 %v1268_v5, %v14036_v6  ;;  %v1389_v10 = vrot.slane %v14046_v62, 4  ;;  %v14056_v31 = vadd.f32 %v970_v48, %v13884_v25 }
 0x1c0   : > { %v1250_v47 = vadd.f32 %v1249_v20, %v1248_v37  ;;  %v1256_v36 = vrot.slane %v1255_v8, 2  ;;  %v1376_v23 = vadd.f32 %v1375_v51, %v14041_v53  ;;  %v1382_v60 = vrot.slane %v14051_v41, 4 }
 0x1c1   : > { %v1264_v56 = vadd.f32 %v1263_v57, %v1262_v59  ;;  %v1270_v1 = vrot.slane %v1269_v22, 2  ;;  %v1390_v58 = vadd.f32 %v1389_v10, %v14046_v62  ;;  %v1396_v24 = vrot.slane %v14056_v31, 4 }
 0x1c2   : > { %v1251_v0 = vrot.slane %v1250_v47, 1  ;;  %v1257_v52 = vadd.f32 %v1256_v36, %v1255_v8  ;;  %v1377_v50 = vrot.slane %v1376_v23, 2  ;;  %v14063_v54 = vadd.f32 %v1382_v60, %v14051_v41 }
 0x1c3   : > { %v13076_v25 = vpop.eup %13075  ;;  %v1265_v3 = vrot.slane %v1264_v56, 1  ;;  %v1271_v42 = vadd.f32 %v1270_v1, %v1269_v22  ;;  %v1391_v44 = vrot.slane %v1390_v58, 2  ;;  %v14066_v19 = vadd.f32 %v1396_v24, %v14056_v31 }
 0x1c4   : > { %v13078_v63 = vpop.eup %13077  ;;  %v2018_v46 = vmul.f32 %v13076_v25, %v13985_v16  ;;  %v1252_v37 = vadd.f32 %v1251_v0, %v1250_v47  ;;  %v1258_v18 = vrot.slane %v1257_v52, 1  ;;  %v14069_v48 = vadd.f32 %v1377_v50, %v1376_v23 }
 0x1c5   : > { %v13080_v59 = vpop.eup %13079  ;;  %v2020_v5 = vmul.f32 %v13078_v63, %v13988_v17  ;;  %v1266_v20 = vadd.f32 %v1265_v3, %v1264_v56  ;;  %v1272_v8 = vrot.slane %v1271_v42, 1  ;;  %v14072_v51 = vadd.f32 %v1391_v44, %v1390_v58 }
 0x1c6   : > { %v13082_v57 = vpop.eup %13081  ;;  %v2132_v22 = vmul.f32 %v13889_v27, %v2018_v46  ;;  %v2019_v10 = vmul.f32 %v13080_v59, %v13993_v11  ;;  %v1334_v36 = vmul.f32 0.125, %v1252_v37  ;;  %v1259_v60 = vadd.f32 %v1258_v18, %v1257_v52 }
 0x1c7   : > { %v13084_v1 = vpop.eup %13083  ;;  %v2134_v16 = vmul.f32 %v13895_v29, %v2020_v5  ;;  %v2021_v47 = vmul.f32 %v13082_v57, %v13998_v15  ;;  %v1336_v23 = vmul.f32 0.125, %v1266_v20  ;;  %v1273_v24 = vadd.f32 %v1272_v8, %v1271_v42 }
 0x1c8   : > { %v13086_v0 = vpop.eup %13085  ;;  %v2246_v17 = vadd.f32 %v13892_v28, %v2132_v22  ;;  %v2133_v56 = vmul.f32 %v13901_v32, %v2019_v10  ;;  %v2034_v58 = vmul.f32 %v13084_v1, %v14003_v55  ;;  %v14082_v50 = vsub.f32 %v14025_v49, %v1334_v36 }
 0x1c9   : > { %v13088_v11 = vpop.eup %13087  ;;  %v2248_v52 = vadd.f32 %v13898_v30, %v2134_v16  ;;  %v2135_v25 = vmul.f32 %v13907_v34, %v2021_v47  ;;  %v2036_v3 = vmul.f32 %v13086_v0, %v14008_v21  ;;  %v14088_v15 = vsub.f32 %v14028_v4, %v1336_v23 }
 0x1ca   : > { %v13090_v42 = vpop.eup %13089  ;;  %vm2278_vm1 = vcmp.ge.f32.partialorder %v2246_v17, 0.0  ;;  %v2310_v44 = vmul.f32 0.01, %v2246_v17  ;;  %v2247_v63 = vadd.f32 %v13904_v33, %v2133_v56  ;;  %v2148_v55 = vmul.f32 %v13889_v27, %v2034_v58 }
 0x1cb   : > { %vm2280_vm2 = vcmp.ge.f32.partialorder %v2248_v52, 0.0  ;;  %v2312_v49 = vmul.f32 0.01, %v2248_v52  ;;  %v2249_v46 = vadd.f32 %v13910_v35, %v2135_v25  ;;  %v2150_v37 = vmul.f32 %v13895_v29, %v2036_v3 }
 0x1cc   : > { %v2342_v18 = vsel %vm2278_vm1, %v2246_v17, %v2310_v44  ;;  %vm2279_vm3 = vcmp.ge.f32.partialorder %v2247_v63, 0.0  ;;  %v2311_v59 = vmul.f32 0.01, %v2247_v63  ;;  %v2262_v21 = vadd.f32 %v13892_v28, %v2148_v55 }
 0x1cd   : > { %2374 = vst [vmem:[#allocation2] sm:$0xff] %v2342_v18  ;;  %v2344_v4 = vsel %vm2280_vm2, %v2248_v52, %v2312_v49  ;;  %vm2281_vm4 = vcmp.ge.f32.partialorder %v2249_v46, 0.0  ;;  %v2313_v5 = vmul.f32 0.01, %v2249_v46  ;;  %v2264_v20 = vadd.f32 %v13898_v30, %v2150_v37 }
 0x1ce   : > { %2376 = vst [vmem:[#allocation2 + $0x10] sm:$0xff] %v2344_v4  ;;  %v2343_v8 = vsel %vm2279_vm3, %v2247_v63, %v2311_v59  ;;  %vm2294_vm5 = vcmp.ge.f32.partialorder %v2262_v21, 0.0  ;;  %v2326_v27 = vmul.f32 0.01, %v2262_v21  ;;  %v2035_v57 = vmul.f32 %v13088_v11, %v14013_v2 }
 0x1cf   : > { %2375 = vst [vmem:[#allocation2 + $0x8] sm:$0xff] %v2343_v8  ;;  %v2345_v22 = vsel %vm2281_vm4, %v2249_v46, %v2313_v5  ;;  %vm2296_vm6 = vcmp.ge.f32.partialorder %v2264_v20, 0.0  ;;  %v2328_v29 = vmul.f32 0.01, %v2264_v20  ;;  %v2037_v10 = vmul.f32 %v13090_v42, %v14018_v12 }
 0x1d0   : > { %2377 = vst [vmem:[#allocation2 + $0x18] sm:$0xff] %v2345_v22  ;;  %v2358_v28 = vsel %vm2294_vm5, %v2262_v21, %v2326_v27  ;;  %v2149_v36 = vmul.f32 %v13901_v32, %v2035_v57  ;;  %v1606_v1 = vmul.f32 %v14082_v50, %v14082_v50  ;;  %v1608_v30 = vmul.f32 %v14088_v15, %v14088_v15 }
 0x1d1   : > { %2390 = vst [vmem:[#allocation2 + $0x80] sm:$0xff] %v2358_v28  ;;  %v2360_v16 = vsel %vm2296_vm6, %v2264_v20, %v2328_v29  ;;  %v2151_v2 = vmul.f32 %v13907_v34, %v2037_v10  ;;  %v1335_v47 = vmul.f32 0.125, %v1259_v60  ;;  %v1337_v23 = vmul.f32 0.125, %v1273_v24 }
 0x1d2   : > { %2392 = vst [vmem:[#allocation2 + $0x90] sm:$0xff] %v2360_v16  ;;  %v2263_v0 = vadd.f32 %v13904_v33, %v2149_v36  ;;  %v1663_v12 = vrot.slane %v1606_v1, 4  ;;  %v1677_v17 = vrot.slane %v1608_v30, 4  ;;  %v1379_v56 = vrot.slane %v14069_v48, 1 }
 0x1d3   : > { %v2265_v32 = vadd.f32 %v13910_v35, %v2151_v2  ;;  %v14108_v58 = vsub.f32 %v14032_v61, %v1335_v47  ;;  %v14111_v11 = vsub.f32 %v14036_v6, %v1337_v23  ;;  %v1393_v52 = vrot.slane %v14072_v51, 1 }
 0x1d4   : > { %vm2295_vm7 = vcmp.ge.f32.partialorder %v2263_v0, 0.0  ;;  %v2327_v34 = vmul.f32 0.01, %v2263_v0  ;;  %v1664_v60 = vadd.f32 %v1663_v12, %v1606_v1  ;;  %v1678_v24 = vadd.f32 %v1677_v17, %v1608_v30 }
 0x1d5   : > { %vm2297_vm8 = vcmp.ge.f32.partialorder %v2265_v32, 0.0  ;;  %v2329_v33 = vmul.f32 0.01, %v2265_v32  ;;  %v1607_v25 = vmul.f32 %v14108_v58, %v14108_v58  ;;  %v1609_v35 = vmul.f32 %v14111_v11, %v14111_v11 }
 0x1d6   : > { %v2359_v3 = vsel %vm2295_vm7, %v2263_v0, %v2327_v34  ;;  %v1665_v61 = vrot.slane %v1664_v60, 2  ;;  %v1679_v42 = vrot.slane %v1678_v24, 2  ;;  %v1380_v6 = vadd.f32 %v1379_v56, %v14069_v48 }
 0x1d7   : > { %2391 = vst [vmem:[#allocation2 + $0x88] sm:$0xff] %v2359_v3  ;;  %v2361_v44 = vsel %vm2297_vm8, %v2265_v32, %v2329_v33  ;;  %v1670_v63 = vrot.slane %v1607_v25, 4  ;;  %v1684_v55 = vrot.slane %v1609_v35, 4  ;;  %v1394_v49 = vadd.f32 %v1393_v52, %v14072_v51  ;;  %v1007_v32 = vpop.f32.mrf.mxu0 }
 0x1d8   : > { %2393 = vst [vmem:[#allocation2 + $0x98] sm:$0xff] %v2361_v44  ;;  %v1666_v46 = vadd.f32 %v1665_v61, %v1664_v60  ;;  %v1680_v37 = vadd.f32 %v1679_v42, %v1678_v24  ;;  %v1462_v18 = vmul.f32 0.125, %v1380_v6  ;;  %v1384_v59 = vrot.slane %v14063_v54, 2 }
 0x1d9   : > { %v1671_v21 = vadd.f32 %v1670_v63, %v1607_v25  ;;  %v1685_v4 = vadd.f32 %v1684_v55, %v1609_v35  ;;  %v1464_v5 = vmul.f32 0.125, %v1394_v49  ;;  %v1398_v20 = vrot.slane %v14066_v19, 2 }
 0x1da   : > { %v1667_v8 = vrot.slane %v1666_v46, 1  ;;  %v1681_v27 = vrot.slane %v1680_v37, 1  ;;  %v14123_v48 = vsub.f32 %v14041_v53, %v1462_v18  ;;  %v1385_v57 = vadd.f32 %v1384_v59, %v14063_v54  ;;  %v1050_v59 = vpop.f32.mrf.mxu1 }
 0x1db   : > { %v1672_v22 = vrot.slane %v1671_v21, 2  ;;  %v1686_v51 = vrot.slane %v1685_v4, 2  ;;  %v14127_v29 = vsub.f32 %v14046_v62, %v1464_v5  ;;  %v1399_v10 = vadd.f32 %v1398_v20, %v14066_v19 }
 0x1dc   : > { %v1668_v28 = vadd.f32 %v1667_v8, %v1666_v46  ;;  %v1682_v36 = vadd.f32 %v1681_v27, %v1680_v37  ;;  %v1782_v1 = vmul.f32 %v14123_v48, %v14123_v48  ;;  %v1386_v30 = vrot.slane %v1385_v57, 1 }
 0x1dd   : > { %v1673_v16 = vadd.f32 %v1672_v22, %v1671_v21  ;;  %v1687_v2 = vadd.f32 %v1686_v51, %v1685_v4  ;;  %v1784_v53 = vmul.f32 %v14127_v29, %v14127_v29  ;;  %v1400_v47 = vrot.slane %v1399_v10, 1 }
 0x1de   : > { %v1750_v54 = vmul.f32 0.125, %v1668_v28  ;;  %v1752_v23 = vmul.f32 0.125, %v1682_v36  ;;  %v1823_v0 = vrot.slane %v1782_v1, 4  ;;  %v1387_v12 = vadd.f32 %v1386_v30, %v1385_v57  ;;  %v14152_v57 = vld [vmem:[#allocation10 + $0x8] sm:$0xff] }
 0x1df   : > { %v1674_v62 = vrot.slane %v1673_v16, 1  ;;  %v1688_v17 = vrot.slane %v1687_v2, 1  ;;  %v1837_v56 = vrot.slane %v1784_v53, 4  ;;  %v1401_v19 = vadd.f32 %v1400_v47, %v1399_v10  ;;  %v1009_v10 = vpop.f32.mrf.mxu0 }
 0x1e0   : > { %v1958_v52 = vadd.f32 1e-05, %v1750_v54  ;;  %v1960_v34 = vadd.f32 1e-05, %v1752_v23  ;;  %v1824_v60 = vadd.f32 %v1823_v0, %v1782_v1  ;;  %v1463_v24 = vmul.f32 0.125, %v1387_v12  ;;  %v14167_v12 = vld [vmem:[#allocation12 + $0x8] sm:$0xff] }
 0x1e1   : > { %v1675_v33 = vadd.f32 %v1674_v62, %v1673_v16  ;;  %v1689_v25 = vadd.f32 %v1688_v17, %v1687_v2  ;;  %v1838_v35 = vadd.f32 %v1837_v56, %v1784_v53  ;;  %v1465_v3 = vmul.f32 0.125, %v1401_v19 }
 0x1e2   : > { %13091 = vrsqrt.f32 %v1958_v52  ;;  %v1825_v61 = vrot.slane %v1824_v60, 2  ;;  %v14135_v42 = vsub.f32 %v14051_v41, %v1463_v24  ;;  %v14138_v6 = vadd.f32 %v1007_v32, %v13916_v38 }
 0x1e3   : > { %13093 = vrsqrt.f32 %v1960_v34  ;;  %v1751_v44 = vmul.f32 0.125, %v1675_v33  ;;  %v1753_v63 = vmul.f32 0.125, %v1689_v25  ;;  %v1839_v55 = vrot.slane %v1838_v35, 2  ;;  %v1052_v33 = vpop.f32.mrf.mxu1 }
 0x1e4   : > { %v1826_v49 = vadd.f32 %v1825_v61, %v1824_v60  ;;  %v1783_v46 = vmul.f32 %v14135_v42, %v14135_v42  ;;  %v14143_v37 = vsub.f32 %v14056_v31, %v1465_v3  ;;  %v1275_v18 = vrot.slane %v14138_v6, 4 }
 0x1e5   : > { %v1959_v21 = vadd.f32 1e-05, %v1751_v44  ;;  %v1961_v41 = vadd.f32 1e-05, %v1753_v63  ;;  %v1840_v4 = vadd.f32 %v1839_v55, %v1838_v35  ;;  %v14148_v5 = vrot.slane %v13886_v26, %v13862_v9 }
 0x1e6   : > { %v1827_v20 = vrot.slane %v1826_v49, 1  ;;  %v1830_v8 = vrot.slane %v1783_v46, 4  ;;  %v1785_v27 = vmul.f32 %v14143_v37, %v14143_v37  ;;  %v1276_v31 = vadd.f32 %v1275_v18, %v14138_v6 }
 0x1e7   : > { %13095 = vrsqrt.f32 %v1959_v21  ;;  %v1841_v22 = vrot.slane %v1840_v4, 1  ;;  %v14156_v51 = vadd.f32 %v1050_v59, %v13920_v39  ;;  %v14160_v28 = vrot.slane %v13886_v26, %v13864_v13 }
 0x1e8   : > { %13097 = vrsqrt.f32 %v1961_v41  ;;  %v1828_v36 = vadd.f32 %v1827_v20, %v1826_v49  ;;  %v1831_v1 = vadd.f32 %v1830_v8, %v1783_v46  ;;  %v1844_v30 = vrot.slane %v1785_v27, 4 }
 0x1e9   : > { %v1842_v16 = vadd.f32 %v1841_v22, %v1840_v4  ;;  %v1277_v2 = vrot.slane %v1276_v31, 2  ;;  %v14164_v53 = vrot.slane %v14152_v57, %v13854_v7  ;;  %v1289_v47 = vrot.slane %v14156_v51, 4 }
 0x1ea   : > { %v1910_v54 = vmul.f32 0.125, %v1828_v36  ;;  %v1832_v23 = vrot.slane %v1831_v1, 2  ;;  %v1845_v0 = vadd.f32 %v1844_v30, %v1785_v27  ;;  %v14170_v62 = vadd.f32 %v1009_v10, %v13924_v40  ;;  %v16523_v30 = vld [vmem:[#allocation32_spill] sm:$0xff] }
 0x1eb   : > { %v1912_v17 = vmul.f32 0.125, %v1842_v16  ;;  %v1278_v56 = vadd.f32 %v1277_v2, %v1276_v31  ;;  %v1290_v19 = vadd.f32 %v1289_v47, %v14156_v51  ;;  %v14175_v32 = vrot.slane %v13886_v26, %v13866_v14 }
 0x1ec   : > { %v1974_v52 = vadd.f32 1e-05, %v1910_v54  ;;  %v1833_v34 = vadd.f32 %v1832_v23, %v1831_v1  ;;  %v1846_v60 = vrot.slane %v1845_v0, 2  ;;  %v1282_v24 = vrot.slane %v14170_v62, 4  ;;  %v16524_v23 = vld [vmem:[#allocation33_spill] sm:$0xff] }
 0x1ed   : > { %v1976_v25 = vadd.f32 1e-05, %v1912_v17  ;;  %v1279_v35 = vrot.slane %v1278_v56, 1  ;;  %v14180_v3 = vrot.slane %v14167_v12, %v13854_v7  ;;  %v1291_v61 = vrot.slane %v1290_v19, 2 }
 0x1ee   : > { %13099 = vrsqrt.f32 %v1974_v52  ;;  %v1834_v44 = vrot.slane %v1833_v34, 1  ;;  %v1847_v63 = vadd.f32 %v1846_v60, %v1845_v0  ;;  %v1283_v55 = vadd.f32 %v1282_v24, %v14170_v62  ;;  %v16525_v52 = vld [vmem:[#allocation34_spill] sm:$0xff] }
 0x1ef   : > { %v13092_v26 = vpop.eup %13091  ;;  %13101 = vrsqrt.f32 %v1976_v25  ;;  %v1280_v49 = vadd.f32 %v1279_v35, %v1278_v56  ;;  %v1292_v46 = vadd.f32 %v1291_v61, %v1290_v19  ;;  %v14184_v18 = vadd.f32 %v1052_v33, %v13936_v45  ;;  %v16526_v61 = vld [vmem:[#allocation35_spill] sm:$0xff] }
 0x1f0   : > { %v13094_v59 = vpop.eup %13093  ;;  %v2022_v21 = vmul.f32 %v13092_v26, %v14082_v50  ;;  %v1835_v41 = vadd.f32 %v1834_v44, %v1833_v34  ;;  %v1848_v4 = vrot.slane %v1847_v63, 1  ;;  %v1284_v7 = vrot.slane %v1283_v55, 2  ;;  %v16527_v26 = vld [vmem:[#allocation36_spill] sm:$0xff] }
 0x1f1   : > { %v2024_v20 = vmul.f32 %v13094_v59, %v14088_v15  ;;  %v1338_v8 = vmul.f32 0.125, %v1280_v49  ;;  %v1293_v27 = vrot.slane %v1292_v46, 1  ;;  %v1296_v31 = vrot.slane %v14184_v18, 4 }
 0x1f2   : > { %v2136_v22 = vmul.f32 %v13929_v43, %v2022_v21  ;;  %v1911_v10 = vmul.f32 0.125, %v1835_v41  ;;  %v1849_v36 = vadd.f32 %v1848_v4, %v1847_v63  ;;  %v1285_v1 = vadd.f32 %v1284_v7, %v1283_v55  ;;  %v16528_v21 = vld [vmem:[#allocation37_spill] sm:$0xff] }
 0x1f3   : > { %v2138_v16 = vmul.f32 %v16523_v30, %v2024_v20  ;;  %v14192_v2 = vsub.f32 %v14138_v6, %v1338_v8  ;;  %v1294_v50 = vadd.f32 %v1293_v27, %v1292_v46  ;;  %v1297_v47 = vadd.f32 %v1296_v31, %v14184_v18 }
 0x1f4   : > { %v13096_v54 = vpop.eup %13095  ;;  %v2250_v15 = vadd.f32 %v16524_v23, %v2136_v22  ;;  %v1975_v0 = vadd.f32 1e-05, %v1911_v10  ;;  %v1913_v17 = vmul.f32 0.125, %v1849_v36  ;;  %v1286_v56 = vrot.slane %v1285_v1, 1  ;;  %v16530_v10 = vld [vmem:[#allocation28_spill] sm:$0xff] }
 0x1f5   : > { %v13098_v19 = vpop.eup %13097  ;;  %v2252_v34 = vadd.f32 %v16525_v52, %v2138_v16  ;;  %v2023_v60 = vmul.f32 %v13096_v54, %v14108_v58  ;;  %v1610_v24 = vmul.f32 %v14192_v2, %v14192_v2  ;;  %v1340_v33 = vmul.f32 0.125, %v1294_v50 }
 0x1f6   : > { %vm2282_vm9 = vcmp.ge.f32.partialorder %v2250_v15, 0.0  ;;  %v2314_v6 = vmul.f32 0.01, %v2250_v15  ;;  %v2025_v25 = vmul.f32 %v13098_v19, %v14111_v11  ;;  %13103 = vrsqrt.f32 %v1975_v0  ;;  %v16529_v11 = vld [vmem:[#allocation38_spill] sm:$0xff]  ;;  %v1011_v19 = vpop.f32.mrf.mxu0 }
 0x1f7   : > { %vm2284_vm10 = vcmp.ge.f32.partialorder %v2252_v34, 0.0  ;;  %v2316_v35 = vmul.f32 0.01, %v2252_v34  ;;  %v2137_v44 = vmul.f32 %v16526_v61, %v2023_v60  ;;  %v1977_v63 = vadd.f32 1e-05, %v1913_v17 }
 0x1f8   : > { %v2346_v55 = vsel %vm2282_vm9, %v2250_v15, %v2314_v6  ;;  %v2139_v49 = vmul.f32 %v16527_v26, %v2025_v25  ;;  %v1691_v46 = vrot.slane %v1610_v24, 4  ;;  %v14204_v58 = vsub.f32 %v14156_v51, %v1340_v33  ;;  %v1054_v6 = vpop.f32.mrf.mxu1 }
 0x1f9   : > { %2378 = vst [vmem:[#allocation2 + $0x20] sm:$0xff] %v2346_v55  ;;  %v2348_v59 = vsel %vm2284_vm10, %v2252_v34, %v2316_v35  ;;  %v2251_v41 = vadd.f32 %v16528_v21, %v2137_v44  ;;  %13105 = vrsqrt.f32 %v1977_v63  ;;  %v1287_v4 = vadd.f32 %v1286_v56, %v1285_v1 }
 0x1fa   : > { %2380 = vst [vmem:[#allocation2 + $0x30] sm:$0xff] %v2348_v59  ;;  %v2253_v7 = vadd.f32 %v16529_v11, %v2139_v49  ;;  %v1692_v20 = vadd.f32 %v1691_v46, %v1610_v24  ;;  %v1612_v8 = vmul.f32 %v14204_v58, %v14204_v58  ;;  %v1298_v27 = vrot.slane %v1297_v47, 2 }
 0x1fb   : > { %v13100_v31 = vpop.eup %13099  ;;  %vm2283_vm11 = vcmp.ge.f32.partialorder %v2251_v41, 0.0  ;;  %v2315_v22 = vmul.f32 0.01, %v2251_v41  ;;  %v14212_v51 = vrot.slane %v14152_v57, %v16530_v10  ;;  %v1339_v36 = vmul.f32 0.125, %v1287_v4 }
 0x1fc   : > { %v13102_v16 = vpop.eup %13101  ;;  %vm2285_vm12 = vcmp.ge.f32.partialorder %v2253_v7, 0.0  ;;  %v2317_v50 = vmul.f32 0.01, %v2253_v7  ;;  %v2038_v1 = vmul.f32 %v13100_v31, %v14123_v48  ;;  %v1693_v54 = vrot.slane %v1692_v20, 2 }
 0x1fd   : > { %v2347_v15 = vsel %vm2283_vm11, %v2251_v41, %v2315_v22  ;;  %v2040_v0 = vmul.f32 %v13102_v16, %v14127_v29  ;;  %v1705_v17 = vrot.slane %v1612_v8, 4  ;;  %v14217_v56 = vsub.f32 %v14170_v62, %v1339_v36 }
 0x1fe   : > { %2379 = vst [vmem:[#allocation2 + $0x28] sm:$0xff] %v2347_v15  ;;  %v2349_v34 = vsel %vm2285_vm12, %v2253_v7, %v2317_v50  ;;  %v2152_v60 = vmul.f32 %v13929_v43, %v2038_v1  ;;  %v1694_v24 = vadd.f32 %v1693_v54, %v1692_v20  ;;  %v1299_v33 = vadd.f32 %v1298_v27, %v1297_v47 }
 0x1ff   : > { %2381 = vst [vmem:[#allocation2 + $0x38] sm:$0xff] %v2349_v34  ;;  %v2154_v25 = vmul.f32 %v16523_v30, %v2040_v0  ;;  %v1706_v48 = vadd.f32 %v1705_v17, %v1612_v8  ;;  %v14223_v35 = vrot.slane %v14167_v12, %v16530_v10  ;;  %v1611_v29 = vmul.f32 %v14217_v56, %v14217_v56 }
 0x200   : > { %v2266_v62 = vadd.f32 %v16524_v23, %v2152_v60  ;;  %v1695_v44 = vrot.slane %v1694_v24, 1  ;;  %v1300_v63 = vrot.slane %v1299_v33, 1  ;;  %v14229_v43 = vadd.f32 %v1011_v19, %v13916_v38  ;;  %v1013_v60 = vpop.f32.mrf.mxu0 }
 0x201   : > { %v2268_v47 = vadd.f32 %v16525_v52, %v2154_v25  ;;  %v1707_v55 = vrot.slane %v1706_v48, 2  ;;  %v1698_v49 = vrot.slane %v1611_v29, 4  ;;  %v14233_v30 = vadd.f32 %v1054_v6, %v13920_v39 }
 0x202   : > { %vm2298_vm13 = vcmp.ge.f32.partialorder %v2266_v62, 0.0  ;;  %v2330_v46 = vmul.f32 0.01, %v2266_v62  ;;  %v1696_v59 = vadd.f32 %v1695_v44, %v1694_v24  ;;  %v1301_v41 = vadd.f32 %v1300_v63, %v1299_v33 }
 0x203   : > { %v13104_v4 = vpop.eup %13103  ;;  %vm2300_vm14 = vcmp.ge.f32.partialorder %v2268_v47, 0.0  ;;  %v2332_v7 = vmul.f32 0.01, %v2268_v47  ;;  %v1708_v23 = vadd.f32 %v1707_v55, %v1706_v48  ;;  %v1699_v20 = vadd.f32 %v1698_v49, %v1611_v29 }
 0x204   : > { %v2362_v8 = vsel %vm2298_vm13, %v2266_v62, %v2330_v46  ;;  %v2039_v38 = vmul.f32 %v13104_v4, %v14135_v42  ;;  %v1754_v27 = vmul.f32 0.125, %v1696_v59  ;;  %v1341_v31 = vmul.f32 0.125, %v1301_v41  ;;  %v1056_v46 = vpop.f32.mrf.mxu1 }
 0x205   : > { %2394 = vst [vmem:[#allocation2 + $0xa0] sm:$0xff] %v2362_v8  ;;  %v2364_v52 = vsel %vm2300_vm14, %v2268_v47, %v2332_v7  ;;  %v1709_v22 = vrot.slane %v1708_v23, 1  ;;  %v1700_v10 = vrot.slane %v1699_v20, 2  ;;  %v1403_v39 = vrot.slane %v14229_v43, 4 }
 0x206   : > { %v13106_v36 = vpop.eup %13105  ;;  %2396 = vst [vmem:[#allocation2 + $0xb0] sm:$0xff] %v2364_v52  ;;  %v2153_v16 = vmul.f32 %v16526_v61, %v2039_v38  ;;  %v1962_v50 = vadd.f32 1e-05, %v1754_v27  ;;  %v14239_v1 = vsub.f32 %v14184_v18, %v1341_v31  ;;  %v1417_v54 = vrot.slane %v14233_v30, 4 }
 0x207   : > { %v2041_v42 = vmul.f32 %v13106_v36, %v14143_v37  ;;  %v1710_v15 = vadd.f32 %v1709_v22, %v1708_v23  ;;  %v1701_v0 = vadd.f32 %v1700_v10, %v1699_v20  ;;  %v1404_v17 = vadd.f32 %v1403_v39, %v14229_v43  ;;  %v1136_v10 = vpop.f32.mrf.mxu1  ;;  %v16531_v39 = vld [vmem:[#allocation29_spill] sm:$0xff] }
 0x208   : > { %v2267_v19 = vadd.f32 %v16528_v21, %v2153_v16  ;;  %13107 = vrsqrt.f32 %v1962_v50  ;;  %v1613_v34 = vmul.f32 %v14239_v1, %v14239_v1  ;;  %v1418_v61 = vadd.f32 %v1417_v54, %v14233_v30 }
 0x209   : > { %v2155_v18 = vmul.f32 %v16527_v26, %v2041_v42  ;;  %v1756_v24 = vmul.f32 0.125, %v1710_v15  ;;  %v1702_v33 = vrot.slane %v1701_v0, 1  ;;  %v1405_v6 = vrot.slane %v1404_v17, 2  ;;  %v1093_v26 = vpop.f32.mrf.mxu0 }
 0x20a   : > { %vm2299_vm15 = vcmp.ge.f32.partialorder %v2267_v19, 0.0  ;;  %v2331_v37 = vmul.f32 0.01, %v2267_v19  ;;  %v1712_v25 = vrot.slane %v1613_v34, 4  ;;  %v1419_v48 = vrot.slane %v1418_v61, 2 }
 0x20b   : > { %v2269_v29 = vadd.f32 %v16529_v11, %v2155_v18  ;;  %v1964_v62 = vadd.f32 1e-05, %v1756_v24  ;;  %v1703_v21 = vadd.f32 %v1702_v33, %v1701_v0  ;;  %v1406_v44 = vadd.f32 %v1405_v6, %v1404_v17  ;;  %v16532_v6 = vld [vmem:[#allocation30_spill] sm:$0xff] }
 0x20c   : > { %v2363_v63 = vsel %vm2299_vm15, %v2267_v19, %v2331_v37  ;;  %v1713_v47 = vadd.f32 %v1712_v25, %v1613_v34  ;;  %v1420_v55 = vadd.f32 %v1419_v48, %v1418_v61  ;;  %v14251_v49 = vadd.f32 %v1013_v60, %v13924_v40 }
 0x20d   : > { %2395 = vst [vmem:[#allocation2 + $0xa8] sm:$0xff] %v2363_v63  ;;  %vm2301_vm0 = vcmp.ge.f32.partialorder %v2269_v29, 0.0  ;;  %v2333_v59 = vmul.f32 0.01, %v2269_v29  ;;  %13109 = vrsqrt.f32 %v1964_v62  ;;  %v1755_v41 = vmul.f32 0.125, %v1703_v21 }
 0x20e   : > { %v1714_v4 = vrot.slane %v1713_v47, 2  ;;  %v1407_v7 = vrot.slane %v1406_v44, 1  ;;  %v1421_v23 = vrot.slane %v1420_v55, 1  ;;  %v1410_v11 = vrot.slane %v14251_v49, 4 }
 0x20f   : > { %v2365_v20 = vsel %vm2301_vm0, %v2269_v29, %v2333_v59  ;;  %v1963_v8 = vadd.f32 1e-05, %v1755_v41  ;;  %v14255_v38 = vadd.f32 %v1056_v46, %v13936_v45  ;;  %v14258_v40 = vadd.f32 %v1093_v26, %v14148_v5 }
 0x210   : > { %2397 = vst [vmem:[#allocation2 + $0xb8] sm:$0xff] %v2365_v20  ;;  %v1715_v27 = vadd.f32 %v1714_v4, %v1713_v47  ;;  %v1408_v31 = vadd.f32 %v1407_v7, %v1406_v44  ;;  %v1422_v52 = vadd.f32 %v1421_v23, %v1420_v55  ;;  %v1411_v22 = vadd.f32 %v1410_v11, %v14251_v49 }
 0x211   : > { %13111 = vrsqrt.f32 %v1963_v8  ;;  %v14263_v36 = vrot.slane %v14152_v57, %v16531_v39  ;;  %v1424_v16 = vrot.slane %v14255_v38, 4  ;;  %v1303_v45 = vrot.slane %v14258_v40, 4 }
 0x212   : > { %v1716_v50 = vrot.slane %v1715_v27, 1  ;;  %v1466_v54 = vmul.f32 0.125, %v1408_v31  ;;  %v1468_v42 = vmul.f32 0.125, %v1422_v52  ;;  %v1412_v15 = vrot.slane %v1411_v22, 2 }
 0x213   : > { %v14269_v0 = vrot.slane %v14167_v12, %v16531_v39  ;;  %v1425_v17 = vadd.f32 %v1424_v16, %v14255_v38  ;;  %v1304_v19 = vadd.f32 %v1303_v45, %v14258_v40  ;;  %v14274_v34 = vadd.f32 %v1136_v10, %v14160_v28 }
 0x214   : > { %v1717_v61 = vadd.f32 %v1716_v50, %v1715_v27  ;;  %v14277_v60 = vsub.f32 %v14229_v43, %v1466_v54  ;;  %v14280_v18 = vsub.f32 %v14233_v30, %v1468_v42  ;;  %v1413_v24 = vadd.f32 %v1412_v15, %v1411_v22 }
 0x215   : > { %v13108_v33 = vpop.eup %13107  ;;  %v14284_v37 = vrot.slane %v14152_v57, %v16532_v6  ;;  %v1426_v25 = vrot.slane %v1425_v17, 2  ;;  %v1305_v48 = vrot.slane %v1304_v19, 2  ;;  %v1317_v29 = vrot.slane %v14274_v34, 4 }
 0x216   : > { %v2026_v62 = vmul.f32 %v13108_v33, %v14192_v2  ;;  %v1757_v21 = vmul.f32 0.125, %v1717_v61  ;;  %v1786_v43 = vmul.f32 %v14277_v60, %v14277_v60  ;;  %v1788_v30 = vmul.f32 %v14280_v18, %v14280_v18 }
 0x217   : > { %v1414_v44 = vrot.slane %v1413_v24, 1  ;;  %v1427_v63 = vadd.f32 %v1426_v25, %v1425_v17  ;;  %v1306_v47 = vadd.f32 %v1305_v48, %v1304_v19  ;;  %v1318_v55 = vadd.f32 %v1317_v29, %v14274_v34 }
 0x218   : > { %v2140_v46 = vmul.f32 %v14164_v53, %v2026_v62  ;;  %v1965_v26 = vadd.f32 1e-05, %v1757_v21  ;;  %v1851_v59 = vrot.slane %v1786_v43, 4  ;;  %v1865_v41 = vrot.slane %v1788_v30, 4 }
 0x219   : > { %v1415_v4 = vadd.f32 %v1414_v44, %v1413_v24  ;;  %v1428_v7 = vrot.slane %v1427_v63, 1  ;;  %v1307_v2 = vrot.slane %v1306_v47, 1  ;;  %v1319_v23 = vrot.slane %v1318_v55, 2 }
 0x21a   : > { %v13110_v11 = vpop.eup %13109  ;;  %v2254_v20 = vadd.f32 %v14180_v3, %v2140_v46  ;;  %13113 = vrsqrt.f32 %v1965_v26  ;;  %v1852_v8 = vadd.f32 %v1851_v59, %v1786_v43  ;;  %v1866_v27 = vadd.f32 %v1865_v41, %v1788_v30 }
 0x21b   : > { %v2028_v31 = vmul.f32 %v13110_v11, %v14204_v58  ;;  %v1467_v52 = vmul.f32 0.125, %v1415_v4  ;;  %v1429_v22 = vadd.f32 %v1428_v7, %v1427_v63  ;;  %v1308_v10 = vadd.f32 %v1307_v2, %v1306_v47 }
 0x21c   : > { %vm2286_vm1 = vcmp.ge.f32.partialorder %v2254_v20, 0.0  ;;  %v2318_v39 = vmul.f32 0.01, %v2254_v20  ;;  %v1853_v16 = vrot.slane %v1852_v8, 2  ;;  %v1867_v45 = vrot.slane %v1866_v27, 2 }
 0x21d   : > { %v2142_v50 = vmul.f32 %v14212_v51, %v2028_v31  ;;  %v14298_v54 = vsub.f32 %v14251_v49, %v1467_v52  ;;  %v1469_v42 = vmul.f32 0.125, %v1429_v22  ;;  %v1342_v15 = vmul.f32 0.125, %v1308_v10  ;;  %v1095_v22 = vpop.f32.mrf.mxu0 }
 0x21e   : > { %v13112_v17 = vpop.eup %13111  ;;  %v2350_v19 = vsel %vm2286_vm1, %v2254_v20, %v2318_v39  ;;  %v1854_v61 = vadd.f32 %v1853_v16, %v1852_v8  ;;  %v1868_v24 = vadd.f32 %v1867_v45, %v1866_v27  ;;  %v1320_v33 = vadd.f32 %v1319_v23, %v1318_v55 }
 0x21f   : > { %2382 = vst [vmem:[#allocation2 + $0x40] sm:$0xff] %v2350_v19  ;;  %v2256_v58 = vadd.f32 %v14223_v35, %v2142_v50  ;;  %v2027_v25 = vmul.f32 %v13112_v17, %v14217_v56  ;;  %v1787_v48 = vmul.f32 %v14298_v54, %v14298_v54  ;;  %v14305_v29 = vsub.f32 %v14255_v38, %v1469_v42 }
 0x220   : > { %v1855_v49 = vrot.slane %v1854_v61, 1  ;;  %v1869_v62 = vrot.slane %v1868_v24, 1  ;;  %v14308_v21 = vsub.f32 %v14258_v40, %v1342_v15  ;;  %v1321_v43 = vrot.slane %v1320_v33, 1 }
 0x221   : > { %vm2288_vm2 = vcmp.ge.f32.partialorder %v2256_v58, 0.0  ;;  %v2320_v30 = vmul.f32 0.01, %v2256_v58  ;;  %v2141_v44 = vmul.f32 %v14263_v36, %v2027_v25  ;;  %v1858_v63 = vrot.slane %v1787_v48, 4 }
 0x222   : > { %v1856_v47 = vadd.f32 %v1855_v49, %v1854_v61  ;;  %v1870_v55 = vadd.f32 %v1869_v62, %v1868_v24  ;;  %v1789_v56 = vmul.f32 %v14305_v29, %v14305_v29  ;;  %v1614_v38 = vmul.f32 %v14308_v21, %v14308_v21 }
 0x223   : > { %v2352_v46 = vsel %vm2288_vm2, %v2256_v58, %v2320_v30  ;;  %v2255_v26 = vadd.f32 %v14269_v0, %v2141_v44  ;;  %v1859_v59 = vadd.f32 %v1858_v63, %v1787_v48  ;;  %v1322_v40 = vadd.f32 %v1321_v43, %v1320_v33  ;;  %v13139_v63 = vld [vmem:[#allocation9 + $0x8] sm:$0xff] }
 0x224   : > { %2384 = vst [vmem:[#allocation2 + $0x50] sm:$0xff] %v2352_v46  ;;  %v1914_v41 = vmul.f32 0.125, %v1856_v47  ;;  %v1916_v4 = vmul.f32 0.125, %v1870_v55  ;;  %v1872_v7 = vrot.slane %v1789_v56, 4  ;;  %v1719_v2 = vrot.slane %v1614_v38, 4  ;;  %v16533_v47 = vld [vmem:[#allocation31_spill] sm:$0xff] }
 0x225   : > { %vm2287_vm3 = vcmp.ge.f32.partialorder %v2255_v26, 0.0  ;;  %v2319_v23 = vmul.f32 0.01, %v2255_v26  ;;  %v1860_v11 = vrot.slane %v1859_v59, 2  ;;  %v1344_v20 = vmul.f32 0.125, %v1322_v40 }
 0x226   : > { %v1978_v8 = vadd.f32 1e-05, %v1914_v41  ;;  %v1980_v27 = vadd.f32 1e-05, %v1916_v4  ;;  %v1873_v31 = vadd.f32 %v1872_v7, %v1789_v56  ;;  %v1720_v52 = vadd.f32 %v1719_v2, %v1614_v38  ;;  %v1097_v56 = vpop.f32.mrf.mxu0 }
 0x227   : > { %v13114_v10 = vpop.eup %13113  ;;  %v2351_v39 = vsel %vm2287_vm3, %v2255_v26, %v2319_v23  ;;  %v14318_v16 = vrot.slane %v14167_v12, %v16532_v6  ;;  %v1861_v45 = vadd.f32 %v1860_v11, %v1859_v59  ;;  %v14321_v50 = vsub.f32 %v14274_v34, %v1344_v20  ;;  %v1138_v6 = vpop.f32.mrf.mxu1 }
 0x228   : > { %2383 = vst [vmem:[#allocation2 + $0x48] sm:$0xff] %v2351_v39  ;;  %v2029_v42 = vmul.f32 %v13114_v10, %v14239_v1  ;;  %13115 = vrsqrt.f32 %v1978_v8  ;;  %v1874_v15 = vrot.slane %v1873_v31, 2  ;;  %v1721_v17 = vrot.slane %v1720_v52, 2 }
 0x229   : > { %13117 = vrsqrt.f32 %v1980_v27  ;;  %v1862_v19 = vrot.slane %v1861_v45, 1  ;;  %v1616_v61 = vmul.f32 %v14321_v50, %v14321_v50  ;;  %v14327_v24 = vadd.f32 %v1095_v22, %v14175_v32  ;;  %v1140_v59 = vpop.f32.mrf.mxu1 }
 0x22a   : > { %v2143_v33 = vmul.f32 %v14284_v37, %v2029_v42  ;;  %v1875_v58 = vadd.f32 %v1874_v15, %v1873_v31  ;;  %v1722_v34 = vadd.f32 %v1721_v17, %v1720_v52  ;;  %v14332_v25 = vrot.slane %v14152_v57, %v13862_v9 }
 0x22b   : > { %v1863_v1 = vadd.f32 %v1862_v19, %v1861_v45  ;;  %v14336_v48 = vrot.slane %v14167_v12, %v13862_v9  ;;  %v1733_v49 = vrot.slane %v1616_v61, 4  ;;  %v1310_v62 = vrot.slane %v14327_v24, 4  ;;  %v1142_v39 = vpop.f32.mrf.mxu1 }
 0x22c   : > { %v2257_v43 = vadd.f32 %v14318_v16, %v2143_v33  ;;  %v1876_v30 = vrot.slane %v1875_v58, 1  ;;  %v1723_v44 = vrot.slane %v1722_v34, 1  ;;  %v620_v55 = vrot.slane %v13139_v63, %v16533_v47 }
 0x22d   : > { %v1915_v38 = vmul.f32 0.125, %v1863_v1  ;;  %v1734_v46 = vadd.f32 %v1733_v49, %v1616_v61  ;;  %v14343_v26 = vrot.slane %v14152_v57, %v13864_v13  ;;  %v1311_v9 = vadd.f32 %v1310_v62, %v14327_v24  ;;  %v1099_v57 = vpop.f32.mrf.mxu0 }
 0x22e   : > { %vm2289_vm4 = vcmp.ge.f32.partialorder %v2257_v43, 0.0  ;;  %v2321_v40 = vmul.f32 0.01, %v2257_v43  ;;  %v1877_v41 = vadd.f32 %v1876_v30, %v1875_v58  ;;  %v1724_v4 = vadd.f32 %v1723_v44, %v1722_v34 }
 0x22f   : > { %v1979_v7 = vadd.f32 1e-05, %v1915_v38  ;;  %v1735_v2 = vrot.slane %v1734_v46, 2  ;;  %v1312_v23 = vrot.slane %v1311_v9, 2  ;;  %v14346_v11 = vadd.f32 %v1138_v6, %v620_v55 }
 0x230   : > { %v2353_v20 = vsel %vm2289_vm4, %v2257_v43, %v2321_v40  ;;  %v1917_v8 = vmul.f32 0.125, %v1877_v41  ;;  %v1758_v27 = vmul.f32 0.125, %v1724_v4  ;;  %v14350_v31 = vrot.slane %v14167_v12, %v13864_v13 }
 0x231   : > { %2385 = vst [vmem:[#allocation2 + $0x58] sm:$0xff] %v2353_v20  ;;  %13119 = vrsqrt.f32 %v1979_v7  ;;  %v1736_v52 = vadd.f32 %v1735_v2, %v1734_v46  ;;  %v1313_v22 = vadd.f32 %v1312_v23, %v1311_v9  ;;  %v1324_v10 = vrot.slane %v14346_v11, 4 }
 0x232   : > { %v1981_v45 = vadd.f32 1e-05, %v1917_v8  ;;  %v1966_v42 = vadd.f32 1e-05, %v1758_v27  ;;  %v14354_v15 = vadd.f32 %v1097_v56, %v14148_v5  ;;  %v14357_v17 = vadd.f32 %v1140_v59, %v14160_v28 }
 0x233   : > { %v1737_v19 = vrot.slane %v1736_v52, 1  ;;  %v1314_v61 = vrot.slane %v1313_v22, 1  ;;  %v1325_v13 = vadd.f32 %v1324_v10, %v14346_v11  ;;  %v14361_v12 = vadd.f32 %v1099_v57, %v14175_v32 }
 0x234   : > { %13121 = vrsqrt.f32 %v1981_v45  ;;  %v1431_v6 = vrot.slane %v14354_v15, 4  ;;  %v1445_v33 = vrot.slane %v14357_v17, 4  ;;  %v14365_v58 = vadd.f32 %v1142_v39, %v620_v55 }
 0x235   : > { %v13116_v34 = vpop.eup %13115  ;;  %13123 = vrsqrt.f32 %v1966_v42  ;;  %v1738_v5 = vadd.f32 %v1737_v19, %v1736_v52  ;;  %v1315_v1 = vadd.f32 %v1314_v61, %v1313_v22  ;;  %v1326_v28 = vrot.slane %v1325_v13, 2 }
 0x236   : > { %v13118_v49 = vpop.eup %13117  ;;  %v2042_v62 = vmul.f32 %v13116_v34, %v14277_v60  ;;  %v1432_v43 = vadd.f32 %v1431_v6, %v14354_v15  ;;  %v1446_v32 = vadd.f32 %v1445_v33, %v14357_v17  ;;  %v1438_v30 = vrot.slane %v14361_v12, 4 }
 0x237   : > { %v2044_v44 = vmul.f32 %v13118_v49, %v14280_v18  ;;  %v1760_v63 = vmul.f32 0.125, %v1738_v5  ;;  %v1343_v56 = vmul.f32 0.125, %v1315_v1  ;;  %v1327_v55 = vadd.f32 %v1326_v28, %v1325_v13 }
 0x238   : > { %v2156_v38 = vmul.f32 %v14164_v53, %v2042_v62  ;;  %v1433_v46 = vrot.slane %v1432_v43, 2  ;;  %v1447_v9 = vrot.slane %v1446_v32, 2  ;;  %v1439_v59 = vadd.f32 %v1438_v30, %v14361_v12 }
 0x239   : > { %v2158_v40 = vmul.f32 %v14212_v51, %v2044_v44  ;;  %v1968_v60 = vadd.f32 1e-05, %v1760_v63  ;;  %v14376_v41 = vsub.f32 %v14327_v24, %v1343_v56  ;;  %v1328_v4 = vrot.slane %v1327_v55, 1 }
 0x23a   : > { %v2270_v7 = vadd.f32 %v14180_v3, %v2156_v38  ;;  %v1434_v2 = vadd.f32 %v1433_v46, %v1432_v43  ;;  %v1448_v18 = vadd.f32 %v1447_v9, %v1446_v32  ;;  %v1440_v23 = vrot.slane %v1439_v59, 2 }
 0x23b   : > { %v2272_v20 = vadd.f32 %v14223_v35, %v2158_v40  ;;  %13125 = vrsqrt.f32 %v1968_v60  ;;  %v1615_v53 = vmul.f32 %v14376_v41, %v14376_v41  ;;  %v1329_v8 = vadd.f32 %v1328_v4, %v1327_v55 }
 0x23c   : > { %vm2302_vm5 = vcmp.ge.f32.partialorder %v2270_v7, 0.0  ;;  %v2334_v27 = vmul.f32 0.01, %v2270_v7  ;;  %v1435_v51 = vrot.slane %v1434_v2, 1  ;;  %v1449_v57 = vrot.slane %v1448_v18, 1 }
 0x23d   : > { %vm2304_vm6 = vcmp.ge.f32.partialorder %v2272_v20, 0.0  ;;  %v2336_v24 = vmul.f32 0.01, %v2272_v20  ;;  %v1726_v52 = vrot.slane %v1615_v53, 4  ;;  %v1345_v22 = vmul.f32 0.125, %v1329_v8 }
 0x23e   : > { %v13120_v10 = vpop.eup %13119  ;;  %v2366_v3 = vsel %vm2302_vm5, %v2270_v7, %v2334_v27  ;;  %v1436_v39 = vadd.f32 %v1435_v51, %v1434_v2  ;;  %v1450_v45 = vadd.f32 %v1449_v57, %v1448_v18  ;;  %v1441_v42 = vadd.f32 %v1440_v23, %v1439_v59 }
 0x23f   : > { %2398 = vst [vmem:[#allocation2 + $0xc0] sm:$0xff] %v2366_v3  ;;  %v2368_v35 = vsel %vm2304_vm6, %v2272_v20, %v2336_v24  ;;  %v2043_v19 = vmul.f32 %v13120_v10, %v14298_v54  ;;  %v1727_v61 = vadd.f32 %v1726_v52, %v1615_v53  ;;  %v14384_v13 = vsub.f32 %v14346_v11, %v1345_v22 }
 0x240   : > { %2400 = vst [vmem:[#allocation2 + $0xd0] sm:$0xff] %v2368_v35  ;;  %v1470_v6 = vmul.f32 0.125, %v1436_v39  ;;  %v1472_v33 = vmul.f32 0.125, %v1450_v45  ;;  %v1442_v34 = vrot.slane %v1441_v42, 1  ;;  %v1452_v5 = vrot.slane %v14365_v58, 4 }
 0x241   : > { %v13122_v1 = vpop.eup %13121  ;;  %v2157_v28 = vmul.f32 %v14263_v36, %v2043_v19  ;;  %v1728_v49 = vrot.slane %v1727_v61, 2  ;;  %v1617_v62 = vmul.f32 %v14384_v13, %v14384_v13  ;;  %v13551_v44 = vmov 0.0  }
 0x242   : > { %v13124_v43 = vpop.eup %13123  ;;  %v2045_v54 = vmul.f32 %v13122_v1, %v14305_v29  ;;  %v14392_v32 = vsub.f32 %v14354_v15, %v1470_v6  ;;  %v14395_v11 = vsub.f32 %v14357_v17, %v1472_v33  ;;  %v1443_v30 = vadd.f32 %v1442_v34, %v1441_v42  ;;  %2406 = vst [vmem:[#allocation3 + $0xb0] sm:$0xff] %v13551_v44 }
 0x243   : > { %2407 = vst [vmem:[#allocation3] sm:$0xff] %v13551_v44  ;;  %2408 = vst [vmem:[#allocation3 + $0xd8] sm:$0xff] %v13551_v44  ;;  %v2271_v36 = vadd.f32 %v14269_v0, %v2157_v28  ;;  %v2030_v29 = vmul.f32 %v13124_v43, %v14308_v21  ;;  %v1729_v15 = vadd.f32 %v1728_v49, %v1727_v61  ;;  %v1740_v17 = vrot.slane %v1617_v62, 4 }
 0x244   : > { %2409 = vst [vmem:[#allocation3 + $0x18] sm:$0xff] %v13551_v44  ;;  %2410 = vst [vmem:[#allocation3 + $0x50] sm:$0xff] %v13551_v44  ;;  %v2159_v63 = vmul.f32 %v14284_v37, %v2045_v54  ;;  %v1790_v56 = vmul.f32 %v14392_v32, %v14392_v32  ;;  %v1792_v55 = vmul.f32 %v14395_v11, %v14395_v11  ;;  %v1471_v38 = vmul.f32 0.125, %v1443_v30 }
 0x245   : > { %2411 = vst [vmem:[#allocation3 + $0x68] sm:$0xff] %v13551_v44  ;;  %2412 = vst [vmem:[#allocation3 + $0x30] sm:$0xff] %v13551_v44  ;;  %vm2303_vm7 = vcmp.ge.f32.partialorder %v2271_v36, 0.0  ;;  %v2335_v46 = vmul.f32 0.01, %v2271_v36  ;;  %v2144_v9 = vmul.f32 %v14332_v25, %v2030_v29  ;;  %v1730_v59 = vrot.slane %v1729_v15, 1 }
 0x246   : > { %2413 = vst [vmem:[#allocation3 + $0x48] sm:$0xff] %v13551_v44  ;;  %2414 = vst [vmem:[#allocation3 + $0x80] sm:$0xff] %v13551_v44  ;;  %v2273_v0 = vadd.f32 %v14318_v16, %v2159_v63  ;;  %v1741_v40 = vadd.f32 %v1740_v17, %v1617_v62  ;;  %v1879_v21 = vrot.slane %v1790_v56, 4  ;;  %v1893_v60 = vrot.slane %v1792_v55, 4 }
 0x247   : > { %2415 = vst [vmem:[#allocation3 + $0x88] sm:$0xff] %v13551_v44  ;;  %2416 = vst [vmem:[#allocation3 + $0xe8] sm:$0xff] %v13551_v44  ;;  %v2367_v4 = vsel %vm2303_vm7, %v2271_v36, %v2335_v46  ;;  %v2258_v37 = vadd.f32 %v14336_v48, %v2144_v9  ;;  %v1731_v7 = vadd.f32 %v1730_v59, %v1729_v15 }
 0x248   : > { %2417 = vst [vmem:[#allocation3 + $0xb8] sm:$0xff] %v13551_v44  ;;  %2418 = vst [vmem:[#allocation3 + $0x60] sm:$0xff] %v13551_v44  ;;  %v14408_v2 = vsub.f32 %v14361_v12, %v1471_v38  ;;  %v13126_v18 = vpop.eup %13125  ;;  %vm2305_vm8 = vcmp.ge.f32.partialorder %v2273_v0, 0.0  ;;  %v2337_v23 = vmul.f32 0.01, %v2273_v0  ;;  %v1742_v20 = vrot.slane %v1741_v40, 2 }
 0x249   : > { %2419 = vst [vmem:[#allocation3 + $0xf0] sm:$0xff] %v13551_v44  ;;  %2420 = vst [vmem:[#allocation3 + $0x8] sm:$0xff] %v13551_v44  ;;  %v1880_v53 = vadd.f32 %v1879_v21, %v1790_v56  ;;  %vm2290_vm9 = vcmp.ge.f32.partialorder %v2258_v37, 0.0  ;;  %v2322_v8 = vmul.f32 0.01, %v2258_v37  ;;  %v2032_v16 = vmul.f32 %v13126_v18, %v14321_v50  ;;  %v13141_v18 = vld [vmem:[#allocation12 + $0x8] sm:$0xff] }
 0x24a   : > { %2421 = vst [vmem:[#allocation3 + $0x78] sm:$0xff] %v13551_v44  ;;  %2422 = vst [vmem:[#allocation3 + $0x38] sm:$0xff] %v13551_v44  ;;  %v1759_v27 = vmul.f32 0.125, %v1731_v7  ;;  %v2369_v51 = vsel %vm2305_vm8, %v2273_v0, %v2337_v23  ;;  %v1743_v57 = vadd.f32 %v1742_v20, %v1741_v40  ;;  %v1894_v52 = vadd.f32 %v1893_v60, %v1792_v55  ;;  %v13140_v40 = vld [vmem:[#allocation10 + $0x8] sm:$0xff] }
 0x24b   : > { %2423 = vst [vmem:[#allocation3 + $0x58] sm:$0xff] %v13551_v44  ;;  %2424 = vst [vmem:[#allocation3 + $0x40] sm:$0xff] %v13551_v44  ;;  %v1881_v24 = vrot.slane %v1880_v53, 2  ;;  %v2354_v22 = vsel %vm2290_vm9, %v2258_v37, %v2322_v8  ;;  %v2146_v12 = vmul.f32 %v14343_v26, %v2032_v16  ;;  %v1791_v3 = vmul.f32 %v14408_v2, %v14408_v2 }
 0x24c   : > { %2425 = vst [vmem:[#allocation3 + $0xc8] sm:$0xff] %v13551_v44  ;;  %2426 = vst [vmem:[#allocation3 + $0xe0] sm:$0xff] %v13551_v44  ;;  %v1967_v10 = vadd.f32 1e-05, %v1759_v27  ;;  %v1744_v39 = vrot.slane %v1743_v57, 1  ;;  %v1895_v42 = vrot.slane %v1894_v52, 2  ;;  %v1453_v50 = vadd.f32 %v1452_v5, %v14365_v58 }
 0x24d   : > { %2427 = vst [vmem:[#allocation3 + $0x90] sm:$0xff] %v13551_v44  ;;  %2428 = vst [vmem:[#allocation3 + $0x70] sm:$0xff] %v13551_v44  ;;  %v1882_v45 = vadd.f32 %v1881_v24, %v1880_v53  ;;  %v2260_v35 = vadd.f32 %v14350_v31, %v2146_v12  ;;  %v1886_v19 = vrot.slane %v1791_v3, 4  ;;  %v2107_v21 = vrot.slane %v13140_v40, %v13866_v14 }
 0x24e   : > { %2429 = vst [vmem:[#allocation3 + $0xc0] sm:$0xff] %v13551_v44  ;;  %2430 = vst [vmem:[#allocation3 + $0xa8] sm:$0xff] %v13551_v44  ;;  %13127 = vrsqrt.f32 %v1967_v10  ;;  %v1745_v61 = vadd.f32 %v1744_v39, %v1743_v57  ;;  %v1896_v33 = vadd.f32 %v1895_v42, %v1894_v52  ;;  %v1454_v34 = vrot.slane %v1453_v50, 2 }
 0x24f   : > { %2431 = vst [vmem:[#allocation3 + $0xd0] sm:$0xff] %v13551_v44  ;;  %2432 = vst [vmem:[#allocation3 + $0x10] sm:$0xff] %v13551_v44  ;;  %v1883_v6 = vrot.slane %v1882_v45, 1  ;;  %vm2292_vm10 = vcmp.ge.f32.partialorder %v2260_v35, 0.0  ;;  %v2324_v1 = vmul.f32 0.01, %v2260_v35  ;;  %v1887_v28 = vadd.f32 %v1886_v19, %v1791_v3 }
 0x250   : > { %2433 = vst [vmem:[#allocation3 + $0x28] sm:$0xff] %v13551_v44  ;;  %2434 = vst [vmem:[#allocation3 + $0xa0] sm:$0xff] %v13551_v44  ;;  %v1761_v49 = vmul.f32 0.125, %v1745_v61  ;;  %v1897_v43 = vrot.slane %v1896_v33, 1  ;;  %v1455_v54 = vadd.f32 %v1454_v34, %v1453_v50  ;;  %v2221_v23 = vrot.slane %v13141_v18, %v13866_v14 }
 0x251   : > { %2435 = vst [vmem:[#allocation3 + $0xf8] sm:$0xff] %v13551_v44  ;;  %2436 = vst [vmem:[#allocation3 + $0x20] sm:$0xff] %v13551_v44  ;;  %v1884_v62 = vadd.f32 %v1883_v6, %v1882_v45  ;;  %v2356_v30 = vsel %vm2292_vm10, %v2260_v35, %v2324_v1 }
 0x252   : > { %2437 = vst [vmem:[#allocation3 + $0x98] sm:$0xff] %v13551_v44  ;;  %2399 = vst [vmem:[#allocation2 + $0xc8] sm:$0xff] %v2367_v4  ;;  %v1888_v44 = vrot.slane %v1887_v28, 2  ;;  %v1969_v36 = vadd.f32 1e-05, %v1761_v49  ;;  %v1898_v29 = vadd.f32 %v1897_v43, %v1896_v33  ;;  %v1456_v15 = vrot.slane %v1455_v54, 1 }
 0x253   : > { %2401 = vst [vmem:[#allocation2 + $0xd8] sm:$0xff] %v2369_v51  ;;  %2386 = vst [vmem:[#allocation2 + $0x60] sm:$0xff] %v2354_v22  ;;  %v1918_v5 = vmul.f32 0.125, %v1884_v62  ;;  %v2115_v51 = vrot.slane %v13140_v40, %v16533_v47  ;;  %v2229_v22 = vrot.slane %v13141_v18, %v16533_v47 }
 0x254   : > { %2388 = vst [vmem:[#allocation2 + $0x70] sm:$0xff] %v2356_v30  ;;  %v1889_v17 = vadd.f32 %v1888_v44, %v1887_v28  ;;  %13129 = vrsqrt.f32 %v1969_v36  ;;  %v1920_v56 = vmul.f32 0.125, %v1898_v29  ;;  %v1457_v55 = vadd.f32 %v1456_v15, %v1455_v54 }
 0x255   : > { %v1982_v63 = vadd.f32 1e-05, %v1918_v5 }
 0x256   : > { %v1890_v38 = vrot.slane %v1889_v17, 1  ;;  %v1984_v46 = vadd.f32 1e-05, %v1920_v56  ;;  %v1473_v9 = vmul.f32 0.125, %v1457_v55 }
 0x257   : > { %13131 = vrsqrt.f32 %v1982_v63 }
 0x258   : > { %v1891_v59 = vadd.f32 %v1890_v38, %v1889_v17  ;;  %13133 = vrsqrt.f32 %v1984_v46  ;;  %v1537_v0 = vsub.f32 %v14365_v58, %v1473_v9 }
 0x25a   : > { %v1919_v60 = vmul.f32 0.125, %v1891_v59  ;;  %v1793_v37 = vmul.f32 %v1537_v0, %v1537_v0 }
 0x25b   : > { %v13128_v4 = vpop.eup %13127 }
 0x25c   : > { %v2031_v7 = vmul.f32 %v13128_v4, %v14376_v41  ;;  %v1983_v20 = vadd.f32 1e-05, %v1919_v60  ;;  %v1900_v53 = vrot.slane %v1793_v37, 4 }
 0x25e   : > { %v2145_v8 = vmul.f32 %v2107_v21, %v2031_v7  ;;  %13135 = vrsqrt.f32 %v1983_v20  ;;  %v1901_v16 = vadd.f32 %v1900_v53, %v1793_v37 }
 0x260   : > { %v2259_v27 = vadd.f32 %v2221_v23, %v2145_v8  ;;  %v1902_v58 = vrot.slane %v1901_v16, 2 }
 0x261   : > { %v13130_v57 = vpop.eup %13129 }
 0x262   : > { %vm2291_vm11 = vcmp.ge.f32.partialorder %v2259_v27, 0.0  ;;  %v2323_v24 = vmul.f32 0.01, %v2259_v27  ;;  %v2033_v52 = vmul.f32 %v13130_v57, %v14384_v13  ;;  %v1903_v41 = vadd.f32 %v1902_v58, %v1901_v16 }
 0x264   : > { %v13132_v12 = vpop.eup %13131  ;;  %v2355_v10 = vsel %vm2291_vm11, %v2259_v27, %v2323_v24  ;;  %v2147_v14 = vmul.f32 %v2115_v51, %v2033_v52  ;;  %v1904_v39 = vrot.slane %v1903_v41, 1 }
 0x265   : > { %2387 = vst [vmem:[#allocation2 + $0x68] sm:$0xff] %v2355_v10  ;;  %v2046_v3 = vmul.f32 %v13132_v12, %v14392_v32  ;;  %v13134_v45 = vpop.eup %13133 }
 0x266   : > { %v2261_v42 = vadd.f32 %v2229_v22, %v2147_v14  ;;  %v2048_v35 = vmul.f32 %v13134_v45, %v14395_v11  ;;  %v1905_v19 = vadd.f32 %v1904_v39, %v1903_v41 }
 0x267   : > { %v2160_v50 = vmul.f32 %v14332_v25, %v2046_v3 }
 0x268   : > { %vm2293_vm12 = vcmp.ge.f32.partialorder %v2261_v42, 0.0  ;;  %v2325_v61 = vmul.f32 0.01, %v2261_v42  ;;  %v2162_v47 = vmul.f32 %v14343_v26, %v2048_v35  ;;  %v1921_v6 = vmul.f32 0.125, %v1905_v19 }
 0x269   : > { %v2274_v13 = vadd.f32 %v14336_v48, %v2160_v50 }
 0x26a   : > { %v2357_v34 = vsel %vm2293_vm12, %v2261_v42, %v2325_v61  ;;  %v2276_v32 = vadd.f32 %v14350_v31, %v2162_v47  ;;  %v1985_v25 = vadd.f32 1e-05, %v1921_v6 }
 0x26b   : > { %v13136_v33 = vpop.eup %13135  ;;  %vm2306_vm13 = vcmp.ge.f32.partialorder %v2274_v13, 0.0  ;;  %v2338_v1 = vmul.f32 0.01, %v2274_v13  ;;  %2389 = vst [vmem:[#allocation2 + $0x78] sm:$0xff] %v2357_v34 }
 0x26c   : > { %v2047_v28 = vmul.f32 %v13136_v33, %v14408_v2  ;;  %vm2308_vm14 = vcmp.ge.f32.partialorder %v2276_v32, 0.0  ;;  %v2340_v11 = vmul.f32 0.01, %v2276_v32  ;;  %13137 = vrsqrt.f32 %v1985_v25 }
 0x26d   : > { %v2370_v49 = vsel %vm2306_vm13, %v2274_v13, %v2338_v1 }
 0x26e   : > { %2402 = vst [vmem:[#allocation2 + $0xe0] sm:$0xff] %v2370_v49  ;;  %v2161_v62 = vmul.f32 %v2107_v21, %v2047_v28  ;;  %v2372_v48 = vsel %vm2308_vm14, %v2276_v32, %v2340_v11 }
 0x26f   : > { %2404 = vst [vmem:[#allocation2 + $0xf0] sm:$0xff] %v2372_v48 }
 0x270   : > { %v2275_v26 = vadd.f32 %v2221_v23, %v2161_v62 }
 0x272   : > { %vm2307_vm15 = vcmp.ge.f32.partialorder %v2275_v26, 0.0  ;;  %v2339_v43 = vmul.f32 0.01, %v2275_v26 }
 0x274   : > { %v2371_v54 = vsel %vm2307_vm15, %v2275_v26, %v2339_v43 }
 0x275   : > { %2403 = vst [vmem:[#allocation2 + $0xe8] sm:$0xff] %v2371_v54 }
 0x279   : > { %v13138_v30 = vpop.eup %13137 }
 0x27a   : > { %v2049_v44 = vmul.f32 %v13138_v30, %v1537_v0 }
 0x27c   : > { %v2163_v31 = vmul.f32 %v2115_v51, %v2049_v44 }
 0x27e   : > { %v2277_v36 = vadd.f32 %v2229_v22, %v2163_v31 }
 0x280   : > { %vm2309_vm0 = vcmp.ge.f32.partialorder %v2277_v36, 0.0  ;;  %v2341_v2 = vmul.f32 0.01, %v2277_v36 }
 0x282   : > { %v2373_v5 = vsel %vm2309_vm0, %v2277_v36, %v2341_v2 }
 0x283   : > { %2405 = vst [vmem:[#allocation2 + $0xf8] sm:$0xff] %v2373_v5 }
 0x284 PF: > { %v2611_v29 = vld [vmem:[%s13808_s28 + $0x380] sm:$0xff]  ;;  %s11905_s17 = sshll.u32 %s13636_s24, 10  ;;  %p12931_p1 = scmp.ne.s32.totalorder %s13636_s24, 1 }
 0x285   : > { %v2619_v15 = vld [vmem:[%s13808_s28 + $0x3c0] sm:$0xff]  ;;  %s14453_s29 = sshra.s32 %s11905_s17, 7 }
 0x286   : > { %v2867_v17 = vld [vmem:[%s13808_s28 + $0xb80] sm:$0xff]  ;;  %v12020_v63 = vcombine.high %v2611_v29, %v2619_v15  ;;  %v12019_v55 = vcombine.low %v2611_v29, %v2619_v15  ;;  %s11906_s26 = sshll.u32 %s14453_s29, 3 }
 0x287   : > { %v2875_v56 = vld [vmem:[%s13808_s28 + $0xbc0] sm:$0xff]  ;;  %s14465_s27 = scalar_lea.vmem [#allocation2], %s11906_s26 }
 0x288   : > { %v2595_v38 = vld [vmem:[%s13808_s28 + $0x300] sm:$0xff]  ;;  %v12276_v9 = vcombine.high %v2867_v17, %v2875_v56  ;;  %v12275_v59 = vcombine.low %v2867_v17, %v2875_v56  ;;  %8643 = vmatprep.subr.bf16.mxu0 %v12020_v63 }
 0x289   : > { %v2603_v46 = vld [vmem:[%s13808_s28 + $0x340] sm:$0xff]  ;;  %8644 = vmatpush1.bf16.msra.mxu0 %v12019_v55 }
 0x28a   : > { %v12004_v0 = vcombine.high %v2595_v38, %v2603_v46  ;;  %v2851_v40 = vld [vmem:[%s13808_s28 + $0xb00] sm:$0xff]  ;;  %8686 = vmatprep.subr.bf16.mxu1 %v12276_v9  ;;  %v12003_v23 = vcombine.low %v2595_v38, %v2603_v46  ;;  %v2446_v44 = vld [vmem:[%s14465_s27 + $0x18] sm:$0xff] }
 0x28b   : > { %v2859_v21 = vld [vmem:[%s13808_s28 + $0xb40] sm:$0xff]  ;;  %8687 = vmatpush1.bf16.msra.mxu1 %v12275_v59  ;;  %v2454_v31 = vld [vmem:[%s14465_s27 + $0x98] sm:$0xff] }
 0x28c   : > { %v2579_v60 = vld [vmem:[%s13808_s28 + $0x280] sm:$0xff]  ;;  %v12260_v4 = vcombine.high %v2851_v40, %v2859_v21  ;;  %8645 = vmatprep.subr.bf16.mxu0 %v12004_v0  ;;  %v12259_v20 = vcombine.low %v2851_v40, %v2859_v21  ;;  %v14476_v5 = vpack.c.bf16 %v2454_v31, %v2446_v44 }
 0x28d   : > { %v2587_v37 = vld [vmem:[%s13808_s28 + $0x2c0] sm:$0xff]  ;;  %8646 = vmatpush1.bf16.msra.mxu0 %v12003_v23 }
 0x28e   : > { %v2835_v7 = vld [vmem:[%s13808_s28 + $0xa80] sm:$0xff]  ;;  %v11988_v53 = vcombine.high %v2579_v60, %v2587_v37  ;;  %8688 = vmatprep.subr.bf16.mxu1 %v12260_v4  ;;  %v11987_v57 = vcombine.low %v2579_v60, %v2587_v37  ;;  %8718 = vmatprep.mubr.bf16.mxu1 %v14476_v5 }
 0x28f   : > { %v2843_v18 = vld [vmem:[%s13808_s28 + $0xac0] sm:$0xff]  ;;  %8689 = vmatpush1.bf16.msra.mxu1 %v12259_v20 }
 0x290   : > { %v12244_v8 = vcombine.high %v2835_v7, %v2843_v18  ;;  %v2563_v16 = vld [vmem:[%s13808_s28 + $0x200] sm:$0xff]  ;;  %8647 = vmatprep.subr.bf16.mxu0 %v11988_v53  ;;  %v12243_v24 = vcombine.low %v2835_v7, %v2843_v18 }
 0x291   : > { %v2571_v27 = vld [vmem:[%s13808_s28 + $0x240] sm:$0xff]  ;;  %8648 = vmatpush1.bf16.msra.mxu0 %v11987_v57 }
 0x292   : > { %v2819_v51 = vld [vmem:[%s13808_s28 + $0xa00] sm:$0xff]  ;;  %v11972_v52 = vcombine.high %v2563_v16, %v2571_v27  ;;  %8690 = vmatprep.subr.bf16.mxu1 %v12244_v8  ;;  %v11971_v3 = vcombine.low %v2563_v16, %v2571_v27 }
 0x293   : > { %v2827_v58 = vld [vmem:[%s13808_s28 + $0xa40] sm:$0xff]  ;;  %8691 = vmatpush1.bf16.msra.mxu1 %v12243_v24 }
 0x294   : > { %v12228_v22 = vcombine.high %v2819_v51, %v2827_v58  ;;  %v2547_v41 = vld [vmem:[%s13808_s28 + $0x180] sm:$0xff]  ;;  %8649 = vmatprep.subr.bf16.mxu0 %v11972_v52  ;;  %v12227_v39 = vcombine.low %v2819_v51, %v2827_v58 }
 0x295   : > { %v2555_v12 = vld [vmem:[%s13808_s28 + $0x1c0] sm:$0xff]  ;;  %8650 = vmatpush1.bf16.msra.mxu0 %v11971_v3 }
 0x296   : > { %v2803_v10 = vld [vmem:[%s13808_s28 + $0x980] sm:$0xff]  ;;  %v11956_v45 = vcombine.high %v2547_v41, %v2555_v12  ;;  %8692 = vmatprep.subr.bf16.mxu1 %v12228_v22  ;;  %v11955_v13 = vcombine.low %v2547_v41, %v2555_v12 }
 0x297   : > { %v2811_v14 = vld [vmem:[%s13808_s28 + $0x9c0] sm:$0xff]  ;;  %8693 = vmatpush1.bf16.msra.mxu1 %v12227_v39 }
 0x298   : > { %v12212_v42 = vcombine.high %v2803_v10, %v2811_v14  ;;  %v2531_v50 = vld [vmem:[%s13808_s28 + $0x100] sm:$0xff]  ;;  %8651 = vmatprep.subr.bf16.mxu0 %v11956_v45  ;;  %v12211_v47 = vcombine.low %v2803_v10, %v2811_v14 }
 0x299   : > { %v2539_v35 = vld [vmem:[%s13808_s28 + $0x140] sm:$0xff]  ;;  %8652 = vmatpush1.bf16.msra.mxu0 %v11955_v13 }
 0x29a   : > { %v2787_v19 = vld [vmem:[%s13808_s28 + $0x900] sm:$0xff]  ;;  %v11940_v6 = vcombine.high %v2531_v50, %v2539_v35  ;;  %8694 = vmatprep.subr.bf16.mxu1 %v12212_v42  ;;  %v11939_v25 = vcombine.low %v2531_v50, %v2539_v35 }
 0x29b   : > { %v2795_v61 = vld [vmem:[%s13808_s28 + $0x940] sm:$0xff]  ;;  %8695 = vmatpush1.bf16.msra.mxu1 %v12211_v47 }
 0x29c   : > { %v12196_v33 = vcombine.high %v2787_v19, %v2795_v61  ;;  %v2515_v34 = vld [vmem:[%s13808_s28 + $0x80] sm:$0xff]  ;;  %8653 = vmatprep.subr.bf16.mxu0 %v11940_v6  ;;  %v12195_v49 = vcombine.low %v2787_v19, %v2795_v61 }
 0x29d   : > { %v2523_v1 = vld [vmem:[%s13808_s28 + $0xc0] sm:$0xff]  ;;  %8654 = vmatpush1.bf16.msra.mxu0 %v11939_v25 }
 0x29e   : > { %v2771_v32 = vld [vmem:[%s13808_s28 + $0x880] sm:$0xff]  ;;  %v11924_v11 = vcombine.high %v2515_v34, %v2523_v1  ;;  %8696 = vmatprep.subr.bf16.mxu1 %v12196_v33  ;;  %v11923_v29 = vcombine.low %v2515_v34, %v2523_v1 }
 0x29f   : > { %v2779_v28 = vld [vmem:[%s13808_s28 + $0x8c0] sm:$0xff]  ;;  %8697 = vmatpush1.bf16.msra.mxu1 %v12195_v49 }
 0x2a0   : > { %v2499_v62 = vld [vmem:[%s13808_s28] sm:$0xff]  ;;  %v12180_v43 = vcombine.high %v2771_v32, %v2779_v28  ;;  %8655 = vmatprep.subr.bf16.mxu0 %v11924_v11  ;;  %v12179_v15 = vcombine.low %v2771_v32, %v2779_v28 }
 0x2a1   : > { %v2444_v48 = vld [vmem:[%s14465_s27 + $0x8] sm:$0xff]  ;;  %8656 = vmatpush1.bf16.msra.mxu0 %v11923_v29 }
 0x2a2   : > { %v2452_v26 = vld [vmem:[%s14465_s27 + $0x88] sm:$0xff]  ;;  %8698 = vmatprep.subr.bf16.mxu1 %v12180_v43 }
 0x2a3   : > { %v2507_v54 = vld [vmem:[%s13808_s28 + $0x40] sm:$0xff]  ;;  %v14470_v30 = vpack.c.bf16 %v2452_v26, %v2444_v48  ;;  %8699 = vmatpush1.bf16.msra.mxu1 %v12179_v15 }
 0x2a4   : > { %v2755_v36 = vld [vmem:[%s13808_s28 + $0x800] sm:$0xff]  ;;  %v11908_v17 = vcombine.high %v2499_v62, %v2507_v54  ;;  %v11907_v9 = vcombine.low %v2499_v62, %v2507_v54 }
 0x2a5   : > { %v2763_v2 = vld [vmem:[%s13808_s28 + $0x840] sm:$0xff]  ;;  %8675 = vmatprep.mubr.bf16.mxu0 %v14470_v30 }
 0x2a6   : > { %v12164_v63 = vcombine.high %v2755_v36, %v2763_v2  ;;  %v2739_v56 = vld [vmem:[%s13808_s28 + $0x780] sm:$0xff]  ;;  %8657 = vmatprep.subr.bf16.mxu0 %v11908_v17  ;;  %v12163_v59 = vcombine.low %v2755_v36, %v2763_v2 }
 0x2a7   : > { %v2747_v55 = vld [vmem:[%s13808_s28 + $0x7c0] sm:$0xff]  ;;  %8658 = vmatpush1.bf16.msra.mxu0 %v11907_v9 }
 0x2a8   : > { %v2995_v38 = vld [vmem:[%s13808_s28 + $0xf80] sm:$0xff]  ;;  %v12148_v0 = vcombine.high %v2739_v56, %v2747_v55  ;;  %8700 = vmatprep.subr.bf16.mxu1 %v12164_v63  ;;  %v12147_v7 = vcombine.low %v2739_v56, %v2747_v55 }
 0x2a9   : > { %v3003_v46 = vld [vmem:[%s13808_s28 + $0xfc0] sm:$0xff]  ;;  %8701 = vmatpush1.bf16.msra.mxu1 %v12163_v59 }
 0x2aa   : > { %v12404_v40 = vcombine.high %v2995_v38, %v3003_v46  ;;  %v2723_v21 = vld [vmem:[%s13808_s28 + $0x700] sm:$0xff]  ;;  %8659 = vmatprep.subr.bf16.mxu0 %v12148_v0  ;;  %v12403_v18 = vcombine.low %v2995_v38, %v3003_v46 }
 0x2ab   : > { %v2731_v60 = vld [vmem:[%s13808_s28 + $0x740] sm:$0xff]  ;;  %8660 = vmatpush2.bf16.msra.mxu0 %v12147_v7 }
 0x2ac   : > { %v2979_v4 = vld [vmem:[%s13808_s28 + $0xf00] sm:$0xff]  ;;  %v12132_v23 = vcombine.high %v2723_v21, %v2731_v60  ;;  %8702 = vmatprep.subr.bf16.mxu1 %v12404_v40  ;;  %v12131_v51 = vcombine.low %v2723_v21, %v2731_v60 }
 0x2ad   : > { %v2987_v37 = vld [vmem:[%s13808_s28 + $0xf40] sm:$0xff]  ;;  %8703 = vmatpush2.bf16.msra.mxu1 %v12403_v18 }
 0x2ae   : > { %v12388_v20 = vcombine.high %v2979_v4, %v2987_v37  ;;  %v2707_v53 = vld [vmem:[%s13808_s28 + $0x680] sm:$0xff]  ;;  %8661 = vmatprep.subr.bf16.mxu0 %v12132_v23  ;;  %v12387_v58 = vcombine.low %v2979_v4, %v2987_v37  ;;  %v2445_v4 = vld [vmem:[%s14465_s27 + $0x10] sm:$0xff] }
 0x2af   : > { %v2715_v8 = vld [vmem:[%s13808_s28 + $0x6c0] sm:$0xff]  ;;  %8662 = vmatpush2.bf16.msra.mxu0 %v12131_v51  ;;  %v2453_v37 = vld [vmem:[%s14465_s27 + $0x90] sm:$0xff] }
 0x2b0   : > { %v2963_v16 = vld [vmem:[%s13808_s28 + $0xe80] sm:$0xff]  ;;  %v12116_v57 = vcombine.high %v2707_v53, %v2715_v8  ;;  %8704 = vmatprep.subr.bf16.mxu1 %v12388_v20  ;;  %v12115_v10 = vcombine.low %v2707_v53, %v2715_v8 }
 0x2b1   : > { %v2971_v27 = vld [vmem:[%s13808_s28 + $0xec0] sm:$0xff]  ;;  %8705 = vmatpush2.bf16.msra.mxu1 %v12387_v58  ;;  %v14528_v58 = vpack.c.bf16 %v2453_v37, %v2445_v4 }
 0x2b2   : > { %v12372_v24 = vcombine.high %v2963_v16, %v2971_v27  ;;  %v2691_v52 = vld [vmem:[%s13808_s28 + $0x600] sm:$0xff]  ;;  %8663 = vmatprep.subr.bf16.mxu0 %v12116_v57  ;;  %v12371_v14 = vcombine.low %v2963_v16, %v2971_v27 }
 0x2b3   : > { %v2699_v22 = vld [vmem:[%s13808_s28 + $0x640] sm:$0xff]  ;;  %8664 = vmatpush2.bf16.msra.mxu0 %v12115_v10 }
 0x2b4   : > { %v2947_v41 = vld [vmem:[%s13808_s28 + $0xe00] sm:$0xff]  ;;  %v12100_v3 = vcombine.high %v2691_v52, %v2699_v22  ;;  %8706 = vmatprep.subr.bf16.mxu1 %v12372_v24  ;;  %v12099_v19 = vcombine.low %v2691_v52, %v2699_v22  ;;  %v2450_v24 = vld [vmem:[%s14465_s27 + $0x38] sm:$0xff] }
 0x2b5   : > { %v2955_v12 = vld [vmem:[%s13808_s28 + $0xe40] sm:$0xff]  ;;  %8707 = vmatpush2.bf16.msra.mxu1 %v12371_v14  ;;  %v2458_v52 = vld [vmem:[%s14465_s27 + $0xb8] sm:$0xff] }
 0x2b6   : > { %v12356_v39 = vcombine.high %v2947_v41, %v2955_v12  ;;  %v2675_v45 = vld [vmem:[%s13808_s28 + $0x580] sm:$0xff]  ;;  %8665 = vmatprep.subr.bf16.mxu0 %v12100_v3  ;;  %v12355_v61 = vcombine.low %v2947_v41, %v2955_v12 }
 0x2b7   : > { %v2683_v42 = vld [vmem:[%s13808_s28 + $0x5c0] sm:$0xff]  ;;  %8666 = vmatpush2.bf16.msra.mxu0 %v12099_v19 }
 0x2b8   : > { %v2931_v50 = vld [vmem:[%s13808_s28 + $0xd80] sm:$0xff]  ;;  %v12084_v13 = vcombine.high %v2675_v45, %v2683_v42  ;;  %8708 = vmatprep.subr.bf16.mxu1 %v12356_v39  ;;  %v12083_v32 = vcombine.low %v2675_v45, %v2683_v42  ;;  %v14539_v42 = vpack.c.bf16 %v2458_v52, %v2450_v24 }
 0x2b9   : > { %v2939_v35 = vld [vmem:[%s13808_s28 + $0xdc0] sm:$0xff]  ;;  %8709 = vmatpush2.bf16.msra.mxu1 %v12355_v61 }
 0x2ba   : > { %v12340_v47 = vcombine.high %v2931_v50, %v2939_v35  ;;  %v2659_v6 = vld [vmem:[%s13808_s28 + $0x500] sm:$0xff]  ;;  %8667 = vmatprep.subr.bf16.mxu0 %v12084_v13  ;;  %v12339_v28 = vcombine.low %v2931_v50, %v2939_v35 }
 0x2bb   : > { %v2667_v33 = vld [vmem:[%s13808_s28 + $0x540] sm:$0xff]  ;;  %8668 = vmatpush2.bf16.msra.mxu0 %v12083_v32 }
 0x2bc   : > { %v2915_v34 = vld [vmem:[%s13808_s28 + $0xd00] sm:$0xff]  ;;  %v12068_v25 = vcombine.high %v2659_v6, %v2667_v33  ;;  %8710 = vmatprep.subr.bf16.mxu1 %v12340_v47  ;;  %v12067_v43 = vcombine.low %v2659_v6, %v2667_v33 }
 0x2bd   : > { %v2923_v1 = vld [vmem:[%s13808_s28 + $0xd40] sm:$0xff]  ;;  %8711 = vmatpush2.bf16.msra.mxu1 %v12339_v28 }
 0x2be   : > { %v12324_v49 = vcombine.high %v2915_v34, %v2923_v1  ;;  %v2643_v11 = vld [vmem:[%s13808_s28 + $0x480] sm:$0xff]  ;;  %8669 = vmatprep.subr.bf16.mxu0 %v12068_v25  ;;  %v12323_v54 = vcombine.low %v2915_v34, %v2923_v1 }
 0x2bf   : > { %v2651_v62 = vld [vmem:[%s13808_s28 + $0x4c0] sm:$0xff]  ;;  %8670 = vmatpush2.bf16.msra.mxu0 %v12067_v43 }
 0x2c0   : > { %v2899_v48 = vld [vmem:[%s13808_s28 + $0xc80] sm:$0xff]  ;;  %v12052_v44 = vcombine.high %v2643_v11, %v2651_v62  ;;  %8712 = vmatprep.subr.bf16.mxu1 %v12324_v49  ;;  %v12051_v17 = vcombine.low %v2643_v11, %v2651_v62 }
 0x2c1   : > { %v2907_v26 = vld [vmem:[%s13808_s28 + $0xcc0] sm:$0xff]  ;;  %8713 = vmatpush2.bf16.msra.mxu1 %v12323_v54 }
 0x2c2   : > { %v12308_v31 = vcombine.high %v2899_v48, %v2907_v26  ;;  %v2627_v36 = vld [vmem:[%s13808_s28 + $0x400] sm:$0xff]  ;;  %8671 = vmatprep.subr.bf16.mxu0 %v12052_v44  ;;  %v12307_v63 = vcombine.low %v2899_v48, %v2907_v26 }
 0x2c3   : > { %v2635_v2 = vld [vmem:[%s13808_s28 + $0x440] sm:$0xff]  ;;  %8672 = vmatpush2.bf16.msra.mxu0 %v12051_v17 }
 0x2c4   : > { %v2883_v29 = vld [vmem:[%s13808_s28 + $0xc00] sm:$0xff]  ;;  %v12036_v56 = vcombine.high %v2627_v36, %v2635_v2  ;;  %8714 = vmatprep.subr.bf16.mxu1 %v12308_v31  ;;  %v12035_v0 = vcombine.low %v2627_v36, %v2635_v2 }
 0x2c5   : > { %v2891_v15 = vld [vmem:[%s13808_s28 + $0xc40] sm:$0xff]  ;;  %8715 = vmatpush2.bf16.msra.mxu1 %v12307_v63 }
 0x2c6   : > { %v12292_v55 = vcombine.high %v2883_v29, %v2891_v15  ;;  %v3123_v38 = vld [vmem:[%s13808_s28 + $0x1380] sm:$0xff]  ;;  %8673 = vmatprep.subr.bf16.mxu0 %v12036_v56  ;;  %v12291_v60 = vcombine.low %v2883_v29, %v2891_v15 }
 0x2c7   : > { %v3131_v46 = vld [vmem:[%s13808_s28 + $0x13c0] sm:$0xff]  ;;  %8674 = vmatpush2.bf16.msra.mxu0 %v12035_v0 }
 0x2c8   : > { %v3379_v9 = vld [vmem:[%s13808_s28 + $0x1b80] sm:$0xff]  ;;  %v12532_v7 = vcombine.high %v3123_v38, %v3131_v46  ;;  %8716 = vmatprep.subr.bf16.mxu1 %v12292_v55  ;;  %v12531_v57 = vcombine.low %v3123_v38, %v3131_v46 }
 0x2c9   : > { %v3387_v59 = vld [vmem:[%s13808_s28 + $0x1bc0] sm:$0xff]  ;;  %8717 = vmatpush2.bf16.msra.mxu1 %v12291_v60 }
 0x2ca   : > { %v2443_v40 = vld [vmem:[%s14465_s27] sm:$0xff]  ;;  %v12788_v18 = vcombine.high %v3379_v9, %v3387_v59  ;;  %v2448_v27 = vld [vmem:[%s14465_s27 + $0x28] sm:$0xff]  ;;  %8729 = vmatprep.subr.bf16.mxu0 %v12532_v7  ;;  %v12787_v22 = vcombine.low %v3379_v9, %v3387_v59 }
 0x2cb   : > { %v2451_v21 = vld [vmem:[%s14465_s27 + $0x80] sm:$0xff]  ;;  %v2456_v51 = vld [vmem:[%s14465_s27 + $0xa8] sm:$0xff] }
 0x2cc   : > { %v3107_v23 = vld [vmem:[%s13808_s28 + $0x1300] sm:$0xff]  ;;  %v14523_v8 = vpack.c.bf16 %v2451_v21, %v2443_v40  ;;  %8772 = vmatprep.subr.bf16.mxu1 %v12788_v18  ;;  %v14534_v3 = vpack.c.bf16 %v2456_v51, %v2448_v27  ;;  %8719 = vmatmul.mubr.bf16.vlgmr.msra.gmra.mxu1 %v14528_v58 }
 0x2cd   : > { %v3115_v20 = vld [vmem:[%s13808_s28 + $0x1340] sm:$0xff]  ;;  %8773 = vmatpush1.bf16.msra.mxu1 %v12787_v22  ;;  %8804 = vmatprep.mubr.bf16.mxu1 %v14539_v42 }
 0x2ce   : > { %v3363_v53 = vld [vmem:[%s13808_s28 + $0x1b00] sm:$0xff]  ;;  %v12516_v41 = vcombine.high %v3107_v23, %v3115_v20  ;;  %8676 = vmatmul.mubr.bf16.vlgmr.msra.gmra.mxu0 %v14523_v8  ;;  %v12515_v50 = vcombine.low %v3107_v23, %v3115_v20 }
 0x2cf   : > { %v3371_v16 = vld [vmem:[%s13808_s28 + $0x1b40] sm:$0xff]  ;;  %8730 = vmatpush1.bf16.msra.mxu0 %v12531_v57  ;;  %8761 = vmatprep.mubr.bf16.mxu0 %v14534_v3 }
 0x2d0   : > { %v12772_v12 = vcombine.high %v3363_v53, %v3371_v16  ;;  %v3091_v10 = vld [vmem:[%s13808_s28 + $0x1280] sm:$0xff]  ;;  %8731 = vmatprep.subr.bf16.mxu0 %v12516_v41  ;;  %v12771_v35 = vcombine.low %v3363_v53, %v3371_v16 }
 0x2d1   : > { %v3099_v14 = vld [vmem:[%s13808_s28 + $0x12c0] sm:$0xff] }
 0x2d2   : > { %v3347_v39 = vld [vmem:[%s13808_s28 + $0x1a80] sm:$0xff]  ;;  %v12500_v19 = vcombine.high %v3091_v10, %v3099_v14  ;;  %8774 = vmatprep.subr.bf16.mxu1 %v12772_v12  ;;  %v12499_v34 = vcombine.low %v3091_v10, %v3099_v14 }
 0x2d3   : > { %v3355_v45 = vld [vmem:[%s13808_s28 + $0x1ac0] sm:$0xff]  ;;  %8732 = vmatpush1.bf16.msra.mxu0 %v12515_v50  ;;  %8775 = vmatpush1.bf16.msra.mxu1 %v12771_v35 }
 0x2d4   : > { %v12756_v61 = vcombine.high %v3347_v39, %v3355_v45  ;;  %v3075_v13 = vld [vmem:[%s13808_s28 + $0x1200] sm:$0xff]  ;;  %8733 = vmatprep.subr.bf16.mxu0 %v12500_v19  ;;  %v12755_v1 = vcombine.low %v3347_v39, %v3355_v45 }
 0x2d5   : > { %v3083_v47 = vld [vmem:[%s13808_s28 + $0x1240] sm:$0xff] }
 0x2d6   : > { %v3331_v6 = vld [vmem:[%s13808_s28 + $0x1a00] sm:$0xff]  ;;  %v12484_v32 = vcombine.high %v3075_v13, %v3083_v47  ;;  %8776 = vmatprep.subr.bf16.mxu1 %v12756_v61  ;;  %v12483_v48 = vcombine.low %v3075_v13, %v3083_v47 }
 0x2d7   : > { %v3339_v33 = vld [vmem:[%s13808_s28 + $0x1a40] sm:$0xff]  ;;  %8734 = vmatpush1.bf16.msra.mxu0 %v12499_v34  ;;  %8777 = vmatpush1.bf16.msra.mxu1 %v12755_v1 }
 0x2d8   : > { %v12740_v28 = vcombine.high %v3331_v6, %v3339_v33  ;;  %v3059_v25 = vld [vmem:[%s13808_s28 + $0x1180] sm:$0xff]  ;;  %8735 = vmatprep.subr.bf16.mxu0 %v12484_v32  ;;  %v12739_v26 = vcombine.low %v3331_v6, %v3339_v33 }
 0x2d9   : > { %v3067_v49 = vld [vmem:[%s13808_s28 + $0x11c0] sm:$0xff] }
 0x2da   : > { %v3315_v11 = vld [vmem:[%s13808_s28 + $0x1980] sm:$0xff]  ;;  %v12468_v43 = vcombine.high %v3059_v25, %v3067_v49  ;;  %8778 = vmatprep.subr.bf16.mxu1 %v12740_v28  ;;  %v12467_v29 = vcombine.low %v3059_v25, %v3067_v49 }
 0x2db   : > { %v3323_v62 = vld [vmem:[%s13808_s28 + $0x19c0] sm:$0xff]  ;;  %8736 = vmatpush1.bf16.msra.mxu0 %v12483_v48  ;;  %8779 = vmatpush1.bf16.msra.mxu1 %v12739_v26 }
 0x2dc   : > { %v12724_v54 = vcombine.high %v3315_v11, %v3323_v62  ;;  %v3043_v44 = vld [vmem:[%s13808_s28 + $0x1100] sm:$0xff]  ;;  %8737 = vmatprep.subr.bf16.mxu0 %v12468_v43  ;;  %v12723_v15 = vcombine.low %v3315_v11, %v3323_v62 }
 0x2dd   : > { %v3051_v31 = vld [vmem:[%s13808_s28 + $0x1140] sm:$0xff] }
 0x2de   : > { %v3299_v36 = vld [vmem:[%s13808_s28 + $0x1900] sm:$0xff]  ;;  %v12452_v17 = vcombine.high %v3043_v44, %v3051_v31  ;;  %8780 = vmatprep.subr.bf16.mxu1 %v12724_v54  ;;  %v12451_v9 = vcombine.low %v3043_v44, %v3051_v31 }
 0x2df   : > { %v3307_v2 = vld [vmem:[%s13808_s28 + $0x1940] sm:$0xff]  ;;  %8738 = vmatpush1.bf16.msra.mxu0 %v12467_v29  ;;  %8781 = vmatpush1.bf16.msra.mxu1 %v12723_v15 }
 0x2e0   : > { %v12708_v63 = vcombine.high %v3299_v36, %v3307_v2  ;;  %v3027_v56 = vld [vmem:[%s13808_s28 + $0x1080] sm:$0xff]  ;;  %8739 = vmatprep.subr.bf16.mxu0 %v12452_v17  ;;  %v12707_v59 = vcombine.low %v3299_v36, %v3307_v2 }
 0x2e1   : > { %v3035_v55 = vld [vmem:[%s13808_s28 + $0x10c0] sm:$0xff] }
 0x2e2   : > { %v3283_v38 = vld [vmem:[%s13808_s28 + $0x1880] sm:$0xff]  ;;  %v12436_v0 = vcombine.high %v3027_v56, %v3035_v55  ;;  %8782 = vmatprep.subr.bf16.mxu1 %v12708_v63  ;;  %v12435_v7 = vcombine.low %v3027_v56, %v3035_v55 }
 0x2e3   : > { %v3291_v46 = vld [vmem:[%s13808_s28 + $0x18c0] sm:$0xff]  ;;  %8740 = vmatpush1.bf16.msra.mxu0 %v12451_v9  ;;  %8783 = vmatpush1.bf16.msra.mxu1 %v12707_v59 }
 0x2e4   : > { %v12692_v40 = vcombine.high %v3283_v38, %v3291_v46  ;;  %v3011_v21 = vld [vmem:[%s13808_s28 + $0x1000] sm:$0xff]  ;;  %8741 = vmatprep.subr.bf16.mxu0 %v12436_v0  ;;  %v12691_v18 = vcombine.low %v3283_v38, %v3291_v46 }
 0x2e5   : > { %v3019_v60 = vld [vmem:[%s13808_s28 + $0x1040] sm:$0xff] }
 0x2e6   : > { %v3267_v4 = vld [vmem:[%s13808_s28 + $0x1800] sm:$0xff]  ;;  %v12420_v23 = vcombine.high %v3011_v21, %v3019_v60  ;;  %8784 = vmatprep.subr.bf16.mxu1 %v12692_v40  ;;  %v12419_v57 = vcombine.low %v3011_v21, %v3019_v60 }
 0x2e7   : > { %v3275_v37 = vld [vmem:[%s13808_s28 + $0x1840] sm:$0xff]  ;;  %8742 = vmatpush1.bf16.msra.mxu0 %v12435_v7  ;;  %8785 = vmatpush1.bf16.msra.mxu1 %v12691_v18 }
 0x2e8   : > { %v12676_v20 = vcombine.high %v3267_v4, %v3275_v37  ;;  %v3251_v53 = vld [vmem:[%s13808_s28 + $0x1780] sm:$0xff]  ;;  %8743 = vmatprep.subr.bf16.mxu0 %v12420_v23  ;;  %v12675_v24 = vcombine.low %v3267_v4, %v3275_v37 }
 0x2e9   : > { %v3259_v16 = vld [vmem:[%s13808_s28 + $0x17c0] sm:$0xff] }
 0x2ea   : > { %v3507_v27 = vld [vmem:[%s13808_s28 + $0x1f80] sm:$0xff]  ;;  %v12660_v52 = vcombine.high %v3251_v53, %v3259_v16  ;;  %8786 = vmatprep.subr.bf16.mxu1 %v12676_v20  ;;  %v12659_v39 = vcombine.low %v3251_v53, %v3259_v16 }
 0x2eb   : > { %v3515_v51 = vld [vmem:[%s13808_s28 + $0x1fc0] sm:$0xff]  ;;  %8744 = vmatpush1.bf16.msra.mxu0 %v12419_v57  ;;  %8787 = vmatpush1.bf16.msra.mxu1 %v12675_v24 }
 0x2ec   : > { %v12916_v22 = vcombine.high %v3507_v27, %v3515_v51  ;;  %v3235_v41 = vld [vmem:[%s13808_s28 + $0x1700] sm:$0xff]  ;;  %8745 = vmatprep.subr.bf16.mxu0 %v12660_v52  ;;  %v12915_v45 = vcombine.low %v3507_v27, %v3515_v51  ;;  %v2612_v52 = vld [vmem:[%s13808_s28 + $0x388] sm:$0xff] }
 0x2ed   : > { %v3243_v12 = vld [vmem:[%s13808_s28 + $0x1740] sm:$0xff] }
 0x2ee   : > { %v3491_v10 = vld [vmem:[%s13808_s28 + $0x1f00] sm:$0xff]  ;;  %v12644_v50 = vcombine.high %v3235_v41, %v3243_v12  ;;  %8788 = vmatprep.subr.bf16.mxu1 %v12916_v22  ;;  %v12643_v6 = vcombine.low %v3235_v41, %v3243_v12  ;;  %v2620_v22 = vld [vmem:[%s13808_s28 + $0x3c8] sm:$0xff] }
 0x2ef   : > { %v3499_v14 = vld [vmem:[%s13808_s28 + $0x1f40] sm:$0xff]  ;;  %8746 = vmatpush2.bf16.msra.mxu0 %v12659_v39  ;;  %8789 = vmatpush2.bf16.msra.mxu1 %v12915_v45  ;;  %v2868_v41 = vld [vmem:[%s13808_s28 + $0xb88] sm:$0xff] }
 0x2f0   : > { %v12900_v35 = vcombine.high %v3491_v10, %v3499_v14  ;;  %v3219_v19 = vld [vmem:[%s13808_s28 + $0x1680] sm:$0xff]  ;;  %8747 = vmatprep.subr.bf16.mxu0 %v12644_v50  ;;  %v12899_v33 = vcombine.low %v3491_v10, %v3499_v14  ;;  %v2876_v12 = vld [vmem:[%s13808_s28 + $0xbc8] sm:$0xff] }
 0x2f1   : > { %v3227_v61 = vld [vmem:[%s13808_s28 + $0x16c0] sm:$0xff]  ;;  %v2449_v50 = vld [vmem:[%s14465_s27 + $0x30] sm:$0xff] }
 0x2f2   : > { %v3475_v13 = vld [vmem:[%s13808_s28 + $0x1e80] sm:$0xff]  ;;  %v12628_v34 = vcombine.high %v3219_v19, %v3227_v61  ;;  %8790 = vmatprep.subr.bf16.mxu1 %v12900_v35  ;;  %v12627_v11 = vcombine.low %v3219_v19, %v3227_v61  ;;  %v2457_v35 = vld [vmem:[%s14465_s27 + $0xb0] sm:$0xff]  ;;  %v12022_v19 = vcombine.high %v2612_v52, %v2620_v22  ;;  %v12278_v61 = vcombine.high %v2868_v41, %v2876_v12 }
 0x2f3   : > { %v3483_v47 = vld [vmem:[%s13808_s28 + $0x1ec0] sm:$0xff]  ;;  %8748 = vmatpush2.bf16.msra.mxu0 %v12643_v6  ;;  %8791 = vmatpush2.bf16.msra.mxu1 %v12899_v33  ;;  %v2852_v33 = vld [vmem:[%s13808_s28 + $0xb08] sm:$0xff] }
 0x2f4   : > { %v12884_v1 = vcombine.high %v3475_v13, %v3483_v47  ;;  %v3203_v32 = vld [vmem:[%s13808_s28 + $0x1600] sm:$0xff]  ;;  %8749 = vmatprep.subr.bf16.mxu0 %v12628_v34  ;;  %v12883_v62 = vcombine.low %v3475_v13, %v3483_v47  ;;  %v2596_v13 = vld [vmem:[%s13808_s28 + $0x308] sm:$0xff] }
 0x2f5   : > { %v3211_v28 = vld [vmem:[%s13808_s28 + $0x1640] sm:$0xff]  ;;  %v2604_v47 = vld [vmem:[%s13808_s28 + $0x348] sm:$0xff] }
 0x2f6   : > { %v3459_v25 = vld [vmem:[%s13808_s28 + $0x1e00] sm:$0xff]  ;;  %v12612_v48 = vcombine.high %v3203_v32, %v3211_v28  ;;  %8792 = vmatprep.subr.bf16.mxu1 %v12884_v1  ;;  %v12611_v36 = vcombine.low %v3203_v32, %v3211_v28  ;;  %v2860_v34 = vld [vmem:[%s13808_s28 + $0xb48] sm:$0xff]  ;;  %v14610_v1 = vpack.c.bf16 %v2457_v35, %v2449_v50  ;;  %v12021_v32 = vcombine.low %v2612_v52, %v2620_v22 }
 0x2f7   : > { %v3467_v49 = vld [vmem:[%s13808_s28 + $0x1e40] sm:$0xff]  ;;  %8750 = vmatpush2.bf16.msra.mxu0 %v12627_v11  ;;  %8793 = vmatpush2.bf16.msra.mxu1 %v12883_v62  ;;  %v12277_v28 = vcombine.low %v2868_v41, %v2876_v12  ;;  %v2580_v11 = vld [vmem:[%s13808_s28 + $0x288] sm:$0xff] }
 0x2f8   : > { %v12868_v26 = vcombine.high %v3459_v25, %v3467_v49  ;;  %v3187_v43 = vld [vmem:[%s13808_s28 + $0x1580] sm:$0xff]  ;;  %8751 = vmatprep.subr.bf16.mxu0 %v12612_v48  ;;  %v12867_v2 = vcombine.low %v3459_v25, %v3467_v49  ;;  %v12006_v25 = vcombine.high %v2596_v13, %v2604_v47  ;;  %v12262_v49 = vcombine.high %v2852_v33, %v2860_v34  ;;  %v2588_v62 = vld [vmem:[%s13808_s28 + $0x2c8] sm:$0xff] }
 0x2f9   : > { %v3195_v54 = vld [vmem:[%s13808_s28 + $0x15c0] sm:$0xff]  ;;  %v2836_v48 = vld [vmem:[%s13808_s28 + $0xa88] sm:$0xff] }
 0x2fa   : > { %v3443_v44 = vld [vmem:[%s13808_s28 + $0x1d80] sm:$0xff]  ;;  %v12596_v29 = vcombine.high %v3187_v43, %v3195_v54  ;;  %8794 = vmatprep.subr.bf16.mxu1 %v12868_v26  ;;  %v12595_v38 = vcombine.low %v3187_v43, %v3195_v54  ;;  %v2844_v26 = vld [vmem:[%s13808_s28 + $0xac8] sm:$0xff]  ;;  %v12005_v43 = vcombine.low %v2596_v13, %v2604_v47  ;;  %v12261_v54 = vcombine.low %v2852_v33, %v2860_v34 }
 0x2fb   : > { %v3451_v31 = vld [vmem:[%s13808_s28 + $0x1dc0] sm:$0xff]  ;;  %8752 = vmatpush2.bf16.msra.mxu0 %v12611_v36  ;;  %8795 = vmatpush2.bf16.msra.mxu1 %v12867_v2  ;;  %v2564_v36 = vld [vmem:[%s13808_s28 + $0x208] sm:$0xff] }
 0x2fc   : > { %v12852_v15 = vcombine.high %v3443_v44, %v3451_v31  ;;  %v3171_v17 = vld [vmem:[%s13808_s28 + $0x1500] sm:$0xff]  ;;  %8753 = vmatprep.subr.bf16.mxu0 %v12596_v29  ;;  %v12851_v46 = vcombine.low %v3443_v44, %v3451_v31  ;;  %v11990_v44 = vcombine.high %v2580_v11, %v2588_v62  ;;  %v12246_v31 = vcombine.high %v2836_v48, %v2844_v26  ;;  %v2572_v2 = vld [vmem:[%s13808_s28 + $0x248] sm:$0xff] }
 0x2fd   : > { %v3179_v63 = vld [vmem:[%s13808_s28 + $0x1540] sm:$0xff]  ;;  %v2820_v29 = vld [vmem:[%s13808_s28 + $0xa08] sm:$0xff] }
 0x2fe   : > { %v3427_v56 = vld [vmem:[%s13808_s28 + $0x1d00] sm:$0xff]  ;;  %v12580_v9 = vcombine.high %v3171_v17, %v3179_v63  ;;  %8796 = vmatprep.subr.bf16.mxu1 %v12852_v15  ;;  %v12579_v4 = vcombine.low %v3171_v17, %v3179_v63  ;;  %v2828_v15 = vld [vmem:[%s13808_s28 + $0xa48] sm:$0xff]  ;;  %v11989_v17 = vcombine.low %v2580_v11, %v2588_v62  ;;  %v12245_v63 = vcombine.low %v2836_v48, %v2844_v26 }
 0x2ff   : > { %v3435_v55 = vld [vmem:[%s13808_s28 + $0x1d40] sm:$0xff]  ;;  %8754 = vmatpush2.bf16.msra.mxu0 %v12595_v38  ;;  %8797 = vmatpush2.bf16.msra.mxu1 %v12851_v46  ;;  %v2548_v38 = vld [vmem:[%s13808_s28 + $0x188] sm:$0xff] }
 0x300   : > { %v12836_v59 = vcombine.high %v3427_v56, %v3435_v55  ;;  %v3155_v0 = vld [vmem:[%s13808_s28 + $0x1480] sm:$0xff]  ;;  %8755 = vmatprep.subr.bf16.mxu0 %v12580_v9  ;;  %v12835_v37 = vcombine.low %v3427_v56, %v3435_v55  ;;  %v11974_v56 = vcombine.high %v2564_v36, %v2572_v2  ;;  %v12230_v55 = vcombine.high %v2820_v29, %v2828_v15  ;;  %v2556_v46 = vld [vmem:[%s13808_s28 + $0x1c8] sm:$0xff] }
 0x301   : > { %v3163_v40 = vld [vmem:[%s13808_s28 + $0x14c0] sm:$0xff]  ;;  %v2804_v9 = vld [vmem:[%s13808_s28 + $0x988] sm:$0xff] }
 0x302   : > { %v3411_v21 = vld [vmem:[%s13808_s28 + $0x1c80] sm:$0xff]  ;;  %v12564_v7 = vcombine.high %v3155_v0, %v3163_v40  ;;  %8798 = vmatprep.subr.bf16.mxu1 %v12836_v59  ;;  %v12563_v27 = vcombine.low %v3155_v0, %v3163_v40  ;;  %v2812_v59 = vld [vmem:[%s13808_s28 + $0x9c8] sm:$0xff]  ;;  %v11973_v0 = vcombine.low %v2564_v36, %v2572_v2  ;;  %v12229_v40 = vcombine.low %v2820_v29, %v2828_v15 }
 0x303   : > { %v3419_v60 = vld [vmem:[%s13808_s28 + $0x1cc0] sm:$0xff]  ;;  %8756 = vmatpush2.bf16.msra.mxu0 %v12579_v4  ;;  %8799 = vmatpush2.bf16.msra.mxu1 %v12835_v37  ;;  %v2532_v4 = vld [vmem:[%s13808_s28 + $0x108] sm:$0xff] }
 0x304   : > { %v12820_v18 = vcombine.high %v3411_v21, %v3419_v60  ;;  %v3139_v23 = vld [vmem:[%s13808_s28 + $0x1400] sm:$0xff]  ;;  %8757 = vmatprep.subr.bf16.mxu0 %v12564_v7  ;;  %v12819_v51 = vcombine.low %v3411_v21, %v3419_v60  ;;  %v11958_v21 = vcombine.high %v2548_v38, %v2556_v46  ;;  %v12214_v60 = vcombine.high %v2804_v9, %v2812_v59  ;;  %v2540_v37 = vld [vmem:[%s13808_s28 + $0x148] sm:$0xff] }
 0x305   : > { %v3147_v20 = vld [vmem:[%s13808_s28 + $0x1440] sm:$0xff]  ;;  %v2788_v7 = vld [vmem:[%s13808_s28 + $0x908] sm:$0xff]  ;;  %v11941_v52 = vcombine.low %v2532_v4, %v2540_v37 }
 0x306   : > { %v3395_v53 = vld [vmem:[%s13808_s28 + $0x1c00] sm:$0xff]  ;;  %v12548_v57 = vcombine.high %v3139_v23, %v3147_v20  ;;  %8800 = vmatprep.subr.bf16.mxu1 %v12820_v18  ;;  %v12547_v10 = vcombine.low %v3139_v23, %v3147_v20  ;;  %v2796_v18 = vld [vmem:[%s13808_s28 + $0x948] sm:$0xff]  ;;  %v11957_v23 = vcombine.low %v2548_v38, %v2556_v46  ;;  %v12213_v20 = vcombine.low %v2804_v9, %v2812_v59 }
 0x307   : > { %v3403_v16 = vld [vmem:[%s13808_s28 + $0x1c40] sm:$0xff]  ;;  %8758 = vmatpush2.bf16.msra.mxu0 %v12563_v27  ;;  %8801 = vmatpush2.bf16.msra.mxu1 %v12819_v51  ;;  %v2516_v27 = vld [vmem:[%s13808_s28 + $0x88] sm:$0xff]  ;;  %v12197_v22 = vcombine.low %v2788_v7, %v2796_v18 }
 0x308   : > { %v12804_v24 = vcombine.high %v3395_v53, %v3403_v16  ;;  %v2447_v14 = vld [vmem:[%s14465_s27 + $0x20] sm:$0xff]  ;;  %8759 = vmatprep.subr.bf16.mxu0 %v12548_v57  ;;  %v12803_v45 = vcombine.low %v3395_v53, %v3403_v16  ;;  %v11942_v53 = vcombine.high %v2532_v4, %v2540_v37  ;;  %v12198_v16 = vcombine.high %v2788_v7, %v2796_v18  ;;  %v2524_v51 = vld [vmem:[%s13808_s28 + $0xc8] sm:$0xff] }
 0x309   : > { %v2455_v39 = vld [vmem:[%s14465_s27 + $0xa0] sm:$0xff]  ;;  %v2772_v57 = vld [vmem:[%s13808_s28 + $0x888] sm:$0xff]  ;;  %v11926_v41 = vcombine.high %v2516_v27, %v2524_v51  ;;  %v11925_v50 = vcombine.low %v2516_v27, %v2524_v51 }
 0x30a   : > { %8802 = vmatprep.subr.bf16.mxu1 %v12804_v24  ;;  %v14606_v6 = vpack.c.bf16 %v2455_v39, %v2447_v14  ;;  %v2780_v24 = vld [vmem:[%s13808_s28 + $0x8c8] sm:$0xff] }
 0x30b   : > { %8760 = vmatpush2.bf16.msra.mxu0 %v12547_v10  ;;  %8803 = vmatpush2.bf16.msra.mxu1 %v12803_v45  ;;  %v12182_v12 = vcombine.high %v2772_v57, %v2780_v24  ;;  %v2500_v10 = vld [vmem:[%s13808_s28 + $0x8] sm:$0xff]  ;;  %v12181_v35 = vcombine.low %v2772_v57, %v2780_v24 }
 0x30c   : > { %8815 = vmatprep.subr.bf16.mxu0 %v12022_v19  ;;  %8858 = vmatprep.subr.bf16.mxu1 %v12278_v61  ;;  %v2508_v14 = vld [vmem:[%s13808_s28 + $0x48] sm:$0xff] }
 0x30d   : > { %v2756_v39 = vld [vmem:[%s13808_s28 + $0x808] sm:$0xff]  ;;  %v11910_v19 = vcombine.high %v2500_v10, %v2508_v14 }
 0x30e   : > { %8762 = vmatmul.mubr.bf16.vlgmr.msra.gmra.mxu0 %v14606_v6  ;;  %8805 = vmatmul.mubr.bf16.vlgmr.msra.gmra.mxu1 %v14610_v1  ;;  %v2764_v45 = vld [vmem:[%s13808_s28 + $0x848] sm:$0xff] }
 0x30f   : > { %8816 = vmatpush1.bf16.msra.mxu0 %v12021_v32  ;;  %8859 = vmatpush1.bf16.msra.mxu1 %v12277_v28  ;;  %v12166_v61 = vcombine.high %v2756_v39, %v2764_v45  ;;  %v2740_v13 = vld [vmem:[%s13808_s28 + $0x788] sm:$0xff]  ;;  %v11909_v32 = vcombine.low %v2500_v10, %v2508_v14  ;;  %v12165_v28 = vcombine.low %v2756_v39, %v2764_v45 }
 0x310   : > { %8817 = vmatprep.subr.bf16.mxu0 %v12006_v25  ;;  %8860 = vmatprep.subr.bf16.mxu1 %v12262_v49  ;;  %v2748_v47 = vld [vmem:[%s13808_s28 + $0x7c8] sm:$0xff] }
 0x311   : > { %8847 = vmatprep.mubr.bf16.mxu0 %v14470_v30  ;;  %8890 = vmatprep.mubr.bf16.mxu1 %v14476_v5  ;;  %v2996_v33 = vld [vmem:[%s13808_s28 + $0xf88] sm:$0xff]  ;;  %v12150_v25 = vcombine.high %v2740_v13, %v2748_v47 }
 0x312   : > { %v3004_v34 = vld [vmem:[%s13808_s28 + $0xfc8] sm:$0xff] }
 0x313   : > { %8818 = vmatpush1.bf16.msra.mxu0 %v12005_v43  ;;  %8861 = vmatpush1.bf16.msra.mxu1 %v12261_v54  ;;  %v12406_v49 = vcombine.high %v2996_v33, %v3004_v34  ;;  %v2724_v11 = vld [vmem:[%s13808_s28 + $0x708] sm:$0xff]  ;;  %v12149_v43 = vcombine.low %v2740_v13, %v2748_v47  ;;  %v12405_v54 = vcombine.low %v2996_v33, %v3004_v34 }
 0x314   : > { %8819 = vmatprep.subr.bf16.mxu0 %v11990_v44  ;;  %8862 = vmatprep.subr.bf16.mxu1 %v12246_v31  ;;  %v2732_v62 = vld [vmem:[%s13808_s28 + $0x748] sm:$0xff] }
 0x315   : > { %v2980_v48 = vld [vmem:[%s13808_s28 + $0xf08] sm:$0xff]  ;;  %v12134_v44 = vcombine.high %v2724_v11, %v2732_v62 }
 0x316   : > { %v2988_v26 = vld [vmem:[%s13808_s28 + $0xf48] sm:$0xff] }
 0x317   : > { %8820 = vmatpush1.bf16.msra.mxu0 %v11989_v17  ;;  %8863 = vmatpush1.bf16.msra.mxu1 %v12245_v63  ;;  %v12390_v31 = vcombine.high %v2980_v48, %v2988_v26  ;;  %v2708_v36 = vld [vmem:[%s13808_s28 + $0x688] sm:$0xff]  ;;  %v12133_v17 = vcombine.low %v2724_v11, %v2732_v62  ;;  %v12389_v63 = vcombine.low %v2980_v48, %v2988_v26 }
 0x318   : > { %8821 = vmatprep.subr.bf16.mxu0 %v11974_v56  ;;  %8864 = vmatprep.subr.bf16.mxu1 %v12230_v55  ;;  %v2716_v2 = vld [vmem:[%s13808_s28 + $0x6c8] sm:$0xff] }
 0x319   : > { %v2964_v29 = vld [vmem:[%s13808_s28 + $0xe88] sm:$0xff]  ;;  %v12118_v56 = vcombine.high %v2708_v36, %v2716_v2 }
 0x31a   : > { %v2972_v15 = vld [vmem:[%s13808_s28 + $0xec8] sm:$0xff] }
 0x31b   : > { %8822 = vmatpush1.bf16.msra.mxu0 %v11973_v0  ;;  %8865 = vmatpush1.bf16.msra.mxu1 %v12229_v40  ;;  %v12374_v55 = vcombine.high %v2964_v29, %v2972_v15  ;;  %v2692_v38 = vld [vmem:[%s13808_s28 + $0x608] sm:$0xff]  ;;  %v12117_v0 = vcombine.low %v2708_v36, %v2716_v2  ;;  %v12373_v40 = vcombine.low %v2964_v29, %v2972_v15 }
 0x31c   : > { %8823 = vmatprep.subr.bf16.mxu0 %v11958_v21  ;;  %8866 = vmatprep.subr.bf16.mxu1 %v12214_v60  ;;  %v2700_v46 = vld [vmem:[%s13808_s28 + $0x648] sm:$0xff] }
 0x31d   : > { %v2948_v9 = vld [vmem:[%s13808_s28 + $0xe08] sm:$0xff]  ;;  %v12102_v21 = vcombine.high %v2692_v38, %v2700_v46 }
 0x31e   : > { %v2956_v59 = vld [vmem:[%s13808_s28 + $0xe48] sm:$0xff] }
 0x31f   : > { %8824 = vmatpush1.bf16.msra.mxu0 %v11957_v23  ;;  %8867 = vmatpush1.bf16.msra.mxu1 %v12213_v20  ;;  %v12358_v60 = vcombine.high %v2948_v9, %v2956_v59  ;;  %v2676_v4 = vld [vmem:[%s13808_s28 + $0x588] sm:$0xff]  ;;  %v12101_v23 = vcombine.low %v2692_v38, %v2700_v46  ;;  %v12357_v20 = vcombine.low %v2948_v9, %v2956_v59 }
 0x320   : > { %8825 = vmatprep.subr.bf16.mxu0 %v11942_v53  ;;  %8868 = vmatprep.subr.bf16.mxu1 %v12198_v16  ;;  %v2684_v37 = vld [vmem:[%s13808_s28 + $0x5c8] sm:$0xff] }
 0x321   : > { %v2932_v7 = vld [vmem:[%s13808_s28 + $0xd88] sm:$0xff]  ;;  %v12086_v53 = vcombine.high %v2676_v4, %v2684_v37 }
 0x322   : > { %v2940_v18 = vld [vmem:[%s13808_s28 + $0xdc8] sm:$0xff] }
 0x323   : > { %8826 = vmatpush1.bf16.msra.mxu0 %v11941_v52  ;;  %8869 = vmatpush1.bf16.msra.mxu1 %v12197_v22  ;;  %v12342_v16 = vcombine.high %v2932_v7, %v2940_v18  ;;  %v2660_v27 = vld [vmem:[%s13808_s28 + $0x508] sm:$0xff]  ;;  %v12085_v52 = vcombine.low %v2676_v4, %v2684_v37  ;;  %v12341_v22 = vcombine.low %v2932_v7, %v2940_v18 }
 0x324   : > { %8827 = vmatprep.subr.bf16.mxu0 %v11926_v41  ;;  %8870 = vmatprep.subr.bf16.mxu1 %v12182_v12  ;;  %v2668_v51 = vld [vmem:[%s13808_s28 + $0x548] sm:$0xff] }
 0x325   : > { %v2916_v57 = vld [vmem:[%s13808_s28 + $0xd08] sm:$0xff]  ;;  %v12070_v41 = vcombine.high %v2660_v27, %v2668_v51 }
 0x326   : > { %v2924_v24 = vld [vmem:[%s13808_s28 + $0xd48] sm:$0xff] }
 0x327   : > { %8828 = vmatpush1.bf16.msra.mxu0 %v11925_v50  ;;  %8871 = vmatpush1.bf16.msra.mxu1 %v12181_v35  ;;  %v12326_v12 = vcombine.high %v2916_v57, %v2924_v24  ;;  %v2644_v10 = vld [vmem:[%s13808_s28 + $0x488] sm:$0xff]  ;;  %v12069_v50 = vcombine.low %v2660_v27, %v2668_v51  ;;  %v12325_v35 = vcombine.low %v2916_v57, %v2924_v24 }
 0x328   : > { %8829 = vmatprep.subr.bf16.mxu0 %v11910_v19  ;;  %8872 = vmatprep.subr.bf16.mxu1 %v12166_v61  ;;  %v2652_v14 = vld [vmem:[%s13808_s28 + $0x4c8] sm:$0xff] }
 0x329   : > { %v2900_v39 = vld [vmem:[%s13808_s28 + $0xc88] sm:$0xff]  ;;  %v12054_v19 = vcombine.high %v2644_v10, %v2652_v14 }
 0x32a   : > { %v2908_v45 = vld [vmem:[%s13808_s28 + $0xcc8] sm:$0xff] }
 0x32b   : > { %8830 = vmatpush1.bf16.msra.mxu0 %v11909_v32  ;;  %8873 = vmatpush1.bf16.msra.mxu1 %v12165_v28  ;;  %v12310_v61 = vcombine.high %v2900_v39, %v2908_v45  ;;  %v2628_v13 = vld [vmem:[%s13808_s28 + $0x408] sm:$0xff]  ;;  %v12053_v32 = vcombine.low %v2644_v10, %v2652_v14  ;;  %v12309_v28 = vcombine.low %v2900_v39, %v2908_v45 }
 0x32c   : > { %8831 = vmatprep.subr.bf16.mxu0 %v12150_v25  ;;  %8874 = vmatprep.subr.bf16.mxu1 %v12406_v49  ;;  %v2636_v47 = vld [vmem:[%s13808_s28 + $0x448] sm:$0xff] }
 0x32d   : > { %v2884_v33 = vld [vmem:[%s13808_s28 + $0xc08] sm:$0xff]  ;;  %v12038_v25 = vcombine.high %v2628_v13, %v2636_v47 }
 0x32e   : > { %v2892_v34 = vld [vmem:[%s13808_s28 + $0xc48] sm:$0xff] }
 0x32f   : > { %8832 = vmatpush2.bf16.msra.mxu0 %v12149_v43  ;;  %8875 = vmatpush2.bf16.msra.mxu1 %v12405_v54  ;;  %v12294_v49 = vcombine.high %v2884_v33, %v2892_v34  ;;  %v3124_v11 = vld [vmem:[%s13808_s28 + $0x1388] sm:$0xff]  ;;  %v12037_v43 = vcombine.low %v2628_v13, %v2636_v47  ;;  %v12293_v54 = vcombine.low %v2884_v33, %v2892_v34 }
 0x330   : > { %8833 = vmatprep.subr.bf16.mxu0 %v12134_v44  ;;  %8876 = vmatprep.subr.bf16.mxu1 %v12390_v31  ;;  %v3132_v62 = vld [vmem:[%s13808_s28 + $0x13c8] sm:$0xff] }
 0x331   : > { %v3380_v48 = vld [vmem:[%s13808_s28 + $0x1b88] sm:$0xff]  ;;  %v12534_v44 = vcombine.high %v3124_v11, %v3132_v62 }
 0x332   : > { %v3388_v26 = vld [vmem:[%s13808_s28 + $0x1bc8] sm:$0xff] }
 0x333   : > { %8834 = vmatpush2.bf16.msra.mxu0 %v12133_v17  ;;  %8877 = vmatpush2.bf16.msra.mxu1 %v12389_v63  ;;  %v12790_v31 = vcombine.high %v3380_v48, %v3388_v26  ;;  %v3108_v36 = vld [vmem:[%s13808_s28 + $0x1308] sm:$0xff]  ;;  %v12533_v17 = vcombine.low %v3124_v11, %v3132_v62  ;;  %v12789_v63 = vcombine.low %v3380_v48, %v3388_v26 }
 0x334   : > { %8835 = vmatprep.subr.bf16.mxu0 %v12118_v56  ;;  %8878 = vmatprep.subr.bf16.mxu1 %v12374_v55  ;;  %v3116_v2 = vld [vmem:[%s13808_s28 + $0x1348] sm:$0xff] }
 0x335   : > { %v3364_v29 = vld [vmem:[%s13808_s28 + $0x1b08] sm:$0xff]  ;;  %v12518_v56 = vcombine.high %v3108_v36, %v3116_v2 }
 0x336   : > { %v3372_v15 = vld [vmem:[%s13808_s28 + $0x1b48] sm:$0xff] }
 0x337   : > { %8836 = vmatpush2.bf16.msra.mxu0 %v12117_v0  ;;  %8879 = vmatpush2.bf16.msra.mxu1 %v12373_v40  ;;  %v12774_v55 = vcombine.high %v3364_v29, %v3372_v15  ;;  %v3092_v38 = vld [vmem:[%s13808_s28 + $0x1288] sm:$0xff]  ;;  %v12517_v0 = vcombine.low %v3108_v36, %v3116_v2  ;;  %v12773_v40 = vcombine.low %v3364_v29, %v3372_v15 }
 0x338   : > { %8837 = vmatprep.subr.bf16.mxu0 %v12102_v21  ;;  %8880 = vmatprep.subr.bf16.mxu1 %v12358_v60  ;;  %v3100_v46 = vld [vmem:[%s13808_s28 + $0x12c8] sm:$0xff] }
 0x339   : > { %v3348_v9 = vld [vmem:[%s13808_s28 + $0x1a88] sm:$0xff]  ;;  %v12502_v21 = vcombine.high %v3092_v38, %v3100_v46 }
 0x33a   : > { %v3356_v59 = vld [vmem:[%s13808_s28 + $0x1ac8] sm:$0xff] }
 0x33b   : > { %8838 = vmatpush2.bf16.msra.mxu0 %v12101_v23  ;;  %8881 = vmatpush2.bf16.msra.mxu1 %v12357_v20  ;;  %v12758_v60 = vcombine.high %v3348_v9, %v3356_v59  ;;  %v3076_v4 = vld [vmem:[%s13808_s28 + $0x1208] sm:$0xff]  ;;  %v12501_v23 = vcombine.low %v3092_v38, %v3100_v46  ;;  %v12757_v20 = vcombine.low %v3348_v9, %v3356_v59 }
 0x33c   : > { %8839 = vmatprep.subr.bf16.mxu0 %v12086_v53  ;;  %8882 = vmatprep.subr.bf16.mxu1 %v12342_v16  ;;  %v3084_v37 = vld [vmem:[%s13808_s28 + $0x1248] sm:$0xff] }
 0x33d   : > { %v3332_v7 = vld [vmem:[%s13808_s28 + $0x1a08] sm:$0xff]  ;;  %v12486_v53 = vcombine.high %v3076_v4, %v3084_v37 }
 0x33e   : > { %v3340_v18 = vld [vmem:[%s13808_s28 + $0x1a48] sm:$0xff] }
 0x33f   : > { %8840 = vmatpush2.bf16.msra.mxu0 %v12085_v52  ;;  %8883 = vmatpush2.bf16.msra.mxu1 %v12341_v22  ;;  %v12742_v16 = vcombine.high %v3332_v7, %v3340_v18  ;;  %v3060_v27 = vld [vmem:[%s13808_s28 + $0x1188] sm:$0xff]  ;;  %v12485_v52 = vcombine.low %v3076_v4, %v3084_v37  ;;  %v12741_v22 = vcombine.low %v3332_v7, %v3340_v18 }
 0x340   : > { %8841 = vmatprep.subr.bf16.mxu0 %v12070_v41  ;;  %8884 = vmatprep.subr.bf16.mxu1 %v12326_v12  ;;  %v3068_v51 = vld [vmem:[%s13808_s28 + $0x11c8] sm:$0xff] }
 0x341   : > { %v3316_v57 = vld [vmem:[%s13808_s28 + $0x1988] sm:$0xff]  ;;  %v12470_v41 = vcombine.high %v3060_v27, %v3068_v51 }
 0x342   : > { %v3324_v24 = vld [vmem:[%s13808_s28 + $0x19c8] sm:$0xff] }
 0x343   : > { %8842 = vmatpush2.bf16.msra.mxu0 %v12069_v50  ;;  %8885 = vmatpush2.bf16.msra.mxu1 %v12325_v35  ;;  %v12726_v12 = vcombine.high %v3316_v57, %v3324_v24  ;;  %v3044_v10 = vld [vmem:[%s13808_s28 + $0x1108] sm:$0xff]  ;;  %v12469_v50 = vcombine.low %v3060_v27, %v3068_v51  ;;  %v12725_v35 = vcombine.low %v3316_v57, %v3324_v24 }
 0x344   : > { %8843 = vmatprep.subr.bf16.mxu0 %v12054_v19  ;;  %8886 = vmatprep.subr.bf16.mxu1 %v12310_v61  ;;  %v3052_v14 = vld [vmem:[%s13808_s28 + $0x1148] sm:$0xff] }
 0x345   : > { %v3300_v39 = vld [vmem:[%s13808_s28 + $0x1908] sm:$0xff]  ;;  %v12454_v19 = vcombine.high %v3044_v10, %v3052_v14 }
 0x346   : > { %v3308_v45 = vld [vmem:[%s13808_s28 + $0x1948] sm:$0xff] }
 0x347   : > { %8844 = vmatpush2.bf16.msra.mxu0 %v12053_v32  ;;  %8887 = vmatpush2.bf16.msra.mxu1 %v12309_v28  ;;  %v12710_v61 = vcombine.high %v3300_v39, %v3308_v45  ;;  %v3028_v13 = vld [vmem:[%s13808_s28 + $0x1088] sm:$0xff]  ;;  %v12453_v32 = vcombine.low %v3044_v10, %v3052_v14  ;;  %v12709_v28 = vcombine.low %v3300_v39, %v3308_v45 }
 0x348   : > { %8845 = vmatprep.subr.bf16.mxu0 %v12038_v25  ;;  %8888 = vmatprep.subr.bf16.mxu1 %v12294_v49  ;;  %v3036_v47 = vld [vmem:[%s13808_s28 + $0x10c8] sm:$0xff] }
 0x349   : > { %v3284_v33 = vld [vmem:[%s13808_s28 + $0x1888] sm:$0xff]  ;;  %v12438_v25 = vcombine.high %v3028_v13, %v3036_v47 }
 0x34a   : > { %v3292_v34 = vld [vmem:[%s13808_s28 + $0x18c8] sm:$0xff] }
 0x34b   : > { %8846 = vmatpush2.bf16.msra.mxu0 %v12037_v43  ;;  %8889 = vmatpush2.bf16.msra.mxu1 %v12293_v54  ;;  %v12694_v49 = vcombine.high %v3284_v33, %v3292_v34  ;;  %v3012_v11 = vld [vmem:[%s13808_s28 + $0x1008] sm:$0xff]  ;;  %v12437_v43 = vcombine.low %v3028_v13, %v3036_v47  ;;  %v12693_v54 = vcombine.low %v3284_v33, %v3292_v34 }
 0x34c   : > { %8901 = vmatprep.subr.bf16.mxu0 %v12534_v44  ;;  %8944 = vmatprep.subr.bf16.mxu1 %v12790_v31  ;;  %v3020_v62 = vld [vmem:[%s13808_s28 + $0x1048] sm:$0xff] }
 0x34d   : > { %v3268_v48 = vld [vmem:[%s13808_s28 + $0x1808] sm:$0xff]  ;;  %v12422_v44 = vcombine.high %v3012_v11, %v3020_v62 }
 0x34e   : > { %8848 = vmatmul.mubr.bf16.vlgmr.msra.gmra.mxu0 %v14523_v8  ;;  %8891 = vmatmul.mubr.bf16.vlgmr.msra.gmra.mxu1 %v14528_v58  ;;  %v3276_v26 = vld [vmem:[%s13808_s28 + $0x1848] sm:$0xff] }
 0x34f   : > { %8902 = vmatpush1.bf16.msra.mxu0 %v12533_v17  ;;  %8945 = vmatpush1.bf16.msra.mxu1 %v12789_v63  ;;  %v12678_v31 = vcombine.high %v3268_v48, %v3276_v26  ;;  %v3252_v36 = vld [vmem:[%s13808_s28 + $0x1788] sm:$0xff]  ;;  %v12421_v17 = vcombine.low %v3012_v11, %v3020_v62  ;;  %v12677_v63 = vcombine.low %v3268_v48, %v3276_v26 }
 0x350   : > { %8903 = vmatprep.subr.bf16.mxu0 %v12518_v56  ;;  %8946 = vmatprep.subr.bf16.mxu1 %v12774_v55  ;;  %v3260_v2 = vld [vmem:[%s13808_s28 + $0x17c8] sm:$0xff] }
 0x351   : > { %8933 = vmatprep.mubr.bf16.mxu0 %v14534_v3  ;;  %8976 = vmatprep.mubr.bf16.mxu1 %v14539_v42  ;;  %v3508_v29 = vld [vmem:[%s13808_s28 + $0x1f88] sm:$0xff]  ;;  %v12662_v56 = vcombine.high %v3252_v36, %v3260_v2 }
 0x352   : > { %v3516_v15 = vld [vmem:[%s13808_s28 + $0x1fc8] sm:$0xff] }
 0x353   : > { %8904 = vmatpush1.bf16.msra.mxu0 %v12517_v0  ;;  %8947 = vmatpush1.bf16.msra.mxu1 %v12773_v40  ;;  %v12918_v55 = vcombine.high %v3508_v29, %v3516_v15  ;;  %v3236_v38 = vld [vmem:[%s13808_s28 + $0x1708] sm:$0xff]  ;;  %v12661_v0 = vcombine.low %v3252_v36, %v3260_v2  ;;  %v12917_v40 = vcombine.low %v3508_v29, %v3516_v15 }
 0x354   : > { %8905 = vmatprep.subr.bf16.mxu0 %v12502_v21  ;;  %8948 = vmatprep.subr.bf16.mxu1 %v12758_v60  ;;  %v3244_v46 = vld [vmem:[%s13808_s28 + $0x1748] sm:$0xff] }
 0x355   : > { %v3492_v9 = vld [vmem:[%s13808_s28 + $0x1f08] sm:$0xff]  ;;  %v12646_v21 = vcombine.high %v3236_v38, %v3244_v46 }
 0x356   : > { %v3500_v59 = vld [vmem:[%s13808_s28 + $0x1f48] sm:$0xff] }
 0x357   : > { %8906 = vmatpush1.bf16.msra.mxu0 %v12501_v23  ;;  %8949 = vmatpush1.bf16.msra.mxu1 %v12757_v20  ;;  %v12902_v60 = vcombine.high %v3492_v9, %v3500_v59  ;;  %v3220_v4 = vld [vmem:[%s13808_s28 + $0x1688] sm:$0xff]  ;;  %v12645_v23 = vcombine.low %v3236_v38, %v3244_v46  ;;  %v12901_v20 = vcombine.low %v3492_v9, %v3500_v59  ;;  %v2613_v38 = vld [vmem:[%s13808_s28 + $0x390] sm:$0xff] }
 0x358   : > { %8907 = vmatprep.subr.bf16.mxu0 %v12486_v53  ;;  %8950 = vmatprep.subr.bf16.mxu1 %v12742_v16  ;;  %v3228_v37 = vld [vmem:[%s13808_s28 + $0x16c8] sm:$0xff]  ;;  %v2621_v46 = vld [vmem:[%s13808_s28 + $0x3d0] sm:$0xff] }
 0x359   : > { %v3476_v7 = vld [vmem:[%s13808_s28 + $0x1e88] sm:$0xff]  ;;  %v12630_v53 = vcombine.high %v3220_v4, %v3228_v37  ;;  %v2869_v9 = vld [vmem:[%s13808_s28 + $0xb90] sm:$0xff] }
 0x35a   : > { %v3484_v18 = vld [vmem:[%s13808_s28 + $0x1ec8] sm:$0xff]  ;;  %v2877_v59 = vld [vmem:[%s13808_s28 + $0xbd0] sm:$0xff] }
 0x35b   : > { %8908 = vmatpush1.bf16.msra.mxu0 %v12485_v52  ;;  %8951 = vmatpush1.bf16.msra.mxu1 %v12741_v22  ;;  %v12886_v16 = vcombine.high %v3476_v7, %v3484_v18  ;;  %v3204_v27 = vld [vmem:[%s13808_s28 + $0x1608] sm:$0xff]  ;;  %v12629_v52 = vcombine.low %v3220_v4, %v3228_v37  ;;  %v12885_v22 = vcombine.low %v3476_v7, %v3484_v18  ;;  %v2597_v4 = vld [vmem:[%s13808_s28 + $0x310] sm:$0xff] }
 0x35c   : > { %8909 = vmatprep.subr.bf16.mxu0 %v12470_v41  ;;  %8952 = vmatprep.subr.bf16.mxu1 %v12726_v12  ;;  %v3212_v51 = vld [vmem:[%s13808_s28 + $0x1648] sm:$0xff]  ;;  %v2605_v37 = vld [vmem:[%s13808_s28 + $0x350] sm:$0xff] }
 0x35d   : > { %v3460_v57 = vld [vmem:[%s13808_s28 + $0x1e08] sm:$0xff]  ;;  %v12614_v41 = vcombine.high %v3204_v27, %v3212_v51  ;;  %v2853_v7 = vld [vmem:[%s13808_s28 + $0xb10] sm:$0xff] }
 0x35e   : > { %v3468_v24 = vld [vmem:[%s13808_s28 + $0x1e48] sm:$0xff]  ;;  %v2861_v18 = vld [vmem:[%s13808_s28 + $0xb50] sm:$0xff] }
 0x35f   : > { %8910 = vmatpush1.bf16.msra.mxu0 %v12469_v50  ;;  %8953 = vmatpush1.bf16.msra.mxu1 %v12725_v35  ;;  %v12870_v12 = vcombine.high %v3460_v57, %v3468_v24  ;;  %v3188_v10 = vld [vmem:[%s13808_s28 + $0x1588] sm:$0xff]  ;;  %v12613_v50 = vcombine.low %v3204_v27, %v3212_v51  ;;  %v12869_v35 = vcombine.low %v3460_v57, %v3468_v24  ;;  %v2581_v27 = vld [vmem:[%s13808_s28 + $0x290] sm:$0xff] }
 0x360   : > { %8911 = vmatprep.subr.bf16.mxu0 %v12454_v19  ;;  %8954 = vmatprep.subr.bf16.mxu1 %v12710_v61  ;;  %v3196_v14 = vld [vmem:[%s13808_s28 + $0x15c8] sm:$0xff]  ;;  %v2589_v51 = vld [vmem:[%s13808_s28 + $0x2d0] sm:$0xff] }
 0x361   : > { %v3444_v39 = vld [vmem:[%s13808_s28 + $0x1d88] sm:$0xff]  ;;  %v12598_v19 = vcombine.high %v3188_v10, %v3196_v14  ;;  %v2837_v57 = vld [vmem:[%s13808_s28 + $0xa90] sm:$0xff] }
 0x362   : > { %v3452_v45 = vld [vmem:[%s13808_s28 + $0x1dc8] sm:$0xff]  ;;  %v2845_v24 = vld [vmem:[%s13808_s28 + $0xad0] sm:$0xff] }
 0x363   : > { %8912 = vmatpush1.bf16.msra.mxu0 %v12453_v32  ;;  %8955 = vmatpush1.bf16.msra.mxu1 %v12709_v28  ;;  %v12854_v61 = vcombine.high %v3444_v39, %v3452_v45  ;;  %v3172_v13 = vld [vmem:[%s13808_s28 + $0x1508] sm:$0xff]  ;;  %v12597_v32 = vcombine.low %v3188_v10, %v3196_v14  ;;  %v12853_v28 = vcombine.low %v3444_v39, %v3452_v45  ;;  %v2565_v10 = vld [vmem:[%s13808_s28 + $0x210] sm:$0xff] }
 0x364   : > { %8913 = vmatprep.subr.bf16.mxu0 %v12438_v25  ;;  %8956 = vmatprep.subr.bf16.mxu1 %v12694_v49  ;;  %v3180_v47 = vld [vmem:[%s13808_s28 + $0x1548] sm:$0xff]  ;;  %v2573_v14 = vld [vmem:[%s13808_s28 + $0x250] sm:$0xff] }
 0x365   : > { %v3428_v33 = vld [vmem:[%s13808_s28 + $0x1d08] sm:$0xff]  ;;  %v12582_v25 = vcombine.high %v3172_v13, %v3180_v47  ;;  %v2821_v39 = vld [vmem:[%s13808_s28 + $0xa10] sm:$0xff] }
 0x366   : > { %v3436_v34 = vld [vmem:[%s13808_s28 + $0x1d48] sm:$0xff]  ;;  %v2829_v45 = vld [vmem:[%s13808_s28 + $0xa50] sm:$0xff] }
 0x367   : > { %8914 = vmatpush1.bf16.msra.mxu0 %v12437_v43  ;;  %8957 = vmatpush1.bf16.msra.mxu1 %v12693_v54  ;;  %v12838_v49 = vcombine.high %v3428_v33, %v3436_v34  ;;  %v3156_v11 = vld [vmem:[%s13808_s28 + $0x1488] sm:$0xff]  ;;  %v12581_v43 = vcombine.low %v3172_v13, %v3180_v47  ;;  %v12837_v54 = vcombine.low %v3428_v33, %v3436_v34  ;;  %v2549_v13 = vld [vmem:[%s13808_s28 + $0x190] sm:$0xff] }
 0x368   : > { %8915 = vmatprep.subr.bf16.mxu0 %v12422_v44  ;;  %8958 = vmatprep.subr.bf16.mxu1 %v12678_v31  ;;  %v3164_v62 = vld [vmem:[%s13808_s28 + $0x14c8] sm:$0xff]  ;;  %v2557_v47 = vld [vmem:[%s13808_s28 + $0x1d0] sm:$0xff] }
 0x369   : > { %v3412_v48 = vld [vmem:[%s13808_s28 + $0x1c88] sm:$0xff]  ;;  %v12566_v44 = vcombine.high %v3156_v11, %v3164_v62  ;;  %v2805_v33 = vld [vmem:[%s13808_s28 + $0x990] sm:$0xff] }
 0x36a   : > { %v3420_v26 = vld [vmem:[%s13808_s28 + $0x1cc8] sm:$0xff]  ;;  %v2813_v34 = vld [vmem:[%s13808_s28 + $0x9d0] sm:$0xff] }
 0x36b   : > { %8916 = vmatpush1.bf16.msra.mxu0 %v12421_v17  ;;  %8959 = vmatpush1.bf16.msra.mxu1 %v12677_v63  ;;  %v12822_v31 = vcombine.high %v3412_v48, %v3420_v26  ;;  %v3140_v36 = vld [vmem:[%s13808_s28 + $0x1408] sm:$0xff]  ;;  %v12565_v17 = vcombine.low %v3156_v11, %v3164_v62  ;;  %v12821_v63 = vcombine.low %v3412_v48, %v3420_v26  ;;  %v2533_v11 = vld [vmem:[%s13808_s28 + $0x110] sm:$0xff] }
 0x36c   : > { %8917 = vmatprep.subr.bf16.mxu0 %v12662_v56  ;;  %8960 = vmatprep.subr.bf16.mxu1 %v12918_v55  ;;  %v3148_v2 = vld [vmem:[%s13808_s28 + $0x1448] sm:$0xff]  ;;  %v2541_v62 = vld [vmem:[%s13808_s28 + $0x150] sm:$0xff] }
 0x36d   : > { %v3396_v29 = vld [vmem:[%s13808_s28 + $0x1c08] sm:$0xff]  ;;  %v12550_v56 = vcombine.high %v3140_v36, %v3148_v2  ;;  %v2789_v48 = vld [vmem:[%s13808_s28 + $0x910] sm:$0xff] }
 0x36e   : > { %v3404_v15 = vld [vmem:[%s13808_s28 + $0x1c48] sm:$0xff]  ;;  %v2797_v26 = vld [vmem:[%s13808_s28 + $0x950] sm:$0xff] }
 0x36f   : > { %8918 = vmatpush2.bf16.msra.mxu0 %v12661_v0  ;;  %8961 = vmatpush2.bf16.msra.mxu1 %v12917_v40  ;;  %v12806_v55 = vcombine.high %v3396_v29, %v3404_v15  ;;  %v12549_v0 = vcombine.low %v3140_v36, %v3148_v2  ;;  %v12805_v40 = vcombine.low %v3396_v29, %v3404_v15  ;;  %v2517_v36 = vld [vmem:[%s13808_s28 + $0x90] sm:$0xff] }
 0x370   : > { %8919 = vmatprep.subr.bf16.mxu0 %v12646_v21  ;;  %8962 = vmatprep.subr.bf16.mxu1 %v12902_v60  ;;  %v12024_v21 = vcombine.high %v2613_v38, %v2621_v46  ;;  %v12280_v60 = vcombine.high %v2869_v9, %v2877_v59  ;;  %v2525_v2 = vld [vmem:[%s13808_s28 + $0xd0] sm:$0xff] }
 0x371   : > { %v2773_v29 = vld [vmem:[%s13808_s28 + $0x890] sm:$0xff] }
 0x372   : > { %v2781_v15 = vld [vmem:[%s13808_s28 + $0x8d0] sm:$0xff] }
 0x373   : > { %8920 = vmatpush2.bf16.msra.mxu0 %v12645_v23  ;;  %8963 = vmatpush2.bf16.msra.mxu1 %v12901_v20  ;;  %v12023_v23 = vcombine.low %v2613_v38, %v2621_v46  ;;  %v12279_v20 = vcombine.low %v2869_v9, %v2877_v59  ;;  %v2501_v38 = vld [vmem:[%s13808_s28 + $0x10] sm:$0xff] }
 0x374   : > { %8921 = vmatprep.subr.bf16.mxu0 %v12630_v53  ;;  %8964 = vmatprep.subr.bf16.mxu1 %v12886_v16  ;;  %v12008_v53 = vcombine.high %v2597_v4, %v2605_v37  ;;  %v12264_v16 = vcombine.high %v2853_v7, %v2861_v18  ;;  %v2509_v46 = vld [vmem:[%s13808_s28 + $0x50] sm:$0xff] }
 0x375   : > { %v2757_v9 = vld [vmem:[%s13808_s28 + $0x810] sm:$0xff] }
 0x376   : > { %v2765_v59 = vld [vmem:[%s13808_s28 + $0x850] sm:$0xff] }
 0x377   : > { %8922 = vmatpush2.bf16.msra.mxu0 %v12629_v52  ;;  %8965 = vmatpush2.bf16.msra.mxu1 %v12885_v22  ;;  %v12007_v52 = vcombine.low %v2597_v4, %v2605_v37  ;;  %v12263_v22 = vcombine.low %v2853_v7, %v2861_v18  ;;  %v2741_v4 = vld [vmem:[%s13808_s28 + $0x790] sm:$0xff] }
 0x378   : > { %8923 = vmatprep.subr.bf16.mxu0 %v12614_v41  ;;  %8966 = vmatprep.subr.bf16.mxu1 %v12870_v12  ;;  %v11992_v41 = vcombine.high %v2581_v27, %v2589_v51  ;;  %v12248_v12 = vcombine.high %v2837_v57, %v2845_v24  ;;  %v2749_v37 = vld [vmem:[%s13808_s28 + $0x7d0] sm:$0xff] }
 0x379   : > { %v2997_v7 = vld [vmem:[%s13808_s28 + $0xf90] sm:$0xff] }
 0x37a   : > { %v3005_v18 = vld [vmem:[%s13808_s28 + $0xfd0] sm:$0xff] }
 0x37b   : > { %8924 = vmatpush2.bf16.msra.mxu0 %v12613_v50  ;;  %8967 = vmatpush2.bf16.msra.mxu1 %v12869_v35  ;;  %v11991_v50 = vcombine.low %v2581_v27, %v2589_v51  ;;  %v12247_v35 = vcombine.low %v2837_v57, %v2845_v24  ;;  %v2725_v27 = vld [vmem:[%s13808_s28 + $0x710] sm:$0xff] }
 0x37c   : > { %8925 = vmatprep.subr.bf16.mxu0 %v12598_v19  ;;  %8968 = vmatprep.subr.bf16.mxu1 %v12854_v61  ;;  %v11976_v19 = vcombine.high %v2565_v10, %v2573_v14  ;;  %v12232_v61 = vcombine.high %v2821_v39, %v2829_v45  ;;  %v2733_v51 = vld [vmem:[%s13808_s28 + $0x750] sm:$0xff] }
 0x37d   : > { %v2981_v57 = vld [vmem:[%s13808_s28 + $0xf10] sm:$0xff] }
 0x37e   : > { %v2989_v24 = vld [vmem:[%s13808_s28 + $0xf50] sm:$0xff] }
 0x37f   : > { %8926 = vmatpush2.bf16.msra.mxu0 %v12597_v32  ;;  %8969 = vmatpush2.bf16.msra.mxu1 %v12853_v28  ;;  %v11975_v32 = vcombine.low %v2565_v10, %v2573_v14  ;;  %v12231_v28 = vcombine.low %v2821_v39, %v2829_v45  ;;  %v2709_v10 = vld [vmem:[%s13808_s28 + $0x690] sm:$0xff] }
 0x380   : > { %8927 = vmatprep.subr.bf16.mxu0 %v12582_v25  ;;  %8970 = vmatprep.subr.bf16.mxu1 %v12838_v49  ;;  %v11960_v25 = vcombine.high %v2549_v13, %v2557_v47  ;;  %v12216_v49 = vcombine.high %v2805_v33, %v2813_v34  ;;  %v2717_v14 = vld [vmem:[%s13808_s28 + $0x6d0] sm:$0xff] }
 0x381   : > { %v2965_v39 = vld [vmem:[%s13808_s28 + $0xe90] sm:$0xff] }
 0x382   : > { %v2973_v45 = vld [vmem:[%s13808_s28 + $0xed0] sm:$0xff] }
 0x383   : > { %8928 = vmatpush2.bf16.msra.mxu0 %v12581_v43  ;;  %8971 = vmatpush2.bf16.msra.mxu1 %v12837_v54  ;;  %v11959_v43 = vcombine.low %v2549_v13, %v2557_v47  ;;  %v12215_v54 = vcombine.low %v2805_v33, %v2813_v34  ;;  %v2693_v13 = vld [vmem:[%s13808_s28 + $0x610] sm:$0xff] }
 0x384   : > { %8929 = vmatprep.subr.bf16.mxu0 %v12566_v44  ;;  %8972 = vmatprep.subr.bf16.mxu1 %v12822_v31  ;;  %v11944_v44 = vcombine.high %v2533_v11, %v2541_v62  ;;  %v12200_v31 = vcombine.high %v2789_v48, %v2797_v26  ;;  %v2701_v47 = vld [vmem:[%s13808_s28 + $0x650] sm:$0xff] }
 0x385   : > { %v2949_v33 = vld [vmem:[%s13808_s28 + $0xe10] sm:$0xff] }
 0x386   : > { %v2957_v34 = vld [vmem:[%s13808_s28 + $0xe50] sm:$0xff] }
 0x387   : > { %8930 = vmatpush2.bf16.msra.mxu0 %v12565_v17  ;;  %8973 = vmatpush2.bf16.msra.mxu1 %v12821_v63  ;;  %v11943_v17 = vcombine.low %v2533_v11, %v2541_v62  ;;  %v12199_v63 = vcombine.low %v2789_v48, %v2797_v26  ;;  %v2677_v11 = vld [vmem:[%s13808_s28 + $0x590] sm:$0xff] }
 0x388   : > { %8931 = vmatprep.subr.bf16.mxu0 %v12550_v56  ;;  %8974 = vmatprep.subr.bf16.mxu1 %v12806_v55  ;;  %v11928_v56 = vcombine.high %v2517_v36, %v2525_v2  ;;  %v12184_v55 = vcombine.high %v2773_v29, %v2781_v15  ;;  %v2685_v62 = vld [vmem:[%s13808_s28 + $0x5d0] sm:$0xff] }
 0x389   : > { %v2933_v48 = vld [vmem:[%s13808_s28 + $0xd90] sm:$0xff] }
 0x38a   : > { %v2941_v26 = vld [vmem:[%s13808_s28 + $0xdd0] sm:$0xff] }
 0x38b   : > { %8932 = vmatpush2.bf16.msra.mxu0 %v12549_v0  ;;  %8975 = vmatpush2.bf16.msra.mxu1 %v12805_v40  ;;  %v11927_v0 = vcombine.low %v2517_v36, %v2525_v2  ;;  %v12183_v40 = vcombine.low %v2773_v29, %v2781_v15  ;;  %v2661_v36 = vld [vmem:[%s13808_s28 + $0x510] sm:$0xff] }
 0x38c   : > { %8987 = vmatprep.subr.bf16.mxu0 %v12024_v21  ;;  %9030 = vmatprep.subr.bf16.mxu1 %v12280_v60  ;;  %v11912_v21 = vcombine.high %v2501_v38, %v2509_v46  ;;  %v12168_v60 = vcombine.high %v2757_v9, %v2765_v59  ;;  %v2669_v2 = vld [vmem:[%s13808_s28 + $0x550] sm:$0xff] }
 0x38d   : > { %v2917_v29 = vld [vmem:[%s13808_s28 + $0xd10] sm:$0xff] }
 0x38e   : > { %8934 = vmatmul.mubr.bf16.vlgmr.msra.gmra.mxu0 %v14606_v6  ;;  %8977 = vmatmul.mubr.bf16.vlgmr.msra.gmra.mxu1 %v14610_v1  ;;  %v2925_v15 = vld [vmem:[%s13808_s28 + $0xd50] sm:$0xff] }
 0x38f   : > { %8988 = vmatpush1.bf16.msra.mxu0 %v12023_v23  ;;  %9031 = vmatpush1.bf16.msra.mxu1 %v12279_v20  ;;  %v11911_v23 = vcombine.low %v2501_v38, %v2509_v46  ;;  %v12167_v20 = vcombine.low %v2757_v9, %v2765_v59  ;;  %v2645_v38 = vld [vmem:[%s13808_s28 + $0x490] sm:$0xff] }
 0x390   : > { %8989 = vmatprep.subr.bf16.mxu0 %v12008_v53  ;;  %9032 = vmatprep.subr.bf16.mxu1 %v12264_v16  ;;  %v12152_v53 = vcombine.high %v2741_v4, %v2749_v37  ;;  %v12408_v16 = vcombine.high %v2997_v7, %v3005_v18  ;;  %v2653_v46 = vld [vmem:[%s13808_s28 + $0x4d0] sm:$0xff] }
 0x391   : > { %9019 = vmatprep.mubr.bf16.mxu0 %v14470_v30  ;;  %9062 = vmatprep.mubr.bf16.mxu1 %v14476_v5  ;;  %v2901_v9 = vld [vmem:[%s13808_s28 + $0xc90] sm:$0xff] }
 0x392   : > { %v2909_v59 = vld [vmem:[%s13808_s28 + $0xcd0] sm:$0xff] }
 0x393   : > { %8990 = vmatpush1.bf16.msra.mxu0 %v12007_v52  ;;  %9033 = vmatpush1.bf16.msra.mxu1 %v12263_v22  ;;  %v12151_v52 = vcombine.low %v2741_v4, %v2749_v37  ;;  %v12407_v22 = vcombine.low %v2997_v7, %v3005_v18  ;;  %v8720_v4 = vpop.f32.mrf.mxu1  ;;  %v12312_v37 = vcombine.high %v2901_v9, %v2909_v59  ;;  %v2629_v7 = vld [vmem:[%s13808_s28 + $0x410] sm:$0xff] }
 0x394   : > { %8991 = vmatprep.subr.bf16.mxu0 %v11992_v41  ;;  %9034 = vmatprep.subr.bf16.mxu1 %v12248_v12  ;;  %v12136_v41 = vcombine.high %v2725_v27, %v2733_v51  ;;  %v12392_v12 = vcombine.high %v2981_v57, %v2989_v24  ;;  %v2637_v18 = vld [vmem:[%s13808_s28 + $0x450] sm:$0xff] }
 0x397   : > { %8992 = vmatpush1.bf16.msra.mxu0 %v11991_v50  ;;  %9035 = vmatpush1.bf16.msra.mxu1 %v12247_v35  ;;  %v12135_v50 = vcombine.low %v2725_v27, %v2733_v51  ;;  %v12391_v35 = vcombine.low %v2981_v57, %v2989_v24  ;;  %v12311_v27 = vcombine.low %v2901_v9, %v2909_v59  ;;  %v8722_v57 = vpop.f32.mrf.mxu1  ;;  %v3077_v59 = vld [vmem:[%s13808_s28 + $0x1210] sm:$0xff] }
 0x398   : > { %8993 = vmatprep.subr.bf16.mxu0 %v11976_v19  ;;  %9036 = vmatprep.subr.bf16.mxu1 %v12232_v61  ;;  %v12120_v19 = vcombine.high %v2709_v10, %v2717_v14  ;;  %v12376_v61 = vcombine.high %v2965_v39, %v2973_v45  ;;  %v12040_v51 = vcombine.high %v2629_v7, %v2637_v18 }
 0x39b   : > { %8994 = vmatpush1.bf16.msra.mxu0 %v11975_v32  ;;  %9037 = vmatpush1.bf16.msra.mxu1 %v12231_v28  ;;  %v12119_v32 = vcombine.low %v2709_v10, %v2717_v14  ;;  %v12375_v28 = vcombine.low %v2965_v39, %v2973_v45  ;;  %v12039_v10 = vcombine.low %v2629_v7, %v2637_v18 }
 0x39c   : > { %8995 = vmatprep.subr.bf16.mxu0 %v11960_v25  ;;  %9038 = vmatprep.subr.bf16.mxu1 %v12216_v49  ;;  %v12104_v25 = vcombine.high %v2693_v13, %v2701_v47  ;;  %v12360_v49 = vcombine.high %v2949_v33, %v2957_v34 }
 0x39f   : > { %8996 = vmatpush1.bf16.msra.mxu0 %v11959_v43  ;;  %9039 = vmatpush1.bf16.msra.mxu1 %v12215_v54  ;;  %v12103_v43 = vcombine.low %v2693_v13, %v2701_v47  ;;  %v12359_v54 = vcombine.low %v2949_v33, %v2957_v34  ;;  %v3365_v13 = vld [vmem:[%s13808_s28 + $0x1b10] sm:$0xff] }
 0x3a0   : > { %8997 = vmatprep.subr.bf16.mxu0 %v11944_v44  ;;  %9040 = vmatprep.subr.bf16.mxu1 %v12200_v31  ;;  %v12088_v44 = vcombine.high %v2677_v11, %v2685_v62  ;;  %v12344_v31 = vcombine.high %v2933_v48, %v2941_v26  ;;  %v3373_v47 = vld [vmem:[%s13808_s28 + $0x1b50] sm:$0xff] }
 0x3a3   : > { %8998 = vmatpush1.bf16.msra.mxu0 %v11943_v17  ;;  %9041 = vmatpush1.bf16.msra.mxu1 %v12199_v63  ;;  %v12087_v17 = vcombine.low %v2677_v11, %v2685_v62  ;;  %v12343_v63 = vcombine.low %v2933_v48, %v2941_v26  ;;  %v12776_v62 = vcombine.high %v3365_v13, %v3373_v47  ;;  %v3101_v48 = vld [vmem:[%s13808_s28 + $0x12d0] sm:$0xff] }
 0x3a4   : > { %8999 = vmatprep.subr.bf16.mxu0 %v11928_v56  ;;  %9042 = vmatprep.subr.bf16.mxu1 %v12184_v55  ;;  %v12072_v56 = vcombine.high %v2661_v36, %v2669_v2  ;;  %v12328_v55 = vcombine.high %v2917_v29, %v2925_v15  ;;  %v3349_v26 = vld [vmem:[%s13808_s28 + $0x1a90] sm:$0xff] }
 0x3a7   : > { %9000 = vmatpush1.bf16.msra.mxu0 %v11927_v0  ;;  %9043 = vmatpush1.bf16.msra.mxu1 %v12183_v40  ;;  %v12071_v0 = vcombine.low %v2661_v36, %v2669_v2  ;;  %v8677_v40 = vpop.f32.mrf.mxu0 }
 0x3a8   : > { %9001 = vmatprep.subr.bf16.mxu0 %v11912_v21  ;;  %9044 = vmatprep.subr.bf16.mxu1 %v12168_v60  ;;  %v12327_v21 = vcombine.low %v2917_v29, %v2925_v15  ;;  %v12056_v60 = vcombine.high %v2645_v38, %v2653_v46  ;;  %v2467_v29 = vld [vmem:[#allocation3 + $0xb0] sm:$0xff] }
 0x3ab   : > { %9002 = vmatpush1.bf16.msra.mxu0 %v11911_v23  ;;  %9045 = vmatpush1.bf16.msra.mxu1 %v12167_v20  ;;  %v2885_v23 = vld [vmem:[%s13808_s28 + $0xc10] sm:$0xff] }
 0x3ac   : > { %9003 = vmatprep.subr.bf16.mxu0 %v12152_v53  ;;  %9046 = vmatprep.subr.bf16.mxu1 %v12408_v16  ;;  %v2893_v20 = vld [vmem:[%s13808_s28 + $0xc50] sm:$0xff]  ;;  %v12055_v53 = vcombine.low %v2645_v38, %v2653_v46  ;;  %v8679_v16 = vpop.f32.mrf.mxu0 }
 0x3ad   : > { %v12296_v24 = vcombine.high %v2885_v23, %v2893_v20  ;;  %v12295_v39 = vcombine.low %v2885_v23, %v2893_v20 }
 0x3ae   : > { %v8681_v14 = vpop.f32.mrf.mxu0 }
 0x3af   : > { %9004 = vmatpush2.bf16.msra.mxu0 %v12151_v52  ;;  %9047 = vmatpush2.bf16.msra.mxu1 %v12407_v22  ;;  %v3125_v52 = vld [vmem:[%s13808_s28 + $0x1390] sm:$0xff] }
 0x3b0   : > { %9005 = vmatprep.subr.bf16.mxu0 %v12136_v41  ;;  %9048 = vmatprep.subr.bf16.mxu1 %v12392_v12  ;;  %v3133_v22 = vld [vmem:[%s13808_s28 + $0x13d0] sm:$0xff]  ;;  %v8683_v34 = vpop.f32.mrf.mxu0 }
 0x3b1   : > { %v3381_v41 = vld [vmem:[%s13808_s28 + $0x1b90] sm:$0xff]  ;;  %v12536_v45 = vcombine.high %v3125_v52, %v3133_v22  ;;  %v12535_v33 = vcombine.low %v3125_v52, %v3133_v22 }
 0x3b2   : > { %v3389_v12 = vld [vmem:[%s13808_s28 + $0x1bd0] sm:$0xff] }
 0x3b3   : > { %9006 = vmatpush2.bf16.msra.mxu0 %v12135_v50  ;;  %9049 = vmatpush2.bf16.msra.mxu1 %v12391_v35  ;;  %v8724_v50 = vpop.f32.mrf.mxu1  ;;  %v12792_v35 = vcombine.high %v3381_v41, %v3389_v12 }
 0x3b4   : > { %9007 = vmatprep.subr.bf16.mxu0 %v12120_v19  ;;  %9050 = vmatprep.subr.bf16.mxu1 %v12376_v61  ;;  %v3109_v19 = vld [vmem:[%s13808_s28 + $0x1310] sm:$0xff] }
 0x3b5   : > { %v3117_v61 = vld [vmem:[%s13808_s28 + $0x1350] sm:$0xff]  ;;  %v8726_v11 = vpop.f32.mrf.mxu1 }
 0x3b6   : > { %v12519_v2 = vcombine.low %v3109_v19, %v3117_v61  ;;  %v8727_v7 = vadd.f32 %v8726_v11, %v8683_v34 }
 0x3b7   : > { %9008 = vmatpush2.bf16.msra.mxu0 %v12119_v32  ;;  %9051 = vmatpush2.bf16.msra.mxu1 %v12375_v28  ;;  %v12791_v32 = vcombine.low %v3381_v41, %v3389_v12  ;;  %v12520_v28 = vcombine.high %v3109_v19, %v3117_v61  ;;  %v3061_v12 = vld [vmem:[%s13808_s28 + $0x1190] sm:$0xff] }
 0x3b8   : > { %9009 = vmatprep.subr.bf16.mxu0 %v12104_v25  ;;  %9052 = vmatprep.subr.bf16.mxu1 %v12360_v49  ;;  %v14817_v25 = vld [vmem:[%s13808_s28 + $0x1290] sm:$0xff]  ;;  %v8721_v49 = vadd.f32 %v8720_v4, %v8677_v40  ;;  %v2468_v40 = vld [vmem:[#allocation3] sm:$0xff] }
 0x3b9   : > { %v3333_v4 = vld [vmem:[%s13808_s28 + $0x1a10] sm:$0xff] }
 0x3bb   : > { %9010 = vmatpush2.bf16.msra.mxu0 %v12103_v43  ;;  %9053 = vmatpush2.bf16.msra.mxu1 %v12359_v54  ;;  %v3357_v43 = vld [vmem:[%s13808_s28 + $0x1ad0] sm:$0xff] }
 0x3bc   : > { %9011 = vmatprep.subr.bf16.mxu0 %v12088_v44  ;;  %9054 = vmatprep.subr.bf16.mxu1 %v12344_v31  ;;  %v8723_v44 = vadd.f32 %v8722_v57, %v8679_v16  ;;  %v2483_v16 = vld [vmem:[#allocation3 + $0x38] sm:$0xff] }
 0x3bf   : > { %9012 = vmatpush2.bf16.msra.mxu0 %v12087_v17  ;;  %9055 = vmatpush2.bf16.msra.mxu1 %v12343_v63  ;;  %v12775_v17 = vcombine.low %v3365_v13, %v3373_v47  ;;  %v12504_v63 = vcombine.high %v14817_v25, %v3101_v48 }
 0x3c0   : > { %9013 = vmatprep.subr.bf16.mxu0 %v12072_v56  ;;  %9056 = vmatprep.subr.bf16.mxu1 %v12328_v55  ;;  %v12760_v56 = vcombine.high %v3349_v26, %v3357_v43  ;;  %v8725_v55 = vadd.f32 %v8724_v50, %v8681_v14  ;;  %v2484_v14 = vld [vmem:[#allocation3 + $0x58] sm:$0xff] }
 0x3c1   : > { %v3325_v50 = vld [vmem:[%s13808_s28 + $0x19d0] sm:$0xff] }
 0x3c3   : > { %9014 = vmatpush2.bf16.msra.mxu0 %v12071_v0  ;;  %9057 = vmatpush2.bf16.msra.mxu1 %v12327_v21  ;;  %v3085_v0 = vld [vmem:[%s13808_s28 + $0x1250] sm:$0xff] }
 0x3c4   : > { %9015 = vmatprep.subr.bf16.mxu0 %v12056_v60  ;;  %9058 = vmatprep.subr.bf16.mxu1 %v12312_v37  ;;  %v12503_v60 = vcombine.low %v14817_v25, %v3101_v48  ;;  %v3341_v37 = vld [vmem:[%s13808_s28 + $0x1a50] sm:$0xff]  ;;  %v12488_v57 = vcombine.high %v3077_v59, %v3085_v0  ;;  %v12487_v61 = vcombine.low %v3077_v59, %v3085_v0 }
 0x3c5   : > { %v12744_v41 = vcombine.high %v3333_v4, %v3341_v37  ;;  %v12743_v13 = vcombine.low %v3333_v4, %v3341_v37  ;;  %v3301_v25 = vld [vmem:[%s13808_s28 + $0x1910] sm:$0xff] }
 0x3c6   : > { %v3253_v0 = vld [vmem:[%s13808_s28 + $0x1790] sm:$0xff] }
 0x3c7   : > { %9016 = vmatpush2.bf16.msra.mxu0 %v12055_v53  ;;  %9059 = vmatpush2.bf16.msra.mxu1 %v12311_v27 }
 0x3c8   : > { %9017 = vmatprep.subr.bf16.mxu0 %v12040_v51  ;;  %9060 = vmatprep.subr.bf16.mxu1 %v12296_v24  ;;  %v12759_v51 = vcombine.low %v3349_v26, %v3357_v43  ;;  %v3029_v43 = vld [vmem:[%s13808_s28 + $0x1090] sm:$0xff] }
 0x3cb   : > { %9018 = vmatpush2.bf16.msra.mxu0 %v12039_v10  ;;  %9061 = vmatpush2.bf16.msra.mxu1 %v12295_v39  ;;  %v3069_v10 = vld [vmem:[%s13808_s28 + $0x11d0] sm:$0xff] }
 0x3cc   : > { %9073 = vmatprep.subr.bf16.mxu0 %v12536_v45  ;;  %9116 = vmatprep.subr.bf16.mxu1 %v12792_v35  ;;  %v3317_v45 = vld [vmem:[%s13808_s28 + $0x1990] sm:$0xff]  ;;  %v12472_v47 = vcombine.high %v3061_v12, %v3069_v10  ;;  %v12471_v11 = vcombine.low %v3061_v12, %v3069_v10 }
 0x3cd   : > { %v12728_v34 = vcombine.high %v3317_v45, %v3325_v50  ;;  %v3485_v12 = vld [vmem:[%s13808_s28 + $0x1ed0] sm:$0xff] }
 0x3ce   : > { %v8763_v54 = vpop.f32.mrf.mxu0  ;;  %9020 = vmatmul.mubr.bf16.vlgmr.msra.gmra.mxu0 %v14523_v8  ;;  %v8806_v36 = vpop.f32.mrf.mxu1  ;;  %9063 = vmatmul.mubr.bf16.vlgmr.msra.gmra.mxu1 %v14528_v58 }
 0x3cf   : > { %v8764_v31 = vadd.f32 %v8763_v54, %v8721_v49  ;;  %9074 = vmatpush1.bf16.msra.mxu0 %v12535_v33  ;;  %9117 = vmatpush1.bf16.msra.mxu1 %v12791_v32  ;;  %v3045_v32 = vld [vmem:[%s13808_s28 + $0x1110] sm:$0xff] }
 0x3d0   : > { %v8765_v15 = vpop.f32.mrf.mxu0  ;;  %9075 = vmatprep.subr.bf16.mxu0 %v12520_v28  ;;  %v8808_v9 = vpop.f32.mrf.mxu1  ;;  %9118 = vmatprep.subr.bf16.mxu1 %v12776_v62  ;;  %v3053_v28 = vld [vmem:[%s13808_s28 + $0x1150] sm:$0xff]  ;;  %v12727_v62 = vcombine.low %v3317_v45, %v3325_v50 }
 0x3d1   : > { %v8807_v38 = vadd.f32 %v8806_v36, %v8764_v31  ;;  %v8766_v46 = vadd.f32 %v8765_v15, %v8723_v44  ;;  %9105 = vmatprep.mubr.bf16.mxu0 %v14534_v3  ;;  %9148 = vmatprep.mubr.bf16.mxu1 %v14539_v42  ;;  %v3309_v49 = vld [vmem:[%s13808_s28 + $0x1950] sm:$0xff]  ;;  %v12456_v48 = vcombine.high %v3045_v32, %v3053_v28 }
 0x3d2   : > { %v8767_v21 = vpop.f32.mrf.mxu0  ;;  %v8810_v53 = vpop.f32.mrf.mxu1  ;;  %v12712_v26 = vcombine.high %v3301_v25, %v3309_v49  ;;  %v3037_v54 = vld [vmem:[%s13808_s28 + $0x10d0] sm:$0xff]  ;;  %v12455_v36 = vcombine.low %v3045_v32, %v3053_v28 }
 0x3d3   : > { %v10019_v18 = vadd.f32 %v8807_v38, %v2467_v29  ;;  %v8809_v23 = vadd.f32 %v8808_v9, %v8766_v46  ;;  %v8768_v20 = vadd.f32 %v8767_v21, %v8725_v55  ;;  %9076 = vmatpush1.bf16.msra.mxu0 %v12519_v2  ;;  %9119 = vmatpush1.bf16.msra.mxu1 %v12775_v17  ;;  %v3285_v44 = vld [vmem:[%s13808_s28 + $0x1890] sm:$0xff] }
 0x3d4   : > { %v8769_v27 = vpop.f32.mrf.mxu0  ;;  %9077 = vmatprep.subr.bf16.mxu0 %v12504_v63  ;;  %9120 = vmatprep.subr.bf16.mxu1 %v12760_v56  ;;  %v8812_v39 = vpop.f32.mrf.mxu1  ;;  %v3293_v31 = vld [vmem:[%s13808_s28 + $0x18d0] sm:$0xff]  ;;  %v12711_v2 = vcombine.low %v3301_v25, %v3309_v49  ;;  %v12440_v29 = vcombine.high %v3029_v43, %v3037_v54  ;;  %v12439_v38 = vcombine.low %v3029_v43, %v3037_v54 }
 0x3d5   : > { %10051 = vst [vmem:[#allocation3 + $0xb0] sm:$0xff] %v10019_v18  ;;  %v10020_v24 = vadd.f32 %v8809_v23, %v2468_v40  ;;  %v8811_v52 = vadd.f32 %v8810_v53, %v8768_v20  ;;  %v8770_v22 = vadd.f32 %v8769_v27, %v8727_v7  ;;  %v12696_v15 = vcombine.high %v3285_v44, %v3293_v31  ;;  %v3013_v17 = vld [vmem:[%s13808_s28 + $0x1010] sm:$0xff] }
 0x3d6   : > { %v3021_v63 = vld [vmem:[%s13808_s28 + $0x1050] sm:$0xff]  ;;  %v12695_v46 = vcombine.low %v3285_v44, %v3293_v31 }
 0x3d7   : > { %10052 = vst [vmem:[#allocation3] sm:$0xff] %v10020_v24  ;;  %v10035_v35 = vadd.f32 %v8811_v52, %v2483_v16  ;;  %v8813_v19 = vadd.f32 %v8812_v39, %v8770_v22  ;;  %9078 = vmatpush1.bf16.msra.mxu0 %v12503_v60  ;;  %9121 = vmatpush1.bf16.msra.mxu1 %v12759_v51  ;;  %v3269_v56 = vld [vmem:[%s13808_s28 + $0x1810] sm:$0xff] }
 0x3d8   : > { %9079 = vmatprep.subr.bf16.mxu0 %v12488_v57  ;;  %9122 = vmatprep.subr.bf16.mxu1 %v12744_v41  ;;  %v3277_v55 = vld [vmem:[%s13808_s28 + $0x1850] sm:$0xff]  ;;  %v12424_v9 = vcombine.high %v3013_v17, %v3021_v63  ;;  %v12423_v4 = vcombine.low %v3013_v17, %v3021_v63 }
 0x3d9   : > { %10067 = vst [vmem:[#allocation3 + $0x38] sm:$0xff] %v10035_v35  ;;  %v10036_v33 = vadd.f32 %v8813_v19, %v2484_v14  ;;  %v12680_v59 = vcombine.high %v3269_v56, %v3277_v55  ;;  %v3261_v40 = vld [vmem:[%s13808_s28 + $0x17d0] sm:$0xff]  ;;  %v12679_v37 = vcombine.low %v3269_v56, %v3277_v55 }
 0x3da   : > { %v3509_v21 = vld [vmem:[%s13808_s28 + $0x1f90] sm:$0xff]  ;;  %v12664_v7 = vcombine.high %v3253_v0, %v3261_v40  ;;  %v12663_v27 = vcombine.low %v3253_v0, %v3261_v40 }
 0x3db   : > { %10068 = vst [vmem:[#allocation3 + $0x58] sm:$0xff] %v10036_v33  ;;  %9080 = vmatpush1.bf16.msra.mxu0 %v12487_v61  ;;  %9123 = vmatpush1.bf16.msra.mxu1 %v12743_v13  ;;  %v3517_v60 = vld [vmem:[%s13808_s28 + $0x1fd0] sm:$0xff] }
 0x3dc   : > { %9081 = vmatprep.subr.bf16.mxu0 %v12472_v47  ;;  %9124 = vmatprep.subr.bf16.mxu1 %v12728_v34  ;;  %v12920_v18 = vcombine.high %v3509_v21, %v3517_v60  ;;  %v3237_v23 = vld [vmem:[%s13808_s28 + $0x1710] sm:$0xff]  ;;  %v12919_v51 = vcombine.low %v3509_v21, %v3517_v60 }
 0x3dd   : > { %v3245_v20 = vld [vmem:[%s13808_s28 + $0x1750] sm:$0xff] }
 0x3de   : > { %v3493_v53 = vld [vmem:[%s13808_s28 + $0x1f10] sm:$0xff]  ;;  %v12648_v57 = vcombine.high %v3237_v23, %v3245_v20  ;;  %v12647_v10 = vcombine.low %v3237_v23, %v3245_v20  ;;  %v2614_v23 = vld [vmem:[%s13808_s28 + $0x398] sm:$0xff] }
 0x3df   : > { %9082 = vmatpush1.bf16.msra.mxu0 %v12471_v11  ;;  %9125 = vmatpush1.bf16.msra.mxu1 %v12727_v62  ;;  %v3501_v16 = vld [vmem:[%s13808_s28 + $0x1f50] sm:$0xff]  ;;  %v2622_v20 = vld [vmem:[%s13808_s28 + $0x3d8] sm:$0xff] }
 0x3e0   : > { %9083 = vmatprep.subr.bf16.mxu0 %v12456_v48  ;;  %9126 = vmatprep.subr.bf16.mxu1 %v12712_v26  ;;  %v12904_v24 = vcombine.high %v3493_v53, %v3501_v16  ;;  %v3221_v52 = vld [vmem:[%s13808_s28 + $0x1690] sm:$0xff]  ;;  %v12903_v14 = vcombine.low %v3493_v53, %v3501_v16  ;;  %v2870_v53 = vld [vmem:[%s13808_s28 + $0xb98] sm:$0xff] }
 0x3e1   : > { %v3229_v22 = vld [vmem:[%s13808_s28 + $0x16d0] sm:$0xff]  ;;  %v2878_v16 = vld [vmem:[%s13808_s28 + $0xbd8] sm:$0xff] }
 0x3e2   : > { %v3477_v41 = vld [vmem:[%s13808_s28 + $0x1e90] sm:$0xff]  ;;  %v12632_v39 = vcombine.high %v3221_v52, %v3229_v22  ;;  %v12631_v13 = vcombine.low %v3221_v52, %v3229_v22  ;;  %v2598_v52 = vld [vmem:[%s13808_s28 + $0x318] sm:$0xff] }
 0x3e3   : > { %9084 = vmatpush1.bf16.msra.mxu0 %v12455_v36  ;;  %9127 = vmatpush1.bf16.msra.mxu1 %v12711_v2  ;;  %v12888_v45 = vcombine.high %v3477_v41, %v3485_v12  ;;  %v3205_v50 = vld [vmem:[%s13808_s28 + $0x1610] sm:$0xff]  ;;  %v12887_v47 = vcombine.low %v3477_v41, %v3485_v12  ;;  %v2606_v22 = vld [vmem:[%s13808_s28 + $0x358] sm:$0xff] }
 0x3e4   : > { %9085 = vmatprep.subr.bf16.mxu0 %v12440_v29  ;;  %9128 = vmatprep.subr.bf16.mxu1 %v12696_v15  ;;  %v3213_v35 = vld [vmem:[%s13808_s28 + $0x1650] sm:$0xff]  ;;  %v2854_v41 = vld [vmem:[%s13808_s28 + $0xb18] sm:$0xff] }
 0x3e5   : > { %v3461_v19 = vld [vmem:[%s13808_s28 + $0x1e10] sm:$0xff]  ;;  %v12616_v33 = vcombine.high %v3205_v50, %v3213_v35  ;;  %v12615_v11 = vcombine.low %v3205_v50, %v3213_v35  ;;  %v2862_v12 = vld [vmem:[%s13808_s28 + $0xb58] sm:$0xff] }
 0x3e6   : > { %v3469_v61 = vld [vmem:[%s13808_s28 + $0x1e50] sm:$0xff]  ;;  %v2582_v50 = vld [vmem:[%s13808_s28 + $0x298] sm:$0xff] }
 0x3e7   : > { %9086 = vmatpush1.bf16.msra.mxu0 %v12439_v38  ;;  %9129 = vmatpush1.bf16.msra.mxu1 %v12695_v46  ;;  %v12872_v34 = vcombine.high %v3461_v19, %v3469_v61  ;;  %v3189_v32 = vld [vmem:[%s13808_s28 + $0x1590] sm:$0xff]  ;;  %v12871_v62 = vcombine.low %v3461_v19, %v3469_v61  ;;  %v2590_v35 = vld [vmem:[%s13808_s28 + $0x2d8] sm:$0xff] }
 0x3e8   : > { %9087 = vmatprep.subr.bf16.mxu0 %v12424_v9  ;;  %9130 = vmatprep.subr.bf16.mxu1 %v12680_v59  ;;  %v3197_v28 = vld [vmem:[%s13808_s28 + $0x15d0] sm:$0xff]  ;;  %v2838_v19 = vld [vmem:[%s13808_s28 + $0xa98] sm:$0xff] }
 0x3e9   : > { %v3445_v25 = vld [vmem:[%s13808_s28 + $0x1d90] sm:$0xff]  ;;  %v12600_v48 = vcombine.high %v3189_v32, %v3197_v28  ;;  %v12599_v36 = vcombine.low %v3189_v32, %v3197_v28  ;;  %v2846_v61 = vld [vmem:[%s13808_s28 + $0xad8] sm:$0xff] }
 0x3ea   : > { %v3453_v49 = vld [vmem:[%s13808_s28 + $0x1dd0] sm:$0xff]  ;;  %v2566_v32 = vld [vmem:[%s13808_s28 + $0x218] sm:$0xff] }
 0x3eb   : > { %9088 = vmatpush1.bf16.msra.mxu0 %v12423_v4  ;;  %9131 = vmatpush1.bf16.msra.mxu1 %v12679_v37  ;;  %v12856_v26 = vcombine.high %v3445_v25, %v3453_v49  ;;  %v3173_v43 = vld [vmem:[%s13808_s28 + $0x1510] sm:$0xff]  ;;  %v12855_v2 = vcombine.low %v3445_v25, %v3453_v49  ;;  %v2574_v28 = vld [vmem:[%s13808_s28 + $0x258] sm:$0xff] }
 0x3ec   : > { %9089 = vmatprep.subr.bf16.mxu0 %v12664_v7  ;;  %9132 = vmatprep.subr.bf16.mxu1 %v12920_v18  ;;  %v3181_v54 = vld [vmem:[%s13808_s28 + $0x1550] sm:$0xff]  ;;  %v2822_v25 = vld [vmem:[%s13808_s28 + $0xa18] sm:$0xff] }
 0x3ed   : > { %v3429_v44 = vld [vmem:[%s13808_s28 + $0x1d10] sm:$0xff]  ;;  %v12584_v29 = vcombine.high %v3173_v43, %v3181_v54  ;;  %v12583_v38 = vcombine.low %v3173_v43, %v3181_v54  ;;  %v2830_v49 = vld [vmem:[%s13808_s28 + $0xa58] sm:$0xff] }
 0x3ee   : > { %v3437_v31 = vld [vmem:[%s13808_s28 + $0x1d50] sm:$0xff]  ;;  %v2550_v43 = vld [vmem:[%s13808_s28 + $0x198] sm:$0xff] }
 0x3ef   : > { %9090 = vmatpush2.bf16.msra.mxu0 %v12663_v27  ;;  %9133 = vmatpush2.bf16.msra.mxu1 %v12919_v51  ;;  %v12840_v15 = vcombine.high %v3429_v44, %v3437_v31  ;;  %v3157_v17 = vld [vmem:[%s13808_s28 + $0x1490] sm:$0xff]  ;;  %v12839_v46 = vcombine.low %v3429_v44, %v3437_v31  ;;  %v2558_v54 = vld [vmem:[%s13808_s28 + $0x1d8] sm:$0xff] }
 0x3f0   : > { %9091 = vmatprep.subr.bf16.mxu0 %v12648_v57  ;;  %9134 = vmatprep.subr.bf16.mxu1 %v12904_v24  ;;  %v3165_v63 = vld [vmem:[%s13808_s28 + $0x14d0] sm:$0xff]  ;;  %v12026_v57 = vcombine.high %v2614_v23, %v2622_v20  ;;  %v12282_v24 = vcombine.high %v2870_v53, %v2878_v16  ;;  %v2806_v44 = vld [vmem:[%s13808_s28 + $0x998] sm:$0xff] }
 0x3f1   : > { %v3413_v56 = vld [vmem:[%s13808_s28 + $0x1c90] sm:$0xff]  ;;  %v12568_v9 = vcombine.high %v3157_v17, %v3165_v63  ;;  %v12567_v4 = vcombine.low %v3157_v17, %v3165_v63  ;;  %v2814_v31 = vld [vmem:[%s13808_s28 + $0x9d8] sm:$0xff] }
 0x3f2   : > { %v3421_v55 = vld [vmem:[%s13808_s28 + $0x1cd0] sm:$0xff]  ;;  %v2534_v17 = vld [vmem:[%s13808_s28 + $0x118] sm:$0xff] }
 0x3f3   : > { %9092 = vmatpush2.bf16.msra.mxu0 %v12647_v10  ;;  %9135 = vmatpush2.bf16.msra.mxu1 %v12903_v14  ;;  %v12824_v59 = vcombine.high %v3413_v56, %v3421_v55  ;;  %v3141_v0 = vld [vmem:[%s13808_s28 + $0x1410] sm:$0xff]  ;;  %v12823_v37 = vcombine.low %v3413_v56, %v3421_v55  ;;  %v12025_v10 = vcombine.low %v2614_v23, %v2622_v20  ;;  %v2542_v63 = vld [vmem:[%s13808_s28 + $0x158] sm:$0xff] }
 0x3f4   : > { %9093 = vmatprep.subr.bf16.mxu0 %v12632_v39  ;;  %9136 = vmatprep.subr.bf16.mxu1 %v12888_v45  ;;  %v3149_v40 = vld [vmem:[%s13808_s28 + $0x1450] sm:$0xff]  ;;  %v12281_v14 = vcombine.low %v2870_v53, %v2878_v16  ;;  %v12010_v39 = vcombine.high %v2598_v52, %v2606_v22  ;;  %v12266_v45 = vcombine.high %v2854_v41, %v2862_v12  ;;  %v2790_v56 = vld [vmem:[%s13808_s28 + $0x918] sm:$0xff] }
 0x3f5   : > { %v3397_v21 = vld [vmem:[%s13808_s28 + $0x1c10] sm:$0xff]  ;;  %v12552_v7 = vcombine.high %v3141_v0, %v3149_v40  ;;  %v12551_v27 = vcombine.low %v3141_v0, %v3149_v40  ;;  %v2798_v55 = vld [vmem:[%s13808_s28 + $0x958] sm:$0xff] }
 0x3f6   : > { %v3405_v60 = vld [vmem:[%s13808_s28 + $0x1c50] sm:$0xff]  ;;  %v2518_v0 = vld [vmem:[%s13808_s28 + $0x98] sm:$0xff] }
 0x3f7   : > { %9094 = vmatpush2.bf16.msra.mxu0 %v12631_v13  ;;  %9137 = vmatpush2.bf16.msra.mxu1 %v12887_v47  ;;  %v12808_v18 = vcombine.high %v3397_v21, %v3405_v60  ;;  %v12807_v51 = vcombine.low %v3397_v21, %v3405_v60  ;;  %v12009_v13 = vcombine.low %v2598_v52, %v2606_v22  ;;  %v2526_v40 = vld [vmem:[%s13808_s28 + $0xd8] sm:$0xff] }
 0x3f8   : > { %9095 = vmatprep.subr.bf16.mxu0 %v12616_v33  ;;  %9138 = vmatprep.subr.bf16.mxu1 %v12872_v34  ;;  %v12265_v47 = vcombine.low %v2854_v41, %v2862_v12  ;;  %v11994_v33 = vcombine.high %v2582_v50, %v2590_v35  ;;  %v12250_v34 = vcombine.high %v2838_v19, %v2846_v61  ;;  %v2774_v21 = vld [vmem:[%s13808_s28 + $0x898] sm:$0xff] }
 0x3f9   : > { %v2782_v60 = vld [vmem:[%s13808_s28 + $0x8d8] sm:$0xff] }
 0x3fa   : > { %v2502_v23 = vld [vmem:[%s13808_s28 + $0x18] sm:$0xff] }
 0x3fb   : > { %9096 = vmatpush2.bf16.msra.mxu0 %v12615_v11  ;;  %9139 = vmatpush2.bf16.msra.mxu1 %v12871_v62  ;;  %v11993_v11 = vcombine.low %v2582_v50, %v2590_v35  ;;  %v12249_v62 = vcombine.low %v2838_v19, %v2846_v61  ;;  %v2510_v20 = vld [vmem:[%s13808_s28 + $0x58] sm:$0xff] }
 0x3fc   : > { %9097 = vmatprep.subr.bf16.mxu0 %v12600_v48  ;;  %9140 = vmatprep.subr.bf16.mxu1 %v12856_v26  ;;  %v11978_v48 = vcombine.high %v2566_v32, %v2574_v28  ;;  %v12234_v26 = vcombine.high %v2822_v25, %v2830_v49  ;;  %v2758_v53 = vld [vmem:[%s13808_s28 + $0x818] sm:$0xff] }
 0x3fd   : > { %v2766_v16 = vld [vmem:[%s13808_s28 + $0x858] sm:$0xff] }
 0x3fe   : > { %v2742_v52 = vld [vmem:[%s13808_s28 + $0x798] sm:$0xff] }
 0x3ff   : > { %9098 = vmatpush2.bf16.msra.mxu0 %v12599_v36  ;;  %9141 = vmatpush2.bf16.msra.mxu1 %v12855_v2  ;;  %v11977_v36 = vcombine.low %v2566_v32, %v2574_v28  ;;  %v12233_v2 = vcombine.low %v2822_v25, %v2830_v49  ;;  %v2750_v22 = vld [vmem:[%s13808_s28 + $0x7d8] sm:$0xff] }
 0x400   : > { %9099 = vmatprep.subr.bf16.mxu0 %v12584_v29  ;;  %9142 = vmatprep.subr.bf16.mxu1 %v12840_v15  ;;  %v11962_v29 = vcombine.high %v2550_v43, %v2558_v54  ;;  %v12218_v15 = vcombine.high %v2806_v44, %v2814_v31  ;;  %v2998_v41 = vld [vmem:[%s13808_s28 + $0xf98] sm:$0xff] }
 0x401   : > { %v3006_v12 = vld [vmem:[%s13808_s28 + $0xfd8] sm:$0xff] }
 0x402   : > { %v2726_v50 = vld [vmem:[%s13808_s28 + $0x718] sm:$0xff] }
 0x403   : > { %9100 = vmatpush2.bf16.msra.mxu0 %v12583_v38  ;;  %9143 = vmatpush2.bf16.msra.mxu1 %v12839_v46  ;;  %v11961_v38 = vcombine.low %v2550_v43, %v2558_v54  ;;  %v12217_v46 = vcombine.low %v2806_v44, %v2814_v31  ;;  %v2734_v35 = vld [vmem:[%s13808_s28 + $0x758] sm:$0xff] }
 0x404   : > { %9101 = vmatprep.subr.bf16.mxu0 %v12568_v9  ;;  %9144 = vmatprep.subr.bf16.mxu1 %v12824_v59  ;;  %v11946_v9 = vcombine.high %v2534_v17, %v2542_v63  ;;  %v12202_v59 = vcombine.high %v2790_v56, %v2798_v55  ;;  %v2982_v19 = vld [vmem:[%s13808_s28 + $0xf18] sm:$0xff] }
 0x405   : > { %v2990_v61 = vld [vmem:[%s13808_s28 + $0xf58] sm:$0xff] }
 0x406   : > { %v2710_v32 = vld [vmem:[%s13808_s28 + $0x698] sm:$0xff] }
 0x407   : > { %9102 = vmatpush2.bf16.msra.mxu0 %v12567_v4  ;;  %9145 = vmatpush2.bf16.msra.mxu1 %v12823_v37  ;;  %v11945_v4 = vcombine.low %v2534_v17, %v2542_v63  ;;  %v12201_v37 = vcombine.low %v2790_v56, %v2798_v55  ;;  %v2718_v28 = vld [vmem:[%s13808_s28 + $0x6d8] sm:$0xff] }
 0x408   : > { %9103 = vmatprep.subr.bf16.mxu0 %v12552_v7  ;;  %9146 = vmatprep.subr.bf16.mxu1 %v12808_v18  ;;  %v11930_v7 = vcombine.high %v2518_v0, %v2526_v40  ;;  %v12186_v18 = vcombine.high %v2774_v21, %v2782_v60  ;;  %v2966_v25 = vld [vmem:[%s13808_s28 + $0xe98] sm:$0xff] }
 0x409   : > { %v2974_v49 = vld [vmem:[%s13808_s28 + $0xed8] sm:$0xff] }
 0x40a   : > { %v2694_v43 = vld [vmem:[%s13808_s28 + $0x618] sm:$0xff] }
 0x40b   : > { %9104 = vmatpush2.bf16.msra.mxu0 %v12551_v27  ;;  %9147 = vmatpush2.bf16.msra.mxu1 %v12807_v51  ;;  %v11929_v27 = vcombine.low %v2518_v0, %v2526_v40  ;;  %v12185_v51 = vcombine.low %v2774_v21, %v2782_v60  ;;  %v2702_v54 = vld [vmem:[%s13808_s28 + $0x658] sm:$0xff] }
 0x40c   : > { %9159 = vmatprep.subr.bf16.mxu0 %v12026_v57  ;;  %9202 = vmatprep.subr.bf16.mxu1 %v12282_v24  ;;  %v11914_v57 = vcombine.high %v2502_v23, %v2510_v20  ;;  %v12170_v24 = vcombine.high %v2758_v53, %v2766_v16  ;;  %v2950_v44 = vld [vmem:[%s13808_s28 + $0xe18] sm:$0xff] }
 0x40d   : > { %v2958_v31 = vld [vmem:[%s13808_s28 + $0xe58] sm:$0xff] }
 0x40e   : > { %9106 = vmatmul.mubr.bf16.vlgmr.msra.gmra.mxu0 %v14606_v6  ;;  %9149 = vmatmul.mubr.bf16.vlgmr.msra.gmra.mxu1 %v14610_v1  ;;  %v2678_v17 = vld [vmem:[%s13808_s28 + $0x598] sm:$0xff] }
 0x40f   : > { %9160 = vmatpush1.bf16.msra.mxu0 %v12025_v10  ;;  %9203 = vmatpush1.bf16.msra.mxu1 %v12281_v14  ;;  %v11913_v10 = vcombine.low %v2502_v23, %v2510_v20  ;;  %v12169_v14 = vcombine.low %v2758_v53, %v2766_v16  ;;  %v2686_v63 = vld [vmem:[%s13808_s28 + $0x5d8] sm:$0xff] }
 0x410   : > { %9161 = vmatprep.subr.bf16.mxu0 %v12010_v39  ;;  %9204 = vmatprep.subr.bf16.mxu1 %v12266_v45  ;;  %v12154_v39 = vcombine.high %v2742_v52, %v2750_v22  ;;  %v12410_v45 = vcombine.high %v2998_v41, %v3006_v12  ;;  %v2934_v56 = vld [vmem:[%s13808_s28 + $0xd98] sm:$0xff] }
 0x411   : > { %9191 = vmatprep.mubr.bf16.mxu0 %v14470_v30  ;;  %9234 = vmatprep.mubr.bf16.mxu1 %v14476_v5  ;;  %v2942_v55 = vld [vmem:[%s13808_s28 + $0xdd8] sm:$0xff] }
 0x412   : > { %v2662_v0 = vld [vmem:[%s13808_s28 + $0x518] sm:$0xff] }
 0x413   : > { %9162 = vmatpush1.bf16.msra.mxu0 %v12009_v13  ;;  %9205 = vmatpush1.bf16.msra.mxu1 %v12265_v47  ;;  %v12153_v13 = vcombine.low %v2742_v52, %v2750_v22  ;;  %v12409_v47 = vcombine.low %v2998_v41, %v3006_v12  ;;  %v2670_v40 = vld [vmem:[%s13808_s28 + $0x558] sm:$0xff]  ;;  %v8892_v52 = vpop.f32.mrf.mxu1 }
 0x414   : > { %9163 = vmatprep.subr.bf16.mxu0 %v11994_v33  ;;  %9206 = vmatprep.subr.bf16.mxu1 %v12250_v34  ;;  %v12138_v33 = vcombine.high %v2726_v50, %v2734_v35  ;;  %v12394_v34 = vcombine.high %v2982_v19, %v2990_v61  ;;  %v2918_v21 = vld [vmem:[%s13808_s28 + $0xd18] sm:$0xff] }
 0x415   : > { %v2926_v60 = vld [vmem:[%s13808_s28 + $0xd58] sm:$0xff] }
 0x416   : > { %v2646_v23 = vld [vmem:[%s13808_s28 + $0x498] sm:$0xff] }
 0x417   : > { %9164 = vmatpush1.bf16.msra.mxu0 %v11993_v11  ;;  %9207 = vmatpush1.bf16.msra.mxu1 %v12249_v62  ;;  %v12137_v11 = vcombine.low %v2726_v50, %v2734_v35  ;;  %v12393_v62 = vcombine.low %v2982_v19, %v2990_v61  ;;  %v2654_v20 = vld [vmem:[%s13808_s28 + $0x4d8] sm:$0xff]  ;;  %v8894_v19 = vpop.f32.mrf.mxu1 }
 0x418   : > { %9165 = vmatprep.subr.bf16.mxu0 %v11978_v48  ;;  %9208 = vmatprep.subr.bf16.mxu1 %v12234_v26  ;;  %v12122_v48 = vcombine.high %v2710_v32, %v2718_v28  ;;  %v12378_v26 = vcombine.high %v2966_v25, %v2974_v49  ;;  %v2902_v53 = vld [vmem:[%s13808_s28 + $0xc98] sm:$0xff] }
 0x419   : > { %v2910_v16 = vld [vmem:[%s13808_s28 + $0xcd8] sm:$0xff] }
 0x41a   : > { %v12314_v22 = vcombine.high %v2902_v53, %v2910_v16  ;;  %v2630_v41 = vld [vmem:[%s13808_s28 + $0x418] sm:$0xff]  ;;  %v12313_v50 = vcombine.low %v2902_v53, %v2910_v16 }
 0x41b   : > { %9166 = vmatpush1.bf16.msra.mxu0 %v11977_v36  ;;  %9209 = vmatpush1.bf16.msra.mxu1 %v12233_v2  ;;  %v12121_v36 = vcombine.low %v2710_v32, %v2718_v28  ;;  %v12377_v2 = vcombine.low %v2966_v25, %v2974_v49  ;;  %v2638_v12 = vld [vmem:[%s13808_s28 + $0x458] sm:$0xff] }
 0x41c   : > { %9167 = vmatprep.subr.bf16.mxu0 %v11962_v29  ;;  %9210 = vmatprep.subr.bf16.mxu1 %v12218_v15  ;;  %v12106_v29 = vcombine.high %v2694_v43, %v2702_v54  ;;  %v12362_v15 = vcombine.high %v2950_v44, %v2958_v31  ;;  %v12042_v35 = vcombine.high %v2630_v41, %v2638_v12  ;;  %v3078_v16 = vld [vmem:[%s13808_s28 + $0x1218] sm:$0xff] }
 0x41d   : > { %v12041_v32 = vcombine.low %v2630_v41, %v2638_v12 }
 0x41f   : > { %9168 = vmatpush1.bf16.msra.mxu0 %v11961_v38  ;;  %9211 = vmatpush1.bf16.msra.mxu1 %v12217_v46  ;;  %v12105_v38 = vcombine.low %v2694_v43, %v2702_v54  ;;  %v12361_v46 = vcombine.low %v2950_v44, %v2958_v31  ;;  %v3366_v43 = vld [vmem:[%s13808_s28 + $0x1b18] sm:$0xff] }
 0x420   : > { %9169 = vmatprep.subr.bf16.mxu0 %v11946_v9  ;;  %9212 = vmatprep.subr.bf16.mxu1 %v12202_v59  ;;  %v12090_v9 = vcombine.high %v2678_v17, %v2686_v63  ;;  %v12346_v59 = vcombine.high %v2934_v56, %v2942_v55  ;;  %v3374_v54 = vld [vmem:[%s13808_s28 + $0x1b58] sm:$0xff] }
 0x423   : > { %9170 = vmatpush1.bf16.msra.mxu0 %v11945_v4  ;;  %9213 = vmatpush1.bf16.msra.mxu1 %v12201_v37  ;;  %v12089_v4 = vcombine.low %v2678_v17, %v2686_v63  ;;  %v12345_v37 = vcombine.low %v2934_v56, %v2942_v55  ;;  %v12778_v63 = vcombine.high %v3366_v43, %v3374_v54  ;;  %v3102_v56 = vld [vmem:[%s13808_s28 + $0x12d8] sm:$0xff] }
 0x424   : > { %9171 = vmatprep.subr.bf16.mxu0 %v11930_v7  ;;  %9214 = vmatprep.subr.bf16.mxu1 %v12186_v18  ;;  %v12074_v7 = vcombine.high %v2662_v0, %v2670_v40  ;;  %v12330_v18 = vcombine.high %v2918_v21, %v2926_v60  ;;  %v3350_v55 = vld [vmem:[%s13808_s28 + $0x1a98] sm:$0xff] }
 0x427   : > { %9172 = vmatpush1.bf16.msra.mxu0 %v11929_v27  ;;  %9215 = vmatpush1.bf16.msra.mxu1 %v12185_v51  ;;  %v12073_v27 = vcombine.low %v2662_v0, %v2670_v40  ;;  %v8849_v51 = vpop.f32.mrf.mxu0 }
 0x428   : > { %9173 = vmatprep.subr.bf16.mxu0 %v11914_v57  ;;  %9216 = vmatprep.subr.bf16.mxu1 %v12170_v24  ;;  %v12329_v57 = vcombine.low %v2918_v21, %v2926_v60  ;;  %v12058_v24 = vcombine.high %v2646_v23, %v2654_v20  ;;  %v2469_v21 = vld [vmem:[#allocation3 + $0xd8] sm:$0xff] }
 0x42b   : > { %9174 = vmatpush1.bf16.msra.mxu0 %v11913_v10  ;;  %9217 = vmatpush1.bf16.msra.mxu1 %v12169_v14  ;;  %v2886_v10 = vld [vmem:[%s13808_s28 + $0xc18] sm:$0xff] }
 0x42c   : > { %9175 = vmatprep.subr.bf16.mxu0 %v12154_v39  ;;  %9218 = vmatprep.subr.bf16.mxu1 %v12410_v45  ;;  %v2894_v14 = vld [vmem:[%s13808_s28 + $0xc58] sm:$0xff]  ;;  %v12057_v39 = vcombine.low %v2646_v23, %v2654_v20  ;;  %v8851_v45 = vpop.f32.mrf.mxu0 }
 0x42d   : > { %v12298_v61 = vcombine.high %v2886_v10, %v2894_v14  ;;  %v12297_v25 = vcombine.low %v2886_v10, %v2894_v14 }
 0x42e   : > { %v8853_v28 = vpop.f32.mrf.mxu0 }
 0x42f   : > { %9176 = vmatpush2.bf16.msra.mxu0 %v12153_v13  ;;  %9219 = vmatpush2.bf16.msra.mxu1 %v12409_v47  ;;  %v3126_v13 = vld [vmem:[%s13808_s28 + $0x1398] sm:$0xff] }
 0x430   : > { %9177 = vmatprep.subr.bf16.mxu0 %v12138_v33  ;;  %9220 = vmatprep.subr.bf16.mxu1 %v12394_v34  ;;  %v3134_v47 = vld [vmem:[%s13808_s28 + $0x13d8] sm:$0xff]  ;;  %v8855_v31 = vpop.f32.mrf.mxu0 }
 0x431   : > { %v3382_v33 = vld [vmem:[%s13808_s28 + $0x1b98] sm:$0xff]  ;;  %v12538_v49 = vcombine.high %v3126_v13, %v3134_v47  ;;  %v12537_v44 = vcombine.low %v3126_v13, %v3134_v47 }
 0x432   : > { %v3390_v34 = vld [vmem:[%s13808_s28 + $0x1bd8] sm:$0xff] }
 0x433   : > { %9178 = vmatpush2.bf16.msra.mxu0 %v12137_v11  ;;  %9221 = vmatpush2.bf16.msra.mxu1 %v12393_v62  ;;  %v8896_v11 = vpop.f32.mrf.mxu1  ;;  %v12794_v62 = vcombine.high %v3382_v33, %v3390_v34 }
 0x434   : > { %9179 = vmatprep.subr.bf16.mxu0 %v12122_v48  ;;  %9222 = vmatprep.subr.bf16.mxu1 %v12378_v26  ;;  %v3110_v48 = vld [vmem:[%s13808_s28 + $0x1318] sm:$0xff] }
 0x435   : > { %v3118_v26 = vld [vmem:[%s13808_s28 + $0x1358] sm:$0xff]  ;;  %v8898_v17 = vpop.f32.mrf.mxu1 }
 0x436   : > { %v12521_v40 = vcombine.low %v3110_v48, %v3118_v26  ;;  %v8899_v41 = vadd.f32 %v8898_v17, %v8855_v31 }
 0x437   : > { %9180 = vmatpush2.bf16.msra.mxu0 %v12121_v36  ;;  %9223 = vmatpush2.bf16.msra.mxu1 %v12377_v2  ;;  %v12793_v36 = vcombine.low %v3382_v33, %v3390_v34  ;;  %v12522_v2 = vcombine.high %v3110_v48, %v3118_v26  ;;  %v3062_v34 = vld [vmem:[%s13808_s28 + $0x1198] sm:$0xff] }
 0x438   : > { %9181 = vmatprep.subr.bf16.mxu0 %v12106_v29  ;;  %9224 = vmatprep.subr.bf16.mxu1 %v12362_v15  ;;  %v14957_v29 = vld [vmem:[%s13808_s28 + $0x1298] sm:$0xff]  ;;  %v8893_v15 = vadd.f32 %v8892_v52, %v8849_v51 }
 0x439   : > { %v2470_v51 = vld [vmem:[#allocation3 + $0x18] sm:$0xff] }
 0x43a   : > { %v3334_v52 = vld [vmem:[%s13808_s28 + $0x1a18] sm:$0xff] }
 0x43b   : > { %9182 = vmatpush2.bf16.msra.mxu0 %v12105_v38  ;;  %9225 = vmatpush2.bf16.msra.mxu1 %v12361_v46  ;;  %v3358_v38 = vld [vmem:[%s13808_s28 + $0x1ad8] sm:$0xff] }
 0x43c   : > { %9183 = vmatprep.subr.bf16.mxu0 %v12090_v9  ;;  %9226 = vmatprep.subr.bf16.mxu1 %v12346_v59  ;;  %v8895_v9 = vadd.f32 %v8894_v19, %v8851_v45  ;;  %v2485_v45 = vld [vmem:[#allocation3 + $0x40] sm:$0xff] }
 0x43f   : > { %9184 = vmatpush2.bf16.msra.mxu0 %v12089_v4  ;;  %9227 = vmatpush2.bf16.msra.mxu1 %v12345_v37  ;;  %v12777_v4 = vcombine.low %v3366_v43, %v3374_v54  ;;  %v12506_v37 = vcombine.high %v14957_v29, %v3102_v56 }
 0x440   : > { %9185 = vmatprep.subr.bf16.mxu0 %v12074_v7  ;;  %9228 = vmatprep.subr.bf16.mxu1 %v12330_v18  ;;  %v12762_v7 = vcombine.high %v3350_v55, %v3358_v38  ;;  %v8897_v18 = vadd.f32 %v8896_v11, %v8853_v28  ;;  %v2486_v28 = vld [vmem:[#allocation3 + $0xc8] sm:$0xff]  ;;  %v3326_v11 = vld [vmem:[%s13808_s28 + $0x19d8] sm:$0xff] }
 0x443   : > { %9186 = vmatpush2.bf16.msra.mxu0 %v12073_v27  ;;  %9229 = vmatpush2.bf16.msra.mxu1 %v12329_v57  ;;  %v3086_v27 = vld [vmem:[%s13808_s28 + $0x1258] sm:$0xff] }
 0x444   : > { %9187 = vmatprep.subr.bf16.mxu0 %v12058_v24  ;;  %9230 = vmatprep.subr.bf16.mxu1 %v12314_v22  ;;  %v12505_v24 = vcombine.low %v14957_v29, %v3102_v56  ;;  %v3342_v22 = vld [vmem:[%s13808_s28 + $0x1a58] sm:$0xff]  ;;  %v12490_v19 = vcombine.high %v3078_v16, %v3086_v27  ;;  %v12489_v26 = vcombine.low %v3078_v16, %v3086_v27 }
 0x445   : > { %v12746_v33 = vcombine.high %v3334_v52, %v3342_v22  ;;  %v12745_v43 = vcombine.low %v3334_v52, %v3342_v22  ;;  %v3302_v29 = vld [vmem:[%s13808_s28 + $0x1918] sm:$0xff] }
 0x446   : > { %v3254_v27 = vld [vmem:[%s13808_s28 + $0x1798] sm:$0xff] }
 0x447   : > { %9188 = vmatpush2.bf16.msra.mxu0 %v12057_v39  ;;  %9231 = vmatpush2.bf16.msra.mxu1 %v12313_v50 }
 0x448   : > { %9189 = vmatprep.subr.bf16.mxu0 %v12042_v35  ;;  %9232 = vmatprep.subr.bf16.mxu1 %v12298_v61  ;;  %v12761_v35 = vcombine.low %v3350_v55, %v3358_v38  ;;  %v3030_v38 = vld [vmem:[%s13808_s28 + $0x1098] sm:$0xff] }
 0x44b   : > { %9190 = vmatpush2.bf16.msra.mxu0 %v12041_v32  ;;  %9233 = vmatpush2.bf16.msra.mxu1 %v12297_v25  ;;  %v3070_v32 = vld [vmem:[%s13808_s28 + $0x11d8] sm:$0xff] }
 0x44c   : > { %9245 = vmatprep.subr.bf16.mxu0 %v12538_v49  ;;  %9288 = vmatprep.subr.bf16.mxu1 %v12794_v62  ;;  %v3318_v49 = vld [vmem:[%s13808_s28 + $0x1998] sm:$0xff]  ;;  %v12474_v54 = vcombine.high %v3062_v34, %v3070_v32  ;;  %v12473_v17 = vcombine.low %v3062_v34, %v3070_v32 }
 0x44d   : > { %v12730_v31 = vcombine.high %v3318_v49, %v3326_v11  ;;  %v3486_v34 = vld [vmem:[%s13808_s28 + $0x1ed8] sm:$0xff] }
 0x44e   : > { %v8935_v46 = vpop.f32.mrf.mxu0  ;;  %9192 = vmatmul.mubr.bf16.vlgmr.msra.gmra.mxu0 %v14523_v8  ;;  %v8978_v0 = vpop.f32.mrf.mxu1  ;;  %9235 = vmatmul.mubr.bf16.vlgmr.msra.gmra.mxu1 %v14528_v58 }
 0x44f   : > { %v8936_v59 = vadd.f32 %v8935_v46, %v8893_v15  ;;  %9246 = vmatpush1.bf16.msra.mxu0 %v12537_v44  ;;  %9289 = vmatpush1.bf16.msra.mxu1 %v12793_v36  ;;  %v3046_v36 = vld [vmem:[%s13808_s28 + $0x1118] sm:$0xff] }
 0x450   : > { %v8937_v60 = vpop.f32.mrf.mxu0  ;;  %9247 = vmatprep.subr.bf16.mxu0 %v12522_v2  ;;  %v8980_v53 = vpop.f32.mrf.mxu1  ;;  %9290 = vmatprep.subr.bf16.mxu1 %v12778_v63  ;;  %v3054_v2 = vld [vmem:[%s13808_s28 + $0x1158] sm:$0xff]  ;;  %v12729_v63 = vcombine.low %v3318_v49, %v3326_v11 }
 0x451   : > { %v8979_v23 = vadd.f32 %v8978_v0, %v8936_v59  ;;  %v8938_v20 = vadd.f32 %v8937_v60, %v8895_v9  ;;  %9277 = vmatprep.mubr.bf16.mxu0 %v14534_v3  ;;  %9320 = vmatprep.mubr.bf16.mxu1 %v14539_v42  ;;  %v3310_v15 = vld [vmem:[%s13808_s28 + $0x1958] sm:$0xff]  ;;  %v12458_v56 = vcombine.high %v3046_v36, %v3054_v2 }
 0x452   : > { %v8939_v57 = vpop.f32.mrf.mxu0  ;;  %v8982_v39 = vpop.f32.mrf.mxu1  ;;  %v12714_v55 = vcombine.high %v3302_v29, %v3310_v15  ;;  %v3038_v46 = vld [vmem:[%s13808_s28 + $0x10d8] sm:$0xff]  ;;  %v12457_v0 = vcombine.low %v3046_v36, %v3054_v2 }
 0x453   : > { %v10021_v12 = vadd.f32 %v8979_v23, %v2469_v21  ;;  %v8981_v10 = vadd.f32 %v8980_v53, %v8938_v20  ;;  %v8940_v14 = vadd.f32 %v8939_v57, %v8897_v18  ;;  %9248 = vmatpush1.bf16.msra.mxu0 %v12521_v40  ;;  %9291 = vmatpush1.bf16.msra.mxu1 %v12777_v4  ;;  %v3286_v9 = vld [vmem:[%s13808_s28 + $0x1898] sm:$0xff] }
 0x454   : > { %v8941_v50 = vpop.f32.mrf.mxu0  ;;  %9249 = vmatprep.subr.bf16.mxu0 %v12506_v37  ;;  %9292 = vmatprep.subr.bf16.mxu1 %v12762_v7  ;;  %v8984_v25 = vpop.f32.mrf.mxu1  ;;  %v3294_v59 = vld [vmem:[%s13808_s28 + $0x18d8] sm:$0xff]  ;;  %v12713_v40 = vcombine.low %v3302_v29, %v3310_v15  ;;  %v12442_v21 = vcombine.high %v3030_v38, %v3038_v46  ;;  %v12441_v23 = vcombine.low %v3030_v38, %v3038_v46 }
 0x455   : > { %10053 = vst [vmem:[#allocation3 + $0xd8] sm:$0xff] %v10021_v12  ;;  %v10022_v61 = vadd.f32 %v8981_v10, %v2470_v51  ;;  %v8983_v13 = vadd.f32 %v8982_v39, %v8940_v14  ;;  %v8942_v47 = vadd.f32 %v8941_v50, %v8899_v41  ;;  %v12698_v60 = vcombine.high %v3286_v9, %v3294_v59  ;;  %v3014_v4 = vld [vmem:[%s13808_s28 + $0x1018] sm:$0xff] }
 0x456   : > { %v3022_v37 = vld [vmem:[%s13808_s28 + $0x1058] sm:$0xff]  ;;  %v12697_v20 = vcombine.low %v3286_v9, %v3294_v59 }
 0x457   : > { %10054 = vst [vmem:[#allocation3 + $0x18] sm:$0xff] %v10022_v61  ;;  %v10037_v62 = vadd.f32 %v8983_v13, %v2485_v45  ;;  %v8985_v48 = vadd.f32 %v8984_v25, %v8942_v47  ;;  %9250 = vmatpush1.bf16.msra.mxu0 %v12505_v24  ;;  %9293 = vmatpush1.bf16.msra.mxu1 %v12761_v35  ;;  %v3270_v7 = vld [vmem:[%s13808_s28 + $0x1818] sm:$0xff] }
 0x458   : > { %9251 = vmatprep.subr.bf16.mxu0 %v12490_v19  ;;  %9294 = vmatprep.subr.bf16.mxu1 %v12746_v33  ;;  %v3278_v18 = vld [vmem:[%s13808_s28 + $0x1858] sm:$0xff]  ;;  %v12426_v53 = vcombine.high %v3014_v4, %v3022_v37  ;;  %v12425_v52 = vcombine.low %v3014_v4, %v3022_v37 }
 0x459   : > { %10069 = vst [vmem:[#allocation3 + $0x40] sm:$0xff] %v10037_v62  ;;  %v10038_v44 = vadd.f32 %v8985_v48, %v2486_v28  ;;  %v12682_v16 = vcombine.high %v3270_v7, %v3278_v18  ;;  %v3262_v51 = vld [vmem:[%s13808_s28 + $0x17d8] sm:$0xff]  ;;  %v12681_v22 = vcombine.low %v3270_v7, %v3278_v18 }
 0x45a   : > { %v3510_v57 = vld [vmem:[%s13808_s28 + $0x1f98] sm:$0xff]  ;;  %v12666_v41 = vcombine.high %v3254_v27, %v3262_v51  ;;  %v12665_v50 = vcombine.low %v3254_v27, %v3262_v51 }
 0x45b   : > { %10070 = vst [vmem:[#allocation3 + $0xc8] sm:$0xff] %v10038_v44  ;;  %9252 = vmatpush1.bf16.msra.mxu0 %v12489_v26  ;;  %9295 = vmatpush1.bf16.msra.mxu1 %v12745_v43  ;;  %v3518_v24 = vld [vmem:[%s13808_s28 + $0x1fd8] sm:$0xff] }
 0x45c   : > { %9253 = vmatprep.subr.bf16.mxu0 %v12474_v54  ;;  %9296 = vmatprep.subr.bf16.mxu1 %v12730_v31  ;;  %v12922_v12 = vcombine.high %v3510_v57, %v3518_v24  ;;  %v3238_v10 = vld [vmem:[%s13808_s28 + $0x1718] sm:$0xff]  ;;  %v12921_v35 = vcombine.low %v3510_v57, %v3518_v24 }
 0x45d   : > { %v3246_v14 = vld [vmem:[%s13808_s28 + $0x1758] sm:$0xff] }
 0x45e   : > { %v3494_v39 = vld [vmem:[%s13808_s28 + $0x1f18] sm:$0xff]  ;;  %v12650_v19 = vcombine.high %v3238_v10, %v3246_v14  ;;  %v12649_v32 = vcombine.low %v3238_v10, %v3246_v14  ;;  %v2615_v10 = vld [vmem:[%s13808_s28 + $0x3a0] sm:$0xff] }
 0x45f   : > { %9254 = vmatpush1.bf16.msra.mxu0 %v12473_v17  ;;  %9297 = vmatpush1.bf16.msra.mxu1 %v12729_v63  ;;  %v3502_v45 = vld [vmem:[%s13808_s28 + $0x1f58] sm:$0xff]  ;;  %v2623_v14 = vld [vmem:[%s13808_s28 + $0x3e0] sm:$0xff] }
 0x460   : > { %9255 = vmatprep.subr.bf16.mxu0 %v12458_v56  ;;  %9298 = vmatprep.subr.bf16.mxu1 %v12714_v55  ;;  %v12906_v61 = vcombine.high %v3494_v39, %v3502_v45  ;;  %v3222_v13 = vld [vmem:[%s13808_s28 + $0x1698] sm:$0xff]  ;;  %v12905_v28 = vcombine.low %v3494_v39, %v3502_v45  ;;  %v2871_v39 = vld [vmem:[%s13808_s28 + $0xba0] sm:$0xff] }
 0x461   : > { %v3230_v47 = vld [vmem:[%s13808_s28 + $0x16d8] sm:$0xff]  ;;  %v2879_v45 = vld [vmem:[%s13808_s28 + $0xbe0] sm:$0xff] }
 0x462   : > { %v3478_v33 = vld [vmem:[%s13808_s28 + $0x1e98] sm:$0xff]  ;;  %v12634_v25 = vcombine.high %v3222_v13, %v3230_v47  ;;  %v12633_v43 = vcombine.low %v3222_v13, %v3230_v47  ;;  %v2599_v13 = vld [vmem:[%s13808_s28 + $0x320] sm:$0xff] }
 0x463   : > { %9256 = vmatpush1.bf16.msra.mxu0 %v12457_v0  ;;  %9299 = vmatpush1.bf16.msra.mxu1 %v12713_v40  ;;  %v12890_v49 = vcombine.high %v3478_v33, %v3486_v34  ;;  %v3206_v11 = vld [vmem:[%s13808_s28 + $0x1618] sm:$0xff]  ;;  %v12889_v54 = vcombine.low %v3478_v33, %v3486_v34  ;;  %v2607_v47 = vld [vmem:[%s13808_s28 + $0x360] sm:$0xff] }
 0x464   : > { %9257 = vmatprep.subr.bf16.mxu0 %v12442_v21  ;;  %9300 = vmatprep.subr.bf16.mxu1 %v12698_v60  ;;  %v3214_v62 = vld [vmem:[%s13808_s28 + $0x1658] sm:$0xff]  ;;  %v2855_v33 = vld [vmem:[%s13808_s28 + $0xb20] sm:$0xff] }
 0x465   : > { %v3462_v48 = vld [vmem:[%s13808_s28 + $0x1e18] sm:$0xff]  ;;  %v12618_v44 = vcombine.high %v3206_v11, %v3214_v62  ;;  %v12617_v17 = vcombine.low %v3206_v11, %v3214_v62  ;;  %v2863_v34 = vld [vmem:[%s13808_s28 + $0xb60] sm:$0xff] }
 0x466   : > { %v3470_v26 = vld [vmem:[%s13808_s28 + $0x1e58] sm:$0xff]  ;;  %v2583_v11 = vld [vmem:[%s13808_s28 + $0x2a0] sm:$0xff] }
 0x467   : > { %9258 = vmatpush1.bf16.msra.mxu0 %v12441_v23  ;;  %9301 = vmatpush1.bf16.msra.mxu1 %v12697_v20  ;;  %v12874_v31 = vcombine.high %v3462_v48, %v3470_v26  ;;  %v3190_v36 = vld [vmem:[%s13808_s28 + $0x1598] sm:$0xff]  ;;  %v12873_v63 = vcombine.low %v3462_v48, %v3470_v26  ;;  %v2591_v62 = vld [vmem:[%s13808_s28 + $0x2e0] sm:$0xff] }
 0x468   : > { %9259 = vmatprep.subr.bf16.mxu0 %v12426_v53  ;;  %9302 = vmatprep.subr.bf16.mxu1 %v12682_v16  ;;  %v3198_v2 = vld [vmem:[%s13808_s28 + $0x15d8] sm:$0xff]  ;;  %v2839_v48 = vld [vmem:[%s13808_s28 + $0xaa0] sm:$0xff] }
 0x469   : > { %v3446_v29 = vld [vmem:[%s13808_s28 + $0x1d98] sm:$0xff]  ;;  %v12602_v56 = vcombine.high %v3190_v36, %v3198_v2  ;;  %v12601_v0 = vcombine.low %v3190_v36, %v3198_v2  ;;  %v2847_v26 = vld [vmem:[%s13808_s28 + $0xae0] sm:$0xff] }
 0x46a   : > { %v3454_v15 = vld [vmem:[%s13808_s28 + $0x1dd8] sm:$0xff]  ;;  %v2567_v36 = vld [vmem:[%s13808_s28 + $0x220] sm:$0xff] }
 0x46b   : > { %9260 = vmatpush1.bf16.msra.mxu0 %v12425_v52  ;;  %9303 = vmatpush1.bf16.msra.mxu1 %v12681_v22  ;;  %v12858_v55 = vcombine.high %v3446_v29, %v3454_v15  ;;  %v3174_v38 = vld [vmem:[%s13808_s28 + $0x1518] sm:$0xff]  ;;  %v12857_v40 = vcombine.low %v3446_v29, %v3454_v15  ;;  %v2575_v2 = vld [vmem:[%s13808_s28 + $0x260] sm:$0xff] }
 0x46c   : > { %9261 = vmatprep.subr.bf16.mxu0 %v12666_v41  ;;  %9304 = vmatprep.subr.bf16.mxu1 %v12922_v12  ;;  %v3182_v46 = vld [vmem:[%s13808_s28 + $0x1558] sm:$0xff]  ;;  %v2823_v29 = vld [vmem:[%s13808_s28 + $0xa20] sm:$0xff] }
 0x46d   : > { %v3430_v9 = vld [vmem:[%s13808_s28 + $0x1d18] sm:$0xff]  ;;  %v12586_v21 = vcombine.high %v3174_v38, %v3182_v46  ;;  %v12585_v23 = vcombine.low %v3174_v38, %v3182_v46  ;;  %v2831_v15 = vld [vmem:[%s13808_s28 + $0xa60] sm:$0xff] }
 0x46e   : > { %v3438_v59 = vld [vmem:[%s13808_s28 + $0x1d58] sm:$0xff]  ;;  %v2551_v38 = vld [vmem:[%s13808_s28 + $0x1a0] sm:$0xff] }
 0x46f   : > { %9262 = vmatpush2.bf16.msra.mxu0 %v12665_v50  ;;  %9305 = vmatpush2.bf16.msra.mxu1 %v12921_v35  ;;  %v12842_v60 = vcombine.high %v3430_v9, %v3438_v59  ;;  %v3158_v4 = vld [vmem:[%s13808_s28 + $0x1498] sm:$0xff]  ;;  %v12841_v20 = vcombine.low %v3430_v9, %v3438_v59  ;;  %v2559_v46 = vld [vmem:[%s13808_s28 + $0x1e0] sm:$0xff] }
 0x470   : > { %9263 = vmatprep.subr.bf16.mxu0 %v12650_v19  ;;  %9306 = vmatprep.subr.bf16.mxu1 %v12906_v61  ;;  %v3166_v37 = vld [vmem:[%s13808_s28 + $0x14d8] sm:$0xff]  ;;  %v12028_v19 = vcombine.high %v2615_v10, %v2623_v14  ;;  %v12284_v61 = vcombine.high %v2871_v39, %v2879_v45  ;;  %v2807_v9 = vld [vmem:[%s13808_s28 + $0x9a0] sm:$0xff] }
 0x471   : > { %v3414_v7 = vld [vmem:[%s13808_s28 + $0x1c98] sm:$0xff]  ;;  %v12570_v53 = vcombine.high %v3158_v4, %v3166_v37  ;;  %v12569_v52 = vcombine.low %v3158_v4, %v3166_v37  ;;  %v2815_v59 = vld [vmem:[%s13808_s28 + $0x9e0] sm:$0xff] }
 0x472   : > { %v3422_v18 = vld [vmem:[%s13808_s28 + $0x1cd8] sm:$0xff]  ;;  %v2535_v4 = vld [vmem:[%s13808_s28 + $0x120] sm:$0xff] }
 0x473   : > { %9264 = vmatpush2.bf16.msra.mxu0 %v12649_v32  ;;  %9307 = vmatpush2.bf16.msra.mxu1 %v12905_v28  ;;  %v12826_v16 = vcombine.high %v3414_v7, %v3422_v18  ;;  %v3142_v27 = vld [vmem:[%s13808_s28 + $0x1418] sm:$0xff]  ;;  %v12825_v22 = vcombine.low %v3414_v7, %v3422_v18  ;;  %v12027_v32 = vcombine.low %v2615_v10, %v2623_v14  ;;  %v2543_v37 = vld [vmem:[%s13808_s28 + $0x160] sm:$0xff] }
 0x474   : > { %9265 = vmatprep.subr.bf16.mxu0 %v12634_v25  ;;  %9308 = vmatprep.subr.bf16.mxu1 %v12890_v49  ;;  %v3150_v51 = vld [vmem:[%s13808_s28 + $0x1458] sm:$0xff]  ;;  %v12283_v28 = vcombine.low %v2871_v39, %v2879_v45  ;;  %v12012_v25 = vcombine.high %v2599_v13, %v2607_v47  ;;  %v12268_v49 = vcombine.high %v2855_v33, %v2863_v34  ;;  %v2791_v7 = vld [vmem:[%s13808_s28 + $0x920] sm:$0xff] }
 0x475   : > { %v3398_v57 = vld [vmem:[%s13808_s28 + $0x1c18] sm:$0xff]  ;;  %v12554_v41 = vcombine.high %v3142_v27, %v3150_v51  ;;  %v12553_v50 = vcombine.low %v3142_v27, %v3150_v51  ;;  %v2799_v18 = vld [vmem:[%s13808_s28 + $0x960] sm:$0xff] }
 0x476   : > { %v3406_v24 = vld [vmem:[%s13808_s28 + $0x1c58] sm:$0xff]  ;;  %v2519_v27 = vld [vmem:[%s13808_s28 + $0xa0] sm:$0xff] }
 0x477   : > { %9266 = vmatpush2.bf16.msra.mxu0 %v12633_v43  ;;  %9309 = vmatpush2.bf16.msra.mxu1 %v12889_v54  ;;  %v12810_v12 = vcombine.high %v3398_v57, %v3406_v24  ;;  %v12809_v35 = vcombine.low %v3398_v57, %v3406_v24  ;;  %v12011_v43 = vcombine.low %v2599_v13, %v2607_v47  ;;  %v2527_v51 = vld [vmem:[%s13808_s28 + $0xe0] sm:$0xff] }
 0x478   : > { %9267 = vmatprep.subr.bf16.mxu0 %v12618_v44  ;;  %9310 = vmatprep.subr.bf16.mxu1 %v12874_v31  ;;  %v12267_v54 = vcombine.low %v2855_v33, %v2863_v34  ;;  %v11996_v44 = vcombine.high %v2583_v11, %v2591_v62  ;;  %v12252_v31 = vcombine.high %v2839_v48, %v2847_v26  ;;  %v2775_v57 = vld [vmem:[%s13808_s28 + $0x8a0] sm:$0xff] }
 0x479   : > { %v2783_v24 = vld [vmem:[%s13808_s28 + $0x8e0] sm:$0xff] }
 0x47a   : > { %v2503_v10 = vld [vmem:[%s13808_s28 + $0x20] sm:$0xff] }
 0x47b   : > { %9268 = vmatpush2.bf16.msra.mxu0 %v12617_v17  ;;  %9311 = vmatpush2.bf16.msra.mxu1 %v12873_v63  ;;  %v11995_v17 = vcombine.low %v2583_v11, %v2591_v62  ;;  %v12251_v63 = vcombine.low %v2839_v48, %v2847_v26  ;;  %v2511_v14 = vld [vmem:[%s13808_s28 + $0x60] sm:$0xff] }
 0x47c   : > { %9269 = vmatprep.subr.bf16.mxu0 %v12602_v56  ;;  %9312 = vmatprep.subr.bf16.mxu1 %v12858_v55  ;;  %v11980_v56 = vcombine.high %v2567_v36, %v2575_v2  ;;  %v12236_v55 = vcombine.high %v2823_v29, %v2831_v15  ;;  %v2759_v39 = vld [vmem:[%s13808_s28 + $0x820] sm:$0xff] }
 0x47d   : > { %v2767_v45 = vld [vmem:[%s13808_s28 + $0x860] sm:$0xff] }
 0x47e   : > { %v2743_v13 = vld [vmem:[%s13808_s28 + $0x7a0] sm:$0xff] }
 0x47f   : > { %9270 = vmatpush2.bf16.msra.mxu0 %v12601_v0  ;;  %9313 = vmatpush2.bf16.msra.mxu1 %v12857_v40  ;;  %v11979_v0 = vcombine.low %v2567_v36, %v2575_v2  ;;  %v12235_v40 = vcombine.low %v2823_v29, %v2831_v15  ;;  %v2751_v47 = vld [vmem:[%s13808_s28 + $0x7e0] sm:$0xff] }
 0x480   : > { %9271 = vmatprep.subr.bf16.mxu0 %v12586_v21  ;;  %9314 = vmatprep.subr.bf16.mxu1 %v12842_v60  ;;  %v11964_v21 = vcombine.high %v2551_v38, %v2559_v46  ;;  %v12220_v60 = vcombine.high %v2807_v9, %v2815_v59  ;;  %v2999_v33 = vld [vmem:[%s13808_s28 + $0xfa0] sm:$0xff] }
 0x481   : > { %v3007_v34 = vld [vmem:[%s13808_s28 + $0xfe0] sm:$0xff] }
 0x482   : > { %v2727_v11 = vld [vmem:[%s13808_s28 + $0x720] sm:$0xff] }
 0x483   : > { %9272 = vmatpush2.bf16.msra.mxu0 %v12585_v23  ;;  %9315 = vmatpush2.bf16.msra.mxu1 %v12841_v20  ;;  %v11963_v23 = vcombine.low %v2551_v38, %v2559_v46  ;;  %v12219_v20 = vcombine.low %v2807_v9, %v2815_v59  ;;  %v2735_v62 = vld [vmem:[%s13808_s28 + $0x760] sm:$0xff] }
 0x484   : > { %9273 = vmatprep.subr.bf16.mxu0 %v12570_v53  ;;  %9316 = vmatprep.subr.bf16.mxu1 %v12826_v16  ;;  %v11948_v53 = vcombine.high %v2535_v4, %v2543_v37  ;;  %v12204_v16 = vcombine.high %v2791_v7, %v2799_v18  ;;  %v2983_v48 = vld [vmem:[%s13808_s28 + $0xf20] sm:$0xff] }
 0x485   : > { %v2991_v26 = vld [vmem:[%s13808_s28 + $0xf60] sm:$0xff] }
 0x486   : > { %v2711_v36 = vld [vmem:[%s13808_s28 + $0x6a0] sm:$0xff] }
 0x487   : > { %9274 = vmatpush2.bf16.msra.mxu0 %v12569_v52  ;;  %9317 = vmatpush2.bf16.msra.mxu1 %v12825_v22  ;;  %v11947_v52 = vcombine.low %v2535_v4, %v2543_v37  ;;  %v12203_v22 = vcombine.low %v2791_v7, %v2799_v18  ;;  %v2719_v2 = vld [vmem:[%s13808_s28 + $0x6e0] sm:$0xff] }
 0x488   : > { %9275 = vmatprep.subr.bf16.mxu0 %v12554_v41  ;;  %9318 = vmatprep.subr.bf16.mxu1 %v12810_v12  ;;  %v11932_v41 = vcombine.high %v2519_v27, %v2527_v51  ;;  %v12188_v12 = vcombine.high %v2775_v57, %v2783_v24  ;;  %v2967_v29 = vld [vmem:[%s13808_s28 + $0xea0] sm:$0xff] }
 0x489   : > { %v2975_v15 = vld [vmem:[%s13808_s28 + $0xee0] sm:$0xff] }
 0x48a   : > { %v2695_v38 = vld [vmem:[%s13808_s28 + $0x620] sm:$0xff] }
 0x48b   : > { %9276 = vmatpush2.bf16.msra.mxu0 %v12553_v50  ;;  %9319 = vmatpush2.bf16.msra.mxu1 %v12809_v35  ;;  %v11931_v50 = vcombine.low %v2519_v27, %v2527_v51  ;;  %v12187_v35 = vcombine.low %v2775_v57, %v2783_v24  ;;  %v2703_v46 = vld [vmem:[%s13808_s28 + $0x660] sm:$0xff] }
 0x48c   : > { %9331 = vmatprep.subr.bf16.mxu0 %v12028_v19  ;;  %9374 = vmatprep.subr.bf16.mxu1 %v12284_v61  ;;  %v11916_v19 = vcombine.high %v2503_v10, %v2511_v14  ;;  %v12172_v61 = vcombine.high %v2759_v39, %v2767_v45  ;;  %v2951_v9 = vld [vmem:[%s13808_s28 + $0xe20] sm:$0xff] }
 0x48d   : > { %v2959_v59 = vld [vmem:[%s13808_s28 + $0xe60] sm:$0xff] }
 0x48e   : > { %9278 = vmatmul.mubr.bf16.vlgmr.msra.gmra.mxu0 %v14606_v6  ;;  %9321 = vmatmul.mubr.bf16.vlgmr.msra.gmra.mxu1 %v14610_v1  ;;  %v2679_v4 = vld [vmem:[%s13808_s28 + $0x5a0] sm:$0xff] }
 0x48f   : > { %9332 = vmatpush1.bf16.msra.mxu0 %v12027_v32  ;;  %9375 = vmatpush1.bf16.msra.mxu1 %v12283_v28  ;;  %v11915_v32 = vcombine.low %v2503_v10, %v2511_v14  ;;  %v12171_v28 = vcombine.low %v2759_v39, %v2767_v45  ;;  %v2687_v37 = vld [vmem:[%s13808_s28 + $0x5e0] sm:$0xff] }
 0x490   : > { %9333 = vmatprep.subr.bf16.mxu0 %v12012_v25  ;;  %9376 = vmatprep.subr.bf16.mxu1 %v12268_v49  ;;  %v12156_v25 = vcombine.high %v2743_v13, %v2751_v47  ;;  %v12412_v49 = vcombine.high %v2999_v33, %v3007_v34  ;;  %v2935_v7 = vld [vmem:[%s13808_s28 + $0xda0] sm:$0xff] }
 0x491   : > { %9363 = vmatprep.mubr.bf16.mxu0 %v14470_v30  ;;  %9406 = vmatprep.mubr.bf16.mxu1 %v14476_v5  ;;  %v2943_v18 = vld [vmem:[%s13808_s28 + $0xde0] sm:$0xff] }
 0x492   : > { %v2663_v27 = vld [vmem:[%s13808_s28 + $0x520] sm:$0xff] }
 0x493   : > { %9334 = vmatpush1.bf16.msra.mxu0 %v12011_v43  ;;  %9377 = vmatpush1.bf16.msra.mxu1 %v12267_v54  ;;  %v12155_v43 = vcombine.low %v2743_v13, %v2751_v47  ;;  %v12411_v54 = vcombine.low %v2999_v33, %v3007_v34  ;;  %v2671_v51 = vld [vmem:[%s13808_s28 + $0x560] sm:$0xff]  ;;  %v9064_v13 = vpop.f32.mrf.mxu1 }
 0x494   : > { %9335 = vmatprep.subr.bf16.mxu0 %v11996_v44  ;;  %9378 = vmatprep.subr.bf16.mxu1 %v12252_v31  ;;  %v12140_v44 = vcombine.high %v2727_v11, %v2735_v62  ;;  %v12396_v31 = vcombine.high %v2983_v48, %v2991_v26  ;;  %v2919_v57 = vld [vmem:[%s13808_s28 + $0xd20] sm:$0xff] }
 0x495   : > { %v2927_v24 = vld [vmem:[%s13808_s28 + $0xd60] sm:$0xff] }
 0x496   : > { %v2647_v10 = vld [vmem:[%s13808_s28 + $0x4a0] sm:$0xff] }
 0x497   : > { %9336 = vmatpush1.bf16.msra.mxu0 %v11995_v17  ;;  %9379 = vmatpush1.bf16.msra.mxu1 %v12251_v63  ;;  %v12139_v17 = vcombine.low %v2727_v11, %v2735_v62  ;;  %v12395_v63 = vcombine.low %v2983_v48, %v2991_v26  ;;  %v2655_v14 = vld [vmem:[%s13808_s28 + $0x4e0] sm:$0xff]  ;;  %v9066_v48 = vpop.f32.mrf.mxu1 }
 0x498   : > { %9337 = vmatprep.subr.bf16.mxu0 %v11980_v56  ;;  %9380 = vmatprep.subr.bf16.mxu1 %v12236_v55  ;;  %v12124_v56 = vcombine.high %v2711_v36, %v2719_v2  ;;  %v12380_v55 = vcombine.high %v2967_v29, %v2975_v15  ;;  %v2903_v39 = vld [vmem:[%s13808_s28 + $0xca0] sm:$0xff] }
 0x499   : > { %v2911_v45 = vld [vmem:[%s13808_s28 + $0xce0] sm:$0xff] }
 0x49a   : > { %v12316_v47 = vcombine.high %v2903_v39, %v2911_v45  ;;  %v2631_v33 = vld [vmem:[%s13808_s28 + $0x420] sm:$0xff]  ;;  %v12315_v11 = vcombine.low %v2903_v39, %v2911_v45 }
 0x49b   : > { %9338 = vmatpush1.bf16.msra.mxu0 %v11979_v0  ;;  %9381 = vmatpush1.bf16.msra.mxu1 %v12235_v40  ;;  %v12123_v0 = vcombine.low %v2711_v36, %v2719_v2  ;;  %v12379_v40 = vcombine.low %v2967_v29, %v2975_v15  ;;  %v2639_v34 = vld [vmem:[%s13808_s28 + $0x460] sm:$0xff] }
 0x49c   : > { %9339 = vmatprep.subr.bf16.mxu0 %v11964_v21  ;;  %9382 = vmatprep.subr.bf16.mxu1 %v12220_v60  ;;  %v12108_v21 = vcombine.high %v2695_v38, %v2703_v46  ;;  %v12364_v60 = vcombine.high %v2951_v9, %v2959_v59  ;;  %v12044_v62 = vcombine.high %v2631_v33, %v2639_v34  ;;  %v3079_v45 = vld [vmem:[%s13808_s28 + $0x1220] sm:$0xff] }
 0x49d   : > { %v12043_v36 = vcombine.low %v2631_v33, %v2639_v34 }
 0x49f   : > { %9340 = vmatpush1.bf16.msra.mxu0 %v11963_v23  ;;  %9383 = vmatpush1.bf16.msra.mxu1 %v12219_v20  ;;  %v12107_v23 = vcombine.low %v2695_v38, %v2703_v46  ;;  %v12363_v20 = vcombine.low %v2951_v9, %v2959_v59  ;;  %v3367_v38 = vld [vmem:[%s13808_s28 + $0x1b20] sm:$0xff] }
 0x4a0   : > { %9341 = vmatprep.subr.bf16.mxu0 %v11948_v53  ;;  %9384 = vmatprep.subr.bf16.mxu1 %v12204_v16  ;;  %v12092_v53 = vcombine.high %v2679_v4, %v2687_v37  ;;  %v12348_v16 = vcombine.high %v2935_v7, %v2943_v18  ;;  %v3375_v46 = vld [vmem:[%s13808_s28 + $0x1b60] sm:$0xff] }
 0x4a3   : > { %9342 = vmatpush1.bf16.msra.mxu0 %v11947_v52  ;;  %9385 = vmatpush1.bf16.msra.mxu1 %v12203_v22  ;;  %v12091_v52 = vcombine.low %v2679_v4, %v2687_v37  ;;  %v12347_v22 = vcombine.low %v2935_v7, %v2943_v18  ;;  %v12780_v37 = vcombine.high %v3367_v38, %v3375_v46  ;;  %v3103_v7 = vld [vmem:[%s13808_s28 + $0x12e0] sm:$0xff] }
 0x4a4   : > { %9343 = vmatprep.subr.bf16.mxu0 %v11932_v41  ;;  %9386 = vmatprep.subr.bf16.mxu1 %v12188_v12  ;;  %v12076_v41 = vcombine.high %v2663_v27, %v2671_v51  ;;  %v12332_v12 = vcombine.high %v2919_v57, %v2927_v24  ;;  %v3351_v18 = vld [vmem:[%s13808_s28 + $0x1aa0] sm:$0xff] }
 0x4a7   : > { %9344 = vmatpush1.bf16.msra.mxu0 %v11931_v50  ;;  %9387 = vmatpush1.bf16.msra.mxu1 %v12187_v35  ;;  %v12075_v50 = vcombine.low %v2663_v27, %v2671_v51  ;;  %v9021_v35 = vpop.f32.mrf.mxu0 }
 0x4a8   : > { %9345 = vmatprep.subr.bf16.mxu0 %v11916_v19  ;;  %9388 = vmatprep.subr.bf16.mxu1 %v12172_v61  ;;  %v12331_v19 = vcombine.low %v2919_v57, %v2927_v24  ;;  %v12060_v61 = vcombine.high %v2647_v10, %v2655_v14  ;;  %v2471_v57 = vld [vmem:[#allocation3 + $0x50] sm:$0xff] }
 0x4ab   : > { %9346 = vmatpush1.bf16.msra.mxu0 %v11915_v32  ;;  %9389 = vmatpush1.bf16.msra.mxu1 %v12171_v28  ;;  %v2887_v32 = vld [vmem:[%s13808_s28 + $0xc20] sm:$0xff] }
 0x4ac   : > { %9347 = vmatprep.subr.bf16.mxu0 %v12156_v25  ;;  %9390 = vmatprep.subr.bf16.mxu1 %v12412_v49  ;;  %v2895_v28 = vld [vmem:[%s13808_s28 + $0xc60] sm:$0xff]  ;;  %v12059_v25 = vcombine.low %v2647_v10, %v2655_v14  ;;  %v9023_v49 = vpop.f32.mrf.mxu0 }
 0x4ad   : > { %v12300_v26 = vcombine.high %v2887_v32, %v2895_v28  ;;  %v12299_v29 = vcombine.low %v2887_v32, %v2895_v28 }
 0x4ae   : > { %v9025_v2 = vpop.f32.mrf.mxu0 }
 0x4af   : > { %9348 = vmatpush2.bf16.msra.mxu0 %v12155_v43  ;;  %9391 = vmatpush2.bf16.msra.mxu1 %v12411_v54  ;;  %v3127_v43 = vld [vmem:[%s13808_s28 + $0x13a0] sm:$0xff] }
 0x4b0   : > { %9349 = vmatprep.subr.bf16.mxu0 %v12140_v44  ;;  %9392 = vmatprep.subr.bf16.mxu1 %v12396_v31  ;;  %v3135_v54 = vld [vmem:[%s13808_s28 + $0x13e0] sm:$0xff]  ;;  %v9027_v59 = vpop.f32.mrf.mxu0 }
 0x4b1   : > { %v3383_v44 = vld [vmem:[%s13808_s28 + $0x1ba0] sm:$0xff]  ;;  %v12540_v15 = vcombine.high %v3127_v43, %v3135_v54  ;;  %v12539_v9 = vcombine.low %v3127_v43, %v3135_v54 }
 0x4b2   : > { %v3391_v31 = vld [vmem:[%s13808_s28 + $0x1be0] sm:$0xff] }
 0x4b3   : > { %9350 = vmatpush2.bf16.msra.mxu0 %v12139_v17  ;;  %9393 = vmatpush2.bf16.msra.mxu1 %v12395_v63  ;;  %v9068_v17 = vpop.f32.mrf.mxu1  ;;  %v12796_v63 = vcombine.high %v3383_v44, %v3391_v31 }
 0x4b4   : > { %9351 = vmatprep.subr.bf16.mxu0 %v12124_v56  ;;  %9394 = vmatprep.subr.bf16.mxu1 %v12380_v55  ;;  %v3111_v56 = vld [vmem:[%s13808_s28 + $0x1320] sm:$0xff] }
 0x4b5   : > { %v3119_v55 = vld [vmem:[%s13808_s28 + $0x1360] sm:$0xff]  ;;  %v9070_v4 = vpop.f32.mrf.mxu1 }
 0x4b6   : > { %v12523_v51 = vcombine.low %v3111_v56, %v3119_v55  ;;  %v9071_v33 = vadd.f32 %v9070_v4, %v9027_v59 }
 0x4b7   : > { %9352 = vmatpush2.bf16.msra.mxu0 %v12123_v0  ;;  %9395 = vmatpush2.bf16.msra.mxu1 %v12379_v40  ;;  %v12795_v0 = vcombine.low %v3383_v44, %v3391_v31  ;;  %v12524_v40 = vcombine.high %v3111_v56, %v3119_v55  ;;  %v3063_v31 = vld [vmem:[%s13808_s28 + $0x11a0] sm:$0xff] }
 0x4b8   : > { %9353 = vmatprep.subr.bf16.mxu0 %v12108_v21  ;;  %9396 = vmatprep.subr.bf16.mxu1 %v12364_v60  ;;  %v15097_v21 = vld [vmem:[%s13808_s28 + $0x12a0] sm:$0xff]  ;;  %v9065_v60 = vadd.f32 %v9064_v13, %v9021_v35 }
 0x4b9   : > { %v2472_v35 = vld [vmem:[#allocation3 + $0x68] sm:$0xff] }
 0x4ba   : > { %v3335_v13 = vld [vmem:[%s13808_s28 + $0x1a20] sm:$0xff] }
 0x4bb   : > { %9354 = vmatpush2.bf16.msra.mxu0 %v12107_v23  ;;  %9397 = vmatpush2.bf16.msra.mxu1 %v12363_v20  ;;  %v3359_v23 = vld [vmem:[%s13808_s28 + $0x1ae0] sm:$0xff] }
 0x4bc   : > { %9355 = vmatprep.subr.bf16.mxu0 %v12092_v53  ;;  %9398 = vmatprep.subr.bf16.mxu1 %v12348_v16  ;;  %v9067_v53 = vadd.f32 %v9066_v48, %v9023_v49  ;;  %v2487_v49 = vld [vmem:[#allocation3 + $0xe0] sm:$0xff] }
 0x4bf   : > { %9356 = vmatpush2.bf16.msra.mxu0 %v12091_v52  ;;  %9399 = vmatpush2.bf16.msra.mxu1 %v12347_v22  ;;  %v12779_v52 = vcombine.low %v3367_v38, %v3375_v46  ;;  %v12508_v22 = vcombine.high %v15097_v21, %v3103_v7 }
 0x4c0   : > { %9357 = vmatprep.subr.bf16.mxu0 %v12076_v41  ;;  %9400 = vmatprep.subr.bf16.mxu1 %v12332_v12  ;;  %v12764_v41 = vcombine.high %v3351_v18, %v3359_v23  ;;  %v9069_v12 = vadd.f32 %v9068_v17, %v9025_v2  ;;  %v2488_v2 = vld [vmem:[#allocation3 + $0x90] sm:$0xff]  ;;  %v3327_v17 = vld [vmem:[%s13808_s28 + $0x19e0] sm:$0xff] }
 0x4c3   : > { %9358 = vmatpush2.bf16.msra.mxu0 %v12075_v50  ;;  %9401 = vmatpush2.bf16.msra.mxu1 %v12331_v19  ;;  %v3087_v50 = vld [vmem:[%s13808_s28 + $0x1260] sm:$0xff] }
 0x4c4   : > { %9359 = vmatprep.subr.bf16.mxu0 %v12060_v61  ;;  %9402 = vmatprep.subr.bf16.mxu1 %v12316_v47  ;;  %v12507_v61 = vcombine.low %v15097_v21, %v3103_v7  ;;  %v3343_v47 = vld [vmem:[%s13808_s28 + $0x1a60] sm:$0xff]  ;;  %v12492_v48 = vcombine.high %v3079_v45, %v3087_v50  ;;  %v12491_v55 = vcombine.low %v3079_v45, %v3087_v50 }
 0x4c5   : > { %v12748_v44 = vcombine.high %v3335_v13, %v3343_v47  ;;  %v12747_v38 = vcombine.low %v3335_v13, %v3343_v47  ;;  %v3303_v21 = vld [vmem:[%s13808_s28 + $0x1920] sm:$0xff] }
 0x4c6   : > { %v3255_v50 = vld [vmem:[%s13808_s28 + $0x17a0] sm:$0xff] }
 0x4c7   : > { %9360 = vmatpush2.bf16.msra.mxu0 %v12059_v25  ;;  %9403 = vmatpush2.bf16.msra.mxu1 %v12315_v11 }
 0x4c8   : > { %9361 = vmatprep.subr.bf16.mxu0 %v12044_v62  ;;  %9404 = vmatprep.subr.bf16.mxu1 %v12300_v26  ;;  %v12763_v62 = vcombine.low %v3351_v18, %v3359_v23  ;;  %v3031_v23 = vld [vmem:[%s13808_s28 + $0x10a0] sm:$0xff] }
 0x4cb   : > { %9362 = vmatpush2.bf16.msra.mxu0 %v12043_v36  ;;  %9405 = vmatpush2.bf16.msra.mxu1 %v12299_v29  ;;  %v3071_v36 = vld [vmem:[%s13808_s28 + $0x11e0] sm:$0xff] }
 0x4cc   : > { %9417 = vmatprep.subr.bf16.mxu0 %v12540_v15  ;;  %9460 = vmatprep.subr.bf16.mxu1 %v12796_v63  ;;  %v3319_v15 = vld [vmem:[%s13808_s28 + $0x19a0] sm:$0xff]  ;;  %v12476_v46 = vcombine.high %v3063_v31, %v3071_v36  ;;  %v12475_v4 = vcombine.low %v3063_v31, %v3071_v36 }
 0x4cd   : > { %v12732_v59 = vcombine.high %v3319_v15, %v3327_v17  ;;  %v3487_v31 = vld [vmem:[%s13808_s28 + $0x1ee0] sm:$0xff] }
 0x4ce   : > { %v9107_v20 = vpop.f32.mrf.mxu0  ;;  %9364 = vmatmul.mubr.bf16.vlgmr.msra.gmra.mxu0 %v14523_v8  ;;  %v9150_v27 = vpop.f32.mrf.mxu1  ;;  %9407 = vmatmul.mubr.bf16.vlgmr.msra.gmra.mxu1 %v14528_v58 }
 0x4cf   : > { %v9108_v16 = vadd.f32 %v9107_v20, %v9065_v60  ;;  %9418 = vmatpush1.bf16.msra.mxu0 %v12539_v9  ;;  %9461 = vmatpush1.bf16.msra.mxu1 %v12795_v0  ;;  %v3047_v0 = vld [vmem:[%s13808_s28 + $0x1120] sm:$0xff] }
 0x4d0   : > { %v9109_v24 = vpop.f32.mrf.mxu0  ;;  %9419 = vmatprep.subr.bf16.mxu0 %v12524_v40  ;;  %v9152_v39 = vpop.f32.mrf.mxu1  ;;  %9462 = vmatprep.subr.bf16.mxu1 %v12780_v37  ;;  %v3055_v40 = vld [vmem:[%s13808_s28 + $0x1160] sm:$0xff]  ;;  %v12731_v37 = vcombine.low %v3319_v15, %v3327_v17 }
 0x4d1   : > { %v9151_v10 = vadd.f32 %v9150_v27, %v9108_v16  ;;  %v9110_v14 = vadd.f32 %v9109_v24, %v9067_v53  ;;  %9449 = vmatprep.mubr.bf16.mxu0 %v14534_v3  ;;  %9492 = vmatprep.mubr.bf16.mxu1 %v14539_v42  ;;  %v3311_v60 = vld [vmem:[%s13808_s28 + $0x1960] sm:$0xff]  ;;  %v12460_v7 = vcombine.high %v3047_v0, %v3055_v40 }
 0x4d2   : > { %v9111_v19 = vpop.f32.mrf.mxu0  ;;  %v9154_v25 = vpop.f32.mrf.mxu1  ;;  %v12716_v18 = vcombine.high %v3303_v21, %v3311_v60  ;;  %v3039_v20 = vld [vmem:[%s13808_s28 + $0x10e0] sm:$0xff]  ;;  %v12459_v27 = vcombine.low %v3047_v0, %v3055_v40 }
 0x4d3   : > { %v10023_v34 = vadd.f32 %v9151_v10, %v2471_v57  ;;  %v9153_v32 = vadd.f32 %v9152_v39, %v9110_v14  ;;  %v9112_v28 = vadd.f32 %v9111_v19, %v9069_v12  ;;  %9420 = vmatpush1.bf16.msra.mxu0 %v12523_v51  ;;  %9463 = vmatpush1.bf16.msra.mxu1 %v12779_v52  ;;  %v3287_v53 = vld [vmem:[%s13808_s28 + $0x18a0] sm:$0xff] }
 0x4d4   : > { %v9113_v11 = vpop.f32.mrf.mxu0  ;;  %9421 = vmatprep.subr.bf16.mxu0 %v12508_v22  ;;  %9464 = vmatprep.subr.bf16.mxu1 %v12764_v41  ;;  %v9156_v29 = vpop.f32.mrf.mxu1  ;;  %v3295_v16 = vld [vmem:[%s13808_s28 + $0x18e0] sm:$0xff]  ;;  %v12715_v51 = vcombine.low %v3303_v21, %v3311_v60  ;;  %v12444_v57 = vcombine.high %v3031_v23, %v3039_v20  ;;  %v12443_v10 = vcombine.low %v3031_v23, %v3039_v20 }
 0x4d5   : > { %10055 = vst [vmem:[#allocation3 + $0x50] sm:$0xff] %v10023_v34  ;;  %v10024_v26 = vadd.f32 %v9153_v32, %v2472_v35  ;;  %v9155_v43 = vadd.f32 %v9154_v25, %v9112_v28  ;;  %v9114_v54 = vadd.f32 %v9113_v11, %v9071_v33  ;;  %v12700_v24 = vcombine.high %v3287_v53, %v3295_v16  ;;  %v3015_v52 = vld [vmem:[%s13808_s28 + $0x1020] sm:$0xff] }
 0x4d6   : > { %v3023_v22 = vld [vmem:[%s13808_s28 + $0x1060] sm:$0xff]  ;;  %v12699_v14 = vcombine.low %v3287_v53, %v3295_v16 }
 0x4d7   : > { %10056 = vst [vmem:[#allocation3 + $0x68] sm:$0xff] %v10024_v26  ;;  %v10039_v63 = vadd.f32 %v9155_v43, %v2487_v49  ;;  %v9157_v56 = vadd.f32 %v9156_v29, %v9114_v54  ;;  %9422 = vmatpush1.bf16.msra.mxu0 %v12507_v61  ;;  %9465 = vmatpush1.bf16.msra.mxu1 %v12763_v62  ;;  %v3271_v41 = vld [vmem:[%s13808_s28 + $0x1820] sm:$0xff] }
 0x4d8   : > { %9423 = vmatprep.subr.bf16.mxu0 %v12492_v48  ;;  %9466 = vmatprep.subr.bf16.mxu1 %v12748_v44  ;;  %v3279_v12 = vld [vmem:[%s13808_s28 + $0x1860] sm:$0xff]  ;;  %v12428_v39 = vcombine.high %v3015_v52, %v3023_v22  ;;  %v12427_v13 = vcombine.low %v3015_v52, %v3023_v22 }
 0x4d9   : > { %10071 = vst [vmem:[#allocation3 + $0xe0] sm:$0xff] %v10039_v63  ;;  %v10040_v9 = vadd.f32 %v9157_v56, %v2488_v2  ;;  %v12684_v45 = vcombine.high %v3271_v41, %v3279_v12  ;;  %v3263_v35 = vld [vmem:[%s13808_s28 + $0x17e0] sm:$0xff]  ;;  %v12683_v47 = vcombine.low %v3271_v41, %v3279_v12 }
 0x4da   : > { %v3511_v19 = vld [vmem:[%s13808_s28 + $0x1fa0] sm:$0xff]  ;;  %v12668_v33 = vcombine.high %v3255_v50, %v3263_v35  ;;  %v12667_v11 = vcombine.low %v3255_v50, %v3263_v35 }
 0x4db   : > { %10072 = vst [vmem:[#allocation3 + $0x90] sm:$0xff] %v10040_v9  ;;  %9424 = vmatpush1.bf16.msra.mxu0 %v12491_v55  ;;  %9467 = vmatpush1.bf16.msra.mxu1 %v12747_v38  ;;  %v3519_v61 = vld [vmem:[%s13808_s28 + $0x1fe0] sm:$0xff] }
 0x4dc   : > { %9425 = vmatprep.subr.bf16.mxu0 %v12476_v46  ;;  %9468 = vmatprep.subr.bf16.mxu1 %v12732_v59  ;;  %v12924_v34 = vcombine.high %v3511_v19, %v3519_v61  ;;  %v3239_v32 = vld [vmem:[%s13808_s28 + $0x1720] sm:$0xff]  ;;  %v12923_v62 = vcombine.low %v3511_v19, %v3519_v61 }
 0x4dd   : > { %v3247_v28 = vld [vmem:[%s13808_s28 + $0x1760] sm:$0xff] }
 0x4de   : > { %v3495_v25 = vld [vmem:[%s13808_s28 + $0x1f20] sm:$0xff]  ;;  %v12652_v48 = vcombine.high %v3239_v32, %v3247_v28  ;;  %v12651_v36 = vcombine.low %v3239_v32, %v3247_v28  ;;  %v2616_v32 = vld [vmem:[%s13808_s28 + $0x3a8] sm:$0xff] }
 0x4df   : > { %9426 = vmatpush1.bf16.msra.mxu0 %v12475_v4  ;;  %9469 = vmatpush1.bf16.msra.mxu1 %v12731_v37  ;;  %v3503_v49 = vld [vmem:[%s13808_s28 + $0x1f60] sm:$0xff]  ;;  %v2624_v28 = vld [vmem:[%s13808_s28 + $0x3e8] sm:$0xff] }
 0x4e0   : > { %9427 = vmatprep.subr.bf16.mxu0 %v12460_v7  ;;  %9470 = vmatprep.subr.bf16.mxu1 %v12716_v18  ;;  %v12908_v26 = vcombine.high %v3495_v25, %v3503_v49  ;;  %v3223_v43 = vld [vmem:[%s13808_s28 + $0x16a0] sm:$0xff]  ;;  %v12907_v2 = vcombine.low %v3495_v25, %v3503_v49  ;;  %v2872_v25 = vld [vmem:[%s13808_s28 + $0xba8] sm:$0xff] }
 0x4e1   : > { %v3231_v54 = vld [vmem:[%s13808_s28 + $0x16e0] sm:$0xff]  ;;  %v2880_v49 = vld [vmem:[%s13808_s28 + $0xbe8] sm:$0xff] }
 0x4e2   : > { %v3479_v44 = vld [vmem:[%s13808_s28 + $0x1ea0] sm:$0xff]  ;;  %v12636_v29 = vcombine.high %v3223_v43, %v3231_v54  ;;  %v12635_v38 = vcombine.low %v3223_v43, %v3231_v54  ;;  %v2600_v43 = vld [vmem:[%s13808_s28 + $0x328] sm:$0xff] }
 0x4e3   : > { %9428 = vmatpush1.bf16.msra.mxu0 %v12459_v27  ;;  %9471 = vmatpush1.bf16.msra.mxu1 %v12715_v51  ;;  %v12892_v15 = vcombine.high %v3479_v44, %v3487_v31  ;;  %v3207_v17 = vld [vmem:[%s13808_s28 + $0x1620] sm:$0xff]  ;;  %v12891_v46 = vcombine.low %v3479_v44, %v3487_v31  ;;  %v2608_v54 = vld [vmem:[%s13808_s28 + $0x368] sm:$0xff] }
 0x4e4   : > { %9429 = vmatprep.subr.bf16.mxu0 %v12444_v57  ;;  %9472 = vmatprep.subr.bf16.mxu1 %v12700_v24  ;;  %v3215_v63 = vld [vmem:[%s13808_s28 + $0x1660] sm:$0xff]  ;;  %v2856_v44 = vld [vmem:[%s13808_s28 + $0xb28] sm:$0xff] }
 0x4e5   : > { %v3463_v56 = vld [vmem:[%s13808_s28 + $0x1e20] sm:$0xff]  ;;  %v12620_v9 = vcombine.high %v3207_v17, %v3215_v63  ;;  %v12619_v4 = vcombine.low %v3207_v17, %v3215_v63  ;;  %v2864_v31 = vld [vmem:[%s13808_s28 + $0xb68] sm:$0xff] }
 0x4e6   : > { %v3471_v55 = vld [vmem:[%s13808_s28 + $0x1e60] sm:$0xff]  ;;  %v2584_v17 = vld [vmem:[%s13808_s28 + $0x2a8] sm:$0xff] }
 0x4e7   : > { %9430 = vmatpush1.bf16.msra.mxu0 %v12443_v10  ;;  %9473 = vmatpush1.bf16.msra.mxu1 %v12699_v14  ;;  %v12876_v59 = vcombine.high %v3463_v56, %v3471_v55  ;;  %v3191_v0 = vld [vmem:[%s13808_s28 + $0x15a0] sm:$0xff]  ;;  %v12875_v37 = vcombine.low %v3463_v56, %v3471_v55  ;;  %v2592_v63 = vld [vmem:[%s13808_s28 + $0x2e8] sm:$0xff] }
 0x4e8   : > { %9431 = vmatprep.subr.bf16.mxu0 %v12428_v39  ;;  %9474 = vmatprep.subr.bf16.mxu1 %v12684_v45  ;;  %v3199_v40 = vld [vmem:[%s13808_s28 + $0x15e0] sm:$0xff]  ;;  %v2840_v56 = vld [vmem:[%s13808_s28 + $0xaa8] sm:$0xff] }
 0x4e9   : > { %v3447_v21 = vld [vmem:[%s13808_s28 + $0x1da0] sm:$0xff]  ;;  %v12604_v7 = vcombine.high %v3191_v0, %v3199_v40  ;;  %v12603_v27 = vcombine.low %v3191_v0, %v3199_v40  ;;  %v2848_v55 = vld [vmem:[%s13808_s28 + $0xae8] sm:$0xff] }
 0x4ea   : > { %v3455_v60 = vld [vmem:[%s13808_s28 + $0x1de0] sm:$0xff]  ;;  %v2568_v0 = vld [vmem:[%s13808_s28 + $0x228] sm:$0xff] }
 0x4eb   : > { %9432 = vmatpush1.bf16.msra.mxu0 %v12427_v13  ;;  %9475 = vmatpush1.bf16.msra.mxu1 %v12683_v47  ;;  %v12860_v18 = vcombine.high %v3447_v21, %v3455_v60  ;;  %v3175_v23 = vld [vmem:[%s13808_s28 + $0x1520] sm:$0xff]  ;;  %v12859_v51 = vcombine.low %v3447_v21, %v3455_v60  ;;  %v2576_v40 = vld [vmem:[%s13808_s28 + $0x268] sm:$0xff] }
 0x4ec   : > { %9433 = vmatprep.subr.bf16.mxu0 %v12668_v33  ;;  %9476 = vmatprep.subr.bf16.mxu1 %v12924_v34  ;;  %v3183_v20 = vld [vmem:[%s13808_s28 + $0x1560] sm:$0xff]  ;;  %v2824_v21 = vld [vmem:[%s13808_s28 + $0xa28] sm:$0xff] }
 0x4ed   : > { %v3431_v53 = vld [vmem:[%s13808_s28 + $0x1d20] sm:$0xff]  ;;  %v12588_v57 = vcombine.high %v3175_v23, %v3183_v20  ;;  %v12587_v10 = vcombine.low %v3175_v23, %v3183_v20  ;;  %v2832_v60 = vld [vmem:[%s13808_s28 + $0xa68] sm:$0xff] }
 0x4ee   : > { %v3439_v16 = vld [vmem:[%s13808_s28 + $0x1d60] sm:$0xff]  ;;  %v2552_v23 = vld [vmem:[%s13808_s28 + $0x1a8] sm:$0xff] }
 0x4ef   : > { %9434 = vmatpush2.bf16.msra.mxu0 %v12667_v11  ;;  %9477 = vmatpush2.bf16.msra.mxu1 %v12923_v62  ;;  %v12844_v24 = vcombine.high %v3431_v53, %v3439_v16  ;;  %v3159_v52 = vld [vmem:[%s13808_s28 + $0x14a0] sm:$0xff]  ;;  %v12843_v14 = vcombine.low %v3431_v53, %v3439_v16  ;;  %v2560_v20 = vld [vmem:[%s13808_s28 + $0x1e8] sm:$0xff] }
 0x4f0   : > { %9435 = vmatprep.subr.bf16.mxu0 %v12652_v48  ;;  %9478 = vmatprep.subr.bf16.mxu1 %v12908_v26  ;;  %v3167_v22 = vld [vmem:[%s13808_s28 + $0x14e0] sm:$0xff]  ;;  %v12030_v48 = vcombine.high %v2616_v32, %v2624_v28  ;;  %v12286_v26 = vcombine.high %v2872_v25, %v2880_v49  ;;  %v2808_v53 = vld [vmem:[%s13808_s28 + $0x9a8] sm:$0xff] }
 0x4f1   : > { %v3415_v41 = vld [vmem:[%s13808_s28 + $0x1ca0] sm:$0xff]  ;;  %v12572_v39 = vcombine.high %v3159_v52, %v3167_v22  ;;  %v12571_v13 = vcombine.low %v3159_v52, %v3167_v22  ;;  %v2816_v16 = vld [vmem:[%s13808_s28 + $0x9e8] sm:$0xff] }
 0x4f2   : > { %v3423_v12 = vld [vmem:[%s13808_s28 + $0x1ce0] sm:$0xff]  ;;  %v2536_v52 = vld [vmem:[%s13808_s28 + $0x128] sm:$0xff] }
 0x4f3   : > { %9436 = vmatpush2.bf16.msra.mxu0 %v12651_v36  ;;  %9479 = vmatpush2.bf16.msra.mxu1 %v12907_v2  ;;  %v12828_v45 = vcombine.high %v3415_v41, %v3423_v12  ;;  %v3143_v50 = vld [vmem:[%s13808_s28 + $0x1420] sm:$0xff]  ;;  %v12827_v47 = vcombine.low %v3415_v41, %v3423_v12  ;;  %v12029_v36 = vcombine.low %v2616_v32, %v2624_v28  ;;  %v2544_v22 = vld [vmem:[%s13808_s28 + $0x168] sm:$0xff] }
 0x4f4   : > { %9437 = vmatprep.subr.bf16.mxu0 %v12636_v29  ;;  %9480 = vmatprep.subr.bf16.mxu1 %v12892_v15  ;;  %v3151_v35 = vld [vmem:[%s13808_s28 + $0x1460] sm:$0xff]  ;;  %v12285_v2 = vcombine.low %v2872_v25, %v2880_v49  ;;  %v12014_v29 = vcombine.high %v2600_v43, %v2608_v54  ;;  %v12270_v15 = vcombine.high %v2856_v44, %v2864_v31  ;;  %v2792_v41 = vld [vmem:[%s13808_s28 + $0x928] sm:$0xff] }
 0x4f5   : > { %v3399_v19 = vld [vmem:[%s13808_s28 + $0x1c20] sm:$0xff]  ;;  %v12556_v33 = vcombine.high %v3143_v50, %v3151_v35  ;;  %v12555_v11 = vcombine.low %v3143_v50, %v3151_v35  ;;  %v2800_v12 = vld [vmem:[%s13808_s28 + $0x968] sm:$0xff] }
 0x4f6   : > { %v3407_v61 = vld [vmem:[%s13808_s28 + $0x1c60] sm:$0xff]  ;;  %v2520_v50 = vld [vmem:[%s13808_s28 + $0xa8] sm:$0xff] }
 0x4f7   : > { %9438 = vmatpush2.bf16.msra.mxu0 %v12635_v38  ;;  %9481 = vmatpush2.bf16.msra.mxu1 %v12891_v46  ;;  %v12812_v34 = vcombine.high %v3399_v19, %v3407_v61  ;;  %v12811_v62 = vcombine.low %v3399_v19, %v3407_v61  ;;  %v12013_v38 = vcombine.low %v2600_v43, %v2608_v54  ;;  %v2528_v35 = vld [vmem:[%s13808_s28 + $0xe8] sm:$0xff] }
 0x4f8   : > { %9439 = vmatprep.subr.bf16.mxu0 %v12620_v9  ;;  %9482 = vmatprep.subr.bf16.mxu1 %v12876_v59  ;;  %v12269_v46 = vcombine.low %v2856_v44, %v2864_v31  ;;  %v11998_v9 = vcombine.high %v2584_v17, %v2592_v63  ;;  %v12254_v59 = vcombine.high %v2840_v56, %v2848_v55  ;;  %v2776_v19 = vld [vmem:[%s13808_s28 + $0x8a8] sm:$0xff] }
 0x4f9   : > { %v2784_v61 = vld [vmem:[%s13808_s28 + $0x8e8] sm:$0xff] }
 0x4fa   : > { %v2504_v32 = vld [vmem:[%s13808_s28 + $0x28] sm:$0xff] }
 0x4fb   : > { %9440 = vmatpush2.bf16.msra.mxu0 %v12619_v4  ;;  %9483 = vmatpush2.bf16.msra.mxu1 %v12875_v37  ;;  %v11997_v4 = vcombine.low %v2584_v17, %v2592_v63  ;;  %v12253_v37 = vcombine.low %v2840_v56, %v2848_v55  ;;  %v2512_v28 = vld [vmem:[%s13808_s28 + $0x68] sm:$0xff] }
 0x4fc   : > { %9441 = vmatprep.subr.bf16.mxu0 %v12604_v7  ;;  %9484 = vmatprep.subr.bf16.mxu1 %v12860_v18  ;;  %v11982_v7 = vcombine.high %v2568_v0, %v2576_v40  ;;  %v12238_v18 = vcombine.high %v2824_v21, %v2832_v60  ;;  %v2760_v25 = vld [vmem:[%s13808_s28 + $0x828] sm:$0xff] }
 0x4fd   : > { %v2768_v49 = vld [vmem:[%s13808_s28 + $0x868] sm:$0xff] }
 0x4fe   : > { %v2744_v43 = vld [vmem:[%s13808_s28 + $0x7a8] sm:$0xff] }
 0x4ff   : > { %9442 = vmatpush2.bf16.msra.mxu0 %v12603_v27  ;;  %9485 = vmatpush2.bf16.msra.mxu1 %v12859_v51  ;;  %v11981_v27 = vcombine.low %v2568_v0, %v2576_v40  ;;  %v12237_v51 = vcombine.low %v2824_v21, %v2832_v60  ;;  %v2752_v54 = vld [vmem:[%s13808_s28 + $0x7e8] sm:$0xff] }
 0x500   : > { %9443 = vmatprep.subr.bf16.mxu0 %v12588_v57  ;;  %9486 = vmatprep.subr.bf16.mxu1 %v12844_v24  ;;  %v11966_v57 = vcombine.high %v2552_v23, %v2560_v20  ;;  %v12222_v24 = vcombine.high %v2808_v53, %v2816_v16  ;;  %v3000_v44 = vld [vmem:[%s13808_s28 + $0xfa8] sm:$0xff] }
 0x501   : > { %v3008_v31 = vld [vmem:[%s13808_s28 + $0xfe8] sm:$0xff] }
 0x502   : > { %v2728_v17 = vld [vmem:[%s13808_s28 + $0x728] sm:$0xff] }
 0x503   : > { %9444 = vmatpush2.bf16.msra.mxu0 %v12587_v10  ;;  %9487 = vmatpush2.bf16.msra.mxu1 %v12843_v14  ;;  %v11965_v10 = vcombine.low %v2552_v23, %v2560_v20  ;;  %v12221_v14 = vcombine.low %v2808_v53, %v2816_v16  ;;  %v2736_v63 = vld [vmem:[%s13808_s28 + $0x768] sm:$0xff] }
 0x504   : > { %9445 = vmatprep.subr.bf16.mxu0 %v12572_v39  ;;  %9488 = vmatprep.subr.bf16.mxu1 %v12828_v45  ;;  %v11950_v39 = vcombine.high %v2536_v52, %v2544_v22  ;;  %v12206_v45 = vcombine.high %v2792_v41, %v2800_v12  ;;  %v2984_v56 = vld [vmem:[%s13808_s28 + $0xf28] sm:$0xff] }
 0x505   : > { %v2992_v55 = vld [vmem:[%s13808_s28 + $0xf68] sm:$0xff] }
 0x506   : > { %v2712_v0 = vld [vmem:[%s13808_s28 + $0x6a8] sm:$0xff] }
 0x507   : > { %9446 = vmatpush2.bf16.msra.mxu0 %v12571_v13  ;;  %9489 = vmatpush2.bf16.msra.mxu1 %v12827_v47  ;;  %v11949_v13 = vcombine.low %v2536_v52, %v2544_v22  ;;  %v12205_v47 = vcombine.low %v2792_v41, %v2800_v12  ;;  %v2720_v40 = vld [vmem:[%s13808_s28 + $0x6e8] sm:$0xff] }
 0x508   : > { %9447 = vmatprep.subr.bf16.mxu0 %v12556_v33  ;;  %9490 = vmatprep.subr.bf16.mxu1 %v12812_v34  ;;  %v11934_v33 = vcombine.high %v2520_v50, %v2528_v35  ;;  %v12190_v34 = vcombine.high %v2776_v19, %v2784_v61  ;;  %v2968_v21 = vld [vmem:[%s13808_s28 + $0xea8] sm:$0xff] }
 0x509   : > { %v2976_v60 = vld [vmem:[%s13808_s28 + $0xee8] sm:$0xff] }
 0x50a   : > { %v2696_v23 = vld [vmem:[%s13808_s28 + $0x628] sm:$0xff] }
 0x50b   : > { %9448 = vmatpush2.bf16.msra.mxu0 %v12555_v11  ;;  %9491 = vmatpush2.bf16.msra.mxu1 %v12811_v62  ;;  %v11933_v11 = vcombine.low %v2520_v50, %v2528_v35  ;;  %v12189_v62 = vcombine.low %v2776_v19, %v2784_v61  ;;  %v2704_v20 = vld [vmem:[%s13808_s28 + $0x668] sm:$0xff] }
 0x50c   : > { %9503 = vmatprep.subr.bf16.mxu0 %v12030_v48  ;;  %9546 = vmatprep.subr.bf16.mxu1 %v12286_v26  ;;  %v11918_v48 = vcombine.high %v2504_v32, %v2512_v28  ;;  %v12174_v26 = vcombine.high %v2760_v25, %v2768_v49  ;;  %v2952_v53 = vld [vmem:[%s13808_s28 + $0xe28] sm:$0xff] }
 0x50d   : > { %v2960_v16 = vld [vmem:[%s13808_s28 + $0xe68] sm:$0xff] }
 0x50e   : > { %9450 = vmatmul.mubr.bf16.vlgmr.msra.gmra.mxu0 %v14606_v6  ;;  %9493 = vmatmul.mubr.bf16.vlgmr.msra.gmra.mxu1 %v14610_v1  ;;  %v2680_v52 = vld [vmem:[%s13808_s28 + $0x5a8] sm:$0xff] }
 0x50f   : > { %9504 = vmatpush1.bf16.msra.mxu0 %v12029_v36  ;;  %9547 = vmatpush1.bf16.msra.mxu1 %v12285_v2  ;;  %v11917_v36 = vcombine.low %v2504_v32, %v2512_v28  ;;  %v12173_v2 = vcombine.low %v2760_v25, %v2768_v49  ;;  %v2688_v22 = vld [vmem:[%s13808_s28 + $0x5e8] sm:$0xff] }
 0x510   : > { %9505 = vmatprep.subr.bf16.mxu0 %v12014_v29  ;;  %9548 = vmatprep.subr.bf16.mxu1 %v12270_v15  ;;  %v12158_v29 = vcombine.high %v2744_v43, %v2752_v54  ;;  %v12414_v15 = vcombine.high %v3000_v44, %v3008_v31  ;;  %v2936_v41 = vld [vmem:[%s13808_s28 + $0xda8] sm:$0xff] }
 0x511   : > { %9535 = vmatprep.mubr.bf16.mxu0 %v14470_v30  ;;  %9578 = vmatprep.mubr.bf16.mxu1 %v14476_v5  ;;  %v2944_v12 = vld [vmem:[%s13808_s28 + $0xde8] sm:$0xff] }
 0x512   : > { %v2664_v50 = vld [vmem:[%s13808_s28 + $0x528] sm:$0xff] }
 0x513   : > { %9506 = vmatpush1.bf16.msra.mxu0 %v12013_v38  ;;  %9549 = vmatpush1.bf16.msra.mxu1 %v12269_v46  ;;  %v12157_v38 = vcombine.low %v2744_v43, %v2752_v54  ;;  %v12413_v46 = vcombine.low %v3000_v44, %v3008_v31  ;;  %v2672_v35 = vld [vmem:[%s13808_s28 + $0x568] sm:$0xff]  ;;  %v9236_v43 = vpop.f32.mrf.mxu1 }
 0x514   : > { %9507 = vmatprep.subr.bf16.mxu0 %v11998_v9  ;;  %9550 = vmatprep.subr.bf16.mxu1 %v12254_v59  ;;  %v12142_v9 = vcombine.high %v2728_v17, %v2736_v63  ;;  %v12398_v59 = vcombine.high %v2984_v56, %v2992_v55  ;;  %v2920_v19 = vld [vmem:[%s13808_s28 + $0xd28] sm:$0xff] }
 0x515   : > { %v2928_v61 = vld [vmem:[%s13808_s28 + $0xd68] sm:$0xff] }
 0x516   : > { %v2648_v32 = vld [vmem:[%s13808_s28 + $0x4a8] sm:$0xff] }
 0x517   : > { %9508 = vmatpush1.bf16.msra.mxu0 %v11997_v4  ;;  %9551 = vmatpush1.bf16.msra.mxu1 %v12253_v37  ;;  %v12141_v4 = vcombine.low %v2728_v17, %v2736_v63  ;;  %v12397_v37 = vcombine.low %v2984_v56, %v2992_v55  ;;  %v2656_v28 = vld [vmem:[%s13808_s28 + $0x4e8] sm:$0xff]  ;;  %v9238_v56 = vpop.f32.mrf.mxu1 }
 0x518   : > { %9509 = vmatprep.subr.bf16.mxu0 %v11982_v7  ;;  %9552 = vmatprep.subr.bf16.mxu1 %v12238_v18  ;;  %v12126_v7 = vcombine.high %v2712_v0, %v2720_v40  ;;  %v12382_v18 = vcombine.high %v2968_v21, %v2976_v60  ;;  %v2904_v25 = vld [vmem:[%s13808_s28 + $0xca8] sm:$0xff] }
 0x519   : > { %v2912_v49 = vld [vmem:[%s13808_s28 + $0xce8] sm:$0xff] }
 0x51a   : > { %v12318_v54 = vcombine.high %v2904_v25, %v2912_v49  ;;  %v2632_v44 = vld [vmem:[%s13808_s28 + $0x428] sm:$0xff]  ;;  %v12317_v17 = vcombine.low %v2904_v25, %v2912_v49 }
 0x51b   : > { %9510 = vmatpush1.bf16.msra.mxu0 %v11981_v27  ;;  %9553 = vmatpush1.bf16.msra.mxu1 %v12237_v51  ;;  %v12125_v27 = vcombine.low %v2712_v0, %v2720_v40  ;;  %v12381_v51 = vcombine.low %v2968_v21, %v2976_v60  ;;  %v2640_v31 = vld [vmem:[%s13808_s28 + $0x468] sm:$0xff] }
 0x51c   : > { %9511 = vmatprep.subr.bf16.mxu0 %v11966_v57  ;;  %9554 = vmatprep.subr.bf16.mxu1 %v12222_v24  ;;  %v12110_v57 = vcombine.high %v2696_v23, %v2704_v20  ;;  %v12366_v24 = vcombine.high %v2952_v53, %v2960_v16  ;;  %v12046_v63 = vcombine.high %v2632_v44, %v2640_v31  ;;  %v3080_v49 = vld [vmem:[%s13808_s28 + $0x1228] sm:$0xff] }
 0x51d   : > { %v12045_v0 = vcombine.low %v2632_v44, %v2640_v31 }
 0x51f   : > { %9512 = vmatpush1.bf16.msra.mxu0 %v11965_v10  ;;  %9555 = vmatpush1.bf16.msra.mxu1 %v12221_v14  ;;  %v12109_v10 = vcombine.low %v2696_v23, %v2704_v20  ;;  %v12365_v14 = vcombine.low %v2952_v53, %v2960_v16  ;;  %v3368_v23 = vld [vmem:[%s13808_s28 + $0x1b28] sm:$0xff] }
 0x520   : > { %9513 = vmatprep.subr.bf16.mxu0 %v11950_v39  ;;  %9556 = vmatprep.subr.bf16.mxu1 %v12206_v45  ;;  %v12094_v39 = vcombine.high %v2680_v52, %v2688_v22  ;;  %v12350_v45 = vcombine.high %v2936_v41, %v2944_v12  ;;  %v3376_v20 = vld [vmem:[%s13808_s28 + $0x1b68] sm:$0xff] }
 0x523   : > { %9514 = vmatpush1.bf16.msra.mxu0 %v11949_v13  ;;  %9557 = vmatpush1.bf16.msra.mxu1 %v12205_v47  ;;  %v12093_v13 = vcombine.low %v2680_v52, %v2688_v22  ;;  %v12349_v47 = vcombine.low %v2936_v41, %v2944_v12  ;;  %v12782_v22 = vcombine.high %v3368_v23, %v3376_v20  ;;  %v3104_v41 = vld [vmem:[%s13808_s28 + $0x12e8] sm:$0xff] }
 0x524   : > { %9515 = vmatprep.subr.bf16.mxu0 %v11934_v33  ;;  %9558 = vmatprep.subr.bf16.mxu1 %v12190_v34  ;;  %v12078_v33 = vcombine.high %v2664_v50, %v2672_v35  ;;  %v12334_v34 = vcombine.high %v2920_v19, %v2928_v61  ;;  %v3352_v12 = vld [vmem:[%s13808_s28 + $0x1aa8] sm:$0xff] }
 0x527   : > { %9516 = vmatpush1.bf16.msra.mxu0 %v11933_v11  ;;  %9559 = vmatpush1.bf16.msra.mxu1 %v12189_v62  ;;  %v12077_v11 = vcombine.low %v2664_v50, %v2672_v35  ;;  %v9193_v62 = vpop.f32.mrf.mxu0 }
 0x528   : > { %9517 = vmatprep.subr.bf16.mxu0 %v11918_v48  ;;  %9560 = vmatprep.subr.bf16.mxu1 %v12174_v26  ;;  %v12333_v48 = vcombine.low %v2920_v19, %v2928_v61  ;;  %v12062_v26 = vcombine.high %v2648_v32, %v2656_v28  ;;  %v2473_v19 = vld [vmem:[#allocation3 + $0x30] sm:$0xff] }
 0x52b   : > { %9518 = vmatpush1.bf16.msra.mxu0 %v11917_v36  ;;  %9561 = vmatpush1.bf16.msra.mxu1 %v12173_v2  ;;  %v2888_v36 = vld [vmem:[%s13808_s28 + $0xc28] sm:$0xff] }
 0x52c   : > { %9519 = vmatprep.subr.bf16.mxu0 %v12158_v29  ;;  %9562 = vmatprep.subr.bf16.mxu1 %v12414_v15  ;;  %v2896_v2 = vld [vmem:[%s13808_s28 + $0xc68] sm:$0xff]  ;;  %v12061_v29 = vcombine.low %v2648_v32, %v2656_v28  ;;  %v9195_v15 = vpop.f32.mrf.mxu0 }
 0x52d   : > { %v12302_v55 = vcombine.high %v2888_v36, %v2896_v2  ;;  %v12301_v21 = vcombine.low %v2888_v36, %v2896_v2 }
 0x52e   : > { %v9197_v40 = vpop.f32.mrf.mxu0 }
 0x52f   : > { %9520 = vmatpush2.bf16.msra.mxu0 %v12157_v38  ;;  %9563 = vmatpush2.bf16.msra.mxu1 %v12413_v46  ;;  %v3128_v38 = vld [vmem:[%s13808_s28 + $0x13a8] sm:$0xff] }
 0x530   : > { %9521 = vmatprep.subr.bf16.mxu0 %v12142_v9  ;;  %9564 = vmatprep.subr.bf16.mxu1 %v12398_v59  ;;  %v3136_v46 = vld [vmem:[%s13808_s28 + $0x13e8] sm:$0xff]  ;;  %v9199_v16 = vpop.f32.mrf.mxu0 }
 0x531   : > { %v3384_v9 = vld [vmem:[%s13808_s28 + $0x1ba8] sm:$0xff]  ;;  %v12542_v60 = vcombine.high %v3128_v38, %v3136_v46  ;;  %v12541_v53 = vcombine.low %v3128_v38, %v3136_v46 }
 0x532   : > { %v3392_v59 = vld [vmem:[%s13808_s28 + $0x1be8] sm:$0xff] }
 0x533   : > { %9522 = vmatpush2.bf16.msra.mxu0 %v12141_v4  ;;  %9565 = vmatpush2.bf16.msra.mxu1 %v12397_v37  ;;  %v9240_v4 = vpop.f32.mrf.mxu1  ;;  %v12798_v37 = vcombine.high %v3384_v9, %v3392_v59 }
 0x534   : > { %9523 = vmatprep.subr.bf16.mxu0 %v12126_v7  ;;  %9566 = vmatprep.subr.bf16.mxu1 %v12382_v18  ;;  %v3112_v7 = vld [vmem:[%s13808_s28 + $0x1328] sm:$0xff] }
 0x535   : > { %v3120_v18 = vld [vmem:[%s13808_s28 + $0x1368] sm:$0xff]  ;;  %v9242_v52 = vpop.f32.mrf.mxu1 }
 0x536   : > { %v12525_v35 = vcombine.low %v3112_v7, %v3120_v18  ;;  %v9243_v44 = vadd.f32 %v9242_v52, %v9199_v16 }
 0x537   : > { %9524 = vmatpush2.bf16.msra.mxu0 %v12125_v27  ;;  %9567 = vmatpush2.bf16.msra.mxu1 %v12381_v51  ;;  %v12797_v27 = vcombine.low %v3384_v9, %v3392_v59  ;;  %v12526_v51 = vcombine.high %v3112_v7, %v3120_v18  ;;  %v3064_v59 = vld [vmem:[%s13808_s28 + $0x11a8] sm:$0xff] }
 0x538   : > { %9525 = vmatprep.subr.bf16.mxu0 %v12110_v57  ;;  %9568 = vmatprep.subr.bf16.mxu1 %v12366_v24  ;;  %v15237_v57 = vld [vmem:[%s13808_s28 + $0x12a8] sm:$0xff]  ;;  %v9237_v24 = vadd.f32 %v9236_v43, %v9193_v62 }
 0x539   : > { %v2474_v62 = vld [vmem:[#allocation3 + $0x48] sm:$0xff] }
 0x53a   : > { %v3336_v43 = vld [vmem:[%s13808_s28 + $0x1a28] sm:$0xff] }
 0x53b   : > { %9526 = vmatpush2.bf16.msra.mxu0 %v12109_v10  ;;  %9569 = vmatpush2.bf16.msra.mxu1 %v12365_v14  ;;  %v3360_v10 = vld [vmem:[%s13808_s28 + $0x1ae8] sm:$0xff] }
 0x53c   : > { %9527 = vmatprep.subr.bf16.mxu0 %v12094_v39  ;;  %9570 = vmatprep.subr.bf16.mxu1 %v12350_v45  ;;  %v9239_v39 = vadd.f32 %v9238_v56, %v9195_v15  ;;  %v2489_v15 = vld [vmem:[#allocation3 + $0x70] sm:$0xff] }
 0x53f   : > { %9528 = vmatpush2.bf16.msra.mxu0 %v12093_v13  ;;  %9571 = vmatpush2.bf16.msra.mxu1 %v12349_v47  ;;  %v12781_v13 = vcombine.low %v3368_v23, %v3376_v20  ;;  %v12510_v47 = vcombine.high %v15237_v57, %v3104_v41 }
 0x540   : > { %9529 = vmatprep.subr.bf16.mxu0 %v12078_v33  ;;  %9572 = vmatprep.subr.bf16.mxu1 %v12334_v34  ;;  %v12766_v33 = vcombine.high %v3352_v12, %v3360_v10  ;;  %v9241_v34 = vadd.f32 %v9240_v4, %v9197_v40  ;;  %v2490_v40 = vld [vmem:[#allocation3 + $0xc0] sm:$0xff]  ;;  %v3328_v4 = vld [vmem:[%s13808_s28 + $0x19e8] sm:$0xff] }
 0x543   : > { %9530 = vmatpush2.bf16.msra.mxu0 %v12077_v11  ;;  %9573 = vmatpush2.bf16.msra.mxu1 %v12333_v48  ;;  %v3088_v11 = vld [vmem:[%s13808_s28 + $0x1268] sm:$0xff] }
 0x544   : > { %9531 = vmatprep.subr.bf16.mxu0 %v12062_v26  ;;  %9574 = vmatprep.subr.bf16.mxu1 %v12318_v54  ;;  %v12509_v26 = vcombine.low %v15237_v57, %v3104_v41  ;;  %v3344_v54 = vld [vmem:[%s13808_s28 + $0x1a68] sm:$0xff]  ;;  %v12494_v56 = vcombine.high %v3080_v49, %v3088_v11  ;;  %v12493_v18 = vcombine.low %v3080_v49, %v3088_v11 }
 0x545   : > { %v12750_v9 = vcombine.high %v3336_v43, %v3344_v54  ;;  %v12749_v23 = vcombine.low %v3336_v43, %v3344_v54  ;;  %v3304_v57 = vld [vmem:[%s13808_s28 + $0x1928] sm:$0xff] }
 0x546   : > { %v3256_v11 = vld [vmem:[%s13808_s28 + $0x17a8] sm:$0xff] }
 0x547   : > { %9532 = vmatpush2.bf16.msra.mxu0 %v12061_v29  ;;  %9575 = vmatpush2.bf16.msra.mxu1 %v12317_v17 }
 0x548   : > { %9533 = vmatprep.subr.bf16.mxu0 %v12046_v63  ;;  %9576 = vmatprep.subr.bf16.mxu1 %v12302_v55  ;;  %v12765_v63 = vcombine.low %v3352_v12, %v3360_v10  ;;  %v3032_v10 = vld [vmem:[%s13808_s28 + $0x10a8] sm:$0xff] }
 0x54b   : > { %9534 = vmatpush2.bf16.msra.mxu0 %v12045_v0  ;;  %9577 = vmatpush2.bf16.msra.mxu1 %v12301_v21  ;;  %v3072_v0 = vld [vmem:[%s13808_s28 + $0x11e8] sm:$0xff] }
 0x54c   : > { %9589 = vmatprep.subr.bf16.mxu0 %v12542_v60  ;;  %9632 = vmatprep.subr.bf16.mxu1 %v12798_v37  ;;  %v3320_v60 = vld [vmem:[%s13808_s28 + $0x19a8] sm:$0xff]  ;;  %v12478_v20 = vcombine.high %v3064_v59, %v3072_v0  ;;  %v12477_v52 = vcombine.low %v3064_v59, %v3072_v0 }
 0x54d   : > { %v12734_v16 = vcombine.high %v3320_v60, %v3328_v4  ;;  %v3488_v59 = vld [vmem:[%s13808_s28 + $0x1ee8] sm:$0xff] }
 0x54e   : > { %v9279_v14 = vpop.f32.mrf.mxu0  ;;  %9536 = vmatmul.mubr.bf16.vlgmr.msra.gmra.mxu0 %v14523_v8  ;;  %v9322_v50 = vpop.f32.mrf.mxu1  ;;  %9579 = vmatmul.mubr.bf16.vlgmr.msra.gmra.mxu1 %v14528_v58 }
 0x54f   : > { %v9280_v45 = vadd.f32 %v9279_v14, %v9237_v24  ;;  %9590 = vmatpush1.bf16.msra.mxu0 %v12541_v53  ;;  %9633 = vmatpush1.bf16.msra.mxu1 %v12797_v27  ;;  %v3048_v27 = vld [vmem:[%s13808_s28 + $0x1128] sm:$0xff] }
 0x550   : > { %v9281_v61 = vpop.f32.mrf.mxu0  ;;  %9591 = vmatprep.subr.bf16.mxu0 %v12526_v51  ;;  %v9324_v25 = vpop.f32.mrf.mxu1  ;;  %9634 = vmatprep.subr.bf16.mxu1 %v12782_v22  ;;  %v3056_v51 = vld [vmem:[%s13808_s28 + $0x1168] sm:$0xff]  ;;  %v12733_v22 = vcombine.low %v3320_v60, %v3328_v4 }
 0x551   : > { %v9323_v32 = vadd.f32 %v9322_v50, %v9280_v45  ;;  %v9282_v28 = vadd.f32 %v9281_v61, %v9239_v39  ;;  %9621 = vmatprep.mubr.bf16.mxu0 %v14534_v3  ;;  %9664 = vmatprep.mubr.bf16.mxu1 %v14539_v42  ;;  %v3312_v24 = vld [vmem:[%s13808_s28 + $0x1968] sm:$0xff]  ;;  %v12462_v41 = vcombine.high %v3048_v27, %v3056_v51 }
 0x552   : > { %v9283_v48 = vpop.f32.mrf.mxu0  ;;  %v9326_v29 = vpop.f32.mrf.mxu1  ;;  %v12718_v12 = vcombine.high %v3304_v57, %v3312_v24  ;;  %v3040_v14 = vld [vmem:[%s13808_s28 + $0x10e8] sm:$0xff]  ;;  %v12461_v50 = vcombine.low %v3048_v27, %v3056_v51 }
 0x553   : > { %v10025_v31 = vadd.f32 %v9323_v32, %v2473_v19  ;;  %v9325_v36 = vadd.f32 %v9324_v25, %v9282_v28  ;;  %v9284_v2 = vadd.f32 %v9283_v48, %v9241_v34  ;;  %9592 = vmatpush1.bf16.msra.mxu0 %v12525_v35  ;;  %9635 = vmatpush1.bf16.msra.mxu1 %v12781_v13  ;;  %v3288_v39 = vld [vmem:[%s13808_s28 + $0x18a8] sm:$0xff] }
 0x554   : > { %v9285_v17 = vpop.f32.mrf.mxu0  ;;  %9593 = vmatprep.subr.bf16.mxu0 %v12510_v47  ;;  %9636 = vmatprep.subr.bf16.mxu1 %v12766_v33  ;;  %v9328_v21 = vpop.f32.mrf.mxu1  ;;  %v3296_v45 = vld [vmem:[%s13808_s28 + $0x18e8] sm:$0xff]  ;;  %v12717_v35 = vcombine.low %v3304_v57, %v3312_v24  ;;  %v12446_v19 = vcombine.high %v3032_v10, %v3040_v14  ;;  %v12445_v32 = vcombine.low %v3032_v10, %v3040_v14 }
 0x555   : > { %10057 = vst [vmem:[#allocation3 + $0x30] sm:$0xff] %v10025_v31  ;;  %v10026_v55 = vadd.f32 %v9325_v36, %v2474_v62  ;;  %v9327_v38 = vadd.f32 %v9326_v29, %v9284_v2  ;;  %v9286_v46 = vadd.f32 %v9285_v17, %v9243_v44  ;;  %v12702_v61 = vcombine.high %v3288_v39, %v3296_v45  ;;  %v3016_v13 = vld [vmem:[%s13808_s28 + $0x1028] sm:$0xff] }
 0x556   : > { %v3024_v47 = vld [vmem:[%s13808_s28 + $0x1068] sm:$0xff]  ;;  %v12701_v28 = vcombine.low %v3288_v39, %v3296_v45 }
 0x557   : > { %10058 = vst [vmem:[#allocation3 + $0x48] sm:$0xff] %v10026_v55  ;;  %v10041_v37 = vadd.f32 %v9327_v38, %v2489_v15  ;;  %v9329_v7 = vadd.f32 %v9328_v21, %v9286_v46  ;;  %9594 = vmatpush1.bf16.msra.mxu0 %v12509_v26  ;;  %9637 = vmatpush1.bf16.msra.mxu1 %v12765_v63  ;;  %v3272_v33 = vld [vmem:[%s13808_s28 + $0x1828] sm:$0xff] }
 0x558   : > { %9595 = vmatprep.subr.bf16.mxu0 %v12494_v56  ;;  %9638 = vmatprep.subr.bf16.mxu1 %v12750_v9  ;;  %v3280_v34 = vld [vmem:[%s13808_s28 + $0x1868] sm:$0xff]  ;;  %v12430_v25 = vcombine.high %v3016_v13, %v3024_v47  ;;  %v12429_v43 = vcombine.low %v3016_v13, %v3024_v47 }
 0x559   : > { %10073 = vst [vmem:[#allocation3 + $0x70] sm:$0xff] %v10041_v37  ;;  %v10042_v53 = vadd.f32 %v9329_v7, %v2490_v40  ;;  %v12686_v49 = vcombine.high %v3272_v33, %v3280_v34  ;;  %v3264_v62 = vld [vmem:[%s13808_s28 + $0x17e8] sm:$0xff]  ;;  %v12685_v54 = vcombine.low %v3272_v33, %v3280_v34 }
 0x55a   : > { %v3512_v48 = vld [vmem:[%s13808_s28 + $0x1fa8] sm:$0xff]  ;;  %v12670_v44 = vcombine.high %v3256_v11, %v3264_v62  ;;  %v12669_v17 = vcombine.low %v3256_v11, %v3264_v62 }
 0x55b   : > { %10074 = vst [vmem:[#allocation3 + $0xc0] sm:$0xff] %v10042_v53  ;;  %9596 = vmatpush1.bf16.msra.mxu0 %v12493_v18  ;;  %9639 = vmatpush1.bf16.msra.mxu1 %v12749_v23  ;;  %v3520_v26 = vld [vmem:[%s13808_s28 + $0x1fe8] sm:$0xff] }
 0x55c   : > { %9597 = vmatprep.subr.bf16.mxu0 %v12478_v20  ;;  %9640 = vmatprep.subr.bf16.mxu1 %v12734_v16  ;;  %v12926_v31 = vcombine.high %v3512_v48, %v3520_v26  ;;  %v3240_v36 = vld [vmem:[%s13808_s28 + $0x1728] sm:$0xff]  ;;  %v12925_v63 = vcombine.low %v3512_v48, %v3520_v26 }
 0x55d   : > { %v3248_v2 = vld [vmem:[%s13808_s28 + $0x1768] sm:$0xff] }
 0x55e   : > { %v3496_v29 = vld [vmem:[%s13808_s28 + $0x1f28] sm:$0xff]  ;;  %v12654_v56 = vcombine.high %v3240_v36, %v3248_v2  ;;  %v12653_v0 = vcombine.low %v3240_v36, %v3248_v2  ;;  %v2617_v36 = vld [vmem:[%s13808_s28 + $0x3b0] sm:$0xff] }
 0x55f   : > { %9598 = vmatpush1.bf16.msra.mxu0 %v12477_v52  ;;  %9641 = vmatpush1.bf16.msra.mxu1 %v12733_v22  ;;  %v3504_v15 = vld [vmem:[%s13808_s28 + $0x1f68] sm:$0xff]  ;;  %v2625_v2 = vld [vmem:[%s13808_s28 + $0x3f0] sm:$0xff] }
 0x560   : > { %9599 = vmatprep.subr.bf16.mxu0 %v12462_v41  ;;  %9642 = vmatprep.subr.bf16.mxu1 %v12718_v12  ;;  %v12910_v55 = vcombine.high %v3496_v29, %v3504_v15  ;;  %v3224_v38 = vld [vmem:[%s13808_s28 + $0x16a8] sm:$0xff]  ;;  %v12909_v40 = vcombine.low %v3496_v29, %v3504_v15  ;;  %v2873_v29 = vld [vmem:[%s13808_s28 + $0xbb0] sm:$0xff] }
 0x561   : > { %v3232_v46 = vld [vmem:[%s13808_s28 + $0x16e8] sm:$0xff]  ;;  %v2881_v15 = vld [vmem:[%s13808_s28 + $0xbf0] sm:$0xff] }
 0x562   : > { %v3480_v9 = vld [vmem:[%s13808_s28 + $0x1ea8] sm:$0xff]  ;;  %v12638_v21 = vcombine.high %v3224_v38, %v3232_v46  ;;  %v12637_v23 = vcombine.low %v3224_v38, %v3232_v46  ;;  %v2601_v38 = vld [vmem:[%s13808_s28 + $0x330] sm:$0xff] }
 0x563   : > { %9600 = vmatpush1.bf16.msra.mxu0 %v12461_v50  ;;  %9643 = vmatpush1.bf16.msra.mxu1 %v12717_v35  ;;  %v12894_v60 = vcombine.high %v3480_v9, %v3488_v59  ;;  %v3208_v4 = vld [vmem:[%s13808_s28 + $0x1628] sm:$0xff]  ;;  %v12893_v20 = vcombine.low %v3480_v9, %v3488_v59  ;;  %v2609_v46 = vld [vmem:[%s13808_s28 + $0x370] sm:$0xff] }
 0x564   : > { %9601 = vmatprep.subr.bf16.mxu0 %v12446_v19  ;;  %9644 = vmatprep.subr.bf16.mxu1 %v12702_v61  ;;  %v3216_v37 = vld [vmem:[%s13808_s28 + $0x1668] sm:$0xff]  ;;  %v2857_v9 = vld [vmem:[%s13808_s28 + $0xb30] sm:$0xff] }
 0x565   : > { %v3464_v7 = vld [vmem:[%s13808_s28 + $0x1e28] sm:$0xff]  ;;  %v12622_v53 = vcombine.high %v3208_v4, %v3216_v37  ;;  %v12621_v52 = vcombine.low %v3208_v4, %v3216_v37  ;;  %v2865_v59 = vld [vmem:[%s13808_s28 + $0xb70] sm:$0xff] }
 0x566   : > { %v3472_v18 = vld [vmem:[%s13808_s28 + $0x1e68] sm:$0xff]  ;;  %v2585_v4 = vld [vmem:[%s13808_s28 + $0x2b0] sm:$0xff] }
 0x567   : > { %9602 = vmatpush1.bf16.msra.mxu0 %v12445_v32  ;;  %9645 = vmatpush1.bf16.msra.mxu1 %v12701_v28  ;;  %v12878_v16 = vcombine.high %v3464_v7, %v3472_v18  ;;  %v3192_v27 = vld [vmem:[%s13808_s28 + $0x15a8] sm:$0xff]  ;;  %v12877_v22 = vcombine.low %v3464_v7, %v3472_v18  ;;  %v2593_v37 = vld [vmem:[%s13808_s28 + $0x2f0] sm:$0xff] }
 0x568   : > { %9603 = vmatprep.subr.bf16.mxu0 %v12430_v25  ;;  %9646 = vmatprep.subr.bf16.mxu1 %v12686_v49  ;;  %v3200_v51 = vld [vmem:[%s13808_s28 + $0x15e8] sm:$0xff]  ;;  %v2841_v7 = vld [vmem:[%s13808_s28 + $0xab0] sm:$0xff] }
 0x569   : > { %v3448_v57 = vld [vmem:[%s13808_s28 + $0x1da8] sm:$0xff]  ;;  %v12606_v41 = vcombine.high %v3192_v27, %v3200_v51  ;;  %v12605_v50 = vcombine.low %v3192_v27, %v3200_v51  ;;  %v2849_v18 = vld [vmem:[%s13808_s28 + $0xaf0] sm:$0xff] }
 0x56a   : > { %v3456_v24 = vld [vmem:[%s13808_s28 + $0x1de8] sm:$0xff]  ;;  %v2569_v27 = vld [vmem:[%s13808_s28 + $0x230] sm:$0xff] }
 0x56b   : > { %9604 = vmatpush1.bf16.msra.mxu0 %v12429_v43  ;;  %9647 = vmatpush1.bf16.msra.mxu1 %v12685_v54  ;;  %v12862_v12 = vcombine.high %v3448_v57, %v3456_v24  ;;  %v3176_v10 = vld [vmem:[%s13808_s28 + $0x1528] sm:$0xff]  ;;  %v12861_v35 = vcombine.low %v3448_v57, %v3456_v24  ;;  %v2577_v51 = vld [vmem:[%s13808_s28 + $0x270] sm:$0xff] }
 0x56c   : > { %9605 = vmatprep.subr.bf16.mxu0 %v12670_v44  ;;  %9648 = vmatprep.subr.bf16.mxu1 %v12926_v31  ;;  %v3184_v14 = vld [vmem:[%s13808_s28 + $0x1568] sm:$0xff]  ;;  %v2825_v57 = vld [vmem:[%s13808_s28 + $0xa30] sm:$0xff] }
 0x56d   : > { %v3432_v39 = vld [vmem:[%s13808_s28 + $0x1d28] sm:$0xff]  ;;  %v12590_v19 = vcombine.high %v3176_v10, %v3184_v14  ;;  %v12589_v32 = vcombine.low %v3176_v10, %v3184_v14  ;;  %v2833_v24 = vld [vmem:[%s13808_s28 + $0xa70] sm:$0xff] }
 0x56e   : > { %v3440_v45 = vld [vmem:[%s13808_s28 + $0x1d68] sm:$0xff]  ;;  %v2553_v10 = vld [vmem:[%s13808_s28 + $0x1b0] sm:$0xff] }
 0x56f   : > { %9606 = vmatpush2.bf16.msra.mxu0 %v12669_v17  ;;  %9649 = vmatpush2.bf16.msra.mxu1 %v12925_v63  ;;  %v12846_v61 = vcombine.high %v3432_v39, %v3440_v45  ;;  %v3160_v13 = vld [vmem:[%s13808_s28 + $0x14a8] sm:$0xff]  ;;  %v12845_v28 = vcombine.low %v3432_v39, %v3440_v45  ;;  %v2561_v14 = vld [vmem:[%s13808_s28 + $0x1f0] sm:$0xff] }
 0x570   : > { %9607 = vmatprep.subr.bf16.mxu0 %v12654_v56  ;;  %9650 = vmatprep.subr.bf16.mxu1 %v12910_v55  ;;  %v3168_v47 = vld [vmem:[%s13808_s28 + $0x14e8] sm:$0xff]  ;;  %v12032_v56 = vcombine.high %v2617_v36, %v2625_v2  ;;  %v12288_v55 = vcombine.high %v2873_v29, %v2881_v15  ;;  %v2809_v39 = vld [vmem:[%s13808_s28 + $0x9b0] sm:$0xff] }
 0x571   : > { %v3416_v33 = vld [vmem:[%s13808_s28 + $0x1ca8] sm:$0xff]  ;;  %v12574_v25 = vcombine.high %v3160_v13, %v3168_v47  ;;  %v12573_v43 = vcombine.low %v3160_v13, %v3168_v47  ;;  %v2817_v45 = vld [vmem:[%s13808_s28 + $0x9f0] sm:$0xff] }
 0x572   : > { %v3424_v34 = vld [vmem:[%s13808_s28 + $0x1ce8] sm:$0xff]  ;;  %v2537_v13 = vld [vmem:[%s13808_s28 + $0x130] sm:$0xff] }
 0x573   : > { %9608 = vmatpush2.bf16.msra.mxu0 %v12653_v0  ;;  %9651 = vmatpush2.bf16.msra.mxu1 %v12909_v40  ;;  %v12830_v49 = vcombine.high %v3416_v33, %v3424_v34  ;;  %v3144_v11 = vld [vmem:[%s13808_s28 + $0x1428] sm:$0xff]  ;;  %v12829_v54 = vcombine.low %v3416_v33, %v3424_v34  ;;  %v12031_v0 = vcombine.low %v2617_v36, %v2625_v2  ;;  %v2545_v47 = vld [vmem:[%s13808_s28 + $0x170] sm:$0xff] }
 0x574   : > { %9609 = vmatprep.subr.bf16.mxu0 %v12638_v21  ;;  %9652 = vmatprep.subr.bf16.mxu1 %v12894_v60  ;;  %v3152_v62 = vld [vmem:[%s13808_s28 + $0x1468] sm:$0xff]  ;;  %v12287_v40 = vcombine.low %v2873_v29, %v2881_v15  ;;  %v12016_v21 = vcombine.high %v2601_v38, %v2609_v46  ;;  %v12272_v60 = vcombine.high %v2857_v9, %v2865_v59  ;;  %v2793_v33 = vld [vmem:[%s13808_s28 + $0x930] sm:$0xff] }
 0x575   : > { %v3400_v48 = vld [vmem:[%s13808_s28 + $0x1c28] sm:$0xff]  ;;  %v12558_v44 = vcombine.high %v3144_v11, %v3152_v62  ;;  %v12557_v17 = vcombine.low %v3144_v11, %v3152_v62  ;;  %v2801_v34 = vld [vmem:[%s13808_s28 + $0x970] sm:$0xff] }
 0x576   : > { %v3408_v26 = vld [vmem:[%s13808_s28 + $0x1c68] sm:$0xff]  ;;  %v2521_v11 = vld [vmem:[%s13808_s28 + $0xb0] sm:$0xff] }
 0x577   : > { %9610 = vmatpush2.bf16.msra.mxu0 %v12637_v23  ;;  %9653 = vmatpush2.bf16.msra.mxu1 %v12893_v20  ;;  %v12814_v31 = vcombine.high %v3400_v48, %v3408_v26  ;;  %v12813_v63 = vcombine.low %v3400_v48, %v3408_v26  ;;  %v12015_v23 = vcombine.low %v2601_v38, %v2609_v46  ;;  %v2529_v62 = vld [vmem:[%s13808_s28 + $0xf0] sm:$0xff] }
 0x578   : > { %9611 = vmatprep.subr.bf16.mxu0 %v12622_v53  ;;  %9654 = vmatprep.subr.bf16.mxu1 %v12878_v16  ;;  %v12271_v20 = vcombine.low %v2857_v9, %v2865_v59  ;;  %v12000_v53 = vcombine.high %v2585_v4, %v2593_v37  ;;  %v12256_v16 = vcombine.high %v2841_v7, %v2849_v18  ;;  %v2777_v48 = vld [vmem:[%s13808_s28 + $0x8b0] sm:$0xff] }
 0x579   : > { %v2785_v26 = vld [vmem:[%s13808_s28 + $0x8f0] sm:$0xff] }
 0x57a   : > { %v2505_v36 = vld [vmem:[%s13808_s28 + $0x30] sm:$0xff] }
 0x57b   : > { %9612 = vmatpush2.bf16.msra.mxu0 %v12621_v52  ;;  %9655 = vmatpush2.bf16.msra.mxu1 %v12877_v22  ;;  %v11999_v52 = vcombine.low %v2585_v4, %v2593_v37  ;;  %v12255_v22 = vcombine.low %v2841_v7, %v2849_v18  ;;  %v2513_v2 = vld [vmem:[%s13808_s28 + $0x70] sm:$0xff] }
 0x57c   : > { %9613 = vmatprep.subr.bf16.mxu0 %v12606_v41  ;;  %9656 = vmatprep.subr.bf16.mxu1 %v12862_v12  ;;  %v11984_v41 = vcombine.high %v2569_v27, %v2577_v51  ;;  %v12240_v12 = vcombine.high %v2825_v57, %v2833_v24  ;;  %v2761_v29 = vld [vmem:[%s13808_s28 + $0x830] sm:$0xff] }
 0x57d   : > { %v2769_v15 = vld [vmem:[%s13808_s28 + $0x870] sm:$0xff] }
 0x57e   : > { %v2745_v38 = vld [vmem:[%s13808_s28 + $0x7b0] sm:$0xff] }
 0x57f   : > { %9614 = vmatpush2.bf16.msra.mxu0 %v12605_v50  ;;  %9657 = vmatpush2.bf16.msra.mxu1 %v12861_v35  ;;  %v11983_v50 = vcombine.low %v2569_v27, %v2577_v51  ;;  %v12239_v35 = vcombine.low %v2825_v57, %v2833_v24  ;;  %v2753_v46 = vld [vmem:[%s13808_s28 + $0x7f0] sm:$0xff] }
 0x580   : > { %9615 = vmatprep.subr.bf16.mxu0 %v12590_v19  ;;  %9658 = vmatprep.subr.bf16.mxu1 %v12846_v61  ;;  %v11968_v19 = vcombine.high %v2553_v10, %v2561_v14  ;;  %v12224_v61 = vcombine.high %v2809_v39, %v2817_v45  ;;  %v3001_v9 = vld [vmem:[%s13808_s28 + $0xfb0] sm:$0xff] }
 0x581   : > { %v3009_v59 = vld [vmem:[%s13808_s28 + $0xff0] sm:$0xff] }
 0x582   : > { %v2729_v4 = vld [vmem:[%s13808_s28 + $0x730] sm:$0xff] }
 0x583   : > { %9616 = vmatpush2.bf16.msra.mxu0 %v12589_v32  ;;  %9659 = vmatpush2.bf16.msra.mxu1 %v12845_v28  ;;  %v11967_v32 = vcombine.low %v2553_v10, %v2561_v14  ;;  %v12223_v28 = vcombine.low %v2809_v39, %v2817_v45  ;;  %v2737_v37 = vld [vmem:[%s13808_s28 + $0x770] sm:$0xff] }
 0x584   : > { %9617 = vmatprep.subr.bf16.mxu0 %v12574_v25  ;;  %9660 = vmatprep.subr.bf16.mxu1 %v12830_v49  ;;  %v11952_v25 = vcombine.high %v2537_v13, %v2545_v47  ;;  %v12208_v49 = vcombine.high %v2793_v33, %v2801_v34  ;;  %v2985_v7 = vld [vmem:[%s13808_s28 + $0xf30] sm:$0xff] }
 0x585   : > { %v2993_v18 = vld [vmem:[%s13808_s28 + $0xf70] sm:$0xff] }
 0x586   : > { %v2713_v27 = vld [vmem:[%s13808_s28 + $0x6b0] sm:$0xff] }
 0x587   : > { %9618 = vmatpush2.bf16.msra.mxu0 %v12573_v43  ;;  %9661 = vmatpush2.bf16.msra.mxu1 %v12829_v54  ;;  %v11951_v43 = vcombine.low %v2537_v13, %v2545_v47  ;;  %v12207_v54 = vcombine.low %v2793_v33, %v2801_v34  ;;  %v2721_v51 = vld [vmem:[%s13808_s28 + $0x6f0] sm:$0xff] }
 0x588   : > { %9619 = vmatprep.subr.bf16.mxu0 %v12558_v44  ;;  %9662 = vmatprep.subr.bf16.mxu1 %v12814_v31  ;;  %v11936_v44 = vcombine.high %v2521_v11, %v2529_v62  ;;  %v12192_v31 = vcombine.high %v2777_v48, %v2785_v26  ;;  %v2969_v57 = vld [vmem:[%s13808_s28 + $0xeb0] sm:$0xff] }
 0x589   : > { %v2977_v24 = vld [vmem:[%s13808_s28 + $0xef0] sm:$0xff] }
 0x58a   : > { %v2697_v10 = vld [vmem:[%s13808_s28 + $0x630] sm:$0xff] }
 0x58b   : > { %9620 = vmatpush2.bf16.msra.mxu0 %v12557_v17  ;;  %9663 = vmatpush2.bf16.msra.mxu1 %v12813_v63  ;;  %v11935_v17 = vcombine.low %v2521_v11, %v2529_v62  ;;  %v12191_v63 = vcombine.low %v2777_v48, %v2785_v26  ;;  %v2705_v14 = vld [vmem:[%s13808_s28 + $0x670] sm:$0xff] }
 0x58c   : > { %9675 = vmatprep.subr.bf16.mxu0 %v12032_v56  ;;  %9718 = vmatprep.subr.bf16.mxu1 %v12288_v55  ;;  %v11920_v56 = vcombine.high %v2505_v36, %v2513_v2  ;;  %v12176_v55 = vcombine.high %v2761_v29, %v2769_v15  ;;  %v2953_v39 = vld [vmem:[%s13808_s28 + $0xe30] sm:$0xff] }
 0x58d   : > { %v2961_v45 = vld [vmem:[%s13808_s28 + $0xe70] sm:$0xff] }
 0x58e   : > { %9622 = vmatmul.mubr.bf16.vlgmr.msra.gmra.mxu0 %v14606_v6  ;;  %9665 = vmatmul.mubr.bf16.vlgmr.msra.gmra.mxu1 %v14610_v1  ;;  %v2681_v13 = vld [vmem:[%s13808_s28 + $0x5b0] sm:$0xff] }
 0x58f   : > { %9676 = vmatpush1.bf16.msra.mxu0 %v12031_v0  ;;  %9719 = vmatpush1.bf16.msra.mxu1 %v12287_v40  ;;  %v11919_v0 = vcombine.low %v2505_v36, %v2513_v2  ;;  %v12175_v40 = vcombine.low %v2761_v29, %v2769_v15  ;;  %v2689_v47 = vld [vmem:[%s13808_s28 + $0x5f0] sm:$0xff] }
 0x590   : > { %9677 = vmatprep.subr.bf16.mxu0 %v12016_v21  ;;  %9720 = vmatprep.subr.bf16.mxu1 %v12272_v60  ;;  %v12160_v21 = vcombine.high %v2745_v38, %v2753_v46  ;;  %v12416_v60 = vcombine.high %v3001_v9, %v3009_v59  ;;  %v2937_v33 = vld [vmem:[%s13808_s28 + $0xdb0] sm:$0xff] }
 0x591   : > { %9707 = vmatprep.mubr.bf16.mxu0 %v14470_v30  ;;  %9750 = vmatprep.mubr.bf16.mxu1 %v14476_v5  ;;  %v2945_v34 = vld [vmem:[%s13808_s28 + $0xdf0] sm:$0xff] }
 0x592   : > { %v2665_v11 = vld [vmem:[%s13808_s28 + $0x530] sm:$0xff] }
 0x593   : > { %9678 = vmatpush1.bf16.msra.mxu0 %v12015_v23  ;;  %9721 = vmatpush1.bf16.msra.mxu1 %v12271_v20  ;;  %v12159_v23 = vcombine.low %v2745_v38, %v2753_v46  ;;  %v12415_v20 = vcombine.low %v3001_v9, %v3009_v59  ;;  %v2673_v62 = vld [vmem:[%s13808_s28 + $0x570] sm:$0xff]  ;;  %v9408_v38 = vpop.f32.mrf.mxu1 }
 0x594   : > { %9679 = vmatprep.subr.bf16.mxu0 %v12000_v53  ;;  %9722 = vmatprep.subr.bf16.mxu1 %v12256_v16  ;;  %v12144_v53 = vcombine.high %v2729_v4, %v2737_v37  ;;  %v12400_v16 = vcombine.high %v2985_v7, %v2993_v18  ;;  %v2921_v48 = vld [vmem:[%s13808_s28 + $0xd30] sm:$0xff] }
 0x595   : > { %v2929_v26 = vld [vmem:[%s13808_s28 + $0xd70] sm:$0xff] }
 0x596   : > { %v2649_v36 = vld [vmem:[%s13808_s28 + $0x4b0] sm:$0xff] }
 0x597   : > { %9680 = vmatpush1.bf16.msra.mxu0 %v11999_v52  ;;  %9723 = vmatpush1.bf16.msra.mxu1 %v12255_v22  ;;  %v12143_v52 = vcombine.low %v2729_v4, %v2737_v37  ;;  %v12399_v22 = vcombine.low %v2985_v7, %v2993_v18  ;;  %v2657_v2 = vld [vmem:[%s13808_s28 + $0x4f0] sm:$0xff]  ;;  %v9410_v7 = vpop.f32.mrf.mxu1 }
 0x598   : > { %9681 = vmatprep.subr.bf16.mxu0 %v11984_v41  ;;  %9724 = vmatprep.subr.bf16.mxu1 %v12240_v12  ;;  %v12128_v41 = vcombine.high %v2713_v27, %v2721_v51  ;;  %v12384_v12 = vcombine.high %v2969_v57, %v2977_v24  ;;  %v2905_v29 = vld [vmem:[%s13808_s28 + $0xcb0] sm:$0xff] }
 0x599   : > { %v2913_v15 = vld [vmem:[%s13808_s28 + $0xcf0] sm:$0xff] }
 0x59a   : > { %v12320_v46 = vcombine.high %v2905_v29, %v2913_v15  ;;  %v2633_v9 = vld [vmem:[%s13808_s28 + $0x430] sm:$0xff]  ;;  %v12319_v4 = vcombine.low %v2905_v29, %v2913_v15 }
 0x59b   : > { %9682 = vmatpush1.bf16.msra.mxu0 %v11983_v50  ;;  %9725 = vmatpush1.bf16.msra.mxu1 %v12239_v35  ;;  %v12127_v50 = vcombine.low %v2713_v27, %v2721_v51  ;;  %v12383_v35 = vcombine.low %v2969_v57, %v2977_v24  ;;  %v2641_v59 = vld [vmem:[%s13808_s28 + $0x470] sm:$0xff] }
 0x59c   : > { %9683 = vmatprep.subr.bf16.mxu0 %v11968_v19  ;;  %9726 = vmatprep.subr.bf16.mxu1 %v12224_v61  ;;  %v12112_v19 = vcombine.high %v2697_v10, %v2705_v14  ;;  %v12368_v61 = vcombine.high %v2953_v39, %v2961_v45  ;;  %v12048_v37 = vcombine.high %v2633_v9, %v2641_v59  ;;  %v3081_v15 = vld [vmem:[%s13808_s28 + $0x1230] sm:$0xff] }
 0x59d   : > { %v12047_v27 = vcombine.low %v2633_v9, %v2641_v59 }
 0x59f   : > { %9684 = vmatpush1.bf16.msra.mxu0 %v11967_v32  ;;  %9727 = vmatpush1.bf16.msra.mxu1 %v12223_v28  ;;  %v12111_v32 = vcombine.low %v2697_v10, %v2705_v14  ;;  %v12367_v28 = vcombine.low %v2953_v39, %v2961_v45  ;;  %v3369_v10 = vld [vmem:[%s13808_s28 + $0x1b30] sm:$0xff] }
 0x5a0   : > { %9685 = vmatprep.subr.bf16.mxu0 %v11952_v25  ;;  %9728 = vmatprep.subr.bf16.mxu1 %v12208_v49  ;;  %v12096_v25 = vcombine.high %v2681_v13, %v2689_v47  ;;  %v12352_v49 = vcombine.high %v2937_v33, %v2945_v34  ;;  %v3377_v14 = vld [vmem:[%s13808_s28 + $0x1b70] sm:$0xff] }
 0x5a3   : > { %9686 = vmatpush1.bf16.msra.mxu0 %v11951_v43  ;;  %9729 = vmatpush1.bf16.msra.mxu1 %v12207_v54  ;;  %v12095_v43 = vcombine.low %v2681_v13, %v2689_v47  ;;  %v12351_v54 = vcombine.low %v2937_v33, %v2945_v34  ;;  %v12784_v47 = vcombine.high %v3369_v10, %v3377_v14  ;;  %v3105_v33 = vld [vmem:[%s13808_s28 + $0x12f0] sm:$0xff] }
 0x5a4   : > { %9687 = vmatprep.subr.bf16.mxu0 %v11936_v44  ;;  %9730 = vmatprep.subr.bf16.mxu1 %v12192_v31  ;;  %v12080_v44 = vcombine.high %v2665_v11, %v2673_v62  ;;  %v12336_v31 = vcombine.high %v2921_v48, %v2929_v26  ;;  %v3353_v34 = vld [vmem:[%s13808_s28 + $0x1ab0] sm:$0xff] }
 0x5a7   : > { %9688 = vmatpush1.bf16.msra.mxu0 %v11935_v17  ;;  %9731 = vmatpush1.bf16.msra.mxu1 %v12191_v63  ;;  %v12079_v17 = vcombine.low %v2665_v11, %v2673_v62  ;;  %v9365_v63 = vpop.f32.mrf.mxu0 }
 0x5a8   : > { %9689 = vmatprep.subr.bf16.mxu0 %v11920_v56  ;;  %9732 = vmatprep.subr.bf16.mxu1 %v12176_v55  ;;  %v12335_v56 = vcombine.low %v2921_v48, %v2929_v26  ;;  %v12064_v55 = vcombine.high %v2649_v36, %v2657_v2  ;;  %v2475_v48 = vld [vmem:[#allocation3 + $0x80] sm:$0xff] }
 0x5ab   : > { %9690 = vmatpush1.bf16.msra.mxu0 %v11919_v0  ;;  %9733 = vmatpush1.bf16.msra.mxu1 %v12175_v40  ;;  %v2889_v0 = vld [vmem:[%s13808_s28 + $0xc30] sm:$0xff] }
 0x5ac   : > { %9691 = vmatprep.subr.bf16.mxu0 %v12160_v21  ;;  %9734 = vmatprep.subr.bf16.mxu1 %v12416_v60  ;;  %v2897_v40 = vld [vmem:[%s13808_s28 + $0xc70] sm:$0xff]  ;;  %v12063_v21 = vcombine.low %v2649_v36, %v2657_v2  ;;  %v9367_v60 = vpop.f32.mrf.mxu0 }
 0x5ad   : > { %v12304_v18 = vcombine.high %v2889_v0, %v2897_v40  ;;  %v12303_v57 = vcombine.low %v2889_v0, %v2897_v40 }
 0x5ae   : > { %v9369_v51 = vpop.f32.mrf.mxu0 }
 0x5af   : > { %9692 = vmatpush2.bf16.msra.mxu0 %v12159_v23  ;;  %9735 = vmatpush2.bf16.msra.mxu1 %v12415_v20  ;;  %v3129_v23 = vld [vmem:[%s13808_s28 + $0x13b0] sm:$0xff] }
 0x5b0   : > { %9693 = vmatprep.subr.bf16.mxu0 %v12144_v53  ;;  %9736 = vmatprep.subr.bf16.mxu1 %v12400_v16  ;;  %v3137_v20 = vld [vmem:[%s13808_s28 + $0x13f0] sm:$0xff]  ;;  %v9371_v45 = vpop.f32.mrf.mxu0 }
 0x5b1   : > { %v3385_v53 = vld [vmem:[%s13808_s28 + $0x1bb0] sm:$0xff]  ;;  %v12544_v24 = vcombine.high %v3129_v23, %v3137_v20  ;;  %v12543_v39 = vcombine.low %v3129_v23, %v3137_v20 }
 0x5b2   : > { %v3393_v16 = vld [vmem:[%s13808_s28 + $0x1bf0] sm:$0xff] }
 0x5b3   : > { %9694 = vmatpush2.bf16.msra.mxu0 %v12143_v52  ;;  %9737 = vmatpush2.bf16.msra.mxu1 %v12399_v22  ;;  %v9412_v52 = vpop.f32.mrf.mxu1  ;;  %v12800_v22 = vcombine.high %v3385_v53, %v3393_v16 }
 0x5b4   : > { %9695 = vmatprep.subr.bf16.mxu0 %v12128_v41  ;;  %9738 = vmatprep.subr.bf16.mxu1 %v12384_v12  ;;  %v3113_v41 = vld [vmem:[%s13808_s28 + $0x1330] sm:$0xff] }
 0x5b5   : > { %v3121_v12 = vld [vmem:[%s13808_s28 + $0x1370] sm:$0xff]  ;;  %v9414_v13 = vpop.f32.mrf.mxu1 }
 0x5b6   : > { %v12527_v62 = vcombine.low %v3113_v41, %v3121_v12  ;;  %v9415_v9 = vadd.f32 %v9414_v13, %v9371_v45 }
 0x5b7   : > { %9696 = vmatpush2.bf16.msra.mxu0 %v12127_v50  ;;  %9739 = vmatpush2.bf16.msra.mxu1 %v12383_v35  ;;  %v12799_v50 = vcombine.low %v3385_v53, %v3393_v16  ;;  %v12528_v35 = vcombine.high %v3113_v41, %v3121_v12  ;;  %v3065_v16 = vld [vmem:[%s13808_s28 + $0x11b0] sm:$0xff] }
 0x5b8   : > { %9697 = vmatprep.subr.bf16.mxu0 %v12112_v19  ;;  %9740 = vmatprep.subr.bf16.mxu1 %v12368_v61  ;;  %v15377_v19 = vld [vmem:[%s13808_s28 + $0x12b0] sm:$0xff]  ;;  %v9409_v61 = vadd.f32 %v9408_v38, %v9365_v63  ;;  %v2476_v63 = vld [vmem:[#allocation3 + $0x88] sm:$0xff] }
 0x5b9   : > { %v3337_v38 = vld [vmem:[%s13808_s28 + $0x1a30] sm:$0xff] }
 0x5bb   : > { %9698 = vmatpush2.bf16.msra.mxu0 %v12111_v32  ;;  %9741 = vmatpush2.bf16.msra.mxu1 %v12367_v28  ;;  %v3361_v32 = vld [vmem:[%s13808_s28 + $0x1af0] sm:$0xff] }
 0x5bc   : > { %9699 = vmatprep.subr.bf16.mxu0 %v12096_v25  ;;  %9742 = vmatprep.subr.bf16.mxu1 %v12352_v49  ;;  %v9411_v25 = vadd.f32 %v9410_v7, %v9367_v60  ;;  %v2491_v60 = vld [vmem:[#allocation3 + $0xa8] sm:$0xff] }
 0x5bf   : > { %9700 = vmatpush2.bf16.msra.mxu0 %v12095_v43  ;;  %9743 = vmatpush2.bf16.msra.mxu1 %v12351_v54  ;;  %v12783_v43 = vcombine.low %v3369_v10, %v3377_v14  ;;  %v12512_v54 = vcombine.high %v15377_v19, %v3105_v33 }
 0x5c0   : > { %9701 = vmatprep.subr.bf16.mxu0 %v12080_v44  ;;  %9744 = vmatprep.subr.bf16.mxu1 %v12336_v31  ;;  %v12768_v44 = vcombine.high %v3353_v34, %v3361_v32  ;;  %v9413_v31 = vadd.f32 %v9412_v52, %v9369_v51  ;;  %v2492_v51 = vld [vmem:[#allocation3 + $0xd0] sm:$0xff] }
 0x5c1   : > { %v3329_v52 = vld [vmem:[%s13808_s28 + $0x19f0] sm:$0xff] }
 0x5c3   : > { %9702 = vmatpush2.bf16.msra.mxu0 %v12079_v17  ;;  %9745 = vmatpush2.bf16.msra.mxu1 %v12335_v56  ;;  %v3089_v17 = vld [vmem:[%s13808_s28 + $0x1270] sm:$0xff] }
 0x5c4   : > { %9703 = vmatprep.subr.bf16.mxu0 %v12064_v55  ;;  %9746 = vmatprep.subr.bf16.mxu1 %v12320_v46  ;;  %v12511_v55 = vcombine.low %v15377_v19, %v3105_v33  ;;  %v3345_v46 = vld [vmem:[%s13808_s28 + $0x1a70] sm:$0xff]  ;;  %v12496_v7 = vcombine.high %v3081_v15, %v3089_v17  ;;  %v12495_v12 = vcombine.low %v3081_v15, %v3089_v17 }
 0x5c5   : > { %v12752_v53 = vcombine.high %v3337_v38, %v3345_v46  ;;  %v12751_v10 = vcombine.low %v3337_v38, %v3345_v46  ;;  %v3305_v19 = vld [vmem:[%s13808_s28 + $0x1930] sm:$0xff] }
 0x5c6   : > { %v3257_v17 = vld [vmem:[%s13808_s28 + $0x17b0] sm:$0xff] }
 0x5c7   : > { %9704 = vmatpush2.bf16.msra.mxu0 %v12063_v21  ;;  %9747 = vmatpush2.bf16.msra.mxu1 %v12319_v4 }
 0x5c8   : > { %9705 = vmatprep.subr.bf16.mxu0 %v12048_v37  ;;  %9748 = vmatprep.subr.bf16.mxu1 %v12304_v18  ;;  %v12767_v37 = vcombine.low %v3353_v34, %v3361_v32  ;;  %v3033_v32 = vld [vmem:[%s13808_s28 + $0x10b0] sm:$0xff] }
 0x5cb   : > { %9706 = vmatpush2.bf16.msra.mxu0 %v12047_v27  ;;  %9749 = vmatpush2.bf16.msra.mxu1 %v12303_v57  ;;  %v3073_v27 = vld [vmem:[%s13808_s28 + $0x11f0] sm:$0xff] }
 0x5cc   : > { %9761 = vmatprep.subr.bf16.mxu0 %v12544_v24  ;;  %9804 = vmatprep.subr.bf16.mxu1 %v12800_v22  ;;  %v3321_v24 = vld [vmem:[%s13808_s28 + $0x19b0] sm:$0xff]  ;;  %v12480_v14 = vcombine.high %v3065_v16, %v3073_v27  ;;  %v12479_v13 = vcombine.low %v3065_v16, %v3073_v27 }
 0x5cd   : > { %v12736_v45 = vcombine.high %v3321_v24, %v3329_v52  ;;  %v3489_v16 = vld [vmem:[%s13808_s28 + $0x1ef0] sm:$0xff] }
 0x5ce   : > { %v9451_v28 = vpop.f32.mrf.mxu0  ;;  %9708 = vmatmul.mubr.bf16.vlgmr.msra.gmra.mxu0 %v14523_v8  ;;  %v9494_v11 = vpop.f32.mrf.mxu1  ;;  %9751 = vmatmul.mubr.bf16.vlgmr.msra.gmra.mxu1 %v14528_v58 }
 0x5cf   : > { %v9452_v49 = vadd.f32 %v9451_v28, %v9409_v61  ;;  %9762 = vmatpush1.bf16.msra.mxu0 %v12543_v39  ;;  %9805 = vmatpush1.bf16.msra.mxu1 %v12799_v50  ;;  %v3049_v50 = vld [vmem:[%s13808_s28 + $0x1130] sm:$0xff] }
 0x5d0   : > { %v9453_v26 = vpop.f32.mrf.mxu0  ;;  %9763 = vmatprep.subr.bf16.mxu0 %v12528_v35  ;;  %v9496_v29 = vpop.f32.mrf.mxu1  ;;  %9806 = vmatprep.subr.bf16.mxu1 %v12784_v47  ;;  %v3057_v35 = vld [vmem:[%s13808_s28 + $0x1170] sm:$0xff]  ;;  %v12735_v47 = vcombine.low %v3321_v24, %v3329_v52 }
 0x5d1   : > { %v9495_v36 = vadd.f32 %v9494_v11, %v9452_v49  ;;  %v9454_v2 = vadd.f32 %v9453_v26, %v9411_v25  ;;  %9793 = vmatprep.mubr.bf16.mxu0 %v14534_v3  ;;  %9836 = vmatprep.mubr.bf16.mxu1 %v14539_v42  ;;  %v3313_v61 = vld [vmem:[%s13808_s28 + $0x1970] sm:$0xff]  ;;  %v12464_v33 = vcombine.high %v3049_v50, %v3057_v35 }
 0x5d2   : > { %v9455_v56 = vpop.f32.mrf.mxu0  ;;  %v9498_v21 = vpop.f32.mrf.mxu1  ;;  %v12720_v34 = vcombine.high %v3305_v19, %v3313_v61  ;;  %v3041_v28 = vld [vmem:[%s13808_s28 + $0x10f0] sm:$0xff]  ;;  %v12463_v11 = vcombine.low %v3049_v50, %v3057_v35 }
 0x5d3   : > { %v10027_v59 = vadd.f32 %v9495_v36, %v2475_v48  ;;  %v9497_v0 = vadd.f32 %v9496_v29, %v9454_v2  ;;  %v9456_v40 = vadd.f32 %v9455_v56, %v9413_v31  ;;  %9764 = vmatpush1.bf16.msra.mxu0 %v12527_v62  ;;  %9807 = vmatpush1.bf16.msra.mxu1 %v12783_v43  ;;  %v3289_v25 = vld [vmem:[%s13808_s28 + $0x18b0] sm:$0xff] }
 0x5d4   : > { %v9457_v4 = vpop.f32.mrf.mxu0  ;;  %9765 = vmatprep.subr.bf16.mxu0 %v12512_v54  ;;  %9808 = vmatprep.subr.bf16.mxu1 %v12768_v44  ;;  %v9500_v57 = vpop.f32.mrf.mxu1  ;;  %v3297_v49 = vld [vmem:[%s13808_s28 + $0x18f0] sm:$0xff]  ;;  %v12719_v62 = vcombine.low %v3305_v19, %v3313_v61  ;;  %v12448_v48 = vcombine.high %v3033_v32, %v3041_v28  ;;  %v12447_v36 = vcombine.low %v3033_v32, %v3041_v28 }
 0x5d5   : > { %10059 = vst [vmem:[#allocation3 + $0x80] sm:$0xff] %v10027_v59  ;;  %v10028_v18 = vadd.f32 %v9497_v0, %v2476_v63  ;;  %v9499_v23 = vadd.f32 %v9498_v21, %v9456_v40  ;;  %v9458_v20 = vadd.f32 %v9457_v4, %v9415_v9  ;;  %v12704_v26 = vcombine.high %v3289_v25, %v3297_v49  ;;  %v3017_v43 = vld [vmem:[%s13808_s28 + $0x1030] sm:$0xff] }
 0x5d6   : > { %v3025_v54 = vld [vmem:[%s13808_s28 + $0x1070] sm:$0xff]  ;;  %v12703_v2 = vcombine.low %v3289_v25, %v3297_v49 }
 0x5d7   : > { %10060 = vst [vmem:[#allocation3 + $0x88] sm:$0xff] %v10028_v18  ;;  %v10043_v22 = vadd.f32 %v9499_v23, %v2491_v60  ;;  %v9501_v41 = vadd.f32 %v9500_v57, %v9458_v20  ;;  %9766 = vmatpush1.bf16.msra.mxu0 %v12511_v55  ;;  %9809 = vmatpush1.bf16.msra.mxu1 %v12767_v37  ;;  %v3273_v44 = vld [vmem:[%s13808_s28 + $0x1830] sm:$0xff] }
 0x5d8   : > { %9767 = vmatprep.subr.bf16.mxu0 %v12496_v7  ;;  %9810 = vmatprep.subr.bf16.mxu1 %v12752_v53  ;;  %v3281_v31 = vld [vmem:[%s13808_s28 + $0x1870] sm:$0xff]  ;;  %v12432_v29 = vcombine.high %v3017_v43, %v3025_v54  ;;  %v12431_v38 = vcombine.low %v3017_v43, %v3025_v54 }
 0x5d9   : > { %10075 = vst [vmem:[#allocation3 + $0xa8] sm:$0xff] %v10043_v22  ;;  %v10044_v39 = vadd.f32 %v9501_v41, %v2492_v51  ;;  %v12688_v15 = vcombine.high %v3273_v44, %v3281_v31  ;;  %v3265_v63 = vld [vmem:[%s13808_s28 + $0x17f0] sm:$0xff]  ;;  %v12687_v46 = vcombine.low %v3273_v44, %v3281_v31 }
 0x5da   : > { %v3513_v56 = vld [vmem:[%s13808_s28 + $0x1fb0] sm:$0xff]  ;;  %v12672_v9 = vcombine.high %v3257_v17, %v3265_v63  ;;  %v12671_v4 = vcombine.low %v3257_v17, %v3265_v63 }
 0x5db   : > { %10076 = vst [vmem:[#allocation3 + $0xd0] sm:$0xff] %v10044_v39  ;;  %9768 = vmatpush1.bf16.msra.mxu0 %v12495_v12  ;;  %9811 = vmatpush1.bf16.msra.mxu1 %v12751_v10  ;;  %v3521_v55 = vld [vmem:[%s13808_s28 + $0x1ff0] sm:$0xff] }
 0x5dc   : > { %9769 = vmatprep.subr.bf16.mxu0 %v12480_v14  ;;  %9812 = vmatprep.subr.bf16.mxu1 %v12736_v45  ;;  %v12928_v59 = vcombine.high %v3513_v56, %v3521_v55  ;;  %v3241_v0 = vld [vmem:[%s13808_s28 + $0x1730] sm:$0xff]  ;;  %v12927_v37 = vcombine.low %v3513_v56, %v3521_v55 }
 0x5dd   : > { %v3249_v40 = vld [vmem:[%s13808_s28 + $0x1770] sm:$0xff] }
 0x5de   : > { %v3497_v21 = vld [vmem:[%s13808_s28 + $0x1f30] sm:$0xff]  ;;  %v12656_v7 = vcombine.high %v3241_v0, %v3249_v40  ;;  %v12655_v27 = vcombine.low %v3241_v0, %v3249_v40  ;;  %v2618_v0 = vld [vmem:[%s13808_s28 + $0x3b8] sm:$0xff] }
 0x5df   : > { %9770 = vmatpush1.bf16.msra.mxu0 %v12479_v13  ;;  %9813 = vmatpush1.bf16.msra.mxu1 %v12735_v47  ;;  %v3505_v60 = vld [vmem:[%s13808_s28 + $0x1f70] sm:$0xff]  ;;  %v2626_v40 = vld [vmem:[%s13808_s28 + $0x3f8] sm:$0xff] }
 0x5e0   : > { %9771 = vmatprep.subr.bf16.mxu0 %v12464_v33  ;;  %9814 = vmatprep.subr.bf16.mxu1 %v12720_v34  ;;  %v12912_v18 = vcombine.high %v3497_v21, %v3505_v60  ;;  %v3225_v23 = vld [vmem:[%s13808_s28 + $0x16b0] sm:$0xff]  ;;  %v12911_v51 = vcombine.low %v3497_v21, %v3505_v60  ;;  %v2874_v21 = vld [vmem:[%s13808_s28 + $0xbb8] sm:$0xff] }
 0x5e1   : > { %v3233_v20 = vld [vmem:[%s13808_s28 + $0x16f0] sm:$0xff]  ;;  %v2882_v60 = vld [vmem:[%s13808_s28 + $0xbf8] sm:$0xff] }
 0x5e2   : > { %v3481_v53 = vld [vmem:[%s13808_s28 + $0x1eb0] sm:$0xff]  ;;  %v12640_v57 = vcombine.high %v3225_v23, %v3233_v20  ;;  %v12639_v10 = vcombine.low %v3225_v23, %v3233_v20  ;;  %v2602_v23 = vld [vmem:[%s13808_s28 + $0x338] sm:$0xff] }
 0x5e3   : > { %9772 = vmatpush1.bf16.msra.mxu0 %v12463_v11  ;;  %9815 = vmatpush1.bf16.msra.mxu1 %v12719_v62  ;;  %v12896_v24 = vcombine.high %v3481_v53, %v3489_v16  ;;  %v3209_v52 = vld [vmem:[%s13808_s28 + $0x1630] sm:$0xff]  ;;  %v12895_v14 = vcombine.low %v3481_v53, %v3489_v16  ;;  %v2610_v20 = vld [vmem:[%s13808_s28 + $0x378] sm:$0xff] }
 0x5e4   : > { %9773 = vmatprep.subr.bf16.mxu0 %v12448_v48  ;;  %9816 = vmatprep.subr.bf16.mxu1 %v12704_v26  ;;  %v3217_v22 = vld [vmem:[%s13808_s28 + $0x1670] sm:$0xff]  ;;  %v2858_v53 = vld [vmem:[%s13808_s28 + $0xb38] sm:$0xff] }
 0x5e5   : > { %v3465_v41 = vld [vmem:[%s13808_s28 + $0x1e30] sm:$0xff]  ;;  %v12624_v39 = vcombine.high %v3209_v52, %v3217_v22  ;;  %v12623_v13 = vcombine.low %v3209_v52, %v3217_v22  ;;  %v2866_v16 = vld [vmem:[%s13808_s28 + $0xb78] sm:$0xff] }
 0x5e6   : > { %v3473_v12 = vld [vmem:[%s13808_s28 + $0x1e70] sm:$0xff]  ;;  %v2586_v52 = vld [vmem:[%s13808_s28 + $0x2b8] sm:$0xff] }
 0x5e7   : > { %9774 = vmatpush1.bf16.msra.mxu0 %v12447_v36  ;;  %9817 = vmatpush1.bf16.msra.mxu1 %v12703_v2  ;;  %v12880_v45 = vcombine.high %v3465_v41, %v3473_v12  ;;  %v3193_v50 = vld [vmem:[%s13808_s28 + $0x15b0] sm:$0xff]  ;;  %v12879_v47 = vcombine.low %v3465_v41, %v3473_v12  ;;  %v2594_v22 = vld [vmem:[%s13808_s28 + $0x2f8] sm:$0xff] }
 0x5e8   : > { %9775 = vmatprep.subr.bf16.mxu0 %v12432_v29  ;;  %9818 = vmatprep.subr.bf16.mxu1 %v12688_v15  ;;  %v3201_v35 = vld [vmem:[%s13808_s28 + $0x15f0] sm:$0xff]  ;;  %v2842_v41 = vld [vmem:[%s13808_s28 + $0xab8] sm:$0xff] }
 0x5e9   : > { %v3449_v19 = vld [vmem:[%s13808_s28 + $0x1db0] sm:$0xff]  ;;  %v12608_v33 = vcombine.high %v3193_v50, %v3201_v35  ;;  %v12607_v11 = vcombine.low %v3193_v50, %v3201_v35  ;;  %v2850_v12 = vld [vmem:[%s13808_s28 + $0xaf8] sm:$0xff] }
 0x5ea   : > { %v3457_v61 = vld [vmem:[%s13808_s28 + $0x1df0] sm:$0xff]  ;;  %v2570_v50 = vld [vmem:[%s13808_s28 + $0x238] sm:$0xff] }
 0x5eb   : > { %9776 = vmatpush1.bf16.msra.mxu0 %v12431_v38  ;;  %9819 = vmatpush1.bf16.msra.mxu1 %v12687_v46  ;;  %v12864_v34 = vcombine.high %v3449_v19, %v3457_v61  ;;  %v3177_v32 = vld [vmem:[%s13808_s28 + $0x1530] sm:$0xff]  ;;  %v12863_v62 = vcombine.low %v3449_v19, %v3457_v61  ;;  %v2578_v35 = vld [vmem:[%s13808_s28 + $0x278] sm:$0xff] }
 0x5ec   : > { %9777 = vmatprep.subr.bf16.mxu0 %v12672_v9  ;;  %9820 = vmatprep.subr.bf16.mxu1 %v12928_v59  ;;  %v3185_v28 = vld [vmem:[%s13808_s28 + $0x1570] sm:$0xff]  ;;  %v2826_v19 = vld [vmem:[%s13808_s28 + $0xa38] sm:$0xff] }
 0x5ed   : > { %v3433_v25 = vld [vmem:[%s13808_s28 + $0x1d30] sm:$0xff]  ;;  %v12592_v48 = vcombine.high %v3177_v32, %v3185_v28  ;;  %v12591_v36 = vcombine.low %v3177_v32, %v3185_v28  ;;  %v2834_v61 = vld [vmem:[%s13808_s28 + $0xa78] sm:$0xff] }
 0x5ee   : > { %v3441_v49 = vld [vmem:[%s13808_s28 + $0x1d70] sm:$0xff]  ;;  %v2554_v32 = vld [vmem:[%s13808_s28 + $0x1b8] sm:$0xff] }
 0x5ef   : > { %9778 = vmatpush2.bf16.msra.mxu0 %v12671_v4  ;;  %9821 = vmatpush2.bf16.msra.mxu1 %v12927_v37  ;;  %v12848_v26 = vcombine.high %v3433_v25, %v3441_v49  ;;  %v3161_v43 = vld [vmem:[%s13808_s28 + $0x14b0] sm:$0xff]  ;;  %v12847_v2 = vcombine.low %v3433_v25, %v3441_v49  ;;  %v2562_v28 = vld [vmem:[%s13808_s28 + $0x1f8] sm:$0xff]  ;;  %v11985_v49 = vcombine.low %v2570_v50, %v2578_v35 }
 0x5f0   : > { %9779 = vmatprep.subr.bf16.mxu0 %v12656_v7  ;;  %9822 = vmatprep.subr.bf16.mxu1 %v12912_v18  ;;  %v3169_v54 = vld [vmem:[%s13808_s28 + $0x14f0] sm:$0xff]  ;;  %v12034_v7 = vcombine.high %v2618_v0, %v2626_v40  ;;  %v12290_v18 = vcombine.high %v2874_v21, %v2882_v60  ;;  %v2810_v25 = vld [vmem:[%s13808_s28 + $0x9b8] sm:$0xff] }
 0x5f1   : > { %v3417_v44 = vld [vmem:[%s13808_s28 + $0x1cb0] sm:$0xff]  ;;  %v12576_v29 = vcombine.high %v3161_v43, %v3169_v54  ;;  %v12575_v38 = vcombine.low %v3161_v43, %v3169_v54  ;;  %v2794_v43 = vld [vmem:[%s13808_s28 + $0x938] sm:$0xff] }
 0x5f2   : > { %v3425_v31 = vld [vmem:[%s13808_s28 + $0x1cf0] sm:$0xff]  ;;  %v2802_v54 = vld [vmem:[%s13808_s28 + $0x978] sm:$0xff] }
 0x5f3   : > { %9780 = vmatpush2.bf16.msra.mxu0 %v12655_v27  ;;  %9823 = vmatpush2.bf16.msra.mxu1 %v12911_v51  ;;  %v12832_v15 = vcombine.high %v3417_v44, %v3425_v31  ;;  %v3145_v17 = vld [vmem:[%s13808_s28 + $0x1430] sm:$0xff]  ;;  %v12831_v46 = vcombine.low %v3417_v44, %v3425_v31  ;;  %v12033_v27 = vcombine.low %v2618_v0, %v2626_v40  ;;  %v2762_v0 = vld [vmem:[%s13808_s28 + $0x838] sm:$0xff] }
 0x5f4   : > { %9781 = vmatprep.subr.bf16.mxu0 %v12640_v57  ;;  %9824 = vmatprep.subr.bf16.mxu1 %v12896_v24  ;;  %v3153_v63 = vld [vmem:[%s13808_s28 + $0x1470] sm:$0xff]  ;;  %v12289_v51 = vcombine.low %v2874_v21, %v2882_v60  ;;  %v12018_v57 = vcombine.high %v2602_v23, %v2610_v20  ;;  %v12274_v24 = vcombine.high %v2858_v53, %v2866_v16  ;;  %v2770_v40 = vld [vmem:[%s13808_s28 + $0x878] sm:$0xff] }
 0x5f5   : > { %v3401_v56 = vld [vmem:[%s13808_s28 + $0x1c30] sm:$0xff]  ;;  %v12560_v9 = vcombine.high %v3145_v17, %v3153_v63  ;;  %v12559_v4 = vcombine.low %v3145_v17, %v3153_v63  ;;  %v11969_v44 = vcombine.low %v2554_v32, %v2562_v28  ;;  %v2778_v17 = vld [vmem:[%s13808_s28 + $0x8b8] sm:$0xff] }
 0x5f6   : > { %v3409_v55 = vld [vmem:[%s13808_s28 + $0x1c70] sm:$0xff]  ;;  %v2786_v63 = vld [vmem:[%s13808_s28 + $0x8f8] sm:$0xff] }
 0x5f7   : > { %9782 = vmatpush2.bf16.msra.mxu0 %v12639_v10  ;;  %9825 = vmatpush2.bf16.msra.mxu1 %v12895_v14  ;;  %v12816_v59 = vcombine.high %v3401_v56, %v3409_v55  ;;  %v12815_v37 = vcombine.low %v3401_v56, %v3409_v55  ;;  %v12017_v10 = vcombine.low %v2602_v23, %v2610_v20  ;;  %v3002_v23 = vld [vmem:[%s13808_s28 + $0xfb8] sm:$0xff] }
 0x5f8   : > { %9783 = vmatprep.subr.bf16.mxu0 %v12624_v39  ;;  %9826 = vmatprep.subr.bf16.mxu1 %v12880_v45  ;;  %v12273_v14 = vcombine.low %v2858_v53, %v2866_v16  ;;  %v12002_v39 = vcombine.high %v2586_v52, %v2594_v22  ;;  %v12258_v45 = vcombine.high %v2842_v41, %v2850_v12  ;;  %v3010_v20 = vld [vmem:[%s13808_s28 + $0xff8] sm:$0xff] }
 0x5f9   : > { %v12209_v55 = vcombine.low %v2794_v43, %v2802_v54  ;;  %v12193_v60 = vcombine.low %v2778_v17, %v2786_v63  ;;  %v12177_v16 = vcombine.low %v2762_v0, %v2770_v40 }
 0x5fb   : > { %9784 = vmatpush2.bf16.msra.mxu0 %v12623_v13  ;;  %9827 = vmatpush2.bf16.msra.mxu1 %v12879_v47  ;;  %v12001_v13 = vcombine.low %v2586_v52, %v2594_v22  ;;  %v12257_v47 = vcombine.low %v2842_v41, %v2850_v12  ;;  %v2986_v52 = vld [vmem:[%s13808_s28 + $0xf38] sm:$0xff]  ;;  %v12417_v12 = vcombine.low %v3002_v23, %v3010_v20 }
 0x5fc   : > { %9785 = vmatprep.subr.bf16.mxu0 %v12608_v33  ;;  %9828 = vmatprep.subr.bf16.mxu1 %v12864_v34  ;;  %v11986_v33 = vcombine.high %v2570_v50, %v2578_v35  ;;  %v12242_v34 = vcombine.high %v2826_v19, %v2834_v61  ;;  %v2994_v22 = vld [vmem:[%s13808_s28 + $0xf78] sm:$0xff] }
 0x5fd   : > { %v2970_v50 = vld [vmem:[%s13808_s28 + $0xeb8] sm:$0xff] }
 0x5fe   : > { %v2978_v35 = vld [vmem:[%s13808_s28 + $0xef8] sm:$0xff] }
 0x5ff   : > { %9786 = vmatpush2.bf16.msra.mxu0 %v12607_v11  ;;  %9829 = vmatpush2.bf16.msra.mxu1 %v12863_v62  ;;  %v11970_v11 = vcombine.high %v2554_v32, %v2562_v28  ;;  %v2954_v32 = vld [vmem:[%s13808_s28 + $0xe38] sm:$0xff] }
 0x600   : > { %9787 = vmatprep.subr.bf16.mxu0 %v12592_v48  ;;  %9830 = vmatprep.subr.bf16.mxu1 %v12848_v26  ;;  %v2538_v48 = vld [vmem:[%s13808_s28 + $0x138] sm:$0xff] }
 0x601   : > { %v2546_v26 = vld [vmem:[%s13808_s28 + $0x178] sm:$0xff] }
 0x602   : > { %v11953_v56 = vcombine.low %v2538_v48, %v2546_v26  ;;  %v2962_v28 = vld [vmem:[%s13808_s28 + $0xe78] sm:$0xff] }
 0x603   : > { %9788 = vmatpush2.bf16.msra.mxu0 %v12591_v36  ;;  %9831 = vmatpush2.bf16.msra.mxu1 %v12847_v2  ;;  %v11954_v36 = vcombine.high %v2538_v48, %v2546_v26  ;;  %v12210_v2 = vcombine.high %v2794_v43, %v2802_v54  ;;  %v2938_v48 = vld [vmem:[%s13808_s28 + $0xdb8] sm:$0xff]  ;;  %v12369_v54 = vcombine.low %v2954_v32, %v2962_v28 }
 0x604   : > { %9789 = vmatprep.subr.bf16.mxu0 %v12576_v29  ;;  %9832 = vmatprep.subr.bf16.mxu1 %v12832_v15  ;;  %v2522_v29 = vld [vmem:[%s13808_s28 + $0xb8] sm:$0xff] }
 0x605   : > { %v2530_v15 = vld [vmem:[%s13808_s28 + $0xf8] sm:$0xff] }
 0x606   : > { %v11937_v21 = vcombine.low %v2522_v29, %v2530_v15  ;;  %v2946_v26 = vld [vmem:[%s13808_s28 + $0xdf8] sm:$0xff] }
 0x607   : > { %9790 = vmatpush2.bf16.msra.mxu0 %v12575_v38  ;;  %9833 = vmatpush2.bf16.msra.mxu1 %v12831_v46  ;;  %v11938_v38 = vcombine.high %v2522_v29, %v2530_v15  ;;  %v12194_v46 = vcombine.high %v2778_v17, %v2786_v63  ;;  %v2922_v29 = vld [vmem:[%s13808_s28 + $0xd38] sm:$0xff]  ;;  %v12353_v63 = vcombine.low %v2938_v48, %v2946_v26 }
 0x608   : > { %9791 = vmatprep.subr.bf16.mxu0 %v12560_v9  ;;  %9834 = vmatprep.subr.bf16.mxu1 %v12816_v59  ;;  %v2506_v9 = vld [vmem:[%s13808_s28 + $0x38] sm:$0xff] }
 0x609   : > { %v2514_v59 = vld [vmem:[%s13808_s28 + $0x78] sm:$0xff] }
 0x60a   : > { %v11921_v53 = vcombine.low %v2506_v9, %v2514_v59  ;;  %v2930_v15 = vld [vmem:[%s13808_s28 + $0xd78] sm:$0xff] }
 0x60b   : > { %9792 = vmatpush2.bf16.msra.mxu0 %v12559_v4  ;;  %9835 = vmatpush2.bf16.msra.mxu1 %v12815_v37  ;;  %v11922_v4 = vcombine.high %v2506_v9, %v2514_v59  ;;  %v12178_v37 = vcombine.high %v2762_v0, %v2770_v40  ;;  %v2906_v9 = vld [vmem:[%s13808_s28 + $0xcb8] sm:$0xff] }
 0x60c   : > { %9847 = vmatprep.subr.bf16.mxu0 %v12034_v7  ;;  %9890 = vmatprep.subr.bf16.mxu1 %v12290_v18  ;;  %v2746_v7 = vld [vmem:[%s13808_s28 + $0x7b8] sm:$0xff] }
 0x60d   : > { %v2754_v18 = vld [vmem:[%s13808_s28 + $0x7f8] sm:$0xff] }
 0x60e   : > { %9794 = vmatmul.mubr.bf16.vlgmr.msra.gmra.mxu0 %v14606_v6  ;;  %9837 = vmatmul.mubr.bf16.vlgmr.msra.gmra.mxu1 %v14610_v1  ;;  %v12161_v41 = vcombine.low %v2746_v7, %v2754_v18  ;;  %v2914_v59 = vld [vmem:[%s13808_s28 + $0xcf8] sm:$0xff]  ;;  %v9537_v40 = vpop.f32.mrf.mxu0 }
 0x60f   : > { %9848 = vmatpush1.bf16.msra.mxu0 %v12033_v27  ;;  %9891 = vmatpush1.bf16.msra.mxu1 %v12289_v51  ;;  %v12162_v27 = vcombine.high %v2746_v7, %v2754_v18  ;;  %v12418_v51 = vcombine.high %v3002_v23, %v3010_v20  ;;  %v2634_v7 = vld [vmem:[%s13808_s28 + $0x438] sm:$0xff] }
 0x610   : > { %9849 = vmatprep.subr.bf16.mxu0 %v12018_v57  ;;  %9892 = vmatprep.subr.bf16.mxu1 %v12274_v24  ;;  %v2730_v57 = vld [vmem:[%s13808_s28 + $0x738] sm:$0xff] }
 0x611   : > { %9879 = vmatprep.mubr.bf16.mxu0 %v14470_v30  ;;  %9922 = vmatprep.mubr.bf16.mxu1 %v14476_v5  ;;  %v2818_v30 = vld [vmem:[%s13808_s28 + $0x9f8] sm:$0xff]  ;;  %v12241_v5 = vcombine.low %v2826_v19, %v2834_v61  ;;  %v12401_v61 = vcombine.low %v2986_v52, %v2994_v22 }
 0x612   : > { %v12226_v62 = vcombine.high %v2810_v25, %v2818_v30  ;;  %v12225_v31 = vcombine.low %v2810_v25, %v2818_v30  ;;  %v2738_v24 = vld [vmem:[%s13808_s28 + $0x778] sm:$0xff]  ;;  %v12385_v30 = vcombine.low %v2970_v50, %v2978_v35 }
 0x613   : > { %9850 = vmatpush1.bf16.msra.mxu0 %v12017_v10  ;;  %9893 = vmatpush1.bf16.msra.mxu1 %v12273_v14  ;;  %v12146_v10 = vcombine.high %v2730_v57, %v2738_v24  ;;  %v12402_v14 = vcombine.high %v2986_v52, %v2994_v22  ;;  %v12145_v19 = vcombine.low %v2730_v57, %v2738_v24  ;;  %v2642_v18 = vld [vmem:[%s13808_s28 + $0x478] sm:$0xff] }
 0x614   : > { %9851 = vmatprep.subr.bf16.mxu0 %v12002_v39  ;;  %9894 = vmatprep.subr.bf16.mxu1 %v12258_v45  ;;  %v2714_v39 = vld [vmem:[%s13808_s28 + $0x6b8] sm:$0xff] }
 0x615   : > { %v2722_v45 = vld [vmem:[%s13808_s28 + $0x6f8] sm:$0xff] }
 0x616   : > { %v12129_v25 = vcombine.low %v2714_v39, %v2722_v45  ;;  %v2890_v23 = vld [vmem:[%s13808_s28 + $0xc38] sm:$0xff] }
 0x617   : > { %9852 = vmatpush1.bf16.msra.mxu0 %v12001_v13  ;;  %9895 = vmatpush1.bf16.msra.mxu1 %v12257_v47  ;;  %v12130_v13 = vcombine.high %v2714_v39, %v2722_v45  ;;  %v12386_v47 = vcombine.high %v2970_v50, %v2978_v35  ;;  %v2898_v20 = vld [vmem:[%s13808_s28 + $0xc78] sm:$0xff] }
 0x618   : > { %9853 = vmatprep.subr.bf16.mxu0 %v11986_v33  ;;  %9896 = vmatprep.subr.bf16.mxu1 %v12242_v34  ;;  %v2698_v33 = vld [vmem:[%s13808_s28 + $0x638] sm:$0xff]  ;;  %v12306_v24 = vcombine.high %v2890_v23, %v2898_v20  ;;  %v12305_v39 = vcombine.low %v2890_v23, %v2898_v20 }
 0x619   : > { %v2706_v34 = vld [vmem:[%s13808_s28 + $0x678] sm:$0xff] }
 0x61a   : > { %v12113_v43 = vcombine.low %v2698_v33, %v2706_v34  ;;  %v3130_v52 = vld [vmem:[%s13808_s28 + $0x13b8] sm:$0xff] }
 0x61b   : > { %9854 = vmatpush1.bf16.msra.mxu0 %v11985_v49  ;;  %9897 = vmatpush1.bf16.msra.mxu1 %v12241_v5  ;;  %v12114_v49 = vcombine.high %v2698_v33, %v2706_v34  ;;  %v12370_v5 = vcombine.high %v2954_v32, %v2962_v28  ;;  %v3138_v22 = vld [vmem:[%s13808_s28 + $0x13f8] sm:$0xff] }
 0x61c   : > { %9855 = vmatprep.subr.bf16.mxu0 %v11970_v11  ;;  %9898 = vmatprep.subr.bf16.mxu1 %v12226_v62  ;;  %v2682_v11 = vld [vmem:[%s13808_s28 + $0x5b8] sm:$0xff]  ;;  %v12546_v45 = vcombine.high %v3130_v52, %v3138_v22  ;;  %v12545_v33 = vcombine.low %v3130_v52, %v3138_v22 }
 0x61d   : > { %v2690_v62 = vld [vmem:[%s13808_s28 + $0x5f8] sm:$0xff] }
 0x61e   : > { %v12097_v17 = vcombine.low %v2682_v11, %v2690_v62  ;;  %v3322_v22 = vld [vmem:[%s13808_s28 + $0x19b8] sm:$0xff] }
 0x61f   : > { %9856 = vmatpush1.bf16.msra.mxu0 %v11969_v44  ;;  %9899 = vmatpush1.bf16.msra.mxu1 %v12225_v31  ;;  %v12098_v44 = vcombine.high %v2682_v11, %v2690_v62  ;;  %v12354_v31 = vcombine.high %v2938_v48, %v2946_v26  ;;  %v3106_v11 = vld [vmem:[%s13808_s28 + $0x12f8] sm:$0xff] }
 0x620   : > { %9857 = vmatprep.subr.bf16.mxu0 %v11954_v36  ;;  %9900 = vmatprep.subr.bf16.mxu1 %v12210_v2  ;;  %v2666_v36 = vld [vmem:[%s13808_s28 + $0x538] sm:$0xff] }
 0x621   : > { %v2674_v2 = vld [vmem:[%s13808_s28 + $0x578] sm:$0xff] }
 0x622   : > { %v12081_v0 = vcombine.low %v2666_v36, %v2674_v2  ;;  %v3354_v62 = vld [vmem:[%s13808_s28 + $0x1ab8] sm:$0xff] }
 0x623   : > { %9858 = vmatpush1.bf16.msra.mxu0 %v11953_v56  ;;  %9901 = vmatpush1.bf16.msra.mxu1 %v12209_v55  ;;  %v12082_v56 = vcombine.high %v2666_v36, %v2674_v2  ;;  %v12338_v55 = vcombine.high %v2922_v29, %v2930_v15  ;;  %v3362_v48 = vld [vmem:[%s13808_s28 + $0x1af8] sm:$0xff]  ;;  %v2477_v36 = vld [vmem:[#allocation3 + $0xe8] sm:$0xff] }
 0x624   : > { %9859 = vmatprep.subr.bf16.mxu0 %v11938_v38  ;;  %9902 = vmatprep.subr.bf16.mxu1 %v12194_v46  ;;  %v2650_v38 = vld [vmem:[%s13808_s28 + $0x4b8] sm:$0xff]  ;;  %v12769_v23 = vcombine.low %v3354_v62, %v3362_v48 }
 0x625   : > { %v2658_v46 = vld [vmem:[%s13808_s28 + $0x4f8] sm:$0xff] }
 0x627   : > { %9860 = vmatpush1.bf16.msra.mxu0 %v11937_v21  ;;  %9903 = vmatpush1.bf16.msra.mxu1 %v12193_v60  ;;  %v12337_v21 = vcombine.low %v2922_v29, %v2930_v15  ;;  %v12066_v60 = vcombine.high %v2650_v38, %v2658_v46 }
 0x628   : > { %9861 = vmatprep.subr.bf16.mxu0 %v11922_v4  ;;  %9904 = vmatprep.subr.bf16.mxu1 %v12178_v37  ;;  %v9580_v4 = vpop.f32.mrf.mxu1  ;;  %v12322_v37 = vcombine.high %v2906_v9, %v2914_v59 }
 0x62a   : > { %v9582_v57 = vpop.f32.mrf.mxu1 }
 0x62b   : > { %9862 = vmatpush1.bf16.msra.mxu0 %v11921_v53  ;;  %9905 = vmatpush1.bf16.msra.mxu1 %v12177_v16  ;;  %v12065_v53 = vcombine.low %v2650_v38, %v2658_v46  ;;  %v9539_v16 = vpop.f32.mrf.mxu0  ;;  %v3082_v38 = vld [vmem:[%s13808_s28 + $0x1238] sm:$0xff] }
 0x62c   : > { %9863 = vmatprep.subr.bf16.mxu0 %v12162_v27  ;;  %9906 = vmatprep.subr.bf16.mxu1 %v12418_v51  ;;  %v12321_v27 = vcombine.low %v2906_v9, %v2914_v59  ;;  %v12050_v51 = vcombine.high %v2634_v7, %v2642_v18  ;;  %v9584_v50 = vpop.f32.mrf.mxu1  ;;  %v2478_v46 = vld [vmem:[#allocation3 + $0xb8] sm:$0xff] }
 0x62f   : > { %9864 = vmatpush2.bf16.msra.mxu0 %v12161_v41  ;;  %9907 = vmatpush2.bf16.msra.mxu1 %v12417_v12  ;;  %v3386_v41 = vld [vmem:[%s13808_s28 + $0x1bb8] sm:$0xff] }
 0x630   : > { %9865 = vmatprep.subr.bf16.mxu0 %v12146_v10  ;;  %9908 = vmatprep.subr.bf16.mxu1 %v12402_v14  ;;  %v3394_v12 = vld [vmem:[%s13808_s28 + $0x1bf8] sm:$0xff]  ;;  %v12049_v10 = vcombine.low %v2634_v7, %v2642_v18  ;;  %v9541_v14 = vpop.f32.mrf.mxu0  ;;  %v2493_v18 = vld [vmem:[#allocation3 + $0x10] sm:$0xff] }
 0x631   : > { %v12802_v35 = vcombine.high %v3386_v41, %v3394_v12  ;;  %v12801_v32 = vcombine.low %v3386_v41, %v3394_v12  ;;  %v3330_v41 = vld [vmem:[%s13808_s28 + $0x19f8] sm:$0xff] }
 0x632   : > { %v9543_v34 = vpop.f32.mrf.mxu0 }
 0x633   : > { %9866 = vmatpush2.bf16.msra.mxu0 %v12145_v19  ;;  %9909 = vmatpush2.bf16.msra.mxu1 %v12401_v61  ;;  %v3114_v19 = vld [vmem:[%s13808_s28 + $0x1338] sm:$0xff] }
 0x634   : > { %9867 = vmatprep.subr.bf16.mxu0 %v12130_v13  ;;  %9910 = vmatprep.subr.bf16.mxu1 %v12386_v47  ;;  %v3122_v61 = vld [vmem:[%s13808_s28 + $0x1378] sm:$0xff] }
 0x635   : > { %v3370_v13 = vld [vmem:[%s13808_s28 + $0x1b38] sm:$0xff]  ;;  %v12530_v28 = vcombine.high %v3114_v19, %v3122_v61 }
 0x636   : > { %v3378_v47 = vld [vmem:[%s13808_s28 + $0x1b78] sm:$0xff] }
 0x637   : > { %9868 = vmatpush2.bf16.msra.mxu0 %v12129_v25  ;;  %9911 = vmatpush2.bf16.msra.mxu1 %v12385_v30  ;;  %v15517_v25 = vld [vmem:[%s13808_s28 + $0x12b8] sm:$0xff]  ;;  %v9581_v30 = vadd.f32 %v9580_v4, %v9537_v40  ;;  %v12785_v29 = vcombine.low %v3370_v13, %v3378_v47 }
 0x638   : > { %9869 = vmatprep.subr.bf16.mxu0 %v12114_v49  ;;  %9912 = vmatprep.subr.bf16.mxu1 %v12370_v5  ;;  %v9586_v49 = vpop.f32.mrf.mxu1  ;;  %v12786_v5 = vcombine.high %v3370_v13, %v3378_v47  ;;  %v12514_v15 = vcombine.high %v15517_v25, %v3106_v11  ;;  %v12513_v59 = vcombine.low %v15517_v25, %v3106_v11  ;;  %v3346_v40 = vld [vmem:[%s13808_s28 + $0x1a78] sm:$0xff] }
 0x639   : > { %v3306_v13 = vld [vmem:[%s13808_s28 + $0x1938] sm:$0xff] }
 0x63a   : > { %v3314_v47 = vld [vmem:[%s13808_s28 + $0x1978] sm:$0xff] }
 0x63b   : > { %9870 = vmatpush2.bf16.msra.mxu0 %v12113_v43  ;;  %9913 = vmatpush2.bf16.msra.mxu1 %v12369_v54  ;;  %v9583_v43 = vadd.f32 %v9582_v57, %v9539_v16  ;;  %v3074_v57 = vld [vmem:[%s13808_s28 + $0x11f8] sm:$0xff] }
 0x63c   : > { %9871 = vmatprep.subr.bf16.mxu0 %v12098_v44  ;;  %9914 = vmatprep.subr.bf16.mxu1 %v12354_v31  ;;  %v12529_v31 = vcombine.low %v3114_v19, %v3122_v61  ;;  %v3050_v19 = vld [vmem:[%s13808_s28 + $0x1138] sm:$0xff] }
 0x63d   : > { %v3058_v61 = vld [vmem:[%s13808_s28 + $0x1178] sm:$0xff] }
 0x63e   : > { %v3034_v25 = vld [vmem:[%s13808_s28 + $0x10b8] sm:$0xff]  ;;  %v12465_v11 = vcombine.low %v3050_v19, %v3058_v61 }
 0x63f   : > { %9872 = vmatpush2.bf16.msra.mxu0 %v12097_v17  ;;  %9915 = vmatpush2.bf16.msra.mxu1 %v12353_v63  ;;  %v12770_v17 = vcombine.high %v3354_v62, %v3362_v48  ;;  %v12721_v62 = vcombine.low %v3306_v13, %v3314_v47 }
 0x640   : > { %9873 = vmatprep.subr.bf16.mxu0 %v12082_v56  ;;  %9916 = vmatprep.subr.bf16.mxu1 %v12338_v55 }
 0x643   : > { %9874 = vmatpush2.bf16.msra.mxu0 %v12081_v0  ;;  %9917 = vmatpush2.bf16.msra.mxu1 %v12337_v21  ;;  %v3338_v0 = vld [vmem:[%s13808_s28 + $0x1a38] sm:$0xff]  ;;  %v9587_v21 = vadd.f32 %v9586_v49, %v9543_v34  ;;  %v12737_v34 = vcombine.low %v3322_v22, %v3330_v41 }
 0x644   : > { %9875 = vmatprep.subr.bf16.mxu0 %v12066_v60  ;;  %9918 = vmatprep.subr.bf16.mxu1 %v12322_v37  ;;  %v3290_v49 = vld [vmem:[%s13808_s28 + $0x18b8] sm:$0xff] }
 0x647   : > { %9876 = vmatpush2.bf16.msra.mxu0 %v12065_v53  ;;  %9919 = vmatpush2.bf16.msra.mxu1 %v12321_v27  ;;  %v12754_v27 = vcombine.high %v3338_v0, %v3346_v40 }
 0x648   : > { %9877 = vmatprep.subr.bf16.mxu0 %v12050_v51  ;;  %9920 = vmatprep.subr.bf16.mxu1 %v12306_v24  ;;  %v3066_v51 = vld [vmem:[%s13808_s28 + $0x11b8] sm:$0xff]  ;;  %v2494_v24 = vld [vmem:[#allocation3 + $0x28] sm:$0xff] }
 0x64b   : > { %9878 = vmatpush2.bf16.msra.mxu0 %v12049_v10  ;;  %9921 = vmatpush2.bf16.msra.mxu1 %v12305_v39  ;;  %v12753_v39 = vcombine.low %v3338_v0, %v3346_v40  ;;  %v3498_v0 = vld [vmem:[%s13808_s28 + $0x1f38] sm:$0xff] }
 0x64c   : > { %9933 = vmatprep.subr.bf16.mxu0 %v12546_v45  ;;  %9976 = vmatprep.subr.bf16.mxu1 %v12802_v35  ;;  %v12482_v45 = vcombine.high %v3066_v51, %v3074_v57  ;;  %v12738_v35 = vcombine.high %v3322_v22, %v3330_v41  ;;  %v3506_v40 = vld [vmem:[%s13808_s28 + $0x1f78] sm:$0xff] }
 0x64e   : > { %v9623_v26 = vpop.f32.mrf.mxu0  ;;  %9880 = vmatmul.mubr.bf16.vlgmr.msra.gmra.mxu0 %v14523_v8  ;;  %v9666_v44 = vpop.f32.mrf.mxu1  ;;  %9923 = vmatmul.mubr.bf16.vlgmr.msra.gmra.mxu1 %v14528_v58  ;;  %v9585_v8 = vadd.f32 %v9584_v50, %v9541_v14  ;;  %v3090_v58 = vld [vmem:[%s13808_s28 + $0x1278] sm:$0xff] }
 0x64f   : > { %v9624_v54 = vadd.f32 %v9623_v26, %v9581_v30  ;;  %9934 = vmatpush1.bf16.msra.mxu0 %v12545_v33  ;;  %9977 = vmatpush1.bf16.msra.mxu1 %v12801_v32  ;;  %v12498_v20 = vcombine.high %v3082_v38, %v3090_v58  ;;  %v12497_v14 = vcombine.low %v3082_v38, %v3090_v58  ;;  %v3042_v30 = vld [vmem:[%s13808_s28 + $0x10f8] sm:$0xff] }
 0x650   : > { %v9625_v2 = vpop.f32.mrf.mxu0  ;;  %9935 = vmatprep.subr.bf16.mxu0 %v12530_v28  ;;  %v9668_v55 = vpop.f32.mrf.mxu1  ;;  %9978 = vmatprep.subr.bf16.mxu1 %v12786_v5  ;;  %v12481_v33 = vcombine.low %v3066_v51, %v3074_v57  ;;  %v12466_v32 = vcombine.high %v3050_v19, %v3058_v61  ;;  %v12722_v28 = vcombine.high %v3306_v13, %v3314_v47  ;;  %v3298_v5 = vld [vmem:[%s13808_s28 + $0x18f8] sm:$0xff] }
 0x651   : > { %v9667_v63 = vadd.f32 %v9666_v44, %v9624_v54  ;;  %v9626_v56 = vadd.f32 %v9625_v2, %v9583_v43  ;;  %9965 = vmatprep.mubr.bf16.mxu0 %v14534_v3  ;;  %10008 = vmatprep.mubr.bf16.mxu1 %v14539_v42  ;;  %v12450_v48 = vcombine.high %v3034_v25, %v3042_v30  ;;  %v3018_v43 = vld [vmem:[%s13808_s28 + $0x1038] sm:$0xff] }
 0x652   : > { %v9627_v9 = vpop.f32.mrf.mxu0  ;;  %v9670_v7 = vpop.f32.mrf.mxu1  ;;  %v12706_v26 = vcombine.high %v3290_v49, %v3298_v5  ;;  %v3026_v54 = vld [vmem:[%s13808_s28 + $0x1078] sm:$0xff]  ;;  %v12705_v2 = vcombine.low %v3290_v49, %v3298_v5 }
 0x653   : > { %v10029_v60 = vadd.f32 %v9667_v63, %v2477_v36  ;;  %v9669_v4 = vadd.f32 %v9668_v55, %v9626_v56  ;;  %v9628_v37 = vadd.f32 %v9627_v9, %v9585_v8  ;;  %9936 = vmatpush1.bf16.msra.mxu0 %v12529_v31  ;;  %9979 = vmatpush1.bf16.msra.mxu1 %v12785_v29  ;;  %v3274_v44 = vld [vmem:[%s13808_s28 + $0x1838] sm:$0xff] }
 0x654   : > { %v9629_v3 = vpop.f32.mrf.mxu0  ;;  %9937 = vmatprep.subr.bf16.mxu0 %v12514_v15  ;;  %9980 = vmatprep.subr.bf16.mxu1 %v12770_v17  ;;  %v9672_v52 = vpop.f32.mrf.mxu1  ;;  %v3282_v31 = vld [vmem:[%s13808_s28 + $0x1878] sm:$0xff]  ;;  %v12449_v36 = vcombine.low %v3034_v25, %v3042_v30  ;;  %v12434_v29 = vcombine.high %v3018_v43, %v3026_v54  ;;  %v12433_v55 = vcombine.low %v3018_v43, %v3026_v54 }
 0x655   : > { %10061 = vst [vmem:[#allocation3 + $0xe8] sm:$0xff] %v10029_v60  ;;  %v10030_v53 = vadd.f32 %v9669_v4, %v2478_v46  ;;  %v9671_v16 = vadd.f32 %v9670_v7, %v9628_v37  ;;  %v9630_v42 = vadd.f32 %v9629_v3, %v9587_v21  ;;  %v12690_v15 = vcombine.high %v3274_v44, %v3282_v31  ;;  %v3258_v17 = vld [vmem:[%s13808_s28 + $0x17b8] sm:$0xff] }
 0x656   : > { %v3266_v8 = vld [vmem:[%s13808_s28 + $0x17f8] sm:$0xff]  ;;  %v12689_v38 = vcombine.low %v3274_v44, %v3282_v31  ;;  %v12914_v37 = vcombine.high %v3498_v0, %v3506_v40 }
 0x657   : > { %10062 = vst [vmem:[#allocation3 + $0xb8] sm:$0xff] %v10030_v53  ;;  %v10045_v12 = vadd.f32 %v9671_v16, %v2493_v18  ;;  %v9673_v10 = vadd.f32 %v9672_v52, %v9630_v42  ;;  %9938 = vmatpush1.bf16.msra.mxu0 %v12513_v59  ;;  %9981 = vmatpush1.bf16.msra.mxu1 %v12769_v23  ;;  %v3514_v63 = vld [vmem:[%s13808_s28 + $0x1fb8] sm:$0xff] }
 0x658   : > { %9939 = vmatprep.subr.bf16.mxu0 %v12498_v20  ;;  %9982 = vmatprep.subr.bf16.mxu1 %v12754_v27  ;;  %v3522_v56 = vld [vmem:[%s13808_s28 + $0x1ff8] sm:$0xff]  ;;  %v12674_v58 = vcombine.high %v3258_v17, %v3266_v8  ;;  %v12673_v21 = vcombine.low %v3258_v17, %v3266_v8  ;;  %v12913_v53 = vcombine.low %v3498_v0, %v3506_v40 }
 0x659   : > { %10077 = vst [vmem:[#allocation3 + $0x10] sm:$0xff] %v10045_v12  ;;  %v10046_v50 = vadd.f32 %v9673_v10, %v2494_v24  ;;  %v12930_v46 = vcombine.high %v3514_v63, %v3522_v56  ;;  %v3242_v9 = vld [vmem:[%s13808_s28 + $0x1738] sm:$0xff]  ;;  %v12929_v60 = vcombine.low %v3514_v63, %v3522_v56 }
 0x65a   : > { %v3250_v59 = vld [vmem:[%s13808_s28 + $0x1778] sm:$0xff] }
 0x65b   : > { %10078 = vst [vmem:[#allocation3 + $0x28] sm:$0xff] %v10046_v50  ;;  %9940 = vmatpush1.bf16.msra.mxu0 %v12497_v14  ;;  %9983 = vmatpush1.bf16.msra.mxu1 %v12753_v39  ;;  %v12658_v4 = vcombine.high %v3242_v9, %v3250_v59  ;;  %v3226_v7 = vld [vmem:[%s13808_s28 + $0x16b8] sm:$0xff]  ;;  %v12657_v20 = vcombine.low %v3242_v9, %v3250_v59 }
 0x65c   : > { %9941 = vmatprep.subr.bf16.mxu0 %v12482_v45  ;;  %9984 = vmatprep.subr.bf16.mxu1 %v12738_v35  ;;  %v3234_v18 = vld [vmem:[%s13808_s28 + $0x16f8] sm:$0xff] }
 0x65d   : > { %v3482_v3 = vld [vmem:[%s13808_s28 + $0x1eb8] sm:$0xff]  ;;  %v12642_v16 = vcombine.high %v3226_v7, %v3234_v18  ;;  %v12641_v52 = vcombine.low %v3226_v7, %v3234_v18 }
 0x65e   : > { %v3490_v23 = vld [vmem:[%s13808_s28 + $0x1ef8] sm:$0xff] }
 0x65f   : > { %9942 = vmatpush1.bf16.msra.mxu0 %v12481_v33  ;;  %9985 = vmatpush1.bf16.msra.mxu1 %v12737_v34  ;;  %v12898_v42 = vcombine.high %v3482_v3, %v3490_v23  ;;  %v3210_v27 = vld [vmem:[%s13808_s28 + $0x1638] sm:$0xff]  ;;  %v12897_v22 = vcombine.low %v3482_v3, %v3490_v23 }
 0x660   : > { %9943 = vmatprep.subr.bf16.mxu0 %v12466_v32  ;;  %9986 = vmatprep.subr.bf16.mxu1 %v12722_v28  ;;  %v3218_v51 = vld [vmem:[%s13808_s28 + $0x1678] sm:$0xff] }
 0x661   : > { %v3466_v57 = vld [vmem:[%s13808_s28 + $0x1e38] sm:$0xff]  ;;  %v12626_v41 = vcombine.high %v3210_v27, %v3218_v51  ;;  %v12625_v50 = vcombine.low %v3210_v27, %v3218_v51 }
 0x662   : > { %v3474_v24 = vld [vmem:[%s13808_s28 + $0x1e78] sm:$0xff] }
 0x663   : > { %9944 = vmatpush1.bf16.msra.mxu0 %v12465_v11  ;;  %9987 = vmatpush1.bf16.msra.mxu1 %v12721_v62  ;;  %v12882_v12 = vcombine.high %v3466_v57, %v3474_v24  ;;  %v3194_v10 = vld [vmem:[%s13808_s28 + $0x15b8] sm:$0xff]  ;;  %v12881_v35 = vcombine.low %v3466_v57, %v3474_v24 }
 0x664   : > { %9945 = vmatprep.subr.bf16.mxu0 %v12450_v48  ;;  %9988 = vmatprep.subr.bf16.mxu1 %v12706_v26  ;;  %v3202_v14 = vld [vmem:[%s13808_s28 + $0x15f8] sm:$0xff] }
 0x665   : > { %v3450_v39 = vld [vmem:[%s13808_s28 + $0x1db8] sm:$0xff]  ;;  %v12610_v19 = vcombine.high %v3194_v10, %v3202_v14  ;;  %v12609_v32 = vcombine.low %v3194_v10, %v3202_v14 }
 0x666   : > { %v3458_v45 = vld [vmem:[%s13808_s28 + $0x1df8] sm:$0xff] }
 0x667   : > { %9946 = vmatpush1.bf16.msra.mxu0 %v12449_v36  ;;  %9989 = vmatpush1.bf16.msra.mxu1 %v12705_v2  ;;  %v12866_v61 = vcombine.high %v3450_v39, %v3458_v45  ;;  %v3178_v13 = vld [vmem:[%s13808_s28 + $0x1538] sm:$0xff]  ;;  %v12865_v28 = vcombine.low %v3450_v39, %v3458_v45 }
 0x668   : > { %9947 = vmatprep.subr.bf16.mxu0 %v12434_v29  ;;  %9990 = vmatprep.subr.bf16.mxu1 %v12690_v15  ;;  %v3186_v47 = vld [vmem:[%s13808_s28 + $0x1578] sm:$0xff] }
 0x669   : > { %v3434_v33 = vld [vmem:[%s13808_s28 + $0x1d38] sm:$0xff]  ;;  %v12594_v25 = vcombine.high %v3178_v13, %v3186_v47  ;;  %v12593_v48 = vcombine.low %v3178_v13, %v3186_v47 }
 0x66a   : > { %v3442_v34 = vld [vmem:[%s13808_s28 + $0x1d78] sm:$0xff] }
 0x66b   : > { %9948 = vmatpush1.bf16.msra.mxu0 %v12433_v55  ;;  %9991 = vmatpush1.bf16.msra.mxu1 %v12689_v38  ;;  %v12850_v30 = vcombine.high %v3434_v33, %v3442_v34  ;;  %v3162_v49 = vld [vmem:[%s13808_s28 + $0x14b8] sm:$0xff]  ;;  %v12849_v26 = vcombine.low %v3434_v33, %v3442_v34 }
 0x66c   : > { %9949 = vmatprep.subr.bf16.mxu0 %v12674_v58  ;;  %9992 = vmatprep.subr.bf16.mxu1 %v12930_v46  ;;  %v3170_v5 = vld [vmem:[%s13808_s28 + $0x14f8] sm:$0xff] }
 0x66d   : > { %v3418_v11 = vld [vmem:[%s13808_s28 + $0x1cb8] sm:$0xff]  ;;  %v12578_v43 = vcombine.high %v3162_v49, %v3170_v5  ;;  %v12577_v29 = vcombine.low %v3162_v49, %v3170_v5 }
 0x66e   : > { %v3426_v62 = vld [vmem:[%s13808_s28 + $0x1cf8] sm:$0xff] }
 0x66f   : > { %9950 = vmatpush2.bf16.msra.mxu0 %v12673_v21  ;;  %9993 = vmatpush2.bf16.msra.mxu1 %v12929_v60  ;;  %v12834_v54 = vcombine.high %v3418_v11, %v3426_v62  ;;  %v3146_v44 = vld [vmem:[%s13808_s28 + $0x1438] sm:$0xff]  ;;  %v12833_v15 = vcombine.low %v3418_v11, %v3426_v62  ;;  %v2481_v62 = vld [vmem:[#allocation3 + $0x8] sm:$0xff] }
 0x670   : > { %9951 = vmatprep.subr.bf16.mxu0 %v12658_v4  ;;  %9994 = vmatprep.subr.bf16.mxu1 %v12914_v37  ;;  %v3154_v31 = vld [vmem:[%s13808_s28 + $0x1478] sm:$0xff] }
 0x671   : > { %v3402_v36 = vld [vmem:[%s13808_s28 + $0x1c38] sm:$0xff]  ;;  %v12562_v17 = vcombine.high %v3146_v44, %v3154_v31  ;;  %v12561_v63 = vcombine.low %v3146_v44, %v3154_v31 }
 0x672   : > { %v3410_v2 = vld [vmem:[%s13808_s28 + $0x1c78] sm:$0xff] }
 0x673   : > { %9952 = vmatpush2.bf16.msra.mxu0 %v12657_v20  ;;  %9995 = vmatpush2.bf16.msra.mxu1 %v12913_v53  ;;  %v12818_v8 = vcombine.high %v3402_v36, %v3410_v2  ;;  %v12817_v56 = vcombine.low %v3402_v36, %v3410_v2  ;;  %v2479_v18 = vld [vmem:[#allocation3 + $0x60] sm:$0xff]  ;;  %v2496_v14 = vld [vmem:[#allocation3 + $0xf8] sm:$0xff] }
 0x674   : > { %9953 = vmatprep.subr.bf16.mxu0 %v12642_v16  ;;  %9996 = vmatprep.subr.bf16.mxu1 %v12898_v42  ;;  %v2482_v31 = vld [vmem:[#allocation3 + $0x78] sm:$0xff] }
 0x677   : > { %9954 = vmatpush2.bf16.msra.mxu0 %v12641_v52  ;;  %9997 = vmatpush2.bf16.msra.mxu1 %v12897_v22  ;;  %v2495_v52 = vld [vmem:[#allocation3 + $0xa0] sm:$0xff] }
 0x678   : > { %9955 = vmatprep.subr.bf16.mxu0 %v12626_v41  ;;  %9998 = vmatprep.subr.bf16.mxu1 %v12882_v12 }
 0x67b   : > { %9956 = vmatpush2.bf16.msra.mxu0 %v12625_v50  ;;  %9999 = vmatpush2.bf16.msra.mxu1 %v12881_v35 }
 0x67c   : > { %9957 = vmatprep.subr.bf16.mxu0 %v12610_v19  ;;  %10000 = vmatprep.subr.bf16.mxu1 %v12866_v61 }
 0x67f   : > { %9958 = vmatpush2.bf16.msra.mxu0 %v12609_v32  ;;  %10001 = vmatpush2.bf16.msra.mxu1 %v12865_v28 }
 0x680   : > { %9959 = vmatprep.subr.bf16.mxu0 %v12594_v25  ;;  %10002 = vmatprep.subr.bf16.mxu1 %v12850_v30 }
 0x683   : > { %9960 = vmatpush2.bf16.msra.mxu0 %v12593_v48  ;;  %10003 = vmatpush2.bf16.msra.mxu1 %v12849_v26 }
 0x684   : > { %9961 = vmatprep.subr.bf16.mxu0 %v12578_v43  ;;  %10004 = vmatprep.subr.bf16.mxu1 %v12834_v54 }
 0x687   : > { %9962 = vmatpush2.bf16.msra.mxu0 %v12577_v29  ;;  %10005 = vmatpush2.bf16.msra.mxu1 %v12833_v15 }
 0x688   : > { %9963 = vmatprep.subr.bf16.mxu0 %v12562_v17  ;;  %10006 = vmatprep.subr.bf16.mxu1 %v12818_v8 }
 0x68b   : > { %9964 = vmatpush2.bf16.msra.mxu0 %v12561_v63  ;;  %10007 = vmatpush2.bf16.msra.mxu1 %v12817_v56  ;;  %v2497_v63 = vld [vmem:[#allocation3 + $0x20] sm:$0xff] }
 0x68e   : > { %9966 = vmatmul.mubr.bf16.vlgmr.msra.gmra.mxu0 %v14606_v6  ;;  %10009 = vmatmul.mubr.bf16.vlgmr.msra.gmra.mxu1 %v14610_v1  ;;  %v9709_v55 = vpop.f32.mrf.mxu0  ;;  %v9752_v38 = vpop.f32.mrf.mxu1  ;;  %v2480_v1 = vld [vmem:[#allocation3 + $0xf0] sm:$0xff] }
 0x68f   : > { %v9753_v40 = vadd.f32 %v9752_v38, %v9709_v55 }
 0x690   : > { %v9711_v58 = vpop.f32.mrf.mxu0  ;;  %v9754_v46 = vpop.f32.mrf.mxu1 }
 0x691   : > { %v9755_v4 = vadd.f32 %v9754_v46, %v9711_v58  ;;  %v2498_v46 = vld [vmem:[#allocation3 + $0x98] sm:$0xff] }
 0x692   : > { %v9713_v9 = vpop.f32.mrf.mxu0  ;;  %v9756_v59 = vpop.f32.mrf.mxu1 }
 0x693   : > { %v9757_v23 = vadd.f32 %v9756_v59, %v9713_v9 }
 0x694   : > { %v9715_v0 = vpop.f32.mrf.mxu0  ;;  %v9758_v21 = vpop.f32.mrf.mxu1 }
 0x695   : > { %v9759_v42 = vadd.f32 %v9758_v21, %v9715_v0 }
 0x6ce   : > { %v9795_v60 = vpop.f32.mrf.mxu0  ;;  %v9838_v7 = vpop.f32.mrf.mxu1 }
 0x6cf   : > { %v9796_v37 = vadd.f32 %v9795_v60, %v9753_v40 }
 0x6d0   : > { %v9797_v3 = vpop.f32.mrf.mxu0  ;;  %v9840_v53 = vpop.f32.mrf.mxu1 }
 0x6d1   : > { %v9839_v20 = vadd.f32 %v9838_v7, %v9796_v37  ;;  %v9798_v6 = vadd.f32 %v9797_v3, %v9755_v4 }
 0x6d2   : > { %v9799_v16 = vpop.f32.mrf.mxu0  ;;  %v9842_v24 = vpop.f32.mrf.mxu1 }
 0x6d3   : > { %v10031_v27 = vadd.f32 %v9839_v20, %v2479_v18  ;;  %v9841_v51 = vadd.f32 %v9840_v53, %v9798_v6  ;;  %v9800_v57 = vadd.f32 %v9799_v16, %v9757_v23 }
 0x6d4   : > { %v9801_v22 = vpop.f32.mrf.mxu0  ;;  %v9844_v39 = vpop.f32.mrf.mxu1 }
 0x6d5   : > { %10063 = vst [vmem:[#allocation3 + $0x60] sm:$0xff] %v10031_v27  ;;  %v10032_v41 = vadd.f32 %v9841_v51, %v2480_v1  ;;  %v9843_v12 = vadd.f32 %v9842_v24, %v9800_v57  ;;  %v9802_v10 = vadd.f32 %v9801_v22, %v9759_v42 }
 0x6d7   : > { %10064 = vst [vmem:[#allocation3 + $0xf0] sm:$0xff] %v10032_v41  ;;  %v10047_v45 = vadd.f32 %v9843_v12, %v2495_v52  ;;  %v9845_v50 = vadd.f32 %v9844_v39, %v9802_v10 }
 0x6d9   : > { %10079 = vst [vmem:[#allocation3 + $0xa0] sm:$0xff] %v10047_v45  ;;  %v10048_v35 = vadd.f32 %v9845_v50, %v2496_v14 }
 0x6db   : > { %10080 = vst [vmem:[#allocation3 + $0xf8] sm:$0xff] %v10048_v35 }
 0x70e   : > { %v9881_v19 = vpop.f32.mrf.mxu0  ;;  %v9924_v61 = vpop.f32.mrf.mxu1 }
 0x70f   : > { %v9925_v28 = vadd.f32 %v9924_v61, %v9881_v19 }
 0x710   : > { %v9883_v13 = vpop.f32.mrf.mxu0  ;;  %v9926_v47 = vpop.f32.mrf.mxu1 }
 0x711   : > { %v9927_v49 = vadd.f32 %v9926_v47, %v9883_v13 }
 0x712   : > { %v9885_v33 = vpop.f32.mrf.mxu0  ;;  %v9928_v34 = vpop.f32.mrf.mxu1 }
 0x713   : > { %v9929_v26 = vadd.f32 %v9928_v34, %v9885_v33 }
 0x714   : > { %v9887_v32 = vpop.f32.mrf.mxu0  ;;  %v9930_v25 = vpop.f32.mrf.mxu1 }
 0x715   : > { %v9931_v2 = vadd.f32 %v9930_v25, %v9887_v32 }
 0x74e   : > { %v9967_v30 = vpop.f32.mrf.mxu0  ;;  %v10010_v11 = vpop.f32.mrf.mxu1 }
 0x74f   : > { %v9968_v5 = vadd.f32 %v9967_v30, %v9925_v28 }
 0x750   : > { %v9969_v48 = vpop.f32.mrf.mxu0  ;;  %v10012_v44 = vpop.f32.mrf.mxu1 }
 0x751   : > { %v10011_v43 = vadd.f32 %v10010_v11, %v9968_v5  ;;  %v9970_v54 = vadd.f32 %v9969_v48, %v9927_v49 }
 0x752   : > { %v9971_v36 = vpop.f32.mrf.mxu0  ;;  %v10014_v8 = vpop.f32.mrf.mxu1 }
 0x753   : > { %v10033_v29 = vadd.f32 %v10011_v43, %v2481_v62  ;;  %v10013_v15 = vadd.f32 %v10012_v44, %v9970_v54  ;;  %v9972_v17 = vadd.f32 %v9971_v36, %v9929_v26 }
 0x754   : > { %v9973_v56 = vpop.f32.mrf.mxu0  ;;  %v10016_v9 = vpop.f32.mrf.mxu1 }
 0x755   : > { %10065 = vst [vmem:[#allocation3 + $0x8] sm:$0xff] %v10033_v29  ;;  %v10034_v55 = vadd.f32 %v10013_v15, %v2482_v31  ;;  %v10015_v38 = vadd.f32 %v10014_v8, %v9972_v17  ;;  %v9974_v58 = vadd.f32 %v9973_v56, %v9931_v2 }
 0x757   : > { %10066 = vst [vmem:[#allocation3 + $0x78] sm:$0xff] %v10034_v55  ;;  %v10049_v59 = vadd.f32 %v10015_v38, %v2497_v63  ;;  %v10017_v0 = vadd.f32 %v10016_v9, %v9974_v58  ;;  %10086 = sbr.rel (%p12931_p1) target bundleno = 2315 (0x90b), region = 112 }
 0x759   : > { %10081 = vst [vmem:[#allocation3 + $0x20] sm:$0xff] %v10049_v59  ;;  %v10050_v40 = vadd.f32 %v10017_v0, %v2498_v46 }
 0x75b   : > { %10082 = vst [vmem:[#allocation3 + $0x98] sm:$0xff] %v10050_v40 }
 0x75c   : > { %v10123_v21 = vlaneseq  ;;  %v10119_v37 = vld [vmem:[#allocation15] sm:$0xff]  ;;  %v10087_v6 = vld [vmem:[#allocation3 + $0xb0] sm:$0xff]  ;;  %v10089_v27 = vld [vmem:[#allocation3 + $0xd8] sm:$0xff] }
 0x75d   : > { %v10088_v16 = vld [vmem:[#allocation3] sm:$0xff]  ;;  %v10090_v24 = vld [vmem:[#allocation3 + $0x18] sm:$0xff]  ;;  %v10091_v41 = vld [vmem:[#allocation3 + $0x50] sm:$0xff] }
 0x75e   : > { %v10124_v60 = vshrl.u32 %v10123_v21, 7  ;;  %v10092_v39 = vld [vmem:[#allocation3 + $0x68] sm:$0xff]  ;;  %v10093_v61 = vld [vmem:[#allocation3 + $0x30] sm:$0xff]  ;;  %v10095_v49 = vld [vmem:[#allocation3 + $0x80] sm:$0xff] }
 0x75f   : > { %v10120_v50 = vld [vmem:[#allocation15 + $0x8] sm:$0xff]  ;;  %v10098_v36 = vld [vmem:[#allocation3 + $0xb8] sm:$0xff]  ;;  %v10099_v8 = vld [vmem:[#allocation3 + $0x60] sm:$0xff] }
 0x760   : > { %v15583_v4 = vsub.s32 0, %v10124_v60  ;;  %v15585_v7 = vsub.s32 1, %v10124_v60  ;;  %v15587_v18 = vsub.s32 2, %v10124_v60  ;;  %v15589_v3 = vsub.s32 3, %v10124_v60  ;;  %v10094_v28 = vld [vmem:[#allocation3 + $0x48] sm:$0xff]  ;;  %v10100_v58 = vld [vmem:[#allocation3 + $0xf0] sm:$0xff] }
 0x761   : > { %v15594_v20 = vsub.s32 4, %v10124_v60  ;;  %v15599_v1 = vsub.s32 5, %v10124_v60  ;;  %v15607_v57 = vsub.s32 6, %v10124_v60  ;;  %v15618_v10 = vsub.s32 7, %v10124_v60  ;;  %v10096_v48 = vld [vmem:[#allocation3 + $0x88] sm:$0xff]  ;;  %v10102_v21 = vld [vmem:[#allocation3 + $0x78] sm:$0xff] }
 0x762   : > { %16534 = vst [vmem:[#allocation39_spill] sm:$0xff] %v15589_v3  ;;  %v15592_v23 = vrot.slane %v10119_v37, %v15583_v4  ;;  %v15597_v53 = vrot.slane %v10119_v37, %v15585_v7  ;;  %v15602_v42 = vrot.slane %v10119_v37, %v15587_v18  ;;  %v15605_v51 = vrot.slane %v10119_v37, %v15589_v3  ;;  %v10097_v31 = vld [vmem:[#allocation3 + $0xe8] sm:$0xff] }
 0x763   : > { %16536 = vst [vmem:[#allocation41_spill] sm:$0xff] %v15594_v20  ;;  %16538 = vst [vmem:[#allocation43_spill] sm:$0xff] %v15599_v1  ;;  %v15610_v52 = vrot.slane %v10119_v37, %v15594_v20  ;;  %v15616_v12 = vrot.slane %v10119_v37, %v15599_v1  ;;  %v15627_v35 = vrot.slane %v10119_v37, %v15607_v57  ;;  %v10101_v46 = vld [vmem:[#allocation3 + $0x8] sm:$0xff] }
 0x764   : > { %16535 = vst [vmem:[#allocation40_spill] sm:$0xff] %v15592_v23  ;;  %16537 = vst [vmem:[#allocation42_spill] sm:$0xff] %v15597_v53  ;;  %v15613_v22 = vadd.f32 %v15592_v23, %v10087_v6  ;;  %v15621_v14 = vadd.f32 %v15597_v53, %v10088_v16  ;;  %v15624_v45 = vadd.f32 %v15602_v42, %v10089_v27 }
 0x765   : > { %16539 = vst [vmem:[#allocation44_spill] sm:$0xff] %v15602_v42  ;;  %16540 = vst [vmem:[#allocation45_spill] sm:$0xff] %v15605_v51  ;;  %v15630_v19 = vadd.f32 %v15605_v51, %v10090_v24  ;;  %v15633_v13 = vadd.f32 %v15610_v52, %v10091_v41  ;;  %v15637_v33 = vrot.slane %v10119_v37, %v15618_v10 }
 0x766   : > { %16541 = vst [vmem:[#allocation46_spill] sm:$0xff] %v15607_v57  ;;  %16542 = vst [vmem:[#allocation47_spill] sm:$0xff] %v15610_v52  ;;  %v10309_v47 = vrot.slane %v15613_v22, 4  ;;  %v15640_v34 = vadd.f32 %v15616_v12, %v10092_v39  ;;  %v10316_v32 = vrot.slane %v15621_v14, 4  ;;  %v15644_v25 = vrot.slane %v10120_v50, %v15583_v4 }
 0x767   : > { %16543 = vst [vmem:[#allocation48_spill] sm:$0xff] %v15616_v12  ;;  %16544 = vst [vmem:[#allocation49_spill] sm:$0xff] %v15618_v10  ;;  %v10323_v30 = vrot.slane %v15624_v45, 4  ;;  %v15648_v5 = vrot.slane %v10120_v50, %v15585_v7  ;;  %v15651_v11 = vadd.f32 %v15627_v35, %v10093_v61  ;;  %v10330_v62 = vrot.slane %v15630_v19, 4 }
 0x768   : > { %16545 = vst [vmem:[#allocation50_spill] sm:$0xff] %v15627_v35  ;;  %16546 = vst [vmem:[#allocation51_spill] sm:$0xff] %v15637_v33  ;;  %v15655_v26 = vrot.slane %v10120_v50, %v15587_v18  ;;  %v15658_v43 = vrot.slane %v10120_v50, %v15589_v3  ;;  %v10310_v54 = vadd.f32 %v10309_v47, %v15613_v22  ;;  %v10337_v44 = vrot.slane %v15633_v13, 4 }
 0x769   : > { %16547 = vst [vmem:[#allocation52_spill] sm:$0xff] %v15644_v25  ;;  %16548 = vst [vmem:[#allocation53_spill] sm:$0xff] %v15648_v5  ;;  %v15663_v2 = vrot.slane %v10120_v50, %v15594_v20  ;;  %v15666_v29 = vadd.f32 %v15637_v33, %v10094_v28  ;;  %v10317_v15 = vadd.f32 %v10316_v32, %v15621_v14  ;;  %v10344_v17 = vrot.slane %v15640_v34, 4 }
 0x76a   : > { %16549 = vst [vmem:[#allocation54_spill] sm:$0xff] %v15655_v26  ;;  %16550 = vst [vmem:[#allocation55_spill] sm:$0xff] %v15658_v43  ;;  %v15671_v63 = vrot.slane %v10120_v50, %v15599_v1  ;;  %v15674_v56 = vrot.slane %v10120_v50, %v15607_v57  ;;  %v15677_v55 = vadd.f32 %v15644_v25, %v10095_v49  ;;  %v10351_v40 = vrot.slane %v15651_v11, 4 }
 0x76b   : > { %16551 = vst [vmem:[#allocation56_spill] sm:$0xff] %v15663_v2  ;;  %v10324_v38 = vadd.f32 %v10323_v30, %v15624_v45  ;;  %v15681_v9 = vrot.slane %v10120_v50, %v15618_v10  ;;  %v15684_v59 = vadd.f32 %v15648_v5, %v10096_v48  ;;  %v10331_v0 = vadd.f32 %v10330_v62, %v15630_v19 }
 0x76c   : > { %16552 = vst [vmem:[#allocation57_spill] sm:$0xff] %v15671_v63  ;;  %16553 = vst [vmem:[#allocation58_spill] sm:$0xff] %v15674_v56  ;;  %v15689_v60 = vadd.f32 %v15655_v26, %v10097_v31  ;;  %v15692_v37 = vadd.f32 %v15658_v43, %v10098_v36  ;;  %v10311_v6 = vrot.slane %v10310_v54, 2  ;;  %v10338_v16 = vadd.f32 %v10337_v44, %v15633_v13 }
 0x76d   : > { %16554 = vst [vmem:[#allocation59_spill] sm:$0xff] %v15681_v9  ;;  %v15696_v27 = vadd.f32 %v15663_v2, %v10099_v8  ;;  %v10318_v24 = vrot.slane %v10317_v15, 2  ;;  %v10345_v41 = vadd.f32 %v10344_v17, %v15640_v34  ;;  %v10358_v39 = vrot.slane %v15666_v29, 4 }
 0x76e   : > { %v15701_v50 = vadd.f32 %v15671_v63, %v10100_v58  ;;  %v15704_v61 = vadd.f32 %v15674_v56, %v10101_v46  ;;  %v10325_v47 = vrot.slane %v10324_v38, 2  ;;  %v10365_v32 = vrot.slane %v15677_v55, 4 }
 0x76f   : > { %v15708_v28 = vadd.f32 %v15681_v9, %v10102_v21  ;;  %v10332_v30 = vrot.slane %v10331_v0, 2  ;;  %v10352_v49 = vadd.f32 %v10351_v40, %v15651_v11  ;;  %v10372_v62 = vrot.slane %v15684_v59, 4 }
 0x770   : > { %v10312_v48 = vadd.f32 %v10311_v6, %v10310_v54  ;;  %v10339_v44 = vrot.slane %v10338_v16, 2  ;;  %v10379_v31 = vrot.slane %v15689_v60, 4  ;;  %v10386_v36 = vrot.slane %v15692_v37, 4 }
 0x771   : > { %v10319_v17 = vadd.f32 %v10318_v24, %v10317_v15  ;;  %v10346_v8 = vrot.slane %v10345_v41, 2  ;;  %v10359_v58 = vadd.f32 %v10358_v39, %v15666_v29  ;;  %v10393_v46 = vrot.slane %v15696_v27, 4 }
 0x772   : > { %v10326_v56 = vadd.f32 %v10325_v47, %v10324_v38  ;;  %v10366_v21 = vadd.f32 %v10365_v32, %v15677_v55  ;;  %v10400_v9 = vrot.slane %v15701_v50, 4  ;;  %v10407_v40 = vrot.slane %v15704_v61, 4 }
 0x773   : > { %v10333_v63 = vadd.f32 %v10332_v30, %v10331_v0  ;;  %v10353_v54 = vrot.slane %v10352_v49, 2  ;;  %v10373_v6 = vadd.f32 %v10372_v62, %v15684_v59  ;;  %v10414_v2 = vrot.slane %v15708_v28, 4 }
 0x774   : > { %v10313_v43 = vrot.slane %v10312_v48, 1  ;;  %v10340_v15 = vadd.f32 %v10339_v44, %v10338_v16  ;;  %v10380_v24 = vadd.f32 %v10379_v31, %v15689_v60  ;;  %v10387_v39 = vadd.f32 %v10386_v36, %v15692_v37 }
 0x775   : > { %v10320_v26 = vrot.slane %v10319_v17, 1  ;;  %v10347_v38 = vadd.f32 %v10346_v8, %v10345_v41  ;;  %v10360_v47 = vrot.slane %v10359_v58, 2  ;;  %v10394_v32 = vadd.f32 %v10393_v46, %v15696_v27 }
 0x776   : > { %v10327_v5 = vrot.slane %v10326_v56, 1  ;;  %v10367_v25 = vrot.slane %v10366_v21, 2  ;;  %v10401_v0 = vadd.f32 %v10400_v9, %v15701_v50  ;;  %v10408_v30 = vadd.f32 %v10407_v40, %v15704_v61 }
 0x777   : > { %v10334_v62 = vrot.slane %v10333_v63, 1  ;;  %v10354_v33 = vadd.f32 %v10353_v54, %v10352_v49  ;;  %v10374_v35 = vrot.slane %v10373_v6, 2  ;;  %v10415_v16 = vadd.f32 %v10414_v2, %v15708_v28 }
 0x778   : > { %v10314_v44 = vadd.f32 %v10313_v43, %v10312_v48  ;;  %v10341_v31 = vrot.slane %v10340_v15, 1  ;;  %v10381_v12 = vrot.slane %v10380_v24, 2  ;;  %v10388_v36 = vrot.slane %v10387_v39, 2 }
 0x779   : > { %v10321_v52 = vadd.f32 %v10320_v26, %v10319_v17  ;;  %v10348_v41 = vrot.slane %v10347_v38, 1  ;;  %v10361_v8 = vadd.f32 %v10360_v47, %v10359_v58  ;;  %v10395_v51 = vrot.slane %v10394_v32, 2 }
 0x77a   : > { %v10328_v46 = vadd.f32 %v10327_v5, %v10326_v56  ;;  %v10368_v42 = vadd.f32 %v10367_v25, %v10366_v21  ;;  %v10402_v53 = vrot.slane %v10401_v0, 2  ;;  %v10409_v23 = vrot.slane %v10408_v30, 2 }
 0x77b   : > { %v10335_v9 = vadd.f32 %v10334_v62, %v10333_v63  ;;  %v10355_v10 = vrot.slane %v10354_v33, 1  ;;  %v10375_v40 = vadd.f32 %v10374_v35, %v10373_v6  ;;  %v10416_v57 = vrot.slane %v10415_v16, 2 }
 0x77c   : > { %v10342_v49 = vadd.f32 %v10341_v31, %v10340_v15  ;;  %v10382_v54 = vadd.f32 %v10381_v12, %v10380_v24  ;;  %v10389_v1 = vadd.f32 %v10388_v36, %v10387_v39  ;;  %v10420_v2 = vmul.f32 0.125, %v10314_v44 }
 0x77d   : > { %v10349_v43 = vadd.f32 %v10348_v41, %v10347_v38  ;;  %v10362_v48 = vrot.slane %v10361_v8, 1  ;;  %v10396_v20 = vadd.f32 %v10395_v51, %v10394_v32  ;;  %v10421_v3 = vmul.f32 0.125, %v10321_v52 }
 0x77e   : > { %v10369_v26 = vrot.slane %v10368_v42, 1  ;;  %v10403_v17 = vadd.f32 %v10402_v53, %v10401_v0  ;;  %v10410_v58 = vadd.f32 %v10409_v23, %v10408_v30  ;;  %v10422_v47 = vmul.f32 0.125, %v10328_v46 }
 0x77f   : > { %v10356_v5 = vadd.f32 %v10355_v10, %v10354_v33  ;;  %v10376_v25 = vrot.slane %v10375_v40, 1  ;;  %v10417_v56 = vadd.f32 %v10416_v57, %v10415_v16  ;;  %v10423_v21 = vmul.f32 0.125, %v10335_v9 }
 0x780   : > { %v10383_v63 = vrot.slane %v10382_v54, 1  ;;  %v10390_v62 = vrot.slane %v10389_v1, 1  ;;  %v10424_v35 = vmul.f32 0.125, %v10342_v49  ;;  %v15728_v6 = vsub.f32 %v15613_v22, %v10420_v2 }
 0x781   : > { %v10363_v12 = vadd.f32 %v10362_v48, %v10361_v8  ;;  %v10397_v15 = vrot.slane %v10396_v20, 1  ;;  %v10425_v24 = vmul.f32 0.125, %v10349_v43  ;;  %v15731_v51 = vsub.f32 %v15621_v14, %v10421_v3 }
 0x782   : > { %v10370_v52 = vadd.f32 %v10369_v26, %v10368_v42  ;;  %v10404_v53 = vrot.slane %v10403_v17, 1  ;;  %v10411_v23 = vrot.slane %v10410_v58, 1  ;;  %v15734_v10 = vsub.f32 %v15624_v45, %v10422_v47 }
 0x783   : > { %v10377_v57 = vadd.f32 %v10376_v25, %v10375_v40  ;;  %v10418_v33 = vrot.slane %v10417_v56, 1  ;;  %v10426_v39 = vmul.f32 0.125, %v10356_v5  ;;  %v15737_v38 = vsub.f32 %v15630_v19, %v10423_v21 }
 0x784   : > { %v10384_v22 = vadd.f32 %v10383_v63, %v10382_v54  ;;  %v10391_v32 = vadd.f32 %v10390_v62, %v10389_v1  ;;  %v15740_v0 = vsub.f32 %v15633_v13, %v10424_v35  ;;  %v10692_v3 = vmul.f32 %v15728_v6, %v15728_v6 }
 0x785   : > { %v10398_v42 = vadd.f32 %v10397_v15, %v10396_v20  ;;  %v10427_v14 = vmul.f32 0.125, %v10363_v12  ;;  %v15745_v30 = vsub.f32 %v15640_v34, %v10425_v24  ;;  %v10693_v45 = vmul.f32 %v15731_v51, %v15731_v51 }
 0x786   : > { %v10405_v16 = vadd.f32 %v10404_v53, %v10403_v17  ;;  %v10412_v44 = vadd.f32 %v10411_v23, %v10410_v58  ;;  %v10428_v19 = vmul.f32 0.125, %v10370_v52  ;;  %v10694_v1 = vmul.f32 %v15734_v10, %v15734_v10 }
 0x787   : > { %v10419_v31 = vadd.f32 %v10418_v33, %v10417_v56  ;;  %v10429_v13 = vmul.f32 0.125, %v10377_v57  ;;  %v15752_v36 = vsub.f32 %v15651_v11, %v10426_v39  ;;  %v10695_v20 = vmul.f32 %v15737_v38, %v15737_v38 }
 0x788   : > { %v10430_v41 = vmul.f32 0.125, %v10384_v22  ;;  %v10431_v34 = vmul.f32 0.125, %v10391_v32  ;;  %v10696_v8 = vmul.f32 %v15740_v0, %v15740_v0  ;;  %v10725_v46 = vrot.slane %v10692_v3, 4 }
 0x789   : > { %v10432_v9 = vmul.f32 0.125, %v10398_v42  ;;  %v15759_v40 = vsub.f32 %v15666_v29, %v10427_v14  ;;  %v10697_v49 = vmul.f32 %v15745_v30, %v15745_v30  ;;  %v10732_v54 = vrot.slane %v10693_v45, 4 }
 0x78a   : > { %v10433_v2 = vmul.f32 0.125, %v10405_v16  ;;  %v10434_v11 = vmul.f32 0.125, %v10412_v44  ;;  %v15764_v43 = vsub.f32 %v15677_v55, %v10428_v19  ;;  %v10739_v48 = vrot.slane %v10694_v1, 4 }
 0x78b   : > { %v10435_v26 = vmul.f32 0.125, %v10419_v31  ;;  %v15767_v17 = vsub.f32 %v15684_v59, %v10429_v13  ;;  %v10698_v58 = vmul.f32 %v15752_v36, %v15752_v36  ;;  %v10746_v47 = vrot.slane %v10695_v20, 4 }
 0x78c   : > { %v15772_v29 = vsub.f32 %v15689_v60, %v10430_v41  ;;  %v15775_v5 = vsub.f32 %v15692_v37, %v10431_v34  ;;  %v10726_v25 = vadd.f32 %v10725_v46, %v10692_v3  ;;  %v10753_v56 = vrot.slane %v10696_v8, 4 }
 0x78d   : > { %v15778_v55 = vsub.f32 %v15696_v27, %v10432_v9  ;;  %v10699_v21 = vmul.f32 %v15759_v40, %v15759_v40  ;;  %v10733_v59 = vadd.f32 %v10732_v54, %v10693_v45  ;;  %v10760_v63 = vrot.slane %v10697_v49, 4 }
 0x78e   : > { %v15783_v62 = vsub.f32 %v15701_v50, %v10433_v2  ;;  %v15786_v35 = vsub.f32 %v15704_v61, %v10434_v11  ;;  %v10700_v60 = vmul.f32 %v15764_v43, %v15764_v43  ;;  %v10740_v37 = vadd.f32 %v10739_v48, %v10694_v1 }
 0x78f   : > { %v15791_v12 = vsub.f32 %v15708_v28, %v10435_v26  ;;  %v10701_v27 = vmul.f32 %v15767_v17, %v15767_v17  ;;  %v10747_v15 = vadd.f32 %v10746_v47, %v10695_v20  ;;  %v10767_v24 = vrot.slane %v10698_v58, 4 }
 0x790   : > { %v10702_v52 = vmul.f32 %v15772_v29, %v15772_v29  ;;  %v10703_v50 = vmul.f32 %v15775_v5, %v15775_v5  ;;  %v10727_v61 = vrot.slane %v10726_v25, 2  ;;  %v10754_v53 = vadd.f32 %v10753_v56, %v10696_v8 }
 0x791   : > { %16555 = vst [vmem:[#allocation60_spill] sm:$0xff] %v15791_v12  ;;  %v10704_v23 = vmul.f32 %v15778_v55, %v15778_v55  ;;  %v10734_v57 = vrot.slane %v10733_v59, 2  ;;  %v10761_v33 = vadd.f32 %v10760_v63, %v10697_v49  ;;  %v10774_v28 = vrot.slane %v10699_v21, 4 }
 0x792   : > { %v10705_v39 = vmul.f32 %v15783_v62, %v15783_v62  ;;  %v10706_v22 = vmul.f32 %v15786_v35, %v15786_v35  ;;  %v10741_v32 = vrot.slane %v10740_v37, 2  ;;  %v10781_v3 = vrot.slane %v10700_v60, 4 }
 0x793   : > { %v10707_v42 = vmul.f32 %v15791_v12, %v15791_v12  ;;  %v10748_v14 = vrot.slane %v10747_v15, 2  ;;  %v10768_v45 = vadd.f32 %v10767_v24, %v10698_v58  ;;  %v10788_v16 = vrot.slane %v10701_v27, 4 }
 0x794   : > { %v10728_v44 = vadd.f32 %v10727_v61, %v10726_v25  ;;  %v10755_v19 = vrot.slane %v10754_v53, 2  ;;  %v10795_v1 = vrot.slane %v10702_v52, 4  ;;  %v10802_v31 = vrot.slane %v10703_v50, 4 }
 0x795   : > { %v10735_v13 = vadd.f32 %v10734_v57, %v10733_v59  ;;  %v10762_v20 = vrot.slane %v10761_v33, 2  ;;  %v10775_v41 = vadd.f32 %v10774_v28, %v10699_v21  ;;  %v10809_v34 = vrot.slane %v10704_v23, 4 }
 0x796   : > { %v10742_v8 = vadd.f32 %v10741_v32, %v10740_v37  ;;  %v10782_v46 = vadd.f32 %v10781_v3, %v10700_v60  ;;  %v10816_v9 = vrot.slane %v10705_v39, 4  ;;  %v10823_v49 = vrot.slane %v10706_v22, 4 }
 0x797   : > { %v10749_v54 = vadd.f32 %v10748_v14, %v10747_v15  ;;  %v10769_v2 = vrot.slane %v10768_v45, 2  ;;  %v10789_v11 = vadd.f32 %v10788_v16, %v10701_v27  ;;  %v10830_v48 = vrot.slane %v10707_v42, 4 }
 0x798   : > { %v10729_v26 = vrot.slane %v10728_v44, 1  ;;  %v10756_v47 = vadd.f32 %v10755_v19, %v10754_v53  ;;  %v10796_v58 = vadd.f32 %v10795_v1, %v10702_v52  ;;  %v10803_v56 = vadd.f32 %v10802_v31, %v10703_v50 }
 0x799   : > { %v10736_v25 = vrot.slane %v10735_v13, 1  ;;  %v10763_v63 = vadd.f32 %v10762_v20, %v10761_v33  ;;  %v10776_v24 = vrot.slane %v10775_v41, 2  ;;  %v10810_v61 = vadd.f32 %v10809_v34, %v10704_v23 }
 0x79a   : > { %v10743_v59 = vrot.slane %v10742_v8, 1  ;;  %v10783_v57 = vrot.slane %v10782_v46, 2  ;;  %v10817_v21 = vadd.f32 %v10816_v9, %v10705_v39  ;;  %v10824_v28 = vadd.f32 %v10823_v49, %v10706_v22 }
 0x79b   : > { %v10750_v37 = vrot.slane %v10749_v54, 1  ;;  %v10770_v60 = vadd.f32 %v10769_v2, %v10768_v45  ;;  %v10790_v32 = vrot.slane %v10789_v11, 2  ;;  %v10831_v3 = vadd.f32 %v10830_v48, %v10707_v42 }
 0x79c   : > { %v10730_v15 = vadd.f32 %v10729_v26, %v10728_v44  ;;  %v10757_v14 = vrot.slane %v10756_v47, 1  ;;  %v10797_v27 = vrot.slane %v10796_v58, 2  ;;  %v10804_v16 = vrot.slane %v10803_v56, 2 }
 0x79d   : > { %v10737_v12 = vadd.f32 %v10736_v25, %v10735_v13  ;;  %v10764_v53 = vrot.slane %v10763_v63, 1  ;;  %v10777_v52 = vadd.f32 %v10776_v24, %v10775_v41  ;;  %v10811_v50 = vrot.slane %v10810_v61, 2 }
 0x79e   : > { %v10744_v19 = vadd.f32 %v10743_v59, %v10742_v8  ;;  %v10784_v33 = vadd.f32 %v10783_v57, %v10782_v46  ;;  %v10818_v1 = vrot.slane %v10817_v21, 2  ;;  %v10825_v23 = vrot.slane %v10824_v28, 2 }
 0x79f   : > { %v10751_v31 = vadd.f32 %v10750_v37, %v10749_v54  ;;  %v10771_v20 = vrot.slane %v10770_v60, 1  ;;  %v10791_v39 = vadd.f32 %v10790_v32, %v10789_v11  ;;  %v10832_v22 = vrot.slane %v10831_v3, 2 }
 0x7a0   : > { %v10758_v34 = vadd.f32 %v10757_v14, %v10756_v47  ;;  %v10798_v45 = vadd.f32 %v10797_v27, %v10796_v58  ;;  %v10805_v9 = vadd.f32 %v10804_v16, %v10803_v56  ;;  %v10836_v42 = vmul.f32 0.125, %v10730_v15 }
 0x7a1   : > { %v10765_v44 = vadd.f32 %v10764_v53, %v10763_v63  ;;  %v10778_v49 = vrot.slane %v10777_v52, 1  ;;  %v10812_v2 = vadd.f32 %v10811_v50, %v10810_v61  ;;  %v10837_v48 = vmul.f32 0.125, %v10737_v12 }
 0x7a2   : > { %v10785_v13 = vrot.slane %v10784_v33, 1  ;;  %v10819_v26 = vadd.f32 %v10818_v1, %v10817_v21  ;;  %v10826_v41 = vadd.f32 %v10825_v23, %v10824_v28  ;;  %v10838_v25 = vmul.f32 0.125, %v10744_v19 }
 0x7a3   : > { %v10772_v8 = vadd.f32 %v10771_v20, %v10770_v60  ;;  %v10792_v46 = vrot.slane %v10791_v39, 1  ;;  %v10833_v24 = vadd.f32 %v10832_v22, %v10831_v3  ;;  %v10839_v59 = vmul.f32 0.125, %v10751_v31 }
 0x7a4   : > { %v10799_v54 = vrot.slane %v10798_v45, 1  ;;  %v10806_v57 = vrot.slane %v10805_v9, 1  ;;  %v10840_v11 = vmul.f32 0.125, %v10758_v34  ;;  %v11044_v37 = vadd.f32 1e-05, %v10836_v42 }
 0x7a5   : > { %v10779_v47 = vadd.f32 %v10778_v49, %v10777_v52  ;;  %v10813_v58 = vrot.slane %v10812_v2, 1  ;;  %v10841_v56 = vmul.f32 0.125, %v10765_v44  ;;  %v11045_v32 = vadd.f32 1e-05, %v10837_v48  ;;  %v10235_v44 = vld [vmem:[#allocation16] sm:$0xff] }
 0x7a6   : > { %v10786_v63 = vadd.f32 %v10785_v13, %v10784_v33  ;;  %v10820_v15 = vrot.slane %v10819_v26, 1  ;;  %v10827_v61 = vrot.slane %v10826_v41, 1  ;;  %v11046_v12 = vadd.f32 1e-05, %v10838_v25 }
 0x7a7   : > { %v10793_v14 = vadd.f32 %v10792_v46, %v10791_v39  ;;  %v10834_v21 = vrot.slane %v10833_v24, 1  ;;  %v10842_v28 = vmul.f32 0.125, %v10772_v8  ;;  %v11047_v27 = vadd.f32 1e-05, %v10839_v59 }
 0x7a8   : > { %v10800_v60 = vadd.f32 %v10799_v54, %v10798_v45  ;;  %v10807_v16 = vadd.f32 %v10806_v57, %v10805_v9  ;;  %v11048_v3 = vadd.f32 1e-05, %v10840_v11  ;;  %13142 = vrsqrt.f32 %v11044_v37  ;;  %v16558_v11 = vld [vmem:[#allocation39_spill] sm:$0xff] }
 0x7a9   : > { %v10814_v53 = vadd.f32 %v10813_v58, %v10812_v2  ;;  %v10843_v50 = vmul.f32 0.125, %v10779_v47  ;;  %v11049_v19 = vadd.f32 1e-05, %v10841_v56  ;;  %13144 = vrsqrt.f32 %v11045_v32  ;;  %v16559_v47 = vld [vmem:[#allocation41_spill] sm:$0xff]  ;;  %v10237_v32 = vld [vmem:[#allocation18] sm:$0xff] }
 0x7aa   : > { %v10821_v52 = vadd.f32 %v10820_v15, %v10819_v26  ;;  %v10828_v1 = vadd.f32 %v10827_v61, %v10826_v41  ;;  %v10844_v23 = vmul.f32 0.125, %v10786_v63  ;;  %13146 = vrsqrt.f32 %v11046_v12  ;;  %v10236_v26 = vld [vmem:[#allocation16 + $0x8] sm:$0xff]  ;;  %v16561_v63 = vld [vmem:[#allocation43_spill] sm:$0xff] }
 0x7ab   : > { %v10835_v33 = vadd.f32 %v10834_v21, %v10833_v24  ;;  %v10845_v31 = vmul.f32 0.125, %v10793_v14  ;;  %v11050_v20 = vadd.f32 1e-05, %v10842_v28  ;;  %13148 = vrsqrt.f32 %v11047_v27  ;;  %v16563_v61 = vld [vmem:[#allocation46_spill] sm:$0xff]  ;;  %v16565_v14 = vld [vmem:[#allocation49_spill] sm:$0xff] }
 0x7ac   : > { %13150 = vrsqrt.f32 %v11048_v3  ;;  %v10846_v39 = vmul.f32 0.125, %v10800_v60  ;;  %v11051_v22 = vadd.f32 1e-05, %v10843_v50  ;;  %v10847_v34 = vmul.f32 0.125, %v10807_v16 }
 0x7ad   : > { %13152 = vrsqrt.f32 %v11049_v19  ;;  %v10848_v45 = vmul.f32 0.125, %v10814_v53  ;;  %v10849_v9 = vmul.f32 0.125, %v10821_v52  ;;  %v11052_v42 = vadd.f32 1e-05, %v10844_v23 }
 0x7ae   : > { %v10850_v49 = vmul.f32 0.125, %v10828_v1  ;;  %v10851_v2 = vmul.f32 0.125, %v10835_v33  ;;  %v11053_v48 = vadd.f32 1e-05, %v10845_v31  ;;  %13154 = vrsqrt.f32 %v11050_v20  ;;  %v10238_v1 = vld [vmem:[#allocation18 + $0x8] sm:$0xff] }
 0x7af   : > { %v11054_v13 = vadd.f32 1e-05, %v10846_v39  ;;  %13156 = vrsqrt.f32 %v11051_v22  ;;  %v11055_v41 = vadd.f32 1e-05, %v10847_v34  ;;  %v11056_v25 = vadd.f32 1e-05, %v10848_v45 }
 0x7b0   : > { %13158 = vrsqrt.f32 %v11052_v42  ;;  %v15808_v8 = vrot.slane %v10235_v44, %v15583_v4  ;;  %v11057_v46 = vadd.f32 1e-05, %v10849_v9  ;;  %v11058_v24 = vadd.f32 1e-05, %v10850_v49 }
 0x7b1   : > { %v11059_v59 = vadd.f32 1e-05, %v10851_v2  ;;  %13160 = vrsqrt.f32 %v11053_v48  ;;  %v15811_v54 = vrot.slane %v10235_v44, %v15585_v7  ;;  %v15814_v57 = vrot.slane %v10235_v44, %v15587_v18  ;;  %v11464_v2 = vld [vmem:[#allocation19] sm:$0xff] }
 0x7b2   : > { %16556 = vst [vmem:[#allocation61_spill] sm:$0xff] %v15808_v8  ;;  %v15817_v37 = vrot.slane %v10235_v44, %v16558_v11  ;;  %v15820_v58 = vrot.slane %v10235_v44, %v16559_v47  ;;  %13162 = vrsqrt.f32 %v11054_v13  ;;  %v15823_v15 = vrot.slane %v10235_v44, %v16561_v63 }
 0x7b3   : > { %16557 = vst [vmem:[#allocation62_spill] sm:$0xff] %v15811_v54  ;;  %v15826_v12 = vrot.slane %v10235_v44, %v16563_v61  ;;  %v15829_v21 = vrot.slane %v10235_v44, %v16565_v14  ;;  %13164 = vrsqrt.f32 %v11055_v41  ;;  %v15832_v27 = vrot.slane %v10236_v26, %v15583_v4 }
 0x7b4   : > { %16560 = vst [vmem:[#allocation39_spill] sm:$0xff] %v15820_v58  ;;  %16562 = vst [vmem:[#allocation41_spill] sm:$0xff] %v15823_v15  ;;  %v15835_v60 = vrot.slane %v10236_v26, %v15585_v7  ;;  %v15838_v16 = vrot.slane %v10236_v26, %v15587_v18  ;;  %13166 = vrsqrt.f32 %v11056_v25  ;;  %v15841_v53 = vrot.slane %v10236_v26, %v16558_v11 }
 0x7b5   : > { %v13143_v56 = vpop.eup %13142  ;;  %16564 = vst [vmem:[#allocation43_spill] sm:$0xff] %v15826_v12  ;;  %v15844_v50 = vrot.slane %v10236_v26, %v16559_v47  ;;  %v15847_v19 = vrot.slane %v10236_v26, %v16561_v63  ;;  %v15850_v23 = vrot.slane %v10236_v26, %v16563_v61  ;;  %v15853_v33 = vrot.slane %v10236_v26, %v16565_v14 }
 0x7b6   : > { %v13145_v28 = vpop.eup %13144  ;;  %16566 = vst [vmem:[#allocation46_spill] sm:$0xff] %v15835_v60  ;;  %16567 = vst [vmem:[#allocation49_spill] sm:$0xff] %v15838_v16  ;;  %v15856_v31 = vrot.slane %v10237_v32, %v15583_v4  ;;  %v15859_v20 = vrot.slane %v10237_v32, %v15585_v7  ;;  %13168 = vrsqrt.f32 %v11057_v46  ;;  %v15862_v22 = vrot.slane %v10237_v32, %v15587_v18 }
 0x7b7   : > { %v13147_v3 = vpop.eup %13146  ;;  %16568 = vst [vmem:[#allocation63_spill] sm:$0xff] %v15841_v53  ;;  %16569 = vst [vmem:[#allocation64_spill] sm:$0xff] %v15844_v50  ;;  %v15865_v34 = vrot.slane %v10237_v32, %v16558_v11  ;;  %v15868_v45 = vrot.slane %v10237_v32, %v16559_v47  ;;  %13170 = vrsqrt.f32 %v11058_v24  ;;  %v11108_v42 = vmul.f32 %v13143_v56, %v15728_v6 }
 0x7b8   : > { %16570 = vst [vmem:[#allocation65_spill] sm:$0xff] %v15847_v19  ;;  %v13149_v52 = vpop.eup %13148  ;;  %16571 = vst [vmem:[#allocation66_spill] sm:$0xff] %v15850_v23  ;;  %v11109_v44 = vmul.f32 %v13145_v28, %v15731_v51  ;;  %v15873_v49 = vrot.slane %v10237_v32, %v16561_v63  ;;  %v11110_v48 = vmul.f32 %v13147_v3, %v15734_v10  ;;  %13172 = vrsqrt.f32 %v11059_v59 }
 0x7b9   : > { %16572 = vst [vmem:[#allocation67_spill] sm:$0xff] %v15853_v33  ;;  %v13151_v39 = vpop.eup %13150  ;;  %16573 = vst [vmem:[#allocation68_spill] sm:$0xff] %v15868_v45  ;;  %v15877_v13 = vrot.slane %v10237_v32, %v16563_v61  ;;  %v15880_v26 = vrot.slane %v10237_v32, %v16565_v14  ;;  %v15883_v41 = vrot.slane %v10238_v1, %v15583_v4  ;;  %v11465_v32 = vld [vmem:[#allocation19 + $0x8] sm:$0xff]  ;;  %v15897_v28 = vunpack.c.l.bf16 %v11464_v2 }
 0x7ba   : > { %v13153_v9 = vpop.eup %13152  ;;  %16574 = vst [vmem:[#allocation69_spill] sm:$0xff] %v15873_v49  ;;  %v11111_v6 = vmul.f32 %v13149_v52, %v15737_v38  ;;  %v11112_v51 = vmul.f32 %v13151_v39, %v15740_v0  ;;  %v15888_v46 = vrot.slane %v10238_v1, %v15585_v7  ;;  %v15892_v24 = vrot.slane %v10238_v1, %v15587_v18 }
 0x7bb   : > { %16575 = vst [vmem:[#allocation70_spill] sm:$0xff] %v15877_v13  ;;  %16576 = vst [vmem:[#allocation71_spill] sm:$0xff] %v15880_v26  ;;  %v13155_v25 = vpop.eup %13154  ;;  %v11113_v10 = vmul.f32 %v13153_v9, %v15745_v30  ;;  %v15895_v56 = vrot.slane %v10238_v1, %v16558_v11  ;;  %v11222_v59 = vmul.f32 %v15808_v8, %v11108_v42  ;;  %v15917_v8 = vunpack.c.h.bf16 %v11464_v2 }
 0x7bc   : > { %16577 = vst [vmem:[#allocation72_spill] sm:$0xff] %v15883_v41  ;;  %16578 = vst [vmem:[#allocation73_spill] sm:$0xff] %v15888_v46  ;;  %v13157_v3 = vpop.eup %13156  ;;  %v11223_v38 = vmul.f32 %v15811_v54, %v11109_v44  ;;  %v15902_v0 = vrot.slane %v10238_v1, %v16559_v47  ;;  %v15905_v7 = vrot.slane %v10238_v1, %v16561_v63  ;;  %v15919_v63 = vunpack.c.l.bf16 %v11465_v32 }
 0x7bd   : > { %16579 = vst [vmem:[#allocation74_spill] sm:$0xff] %v15892_v24  ;;  %16580 = vst [vmem:[#allocation75_spill] sm:$0xff] %v15895_v56  ;;  %v13159_v30 = vpop.eup %13158  ;;  %v11114_v52 = vmul.f32 %v13155_v25, %v15752_v36  ;;  %v11224_v11 = vmul.f32 %v15814_v57, %v11110_v48  ;;  %v15910_v39 = vrot.slane %v10238_v1, %v16563_v61  ;;  %v15923_v48 = vunpack.c.h.bf16 %v11465_v32 }
 0x7be   : > { %16581 = vst [vmem:[#allocation76_spill] sm:$0xff] %v15902_v0  ;;  %16582 = vst [vmem:[#allocation77_spill] sm:$0xff] %v15905_v7  ;;  %v15913_v9 = vrot.slane %v10238_v1, %v16565_v14  ;;  %v13161_v42 = vpop.eup %13160  ;;  %v11225_v44 = vmul.f32 %v15817_v37, %v11111_v6  ;;  %v11226_v54 = vmul.f32 %v15820_v58, %v11112_v51 }
 0x7bf   : > { %16583 = vst [vmem:[#allocation78_spill] sm:$0xff] %v15910_v39  ;;  %v11115_v7 = vmul.f32 %v13157_v3, %v15759_v40  ;;  %v11227_v36 = vmul.f32 %v15823_v15, %v11113_v10  ;;  %v11477_v25 = vrot.slane %v15897_v28, %v15583_v4  ;;  %v13163_v14 = vpop.eup %13162  ;;  %v11116_v1 = vmul.f32 %v13159_v30, %v15764_v43 }
 0x7c0   : > { %16584 = vst [vmem:[#allocation79_spill] sm:$0xff] %v15913_v9  ;;  %v11336_v6 = vadd.f32 %v15856_v31, %v11222_v59  ;;  %v11337_v51 = vadd.f32 %v15859_v20, %v11223_v38  ;;  %v11481_v2 = vrot.slane %v15897_v28, %v15587_v18  ;;  %v13165_v58 = vpop.eup %13164  ;;  %v11117_v40 = vmul.f32 %v13161_v42, %v15767_v17 }
 0x7c1   : > { %v11228_v10 = vmul.f32 %v15826_v12, %v11114_v52  ;;  %v11338_v32 = vadd.f32 %v15862_v22, %v11224_v11  ;;  %v11485_v3 = vrot.slane %v15897_v28, %v16559_v47  ;;  %v13167_v15 = vpop.eup %13166  ;;  %v11339_v43 = vadd.f32 %v15865_v34, %v11225_v44 }
 0x7c2   : > { %v15939_v59 = vadd.f32 %v15868_v45, %v11226_v54  ;;  %v11489_v38 = vrot.slane %v15897_v28, %v16563_v61  ;;  %v11493_v30 = vrot.slane %v15917_v8, %v15583_v4  ;;  %v11118_v17 = vmul.f32 %v13163_v14, %v15772_v29 }
 0x7c3   : > { %v11229_v52 = vmul.f32 %v15829_v21, %v11115_v7  ;;  %v15948_v11 = vadd.f32 %v15873_v49, %v11227_v36  ;;  %v11497_v42 = vrot.slane %v15917_v8, %v15587_v18  ;;  %v13169_v44 = vpop.eup %13168  ;;  %v11119_v54 = vmul.f32 %v13165_v58, %v15775_v5 }
 0x7c4   : > { %v11230_v45 = vmul.f32 %v15832_v27, %v11116_v1  ;;  %vm11368_vm1 = vcmp.ge.f32.partialorder %v11336_v6, 0.0  ;;  %vm11369_vm2 = vcmp.ge.f32.partialorder %v11337_v51, 0.0  ;;  %v13171_v28 = vpop.eup %13170  ;;  %v11120_v12 = vmul.f32 %v13167_v15, %v15778_v55 }
 0x7c5   : > { %v11231_v29 = vmul.f32 %v15835_v60, %v11117_v40  ;;  %v15957_v7 = vadd.f32 %v15877_v13, %v11228_v10  ;;  %vm11370_vm3 = vcmp.ge.f32.partialorder %v11338_v32, 0.0  ;;  %vm11371_vm4 = vcmp.ge.f32.partialorder %v11339_v43, 0.0  ;;  %v13173_v49 = vpop.eup %13172 }
 0x7c6   : > { %vm11372_vm5 = vcmp.ge.f32.partialorder %v15939_v59, 0.0  ;;  %v11400_v36 = vmul.f32 0.01, %v11336_v6  ;;  %v11401_v14 = vmul.f32 0.01, %v11337_v51  ;;  %v11121_v5 = vmul.f32 %v13169_v44, %v15783_v62 }
 0x7c7   : > { %v11232_v58 = vmul.f32 %v15838_v16, %v11118_v17  ;;  %v15963_v1 = vadd.f32 %v15880_v26, %v11229_v52  ;;  %vm11373_vm6 = vcmp.ge.f32.partialorder %v15948_v11, 0.0  ;;  %v11122_v55 = vmul.f32 %v13171_v28, %v15786_v35  ;;  %v16587_v35 = vld [vmem:[#allocation60_spill] sm:$0xff] }
 0x7c8   : > { %v11233_v15 = vmul.f32 %v15841_v53, %v11119_v54  ;;  %v15969_v40 = vadd.f32 %v15883_v41, %v11230_v45  ;;  %v11402_v10 = vmul.f32 0.01, %v11338_v32  ;;  %v11234_v60 = vmul.f32 %v15844_v50, %v11120_v12 }
 0x7c9   : > { %v15973_v13 = vadd.f32 %v15888_v46, %v11231_v29  ;;  %vm11374_vm7 = vcmp.ge.f32.partialorder %v15957_v7, 0.0  ;;  %v15977_v62 = vrot.slane %v11477_v25, %v15583_v4  ;;  %v15980_v17 = vrot.slane %v11481_v2, %v15583_v4 }
 0x7ca   : > { %v11123_v52 = vmul.f32 %v13173_v49, %v16587_v35  ;;  %v11403_v44 = vmul.f32 0.01, %v11339_v43  ;;  %v11432_v45 = vsel %vm11368_vm1, %v11336_v6, %v11400_v36  ;;  %v11433_v54 = vsel %vm11369_vm2, %v11337_v51, %v11401_v14 }
 0x7cb   : > { %16585 = vst [vmem:[#allocation80_spill] sm:$0xff] %v15977_v62  ;;  %16586 = vst [vmem:[#allocation81_spill] sm:$0xff] %v15980_v17  ;;  %v11235_v12 = vmul.f32 %v15847_v19, %v11121_v5  ;;  %v15987_v28 = vadd.f32 %v15892_v24, %v11232_v58  ;;  %vm11375_vm8 = vcmp.ge.f32.partialorder %v15963_v1, 0.0  ;;  %v15991_v25 = vrot.slane %v11485_v3, %v15583_v4 }
 0x7cc   : > { %v11236_v2 = vmul.f32 %v15850_v23, %v11122_v55  ;;  %v15995_v29 = vadd.f32 %v15895_v56, %v11233_v15  ;;  %v11404_v49 = vmul.f32 0.01, %v15939_v59  ;;  %v11434_v6 = vsel %vm11370_vm3, %v11338_v32, %v11402_v10  ;;  %v16590_v15 = vld [vmem:[#allocation77_spill] sm:$0xff]  ;;  %v16596_v23 = vld [vmem:[#allocation40_spill] sm:$0xff] }
 0x7cd   : > { %16588 = vst [vmem:[#allocation60_spill] sm:$0xff] %v15991_v25  ;;  %v16000_v51 = vadd.f32 %v15902_v0, %v11234_v60  ;;  %v16003_v36 = vrot.slane %v11489_v38, %v15583_v4  ;;  %v11618_v14 = vmul.f32 %v15977_v62, %v11432_v45  ;;  %v11619_v3 = vmul.f32 %v15980_v17, %v11433_v54 }
 0x7ce   : > { %v11237_v5 = vmul.f32 %v15853_v33, %v11123_v52  ;;  %vm11376_vm9 = vcmp.ge.f32.partialorder %v15969_v40, 0.0  ;;  %v11405_v58 = vmul.f32 0.01, %v15948_v11  ;;  %v11435_v55 = vsel %vm11371_vm4, %v11339_v43, %v11403_v44 }
 0x7cf   : > { %16589 = vst [vmem:[#allocation82_spill] sm:$0xff] %v16003_v36  ;;  %v16012_v32 = vadd.f32 %v16590_v15, %v11235_v12  ;;  %vm11377_vm10 = vcmp.ge.f32.partialorder %v15973_v13, 0.0  ;;  %vm11378_vm11 = vcmp.ge.f32.partialorder %v15987_v28, 0.0  ;;  %v11501_v60 = vrot.slane %v15917_v8, %v16559_v47 }
 0x7d0   : > { %v16019_v38 = vrot.slane %v11493_v30, %v15583_v4  ;;  %v11620_v10 = vmul.f32 %v15991_v25, %v11434_v6  ;;  %v16023_v35 = vadd.f32 %v15910_v39, %v11236_v2  ;;  %vm11379_vm12 = vcmp.ge.f32.partialorder %v15995_v29, 0.0 }
 0x7d1   : > { %v11406_v43 = vmul.f32 0.01, %v15957_v7  ;;  %v11436_v52 = vsel %vm11372_vm5, %v15939_v59, %v11404_v49  ;;  %vm11380_vm13 = vcmp.ge.f32.partialorder %v16000_v51, 0.0  ;;  %v11505_v44 = vrot.slane %v15917_v8, %v16563_v61 }
 0x7d2   : > { %16591 = vst [vmem:[#allocation83_spill] sm:$0xff] %v16019_v38  ;;  %v16034_v30 = vrot.slane %v11497_v42, %v15583_v4  ;;  %v11621_v45 = vmul.f32 %v16003_v36, %v11435_v55  ;;  %v11650_v54 = vadd.f32 %v11619_v3, %v11618_v14  ;;  %v16038_v12 = vadd.f32 %v15913_v9, %v11237_v5 }
 0x7d3   : > { %v11407_v2 = vmul.f32 0.01, %v15963_v1  ;;  %v11408_v6 = vmul.f32 0.01, %v15969_v40  ;;  %v11437_v59 = vsel %vm11373_vm6, %v15948_v11, %v11405_v58  ;;  %vm11381_vm14 = vcmp.ge.f32.partialorder %v16012_v32, 0.0 }
 0x7d4   : > { %16592 = vst [vmem:[#allocation84_spill] sm:$0xff] %v16034_v30  ;;  %v11509_v8 = vrot.slane %v15919_v63, %v15583_v4  ;;  %v16049_v42 = vrot.slane %v11501_v60, %v15583_v4  ;;  %v11622_v49 = vmul.f32 %v16019_v38, %v11436_v52  ;;  %v11651_v14 = vadd.f32 %v11650_v54, %v11620_v10  ;;  %v10103_v10 = vld [vmem:[#allocation3 + $0x38] sm:$0xff]  ;;  %v16618_v38 = vld [vmem:[#allocation59_spill] sm:$0xff] }
 0x7d5   : > { %v11409_v3 = vmul.f32 0.01, %v15973_v13  ;;  %v11410_v5 = vmul.f32 0.01, %v15987_v28  ;;  %v11411_v55 = vmul.f32 0.01, %v15995_v29  ;;  %v11438_v11 = vsel %vm11374_vm7, %v15957_v7, %v11406_v43 }
 0x7d6   : > { %16593 = vst [vmem:[#allocation85_spill] sm:$0xff] %v16049_v42  ;;  %v11513_v58 = vrot.slane %v15919_v63, %v15587_v18  ;;  %v16061_v9 = vrot.slane %v11505_v44, %v15583_v4  ;;  %v11623_v60 = vmul.f32 %v16034_v30, %v11437_v59  ;;  %v11652_v52 = vadd.f32 %v11651_v14, %v11621_v45  ;;  %v10104_v54 = vld [vmem:[#allocation3 + $0x58] sm:$0xff] }
 0x7d7   : > { %v11412_v39 = vmul.f32 0.01, %v16000_v51  ;;  %v11413_v15 = vmul.f32 0.01, %v16012_v32  ;;  %v11414_v33 = vmul.f32 0.01, %v16023_v35  ;;  %v11439_v7 = vsel %vm11375_vm8, %v15963_v1, %v11407_v2 }
 0x7d8   : > { %16594 = vst [vmem:[#allocation86_spill] sm:$0xff] %v16061_v9  ;;  %vm11382_vm15 = vcmp.ge.f32.partialorder %v16023_v35, 0.0  ;;  %vm11383_vm0 = vcmp.ge.f32.partialorder %v16038_v12, 0.0  ;;  %v11517_v43 = vrot.slane %v15919_v63, %v16559_v47  ;;  %v16075_v44 = vrot.slane %v11509_v8, %v15583_v4  ;;  %v10105_v2 = vld [vmem:[#allocation3 + $0x40] sm:$0xff] }
 0x7d9   : > { %v11624_v45 = vmul.f32 %v16049_v42, %v11438_v11  ;;  %v11653_v59 = vadd.f32 %v11652_v52, %v11622_v49  ;;  %v11415_v14 = vmul.f32 0.01, %v16038_v12  ;;  %v11440_v0 = vsel %vm11376_vm9, %v15969_v40, %v11408_v6  ;;  %v16598_v49 = vld [vmem:[#allocation42_spill] sm:$0xff] }
 0x7da   : > { %16595 = vst [vmem:[#allocation87_spill] sm:$0xff] %v16075_v44  ;;  %v11521_v1 = vrot.slane %v15919_v63, %v16563_v61  ;;  %v16085_v56 = vadd.f32 %v16596_v23, %v10103_v10  ;;  %v16088_v19 = vrot.slane %v11513_v58, %v15583_v4  ;;  %v11625_v8 = vmul.f32 %v16061_v9, %v11439_v7  ;;  %v10106_v58 = vld [vmem:[#allocation3 + $0xc8] sm:$0xff]  ;;  %v10107_v7 = vld [vmem:[#allocation3 + $0xe0] sm:$0xff]  ;;  %v10116_v42 = vld [vmem:[#allocation3 + $0xf8] sm:$0xff] }
 0x7db   : > { %v11654_v11 = vadd.f32 %v11653_v59, %v11623_v60  ;;  %v16092_v52 = vadd.f32 %v16598_v49, %v10104_v54  ;;  %v11441_v40 = vsel %vm11377_vm10, %v15973_v13, %v11409_v3  ;;  %v11442_v63 = vsel %vm11378_vm11, %v15987_v28, %v11410_v5  ;;  %v16600_v13 = vld [vmem:[#allocation44_spill] sm:$0xff]  ;;  %v16602_v59 = vld [vmem:[#allocation45_spill] sm:$0xff]  ;;  %v16603_v49 = vld [vmem:[#allocation47_spill] sm:$0xff] }
 0x7dc   : > { %16597 = vst [vmem:[#allocation40_spill] sm:$0xff] %v16088_v19  ;;  %v11443_v23 = vsel %vm11379_vm12, %v15995_v29, %v11411_v55  ;;  %v11525_v6 = vrot.slane %v15923_v48, %v15583_v4  ;;  %v16106_v60 = vrot.slane %v11517_v43, %v15583_v4  ;;  %v11626_v10 = vmul.f32 %v16075_v44, %v11440_v0  ;;  %v10115_v9 = vld [vmem:[#allocation3 + $0xa0] sm:$0xff] }
 0x7dd   : > { %v11655_v54 = vadd.f32 %v11654_v11, %v11624_v45  ;;  %v16110_v3 = vadd.f32 %v16600_v13, %v10105_v2  ;;  %v11444_v28 = vsel %vm11380_vm13, %v16000_v51, %v11412_v39  ;;  %v11529_v29 = vrot.slane %v15923_v48, %v15587_v18  ;;  %v10108_v45 = vld [vmem:[#allocation3 + $0x90] sm:$0xff] }
 0x7de   : > { %16599 = vst [vmem:[#allocation42_spill] sm:$0xff] %v16106_v60  ;;  %v16118_v5 = vrot.slane %v11521_v1, %v15583_v4  ;;  %v10437_v55 = vrot.slane %v16085_v56, 4  ;;  %v11627_v43 = vmul.f32 %v16088_v19, %v11441_v40  ;;  %v16123_v11 = vadd.f32 %v16602_v59, %v10106_v58  ;;  %v10109_v1 = vld [vmem:[#allocation3 + $0x70] sm:$0xff] }
 0x7df   : > { %v11656_v0 = vadd.f32 %v11655_v54, %v11625_v8  ;;  %v10444_v2 = vrot.slane %v16092_v52, 4  ;;  %v11445_v39 = vsel %vm11381_vm14, %v16012_v32, %v11413_v15  ;;  %v11533_v18 = vrot.slane %v15923_v48, %v16559_v47  ;;  %v10110_v32 = vld [vmem:[#allocation3 + $0xc0] sm:$0xff]  ;;  %v16606_v59 = vld [vmem:[#allocation48_spill] sm:$0xff] }
 0x7e0   : > { %16601 = vst [vmem:[#allocation44_spill] sm:$0xff] %v16118_v5  ;;  %v11537_v51 = vrot.slane %v15923_v48, %v16563_v61  ;;  %v16134_v40 = vadd.f32 %v16603_v49, %v10107_v7  ;;  %v16137_v8 = vrot.slane %v11525_v6, %v15583_v4  ;;  %v11628_v58 = vmul.f32 %v16106_v60, %v11442_v63  ;;  %v16607_v49 = vld [vmem:[#allocation50_spill] sm:$0xff] }
 0x7e1   : > { %v11657_v54 = vadd.f32 %v11656_v0, %v11626_v10  ;;  %v10451_v13 = vrot.slane %v16110_v3, 4  ;;  %v16142_v15 = vrot.slane %v11529_v29, %v15583_v4  ;;  %v11629_v47 = vmul.f32 %v16118_v5, %v11443_v23 }
 0x7e2   : > { %16604 = vst [vmem:[#allocation45_spill] sm:$0xff] %v16137_v8  ;;  %v16146_v61 = vadd.f32 %v16606_v59, %v10108_v45  ;;  %v10438_v48 = vadd.f32 %v10437_v55, %v16085_v56  ;;  %v16150_v6 = vadd.f32 %v16607_v49, %v10109_v1  ;;  %v10445_v63 = vadd.f32 %v10444_v2, %v16092_v52  ;;  %v16609_v1 = vld [vmem:[#allocation51_spill] sm:$0xff]  ;;  %v10112_v49 = vld [vmem:[#allocation3 + $0xd0] sm:$0xff] }
 0x7e3   : > { %16605 = vst [vmem:[#allocation47_spill] sm:$0xff] %v16142_v15  ;;  %v11658_v7 = vadd.f32 %v11657_v54, %v11627_v43  ;;  %v10458_v10 = vrot.slane %v16123_v11, 4  ;;  %v11446_v29 = vsel %vm11382_vm15, %v16023_v35, %v11414_v33  ;;  %v11447_v23 = vsel %vm11383_vm0, %v16038_v12, %v11415_v14  ;;  %v10111_v35 = vld [vmem:[#allocation3 + $0xa8] sm:$0xff] }
 0x7e4   : > { %v16161_v0 = vrot.slane %v11533_v18, %v15583_v4  ;;  %v10465_v55 = vrot.slane %v16134_v40, 4  ;;  %v11630_v43 = vmul.f32 %v16137_v8, %v11444_v28  ;;  %v16166_v2 = vadd.f32 %v16609_v1, %v10110_v32 }
 0x7e5   : > { %v11659_v45 = vadd.f32 %v11658_v7, %v11628_v58  ;;  %v10452_v54 = vadd.f32 %v10451_v13, %v16110_v3  ;;  %v16170_v59 = vrot.slane %v11537_v51, %v15583_v4  ;;  %v11631_v33 = vmul.f32 %v16142_v15, %v11445_v39  ;;  %v10113_v4 = vld [vmem:[#allocation3 + $0x10] sm:$0xff] }
 0x7e6   : > { %16608 = vst [vmem:[#allocation48_spill] sm:$0xff] %v16161_v0  ;;  %v10439_v12 = vrot.slane %v10438_v48, 2  ;;  %v10472_v14 = vrot.slane %v16146_v61, 4  ;;  %v10446_v5 = vrot.slane %v10445_v63, 2  ;;  %v10459_v28 = vadd.f32 %v10458_v10, %v16123_v11  ;;  %v16611_v51 = vld [vmem:[#allocation52_spill] sm:$0xff] }
 0x7e7   : > { %16610 = vst [vmem:[#allocation50_spill] sm:$0xff] %v16170_v59  ;;  %v11660_v18 = vadd.f32 %v11659_v45, %v11629_v47  ;;  %v10479_v58 = vrot.slane %v16150_v6, 4  ;;  %v11632_v32 = vmul.f32 %v16161_v0, %v11446_v29  ;;  %v10466_v13 = vadd.f32 %v10465_v55, %v16134_v40  ;;  %v16612_v45 = vld [vmem:[#allocation53_spill] sm:$0xff]  ;;  %v10114_v29 = vld [vmem:[#allocation3 + $0x28] sm:$0xff] }
 0x7e8   : > { %v16179_v1 = vadd.f32 %v16611_v51, %v10111_v35  ;;  %v10453_v39 = vrot.slane %v10452_v54, 2  ;;  %v10486_v15 = vrot.slane %v16166_v2, 4  ;;  %v11633_v47 = vmul.f32 %v16170_v59, %v11447_v23 }
 0x7e9   : > { %v11661_v7 = vadd.f32 %v11660_v18, %v11630_v43  ;;  %v16184_v8 = vadd.f32 %v16612_v45, %v10112_v49  ;;  %v10440_v10 = vadd.f32 %v10439_v12, %v10438_v48  ;;  %v10473_v60 = vadd.f32 %v10472_v14, %v16146_v61  ;;  %v16613_v18 = vld [vmem:[#allocation54_spill] sm:$0xff]  ;;  %v16614_v12 = vld [vmem:[#allocation55_spill] sm:$0xff] }
 0x7ea   : > { %v10447_v0 = vadd.f32 %v10446_v5, %v10445_v63  ;;  %v10460_v55 = vrot.slane %v10459_v28, 2  ;;  %v10480_v43 = vadd.f32 %v10479_v58, %v16150_v6  ;;  %v16189_v35 = vadd.f32 %v16613_v18, %v10113_v4  ;;  %v16615_v18 = vld [vmem:[#allocation56_spill] sm:$0xff] }
 0x7eb   : > { %v11662_v19 = vadd.f32 %v11661_v7, %v11631_v33  ;;  %v10467_v51 = vrot.slane %v10466_v13, 2  ;;  %v10454_v23 = vadd.f32 %v10453_v39, %v10452_v54  ;;  %v10487_v49 = vadd.f32 %v10486_v15, %v16166_v2  ;;  %v10117_v39 = vld [vmem:[#allocation3 + $0x20] sm:$0xff] }
 0x7ec   : > { %v10493_v48 = vrot.slane %v16179_v1, 4  ;;  %v16194_v14 = vadd.f32 %v16614_v12, %v10114_v29  ;;  %v10441_v33 = vrot.slane %v10440_v10, 1  ;;  %v10474_v5 = vrot.slane %v10473_v60, 2 }
 0x7ed   : > { %v11663_v44 = vadd.f32 %v11662_v19, %v11632_v32  ;;  %v10500_v63 = vrot.slane %v16184_v8, 4  ;;  %v10448_v7 = vrot.slane %v10447_v0, 1  ;;  %v10461_v4 = vadd.f32 %v10460_v55, %v10459_v28  ;;  %v16616_v32 = vld [vmem:[#allocation57_spill] sm:$0xff] }
 0x7ee   : > { %v10481_v45 = vrot.slane %v10480_v43, 2  ;;  %v16198_v19 = vadd.f32 %v16615_v18, %v10115_v9  ;;  %v16201_v54 = vadd.f32 %v16616_v32, %v10116_v42  ;;  %v10507_v15 = vrot.slane %v16189_v35, 4  ;;  %v16617_v32 = vld [vmem:[#allocation58_spill] sm:$0xff] }
 0x7ef   : > { %v11664_v58 = vadd.f32 %v11663_v44, %v11633_v47  ;;  %v10455_v29 = vrot.slane %v10454_v23, 1  ;;  %v10468_v12 = vadd.f32 %v10467_v51, %v10466_v13  ;;  %v10488_v59 = vrot.slane %v10487_v49, 2  ;;  %v10118_v47 = vld [vmem:[#allocation3 + $0x98] sm:$0xff] }
 0x7f0   : > { %v10494_v30 = vadd.f32 %v10493_v48, %v16179_v1  ;;  %v10442_v24 = vadd.f32 %v10441_v33, %v10440_v10  ;;  %v10501_v44 = vadd.f32 %v10500_v63, %v16184_v8  ;;  %v10514_v28 = vrot.slane %v16194_v14, 4 }
 0x7f1   : > { %11665 = vadd.xlane.f32.xlu0 %v11664_v58  ;;  %v10449_v9 = vadd.f32 %v10448_v7, %v10447_v0  ;;  %v10462_v55 = vrot.slane %v10461_v4, 1  ;;  %v10475_v18 = vadd.f32 %v10474_v5, %v10473_v60  ;;  %v10482_v42 = vadd.f32 %v10481_v45, %v10480_v43 }
 0x7f2   : > { %v16208_v50 = vadd.f32 %v16617_v32, %v10117_v39  ;;  %v10508_v58 = vadd.f32 %v10507_v15, %v16189_v35  ;;  %v10521_v13 = vrot.slane %v16198_v19, 4  ;;  %v10528_v51 = vrot.slane %v16201_v54, 4 }
 0x7f3   : > { %v10456_v48 = vadd.f32 %v10455_v29, %v10454_v23  ;;  %v10469_v10 = vrot.slane %v10468_v12, 1  ;;  %v10489_v33 = vadd.f32 %v10488_v59, %v10487_v49  ;;  %v10495_v63 = vrot.slane %v10494_v30, 2 }
 0x7f4   : > { %v16214_v46 = vadd.f32 %v16618_v38, %v10118_v47  ;;  %v10502_v0 = vrot.slane %v10501_v44, 2  ;;  %v10515_v60 = vadd.f32 %v10514_v28, %v16194_v14  ;;  %v10548_v43 = vmul.f32 0.125, %v10442_v24 }
 0x7f5   : > { %v10463_v5 = vadd.f32 %v10462_v55, %v10461_v4  ;;  %v10476_v7 = vrot.slane %v10475_v18, 1  ;;  %v10483_v45 = vrot.slane %v10482_v42, 1  ;;  %v10549_v39 = vmul.f32 0.125, %v10449_v9 }
 0x7f6   : > { %v10509_v15 = vrot.slane %v10508_v58, 2  ;;  %v10522_v32 = vadd.f32 %v10521_v13, %v16198_v19  ;;  %v10529_v53 = vadd.f32 %v10528_v51, %v16201_v54  ;;  %v10535_v23 = vrot.slane %v16208_v50, 4 }
 0x7f7   : > { %v10470_v59 = vadd.f32 %v10469_v10, %v10468_v12  ;;  %v10490_v49 = vrot.slane %v10489_v33, 1  ;;  %v10496_v29 = vadd.f32 %v10495_v63, %v10494_v30  ;;  %v10550_v38 = vmul.f32 0.125, %v10456_v48 }
 0x7f8   : > { %v10503_v47 = vadd.f32 %v10502_v0, %v10501_v44  ;;  %v10516_v36 = vrot.slane %v10515_v60, 2  ;;  %v10542_v28 = vrot.slane %v16214_v46, 4  ;;  %v16222_v24 = vsub.f32 %v16085_v56, %v10548_v43 }
 0x7f9   : > { %v10477_v4 = vadd.f32 %v10476_v7, %v10475_v18  ;;  %v10484_v9 = vadd.f32 %v10483_v45, %v10482_v42  ;;  %v10551_v55 = vmul.f32 0.125, %v10463_v5  ;;  %v16225_v13 = vsub.f32 %v16092_v52, %v10549_v39 }
 0x7fa   : > { %v10510_v51 = vadd.f32 %v10509_v15, %v10508_v58  ;;  %v10523_v41 = vrot.slane %v10522_v32, 2  ;;  %v10530_v16 = vrot.slane %v10529_v53, 2  ;;  %v10536_v12 = vadd.f32 %v10535_v23, %v16208_v50 }
 0x7fb   : > { %v10491_v30 = vadd.f32 %v10490_v49, %v10489_v33  ;;  %v10497_v48 = vrot.slane %v10496_v29, 1  ;;  %v10552_v44 = vmul.f32 0.125, %v10470_v59  ;;  %v16229_v10 = vsub.f32 %v16110_v3, %v10550_v38 }
 0x7fc   : > { %v10504_v63 = vrot.slane %v10503_v47, 1  ;;  %v10517_v56 = vadd.f32 %v10516_v36, %v10515_v60  ;;  %v10543_v18 = vadd.f32 %v10542_v28, %v16214_v46  ;;  %v10868_v42 = vmul.f32 %v16222_v24, %v16222_v24 }
 0x7fd   : > { %v10553_v52 = vmul.f32 0.125, %v10477_v4  ;;  %v10554_v0 = vmul.f32 0.125, %v10484_v9  ;;  %v16235_v58 = vsub.f32 %v16123_v11, %v10551_v55  ;;  %v10869_v33 = vmul.f32 %v16225_v13, %v16225_v13 }
 0x7fe   : > { %v10511_v43 = vrot.slane %v10510_v51, 1  ;;  %v10524_v5 = vadd.f32 %v10523_v41, %v10522_v32  ;;  %v10531_v7 = vadd.f32 %v10530_v16, %v10529_v53  ;;  %v10537_v3 = vrot.slane %v10536_v12, 2 }
 0x7ff   : > { %v10498_v45 = vadd.f32 %v10497_v48, %v10496_v29  ;;  %v10555_v39 = vmul.f32 0.125, %v10491_v30  ;;  %v16240_v36 = vsub.f32 %v16134_v40, %v10552_v44  ;;  %v10870_v60 = vmul.f32 %v16229_v10, %v16229_v10 }
 0x800   : > { %v10505_v15 = vadd.f32 %v10504_v63, %v10503_v47  ;;  %v10518_v23 = vrot.slane %v10517_v56, 1  ;;  %v10544_v59 = vrot.slane %v10543_v18, 2  ;;  %v10885_v11 = vrot.slane %v10868_v42, 4 }
 0x801   : > { %v16245_v49 = vsub.f32 %v16146_v61, %v10553_v52  ;;  %v16248_v38 = vsub.f32 %v16150_v6, %v10554_v0  ;;  %v10871_v16 = vmul.f32 %v16235_v58, %v16235_v58  ;;  %v10892_v53 = vrot.slane %v10869_v33, 4 }
 0x802   : > { %v10512_v41 = vadd.f32 %v10511_v43, %v10510_v51  ;;  %v10525_v40 = vrot.slane %v10524_v5, 1  ;;  %v10532_v32 = vrot.slane %v10531_v7, 1  ;;  %v10538_v29 = vadd.f32 %v10537_v3, %v10536_v12 }
 0x803   : > { %v10556_v28 = vmul.f32 0.125, %v10498_v45  ;;  %v16253_v47 = vsub.f32 %v16166_v2, %v10555_v39  ;;  %v10872_v4 = vmul.f32 %v16240_v36, %v16240_v36  ;;  %v10899_v61 = vrot.slane %v10870_v60, 4 }
 0x804   : > { %v10519_v9 = vadd.f32 %v10518_v23, %v10517_v56  ;;  %v10545_v55 = vadd.f32 %v10544_v59, %v10543_v18  ;;  %v10557_v6 = vmul.f32 0.125, %v10505_v15  ;;  %v10886_v30 = vadd.f32 %v10885_v11, %v10868_v42 }
 0x805   : > { %v10873_v48 = vmul.f32 %v16245_v49, %v16245_v49  ;;  %v10874_v51 = vmul.f32 %v16248_v38, %v16248_v38  ;;  %v10893_v44 = vadd.f32 %v10892_v53, %v10869_v33  ;;  %v10906_v12 = vrot.slane %v10871_v16, 4 }
 0x806   : > { %v10526_v63 = vadd.f32 %v10525_v40, %v10524_v5  ;;  %v10533_v52 = vadd.f32 %v10532_v32, %v10531_v7  ;;  %v10539_v2 = vrot.slane %v10538_v29, 1  ;;  %v10558_v0 = vmul.f32 0.125, %v10512_v41 }
 0x807   : > { %v16262_v43 = vsub.f32 %v16179_v1, %v10556_v28  ;;  %v10875_v56 = vmul.f32 %v16253_v47, %v16253_v47  ;;  %v10900_v18 = vadd.f32 %v10899_v61, %v10870_v60  ;;  %v10913_v42 = vrot.slane %v10872_v4, 4 }
 0x808   : > { %v10546_v3 = vrot.slane %v10545_v55, 1  ;;  %v10559_v45 = vmul.f32 0.125, %v10519_v9  ;;  %v16267_v39 = vsub.f32 %v16184_v8, %v10557_v6  ;;  %v10887_v15 = vrot.slane %v10886_v30, 2 }
 0x809   : > { %v10894_v33 = vrot.slane %v10893_v44, 2  ;;  %v10907_v23 = vadd.f32 %v10906_v12, %v10871_v16  ;;  %v10920_v5 = vrot.slane %v10873_v48, 4  ;;  %v10927_v7 = vrot.slane %v10874_v51, 4 }
 0x80a   : > { %v10540_v59 = vadd.f32 %v10539_v2, %v10538_v29  ;;  %v10560_v11 = vmul.f32 0.125, %v10526_v63  ;;  %v10561_v53 = vmul.f32 0.125, %v10533_v52  ;;  %v16270_v1 = vsub.f32 %v16189_v35, %v10558_v0 }
 0x80b   : > { %v10876_v60 = vmul.f32 %v16262_v43, %v16262_v43  ;;  %v10901_v41 = vrot.slane %v10900_v18, 2  ;;  %v10914_v40 = vadd.f32 %v10913_v42, %v10872_v4  ;;  %v10934_v32 = vrot.slane %v10875_v56, 4 }
 0x80c   : > { %v10547_v28 = vadd.f32 %v10546_v3, %v10545_v55  ;;  %v16275_v8 = vsub.f32 %v16194_v14, %v10559_v45  ;;  %v10877_v16 = vmul.f32 %v16267_v39, %v16267_v39  ;;  %v10888_v61 = vadd.f32 %v10887_v15, %v10886_v30 }
 0x80d   : > { %v10895_v29 = vadd.f32 %v10894_v33, %v10893_v44  ;;  %v10908_v9 = vrot.slane %v10907_v23, 2  ;;  %v10921_v6 = vadd.f32 %v10920_v5, %v10873_v48  ;;  %v10928_v12 = vadd.f32 %v10927_v7, %v10874_v51 }
 0x80e   : > { %v10562_v35 = vmul.f32 0.125, %v10540_v59  ;;  %v16280_v63 = vsub.f32 %v16198_v19, %v10560_v11  ;;  %v16283_v52 = vsub.f32 %v16201_v54, %v10561_v53  ;;  %v10878_v4 = vmul.f32 %v16270_v1, %v16270_v1 }
 0x80f   : > { %v10902_v14 = vadd.f32 %v10901_v41, %v10900_v18  ;;  %v10915_v55 = vrot.slane %v10914_v40, 2  ;;  %v10935_v2 = vadd.f32 %v10934_v32, %v10875_v56  ;;  %v10941_v0 = vrot.slane %v10876_v60, 4 }
 0x810   : > { %16619 = vst [vmem:[#allocation51_spill] sm:$0xff] %v16280_v63  ;;  %16620 = vst [vmem:[#allocation52_spill] sm:$0xff] %v16283_v52  ;;  %v10563_v42 = vmul.f32 0.125, %v10547_v28  ;;  %v10879_v30 = vmul.f32 %v16275_v8, %v16275_v8  ;;  %v10889_v48 = vrot.slane %v10888_v61, 1  ;;  %v10948_v51 = vrot.slane %v10877_v16, 4 }
 0x811   : > { %v10896_v44 = vrot.slane %v10895_v29, 1  ;;  %v10909_v3 = vadd.f32 %v10908_v9, %v10907_v23  ;;  %v10922_v19 = vrot.slane %v10921_v6, 2  ;;  %v10929_v45 = vrot.slane %v10928_v12, 2 }
 0x812   : > { %v16290_v54 = vsub.f32 %v16208_v50, %v10562_v35  ;;  %v10880_v15 = vmul.f32 %v16280_v63, %v16280_v63  ;;  %v10881_v56 = vmul.f32 %v16283_v52, %v16283_v52  ;;  %v10955_v18 = vrot.slane %v10878_v4, 4 }
 0x813   : > { %v10903_v33 = vrot.slane %v10902_v14, 1  ;;  %v10916_v5 = vadd.f32 %v10915_v55, %v10914_v40  ;;  %v10936_v7 = vrot.slane %v10935_v2, 2  ;;  %v10942_v59 = vadd.f32 %v10941_v0, %v10876_v60 }
 0x814   : > { %16621 = vst [vmem:[#allocation53_spill] sm:$0xff] %v16290_v54  ;;  %v16297_v11 = vsub.f32 %v16214_v46, %v10563_v42  ;;  %v10890_v23 = vadd.f32 %v10889_v48, %v10888_v61  ;;  %v10949_v53 = vadd.f32 %v10948_v51, %v10877_v16  ;;  %v10962_v41 = vrot.slane %v10879_v30, 4 }
 0x815   : > { %v10897_v32 = vadd.f32 %v10896_v44, %v10895_v29  ;;  %v10910_v50 = vrot.slane %v10909_v3, 1  ;;  %v10923_v28 = vadd.f32 %v10922_v19, %v10921_v6  ;;  %v10930_v9 = vadd.f32 %v10929_v45, %v10928_v12 }
 0x816   : > { %16622 = vst [vmem:[#allocation54_spill] sm:$0xff] %v16297_v11  ;;  %v10882_v35 = vmul.f32 %v16290_v54, %v16290_v54  ;;  %v10956_v25 = vadd.f32 %v10955_v18, %v10878_v4  ;;  %v10969_v52 = vrot.slane %v10880_v15, 4  ;;  %v10976_v63 = vrot.slane %v10881_v56, 4 }
 0x817   : > { %v10904_v26 = vadd.f32 %v10903_v33, %v10902_v14  ;;  %v10917_v40 = vrot.slane %v10916_v5, 1  ;;  %v10937_v55 = vadd.f32 %v10936_v7, %v10935_v2  ;;  %v10943_v60 = vrot.slane %v10942_v59, 2 }
 0x818   : > { %v10883_v46 = vmul.f32 %v16297_v11, %v16297_v11  ;;  %v10950_v61 = vrot.slane %v10949_v53, 2  ;;  %v10963_v16 = vadd.f32 %v10962_v41, %v10879_v30  ;;  %v10996_v0 = vmul.f32 0.125, %v10890_v23 }
 0x819   : > { %v10911_v29 = vadd.f32 %v10910_v50, %v10909_v3  ;;  %v10924_v42 = vrot.slane %v10923_v28, 1  ;;  %v10931_v6 = vrot.slane %v10930_v9, 1  ;;  %v10997_v12 = vmul.f32 0.125, %v10897_v32 }
 0x81a   : > { %v10957_v48 = vrot.slane %v10956_v25, 2  ;;  %v10970_v51 = vadd.f32 %v10969_v52, %v10880_v15  ;;  %v10977_v44 = vadd.f32 %v10976_v63, %v10881_v56  ;;  %v10983_v4 = vrot.slane %v10882_v35, 4 }
 0x81b   : > { %v10918_v19 = vadd.f32 %v10917_v40, %v10916_v5  ;;  %v10938_v45 = vrot.slane %v10937_v55, 1  ;;  %v10944_v14 = vadd.f32 %v10943_v60, %v10942_v59  ;;  %v10998_v18 = vmul.f32 0.125, %v10904_v26 }
 0x81c   : > { %v10951_v2 = vadd.f32 %v10950_v61, %v10949_v53  ;;  %v10964_v33 = vrot.slane %v10963_v16, 2  ;;  %v10990_v7 = vrot.slane %v10883_v46, 4  ;;  %v11060_v54 = vadd.f32 1e-05, %v10996_v0 }
 0x81d   : > { %v10925_v11 = vadd.f32 %v10924_v42, %v10923_v28  ;;  %v10932_v17 = vadd.f32 %v10931_v6, %v10930_v9  ;;  %v10999_v30 = vmul.f32 0.125, %v10911_v29  ;;  %v11061_v23 = vadd.f32 1e-05, %v10997_v12 }
 0x81e   : > { %v10958_v3 = vadd.f32 %v10957_v48, %v10956_v25  ;;  %v10971_v41 = vrot.slane %v10970_v51, 2  ;;  %v10978_v50 = vrot.slane %v10977_v44, 2  ;;  %v10984_v32 = vadd.f32 %v10983_v4, %v10882_v35 }
 0x81f   : > { %v10939_v62 = vadd.f32 %v10938_v45, %v10937_v55  ;;  %v10945_v52 = vrot.slane %v10944_v14, 1  ;;  %v11000_v63 = vmul.f32 0.125, %v10918_v19  ;;  %v11062_v15 = vadd.f32 1e-05, %v10998_v18 }
 0x820   : > { %v10952_v56 = vrot.slane %v10951_v2, 1  ;;  %v10965_v5 = vadd.f32 %v10964_v33, %v10963_v16  ;;  %v10991_v59 = vadd.f32 %v10990_v7, %v10883_v46  ;;  %13174 = vrsqrt.f32 %v11060_v54 }
 0x821   : > { %v11001_v26 = vmul.f32 0.125, %v10925_v11  ;;  %v11063_v53 = vadd.f32 1e-05, %v10999_v30  ;;  %13176 = vrsqrt.f32 %v11061_v23  ;;  %v10959_v40 = vrot.slane %v10958_v3, 1 }
 0x822   : > { %v10972_v28 = vadd.f32 %v10971_v41, %v10970_v51  ;;  %v10979_v9 = vadd.f32 %v10978_v50, %v10977_v44  ;;  %v10985_v60 = vrot.slane %v10984_v32, 2  ;;  %v10946_v61 = vadd.f32 %v10945_v52, %v10944_v14 }
 0x823   : > { %v11002_v25 = vmul.f32 0.125, %v10932_v17  ;;  %v11064_v0 = vadd.f32 1e-05, %v11000_v63  ;;  %13178 = vrsqrt.f32 %v11062_v15  ;;  %v10953_v35 = vadd.f32 %v10952_v56, %v10951_v2 }
 0x824   : > { %v10966_v55 = vrot.slane %v10965_v5, 1  ;;  %v10992_v29 = vrot.slane %v10991_v59, 2  ;;  %v11003_v42 = vmul.f32 0.125, %v10939_v62  ;;  %v11065_v6 = vadd.f32 1e-05, %v11001_v26 }
 0x825   : > { %13180 = vrsqrt.f32 %v11063_v53  ;;  %v10960_v16 = vadd.f32 %v10959_v40, %v10958_v3  ;;  %v10973_v46 = vrot.slane %v10972_v28, 1  ;;  %v10986_v54 = vadd.f32 %v10985_v60, %v10984_v32 }
 0x826   : > { %v10980_v11 = vrot.slane %v10979_v9, 1  ;;  %v11004_v12 = vmul.f32 0.125, %v10946_v61  ;;  %v11066_v48 = vadd.f32 1e-05, %v11002_v25  ;;  %13182 = vrsqrt.f32 %v11064_v0  ;;  %v16623_v25 = vld [vmem:[#allocation61_spill] sm:$0xff] }
 0x827   : > { %v10967_v51 = vadd.f32 %v10966_v55, %v10965_v5  ;;  %v10993_v44 = vadd.f32 %v10992_v29, %v10991_v59  ;;  %v11005_v4 = vmul.f32 0.125, %v10953_v35  ;;  %v11067_v19 = vadd.f32 1e-05, %v11003_v42  ;;  %v16624_v35 = vld [vmem:[#allocation62_spill] sm:$0xff] }
 0x828   : > { %13184 = vrsqrt.f32 %v11065_v6  ;;  %v10974_v17 = vadd.f32 %v10973_v46, %v10972_v28  ;;  %v10987_v45 = vrot.slane %v10986_v54, 1  ;;  %v11006_v14 = vmul.f32 0.125, %v10960_v16 }
 0x829   : > { %v10981_v18 = vadd.f32 %v10980_v11, %v10979_v9  ;;  %v11068_v2 = vadd.f32 1e-05, %v11004_v12  ;;  %13186 = vrsqrt.f32 %v11066_v48  ;;  %v10994_v62 = vrot.slane %v10993_v44, 1  ;;  %v16625_v48 = vld [vmem:[#allocation39_spill] sm:$0xff] }
 0x82a   : > { %v11007_v33 = vmul.f32 0.125, %v10967_v51  ;;  %v11069_v7 = vadd.f32 1e-05, %v11005_v4  ;;  %13188 = vrsqrt.f32 %v11067_v19  ;;  %v10988_v3 = vadd.f32 %v10987_v45, %v10986_v54  ;;  %v16626_v19 = vld [vmem:[#allocation41_spill] sm:$0xff]  ;;  %v16627_v45 = vld [vmem:[#allocation43_spill] sm:$0xff] }
 0x82b   : > { %v11008_v41 = vmul.f32 0.125, %v10974_v17  ;;  %v11070_v50 = vadd.f32 1e-05, %v11006_v14  ;;  %13190 = vrsqrt.f32 %v11068_v2  ;;  %v10995_v52 = vadd.f32 %v10994_v62, %v10993_v44 }
 0x82c   : > { %v11009_v63 = vmul.f32 0.125, %v10981_v18  ;;  %v11071_v15 = vadd.f32 1e-05, %v11007_v33  ;;  %13192 = vrsqrt.f32 %v11069_v7  ;;  %v11010_v26 = vmul.f32 0.125, %v10988_v3  ;;  %v16628_v18 = vld [vmem:[#allocation68_spill] sm:$0xff]  ;;  %v16629_v7 = vld [vmem:[#allocation69_spill] sm:$0xff] }
 0x82d   : > { %v13175_v30 = vpop.eup %13174  ;;  %v11072_v53 = vadd.f32 1e-05, %v11008_v41  ;;  %13194 = vrsqrt.f32 %v11070_v50  ;;  %v11011_v9 = vmul.f32 0.125, %v10995_v52 }
 0x82e   : > { %v13177_v23 = vpop.eup %13176  ;;  %v11124_v56 = vmul.f32 %v13175_v30, %v16222_v24  ;;  %v11073_v60 = vadd.f32 1e-05, %v11009_v63  ;;  %13196 = vrsqrt.f32 %v11071_v15  ;;  %v11074_v24 = vadd.f32 1e-05, %v11010_v26 }
 0x82f   : > { %v11125_v5 = vmul.f32 %v13177_v23, %v16225_v13  ;;  %13198 = vrsqrt.f32 %v11072_v53  ;;  %v11075_v16 = vadd.f32 1e-05, %v11011_v9  ;;  %v16633_v53 = vld [vmem:[#allocation46_spill] sm:$0xff] }
 0x830   : > { %v13179_v32 = vpop.eup %13178  ;;  %v11238_v0 = vmul.f32 %v16623_v25, %v11124_v56  ;;  %13200 = vrsqrt.f32 %v11073_v60  ;;  %v16636_v25 = vld [vmem:[#allocation60_spill] sm:$0xff] }
 0x831   : > { %v11126_v40 = vmul.f32 %v13179_v32, %v16229_v10  ;;  %v11239_v55 = vmul.f32 %v16624_v35, %v11125_v5  ;;  %13202 = vrsqrt.f32 %v11074_v24  ;;  %v16630_v32 = vld [vmem:[#allocation70_spill] sm:$0xff]  ;;  %v16632_v5 = vld [vmem:[#allocation81_spill] sm:$0xff] }
 0x832   : > { %v13181_v59 = vpop.eup %13180  ;;  %13204 = vrsqrt.f32 %v11075_v16 }
 0x833   : > { %v13183_v28 = vpop.eup %13182  ;;  %v11127_v61 = vmul.f32 %v13181_v59, %v16235_v58  ;;  %v11240_v42 = vmul.f32 %v15814_v57, %v11126_v40  ;;  %v11352_v58 = vadd.f32 %v15856_v31, %v11238_v0  ;;  %v11353_v11 = vadd.f32 %v15859_v20, %v11239_v55  ;;  %v16637_v55 = vld [vmem:[#allocation49_spill] sm:$0xff] }
 0x834   : > { %v11128_v13 = vmul.f32 %v13183_v28, %v16240_v36  ;;  %v16634_v28 = vld [vmem:[#allocation71_spill] sm:$0xff] }
 0x835   : > { %v13185_v29 = vpop.eup %13184  ;;  %v11241_v54 = vmul.f32 %v15817_v37, %v11127_v61  ;;  %v11354_v36 = vadd.f32 %v15862_v22, %v11240_v42  ;;  %v11416_v17 = vmul.f32 0.01, %v11352_v58  ;;  %v11417_v31 = vmul.f32 0.01, %v11353_v11  ;;  %v16635_v61 = vld [vmem:[#allocation51_spill] sm:$0xff] }
 0x836   : > { %v13187_v6 = vpop.eup %13186  ;;  %v11129_v46 = vmul.f32 %v13185_v29, %v16245_v49  ;;  %v11242_v51 = vmul.f32 %v16625_v48, %v11128_v13  ;;  %vm11384_vm1 = vcmp.ge.f32.partialorder %v11352_v58, 0.0  ;;  %vm11385_vm2 = vcmp.ge.f32.partialorder %v11353_v11, 0.0  ;;  %v16638_v29 = vld [vmem:[#allocation72_spill] sm:$0xff]  ;;  %v16642_v48 = vld [vmem:[#allocation73_spill] sm:$0xff] }
 0x837   : > { %v13189_v10 = vpop.eup %13188  ;;  %v11130_v12 = vmul.f32 %v13187_v6, %v16248_v38  ;;  %v11355_v37 = vadd.f32 %v15865_v34, %v11241_v54  ;;  %v11418_v2 = vmul.f32 0.01, %v11354_v36  ;;  %vm11386_vm3 = vcmp.ge.f32.partialorder %v11354_v36, 0.0  ;;  %v16639_v6 = vld [vmem:[#allocation52_spill] sm:$0xff] }
 0x838   : > { %v13191_v57 = vpop.eup %13190  ;;  %v11131_v44 = vmul.f32 %v13189_v10, %v16253_v47  ;;  %v11243_v49 = vmul.f32 %v16626_v19, %v11129_v46  ;;  %v11356_v22 = vadd.f32 %v16628_v18, %v11242_v51  ;;  %v11448_v23 = vsel %vm11384_vm1, %v11352_v58, %v11416_v17  ;;  %v16640_v10 = vld [vmem:[#allocation82_spill] sm:$0xff]  ;;  %v16644_v19 = vld [vmem:[#allocation83_spill] sm:$0xff]  ;;  %v16645_v17 = vld [vmem:[#allocation64_spill] sm:$0xff] }
 0x839   : > { %v13193_v4 = vpop.eup %13192  ;;  %v11132_v38 = vmul.f32 %v13191_v57, %v16262_v43  ;;  %v11244_v14 = vmul.f32 %v16627_v45, %v11130_v12  ;;  %v11419_v30 = vmul.f32 0.01, %v11355_v37  ;;  %v11449_v3 = vsel %vm11385_vm2, %v11353_v11, %v11417_v31  ;;  %v16641_v11 = vld [vmem:[#allocation63_spill] sm:$0xff]  ;;  %v16647_v18 = vld [vmem:[#allocation54_spill] sm:$0xff] }
 0x83a   : > { %v13195_v20 = vpop.eup %13194  ;;  %v11133_v62 = vmul.f32 %v13193_v4, %v16267_v39  ;;  %v11245_v47 = vmul.f32 %v15829_v21, %v11131_v44  ;;  %v11357_v34 = vadd.f32 %v16629_v7, %v11243_v49  ;;  %vm11387_vm4 = vcmp.ge.f32.partialorder %v11355_v37, 0.0  ;;  %v16631_v21 = vld [vmem:[#allocation80_spill] sm:$0xff]  ;;  %v16643_v44 = vld [vmem:[#allocation53_spill] sm:$0xff] }
 0x83b   : > { %v13197_v33 = vpop.eup %13196  ;;  %v11134_v41 = vmul.f32 %v13195_v20, %v16270_v1  ;;  %v11246_v50 = vmul.f32 %v15832_v27, %v11132_v38  ;;  %v11358_v52 = vadd.f32 %v16630_v32, %v11244_v14  ;;  %v11420_v63 = vmul.f32 0.01, %v11356_v22  ;;  %v16646_v20 = vld [vmem:[#allocation74_spill] sm:$0xff] }
 0x83c   : > { %v13199_v43 = vpop.eup %13198  ;;  %v11450_v15 = vsel %vm11386_vm3, %v11354_v36, %v11418_v2  ;;  %v11135_v39 = vmul.f32 %v13197_v33, %v16275_v8  ;;  %vm11388_vm5 = vcmp.ge.f32.partialorder %v11356_v22, 0.0  ;;  %v11634_v56 = vmul.f32 %v16631_v21, %v11448_v23  ;;  %v16648_v2 = vld [vmem:[#allocation84_spill] sm:$0xff]  ;;  %v16649_v33 = vld [vmem:[#allocation65_spill] sm:$0xff]  ;;  %v16652_v32 = vld [vmem:[#allocation66_spill] sm:$0xff] }
 0x83d   : > { %v11635_v59 = vmul.f32 %v16632_v5, %v11449_v3  ;;  %v13201_v26 = vpop.eup %13200  ;;  %v11247_v40 = vmul.f32 %v16633_v53, %v11133_v62  ;;  %v11359_v1 = vadd.f32 %v16634_v28, %v11245_v47  ;;  %v11421_v9 = vmul.f32 0.01, %v11357_v34 }
 0x83e   : > { %v11451_v60 = vsel %vm11387_vm4, %v11355_v37, %v11419_v30  ;;  %v11136_v27 = vmul.f32 %v13199_v43, %v16635_v61  ;;  %vm11389_vm6 = vcmp.ge.f32.partialorder %v11357_v34, 0.0  ;;  %v11636_v0 = vmul.f32 %v16636_v25, %v11450_v15  ;;  %v13203_v35 = vpop.eup %13202  ;;  %v16653_v15 = vld [vmem:[#allocation76_spill] sm:$0xff]  ;;  %v16658_v25 = vld [vmem:[#allocation78_spill] sm:$0xff] }
 0x83f   : > { %v11248_v8 = vmul.f32 %v16637_v55, %v11134_v41  ;;  %v11360_v24 = vadd.f32 %v16638_v29, %v11246_v50  ;;  %v11422_v13 = vmul.f32 0.01, %v11358_v52  ;;  %v11452_v42 = vsel %vm11388_vm5, %v11356_v22, %v11420_v63  ;;  %v13205_v58 = vpop.eup %13204  ;;  %v16651_v41 = vld [vmem:[#allocation85_spill] sm:$0xff] }
 0x840   : > { %v11137_v16 = vmul.f32 %v13201_v26, %v16639_v6  ;;  %vm11390_vm7 = vcmp.ge.f32.partialorder %v11358_v52, 0.0  ;;  %v11637_v46 = vmul.f32 %v16640_v10, %v11451_v60  ;;  %v11667_v54 = vadd.f32 %v11635_v59, %v11634_v56  ;;  %v16654_v56 = vld [vmem:[#allocation86_spill] sm:$0xff]  ;;  %v16655_v26 = vld [vmem:[#allocation67_spill] sm:$0xff] }
 0x841   : > { %v11249_v12 = vmul.f32 %v16641_v11, %v11135_v39  ;;  %v11361_v51 = vadd.f32 %v16642_v48, %v11247_v40  ;;  %v11423_v36 = vmul.f32 0.01, %v11359_v1  ;;  %v11453_v57 = vsel %vm11389_vm6, %v11357_v34, %v11421_v9  ;;  %v16650_v34 = vld [vmem:[#allocation75_spill] sm:$0xff]  ;;  %v16656_v40 = vld [vmem:[#allocation77_spill] sm:$0xff]  ;;  %v16661_v10 = vld [vmem:[#allocation42_spill] sm:$0xff] }
 0x842   : > { %v11138_v4 = vmul.f32 %v13203_v35, %v16643_v44  ;;  %vm11391_vm8 = vcmp.ge.f32.partialorder %v11359_v1, 0.0  ;;  %v11638_v49 = vmul.f32 %v16644_v19, %v11452_v42  ;;  %v11668_v37 = vadd.f32 %v11667_v54, %v11636_v0  ;;  %v16657_v60 = vld [vmem:[#allocation87_spill] sm:$0xff]  ;;  %v16663_v44 = vld [vmem:[#allocation45_spill] sm:$0xff] }
 0x843   : > { %v11250_v31 = vmul.f32 %v16645_v17, %v11136_v27  ;;  %v11362_v38 = vadd.f32 %v16646_v20, %v11248_v8  ;;  %v11424_v45 = vmul.f32 0.01, %v11360_v24  ;;  %v11454_v14 = vsel %vm11390_vm7, %v11358_v52, %v11422_v13  ;;  %v16659_v8 = vld [vmem:[#allocation40_spill] sm:$0xff]  ;;  %v16660_v13 = vld [vmem:[#allocation79_spill] sm:$0xff] }
 0x844   : > { %v11139_v22 = vmul.f32 %v13205_v58, %v16647_v18  ;;  %vm11392_vm9 = vcmp.ge.f32.partialorder %v11360_v24, 0.0  ;;  %v11639_v62 = vmul.f32 %v16648_v2, %v11453_v57  ;;  %v11669_v47 = vadd.f32 %v11668_v37, %v11637_v46  ;;  %v16664_v37 = vld [vmem:[#allocation47_spill] sm:$0xff]  ;;  %v16666_v18 = vld [vmem:[#allocation50_spill] sm:$0xff] }
 0x845   : > { %v11251_v7 = vmul.f32 %v16649_v33, %v11137_v16  ;;  %v11363_v30 = vadd.f32 %v16650_v34, %v11249_v12  ;;  %v11425_v23 = vmul.f32 0.01, %v11361_v51  ;;  %v11455_v3 = vsel %vm11391_vm8, %v11359_v1, %v11423_v36  ;;  %v16662_v12 = vld [vmem:[#allocation44_spill] sm:$0xff]  ;;  %v12932_v33 = vld [vmem:[#allocation4] ss:$0 sm:$0xff] }
 0x846   : > { %vm11393_vm10 = vcmp.ge.f32.partialorder %v11361_v51, 0.0  ;;  %v11640_v43 = vmul.f32 %v16651_v41, %v11454_v14  ;;  %v11670_v50 = vadd.f32 %v11669_v47, %v11638_v49  ;;  %v11252_v63 = vmul.f32 %v16652_v32, %v11138_v4 }
 0x847   : > { %v11364_v52 = vadd.f32 %v16653_v15, %v11250_v31  ;;  %v11426_v39 = vmul.f32 0.01, %v11362_v38  ;;  %v11456_v21 = vsel %vm11392_vm9, %v11360_v24, %v11424_v45  ;;  %vm11394_vm11 = vcmp.ge.f32.partialorder %v11362_v38, 0.0 }
 0x848   : > { %v11641_v5 = vmul.f32 %v16654_v56, %v11455_v3  ;;  %v11671_v59 = vadd.f32 %v11670_v50, %v11639_v62  ;;  %v11253_v53 = vmul.f32 %v16655_v26, %v11139_v22  ;;  %v11365_v28 = vadd.f32 %v16656_v40, %v11251_v7 }
 0x849   : > { %v11427_v9 = vmul.f32 0.01, %v11363_v30  ;;  %v11457_v1 = vsel %vm11393_vm10, %v11361_v51, %v11425_v23  ;;  %vm11395_vm12 = vcmp.ge.f32.partialorder %v11363_v30, 0.0  ;;  %v11642_v61 = vmul.f32 %v16657_v60, %v11456_v21 }
 0x84a   : > { %v11672_v27 = vadd.f32 %v11671_v59, %v11640_v43  ;;  %v11366_v0 = vadd.f32 %v16658_v25, %v11252_v63  ;;  %v11428_v35 = vmul.f32 0.01, %v11364_v52  ;;  %v11458_v55 = vsel %vm11394_vm11, %v11362_v38, %v11426_v39  ;;  %v16665_v38 = vld [vmem:[#allocation48_spill] sm:$0xff] }
 0x84b   : > { %vm11396_vm13 = vcmp.ge.f32.partialorder %v11364_v52, 0.0  ;;  %v11643_v29 = vmul.f32 %v16659_v8, %v11457_v1  ;;  %v11367_v42 = vadd.f32 %v16660_v13, %v11253_v53  ;;  %v11429_v6 = vmul.f32 0.01, %v11365_v28 }
 0x84c   : > { %v11673_v24 = vadd.f32 %v11672_v27, %v11641_v5  ;;  %v11459_v16 = vsel %vm11395_vm12, %v11363_v30, %v11427_v9  ;;  %vm11397_vm14 = vcmp.ge.f32.partialorder %v11365_v28, 0.0  ;;  %v11644_v46 = vmul.f32 %v16661_v10, %v11458_v55 }
 0x84d   : > { %v11430_v58 = vmul.f32 0.01, %v11366_v0  ;;  %v11460_v11 = vsel %vm11396_vm13, %v11364_v52, %v11428_v35  ;;  %vm11398_vm15 = vcmp.ge.f32.partialorder %v11366_v0, 0.0  ;;  %v11645_v48 = vmul.f32 %v16662_v12, %v11459_v16 }
 0x84e   : > { %v11674_v54 = vadd.f32 %v11673_v24, %v11642_v61  ;;  %v11431_v36 = vmul.f32 0.01, %v11367_v42  ;;  %v11461_v57 = vsel %vm11397_vm14, %v11365_v28, %v11429_v6  ;;  %vm11399_vm0 = vcmp.ge.f32.partialorder %v11367_v42, 0.0 }
 0x84f   : > { %v11646_v4 = vmul.f32 %v16663_v44, %v11460_v11  ;;  %v11462_v49 = vsel %vm11398_vm15, %v11366_v0, %v11430_v58  ;;  %v11647_v17 = vmul.f32 %v16664_v37, %v11461_v57  ;;  %vm11705_vm1 = vcmask 7168  }
 0x850   : > { %v11675_v51 = vadd.f32 %v11674_v54, %v11643_v29  ;;  %v11463_v20 = vsel %vm11399_vm0, %v11367_v42, %v11431_v36  ;;  %v11648_v45 = vmul.f32 %v16665_v38, %v11462_v49 }
 0x851   : > { %v11649_v22 = vmul.f32 %v16666_v18, %v11463_v20 }
 0x852   : > { %v11676_v19 = vadd.f32 %v11675_v51, %v11644_v46 }
 0x854   : > { %v11677_v31 = vadd.f32 %v11676_v19, %v11645_v48 }
 0x856   : > { %v11678_v14 = vadd.f32 %v11677_v31, %v11646_v4 }
 0x858   : > { %v11679_v2 = vadd.f32 %v11678_v14, %v11647_v17 }
 0x85a   : > { %v11680_v62 = vadd.f32 %v11679_v2, %v11648_v45 }
 0x85c   : > { %v11681_v47 = vadd.f32 %v11680_v62, %v11649_v22 }
 0x85e   : > { %11682 = vadd.xlane.f32.xlu0 %v11681_v47 }
 0x87a   : > { %v11666_v7 = vpop.xlane.xlu0 %11665 }
 0x87b   : > { %v11691_v34 = vadd.f32 %v12932_v33, %v11666_v7 }
 0x87d   : > { %v12933_v30 = vmul.f32 -1.442695, %v11691_v34 }
 0x87f   : > { %13206 = vpow2.f32 %v12933_v30 }
 0x88c   : > { %v13207_v23 = vpop.eup %13206 }
 0x88d   : > { %v11699_v3 = vadd.f32 1.0, %v13207_v23 }
 0x88f   : > { %13208 = vrcp.f32 %v11699_v3 }
 0x89c   : > { %v13209_v41 = vpop.eup %13208 }
 0x89d   : > { %11706 = vst.msk [vmem:[%s16397_s11] sm:$0xff] %vm11705_vm1, %v13209_v41 }
 0x8e7   : > { %v11683_v43 = vpop.xlane.xlu0 %11682 }
 0x8e8   : > { %v11692_v50 = vadd.f32 %v12932_v33, %v11683_v43 }
 0x8ea   : > { %v12934_v32 = vmul.f32 -1.442695, %v11692_v50 }
 0x8ec   : > { %13210 = vpow2.f32 %v12934_v32 }
 0x8f9   : > { %v13211_v63 = vpop.eup %13210 }
 0x8fa   : > { %v11700_v15 = vadd.f32 1.0, %v13211_v63 }
 0x8fc   : > { %13212 = vrcp.f32 %v11700_v15 }
 0x909   : > { %v13213_v52 = vpop.eup %13212 }
 0x90a   : > { %11707 = vst.msk [vmem:[%s16397_s11 + $0x8] sm:$0xff] %vm11705_vm1, %v13213_v52 }
 0x90b PF: > { %p28_p3 = scmp.ge.s32.totalorder %s13734_s12, 4   ;;  %s16667_s19 = smov %s13526_s20 }
 0x90c   : > { %s16668_s20 = smov %s13530_s21  ;;  %s16669_s21 = smov %s13745_s13 }
 0x90d   : > { %s16670_s22 = smov %s13734_s12  ;;  %30 = sbr.rel (!%p28_p3) target bundleno = 11 (0xb), region = 146 }
 0x912   :  { %11719 = vsyncpa [#allocation6], 1 }
 0x913   :  { %11721 = vsyncpa [#allocation6 + $0x1], 1 }
 0x914   :  { %11722 = vsyncpa [#allocation8], 1 }
 0x915   :  { %11723 = vsyncpa [#allocation11], 1 }
 0x916   :  { %11724 = vsyncpa [#allocation14], 1 }
 0x917   :  { %11726 = vsyncpa [#allocation14 + $0x1], 1 }
 0x918   :  { %11727 = vsyncpa [#allocation17], 1 }
 0x919   :  { %11728 = vsyncpa [#allocation20], 1 }

</bundles_post_ra>
